<compile_context>
chip_gen: v5e
topology: v5e:2x2
jax: 0.10.0
libtpu: 0.0.40
codegen_flags: <defaults>
</compile_context>

<pallas_src>
import functools

import jax
import jax.numpy as jnp
from jax.experimental import pallas as pl
from jax.experimental.pallas import tpu as pltpu

LANE = 128


def _round_up(v, m=LANE):
    return ((v + m - 1) // m) * m


def _pick_tile(dim, candidates):
    for c in candidates:
        if dim % c == 0:
            return c
    return dim


# timm's make_divisible (used for rd_channels).
def make_divisible(v, divisor=8, min_value=None, round_limit=0.9):
    min_value = min_value or divisor
    new_v = max(min_value, int(v + divisor / 2) // divisor * divisor)
    if new_v < round_limit * v:
        new_v += divisor
    return new_v


# ----------------------------------------------------------------------------
# Kernel 1: tiled matmul + folded BN + SiLU  (cv1: 1x1 conv, eval-mode BN)
#   grid = (M/tm, N/tn, K/tk), f32 accumulator in VMEM scratch, bf16 operands.
# ----------------------------------------------------------------------------
def _mm_bn_silu_kernel(x_ref, w_ref, s_ref, b_ref, o_ref, acc_ref):
    @pl.when(pl.program_id(2) == 0)
    def _():
        acc_ref[...] = jnp.zeros_like(acc_ref)

    acc_ref[...] += jnp.dot(x_ref[...], w_ref[...],
                            preferred_element_type=jnp.float32)

    @pl.when(pl.program_id(2) == pl.num_programs(2) - 1)
    def _():
        y = acc_ref[...] * s_ref[...] + b_ref[...]          # folded BN (f32)
        o_ref[...] = (y * jax.nn.sigmoid(y)).astype(o_ref.dtype)   # SiLU, cast on store


def conv1x1_bn_silu(x2d, w2d, scale, bias, out_dtype=jnp.bfloat16):
    M, K = x2d.shape
    K2, N = w2d.shape
    assert K == K2
    tm = _pick_tile(M, (512, 256, 128, 64, 32, 16, 8))
    tn = _pick_tile(N, (256, 128))
    tk = _pick_tile(K, (512, 256, 128))
    grid = (M // tm, N // tn, K // tk)
    return pl.pallas_call(
        _mm_bn_silu_kernel,
        out_shape=jax.ShapeDtypeStruct((M, N), out_dtype),
        grid=grid,
        in_specs=[
            pl.BlockSpec((tm, tk), lambda i, j, k: (i, k)),
            pl.BlockSpec((tk, tn), lambda i, j, k: (k, j)),
            pl.BlockSpec((1, tn), lambda i, j, k: (0, j)),
            pl.BlockSpec((1, tn), lambda i, j, k: (0, j)),
        ],
        out_specs=pl.BlockSpec((tm, tn), lambda i, j, k: (i, j)),
        scratch_shapes=[pltpu.VMEM((tm, tn), jnp.float32)],
        compiler_params=pltpu.CompilerParams(
            dimension_semantics=("parallel", "parallel", "arbitrary"),
            vmem_limit_bytes=48 * 1024 * 1024),
        cost_estimate=pl.CostEstimate(
            flops=2 * M * K * N, transcendentals=M * N,
            bytes_accessed=2 * (M * K + K * N + M * N)),
    )(x2d, w2d, scale, bias)


# ----------------------------------------------------------------------------
# Kernel 2: 3x3 conv + folded BN + SiLU via in-kernel 9-tap accumulation.
#   Input is the spatially padded y1 (B, H+2, W+2, Cin_p); no HBM im2col tensor.
#   grid = (B, Cout_p/tn); f32 accumulator in VMEM scratch.
# ----------------------------------------------------------------------------
def _conv3x3_bn_silu_kernel(xp_ref, w_ref, s_ref, b_ref, o_ref, acc_ref, *, H, W):
    cin = xp_ref.shape[-1]
    acc_ref[...] = jnp.zeros_like(acc_ref)
    for t in range(9):                                   # static unroll over the 9 taps
        dy, dx = t // 3, t % 3
        xs = xp_ref[:, dy:dy + H, dx:dx + W, :].reshape(H * W, cin)   # shifted window
        acc_ref[...] += jnp.dot(xs, w_ref[t], preferred_element_type=jnp.float32)
    y = acc_ref[...] * s_ref[...] + b_ref[...]
    o_ref[0] = (y * jax.nn.sigmoid(y)).astype(o_ref.dtype)


def conv3x3_bn_silu(y1_padded, w9, scale, bias, H, W, out_dtype=jnp.bfloat16):
    # TODO(synk): for large feature maps, tile over output rows (1-row halo) instead of
    # one whole padded image per grid step, to keep the block small on v7x (64 MiB VMEM).
    B, Hp2, Wp2, Cin = y1_padded.shape
    _, _, Cout = w9.shape
    tn = _pick_tile(Cout, (256, 128))
    kern = functools.partial(_conv3x3_bn_silu_kernel, H=H, W=W)
    return pl.pallas_call(
        kern,
        out_shape=jax.ShapeDtypeStruct((B, H * W, Cout), out_dtype),
        grid=(B, Cout // tn),
        in_specs=[
            pl.BlockSpec((1, Hp2, Wp2, Cin), lambda b, j: (b, 0, 0, 0)),
            pl.BlockSpec((9, Cin, tn), lambda b, j: (0, 0, j)),
            pl.BlockSpec((1, tn), lambda b, j: (0, j)),
            pl.BlockSpec((1, tn), lambda b, j: (0, j)),
        ],
        out_specs=pl.BlockSpec((1, H * W, tn), lambda b, j: (b, 0, j)),
        scratch_shapes=[pltpu.VMEM((H * W, tn), jnp.float32)],
        compiler_params=pltpu.CompilerParams(
            dimension_semantics=("parallel", "parallel"),
            vmem_limit_bytes=48 * 1024 * 1024),
        cost_estimate=pl.CostEstimate(
            flops=2 * B * H * W * 9 * Cin * Cout,
            transcendentals=B * H * W * Cout,
            bytes_accessed=2 * (B * Hp2 * Wp2 * Cin + 9 * Cin * Cout + B * H * W * Cout)),
    )(y1_padded, w9, scale, bias)


# ----------------------------------------------------------------------------
# Kernel 3: GlobalContext — softmax attention pooling (MXU dots) + ConvMlp
#            (fc1 -> LayerNorm -> ReLU -> fc2) + sigmoid gate + residual add.
#   One grid step per batch element; y2 is (HW, Cp) bf16, residual/output f32.
# ----------------------------------------------------------------------------
def _gc_gate_kernel(y2_ref, xres_ref, wat_ref, wf1_ref, bf1_ref,
                    lnw_ref, lnb_ref, wf2_ref, bf2_ref, o_ref,
                    *, add_residual, ln_eps):
    y2 = y2_ref[0]                                                     # (HW, Cp) bf16

    # conv_attn logits on the MXU: (HW, Cp) @ (Cp, 1).  (conv_attn bias dropped:
    # it is constant over HW, hence softmax-invariant.)
    logits = jnp.dot(y2, wat_ref[...], preferred_element_type=jnp.float32)   # (HW, 1)

    # softmax over spatial positions (column orientation, cross-sublane reductions)
    m = jnp.max(logits, axis=0, keepdims=True)
    p = jnp.exp(logits - m)                                            # (HW, 1) f32
    denom = jnp.sum(p, axis=0, keepdims=True)                          # (1, 1)

    # context pooling on the MXU: p^T @ y2 via transposed-lhs dot_general -> (1, Cp)
    ctx = jax.lax.dot_general(p.astype(y2.dtype), y2,
                              dimension_numbers=(((0,), (0,)), ((), ())),
                              preferred_element_type=jnp.float32)
    ctx = ctx * pl.reciprocal(denom, approx=True)                      # normalize

    # ConvMlp: fc1 -> LayerNorm (over rd channels) -> ReLU -> fc2
    h = jnp.dot(ctx, wf1_ref[...], preferred_element_type=jnp.float32) + bf1_ref[...]
    mu = jnp.mean(h, axis=-1, keepdims=True)
    var = jnp.mean((h - mu) ** 2, axis=-1, keepdims=True)
    h = (h - mu) * jax.lax.rsqrt(var + ln_eps)
    h = h * lnw_ref[...] + lnb_ref[...]
    h = jnp.maximum(h, 0.0)
    g = jnp.dot(h, wf2_ref[...], preferred_element_type=jnp.float32) + bf2_ref[...]
    gate = jax.nn.sigmoid(g)                                           # (1, Cp)

    out = y2.astype(jnp.float32) * gate                                # broadcast over HW
    if add_residual:
        out = out + xres_ref[0]
    o_ref[0] = out.astype(o_ref.dtype)


def gc_gate(y2, xres, P, add_residual):
    # TODO(synk): for very large H*W*C, tile the HW axis (two-pass / online softmax)
    # so the per-batch block fits v7x's smaller VMEM and regains pipelining.
    B, HW, Cp = y2.shape
    rd = P["rd"]
    kern = functools.partial(_gc_gate_kernel, add_residual=add_residual, ln_eps=1e-5)

    def full(shape):
        return pl.BlockSpec(shape, lambda b: (0,) * len(shape))

    return pl.pallas_call(
        kern,
        out_shape=jax.ShapeDtypeStruct((B, HW, Cp), jnp.float32),
        grid=(B,),
        in_specs=[
            pl.BlockSpec((1, HW, Cp), lambda b: (b, 0, 0)),   # y2 (bf16)
            pl.BlockSpec((1, HW, Cp), lambda b: (b, 0, 0)),   # residual x (f32)
            full((Cp, 1)),     # conv_attn weight (column)
            full((Cp, rd)),    # fc1 weight
            full((1, rd)),     # fc1 bias
            full((1, rd)),     # LayerNorm weight
            full((1, rd)),     # LayerNorm bias
            full((rd, Cp)),    # fc2 weight
            full((1, Cp)),     # fc2 bias
        ],
        out_specs=pl.BlockSpec((1, HW, Cp), lambda b: (b, 0, 0)),
        compiler_params=pltpu.CompilerParams(dimension_semantics=("parallel",)),
    )(y2, xres, P["wat_col"], P["wf1_p"], P["bf1"], P["lnw"], P["lnb"],
      P["wf2_p"], P["bf2_p"])


# ----------------------------------------------------------------------------
# Parameter init (deterministic, synthetic). BN folded (eval mode). Also builds
# channel-padded, transposed, bf16 kernel-layout copies of the weights.
# ----------------------------------------------------------------------------
def init_params(key, c1, c2, e=0.5):
    c_ = int(c2 * e)
    rd = make_divisible(c2 * (1.0 / 8), 1, round_limit=0.0)
    assert c_ > 0 and rd > 0
    ks = jax.random.split(key, 16)
    f32, bf16 = jnp.float32, jnp.bfloat16

    w1 = 0.3 * jax.random.normal(ks[0], (c_, c1, 1, 1), f32)          # cv1 conv (OIHW)
    g1 = 1.0 + 0.1 * jax.random.normal(ks[1], (c_,), f32)
    b1 = 0.1 * jax.random.normal(ks[2], (c_,), f32)
    m1 = 0.1 * jax.random.normal(ks[3], (c_,), f32)
    v1 = 1.0 + 0.2 * jax.random.uniform(ks[4], (c_,), f32)

    w2 = 0.2 * jax.random.normal(ks[5], (c2, c_, 3, 3), f32)          # cv2 conv (OIHW)
    g2 = 1.0 + 0.1 * jax.random.normal(ks[6], (c2,), f32)
    b2 = 0.1 * jax.random.normal(ks[7], (c2,), f32)
    m2 = 0.1 * jax.random.normal(ks[8], (c2,), f32)
    v2 = 1.0 + 0.2 * jax.random.uniform(ks[9], (c2,), f32)

    # GlobalContext: conv_attn (kaiming fan_in), ConvMlp (scale branch).
    wat = (2.0 / c2) ** 0.5 * jax.random.normal(ks[10], (1, c2), f32)
    wf1 = 0.3 * jax.random.normal(ks[11], (c2, rd), f32)
    bf1 = 0.1 * jax.random.normal(ks[12], (1, rd), f32)
    lnw = jnp.ones((1, rd), f32)
    lnb = jnp.zeros((1, rd), f32)
    wf2 = 0.3 * jax.random.normal(ks[13], (rd, c2), f32)
    bf2 = 0.1 * jax.random.normal(ks[14], (1, c2), f32)

    eps_bn = 1e-5
    s1 = g1 / jnp.sqrt(v1 + eps_bn); t1 = b1 - m1 * s1
    s2 = g2 / jnp.sqrt(v2 + eps_bn); t2 = b2 - m2 * s2

    # kernel-layout (lane-padded) copies
    c1p, c_p, c2p = _round_up(c1), _round_up(c_), _round_up(c2)

    w1t = jnp.transpose(w1[:, :, 0, 0], (1, 0))                                   # (c1, c_)
    w1t_p = jnp.zeros((c1p, c_p), f32).at[:c1, :c_].set(w1t).astype(bf16)
    s1_p = jnp.zeros((1, c_p), f32).at[0, :c_].set(s1)
    t1_p = jnp.zeros((1, c_p), f32).at[0, :c_].set(t1)

    w2t = jnp.transpose(w2, (2, 3, 1, 0)).reshape(9, c_, c2)                      # (tap, cin, cout)
    w2t_p = jnp.zeros((9, c_p, c2p), f32).at[:, :c_, :c2].set(w2t).astype(bf16)
    s2_p = jnp.zeros((1, c2p), f32).at[0, :c2].set(s2)
    t2_p = jnp.zeros((1, c2p), f32).at[0, :c2].set(t2)

    wat_col = jnp.zeros((c2p, 1), f32).at[:c2, 0].set(wat[0]).astype(bf16)
    wf1_p = jnp.zeros((c2p, rd), f32).at[:c2, :].set(wf1)
    wf2_p = jnp.zeros((rd, c2p), f32).at[:, :c2].set(wf2)
    bf2_p = jnp.zeros((1, c2p), f32).at[:, :c2].set(bf2)

    return dict(
        c_=c_, c2=c2, rd=rd, c1p=c1p, c_p=c_p, c2p=c2p,
        # reference (original-layout) params
        w1_oihw=w1, w2_oihw=w2, s1=s1, t1=t1, s2=s2, t2=t2,
        wat=wat, wf1=wf1, bf1=bf1, lnw=lnw, lnb=lnb, wf2=wf2, bf2=bf2,
        # kernel params
        w1t_p=w1t_p, s1_p=s1_p, t1_p=t1_p,
        w2t_p=w2t_p, s2_p=s2_p, t2_p=t2_p,
        wat_col=wat_col, wf1_p=wf1_p, wf2_p=wf2_p, bf2_p=bf2_p,
    )


# ----------------------------------------------------------------------------
# Full GlobalC_Bottleneck forward (Pallas path).
# ----------------------------------------------------------------------------
def global_c_bottleneck_pallas(x_nchw, P, shortcut=True):
    B, C1, H, W = x_nchw.shape
    c2, c_p, c2p, c1p = P["c2"], P["c_p"], P["c2p"], P["c1p"]

    x = jnp.transpose(x_nchw, (0, 2, 3, 1)).astype(jnp.float32)              # NHWC
    xp = jnp.pad(x, ((0, 0), (0, 0), (0, 0), (0, c1p - C1)))                 # lane-pad channels

    # cv1: 1x1 Conv + BN + SiLU — tiled, pipelined MXU matmul (bf16 in/out, f32 acc)
    y1 = conv1x1_bn_silu(xp.reshape(B * H * W, c1p).astype(jnp.bfloat16),
                         P["w1t_p"], P["s1_p"], P["t1_p"])
    y1 = y1.reshape(B, H, W, c_p)

    # cv2: 3x3 Conv (pad=1) + BN + SiLU — 9 taps accumulated inside the kernel
    y1sp = jnp.pad(y1, ((0, 0), (1, 1), (1, 1), (0, 0)))                     # spatial halo only
    y2 = conv3x3_bn_silu(y1sp, P["w2t_p"], P["s2_p"], P["t2_p"], H, W)       # (B, HW, c2p) bf16

    # GlobalContext attention + gate (+ bottleneck residual) — fused Pallas kernel
    add = bool(shortcut) and (C1 == c2)
    if add:
        xres = xp.reshape(B, H * W, c1p)        # c1p == c2p since C1 == c2
    else:
        xres = jnp.zeros((B, H * W, c2p), jnp.float32)
    out = gc_gate(y2, xres, P, add)                                          # (B, HW, c2p) f32

    out = out[:, :, :c2].reshape(B, H, W, c2)
    return jnp.transpose(out, (0, 3, 1, 2))                                  # back to NCHW


# ----------------------------------------------------------------------------
# Pure-JAX reference (mirrors the kernels' bf16 storage of activations/weights).
# ----------------------------------------------------------------------------
def reference_forward(x_nchw, P, shortcut=True):
    f32, bf16 = jnp.float32, jnp.bfloat16

    def conv_bn_silu_ref(x, w_oihw, s, t, pad):
        y = jax.lax.conv_general_dilated(
            x.astype(bf16), w_oihw.astype(bf16), (1, 1), [(pad, pad), (pad, pad)],
            dimension_numbers=("NCHW", "OIHW", "NCHW"),
            preferred_element_type=f32)
        y = y * s[None, :, None, None] + t[None, :, None, None]
        y = y * jax.nn.sigmoid(y)
        return y.astype(bf16).astype(f32)     # kernels store bf16 intermediates

    y1 = conv_bn_silu_ref(x_nchw, P["w1_oihw"], P["s1"], P["t1"], 0)
    y2 = conv_bn_silu_ref(y1, P["w2_oihw"], P["s2"], P["t2"], 1)
    B, C, H, W = y2.shape
    wat = P["wat"].astype(bf16).astype(f32)[0]
    logits = jnp.einsum("bchw,c->bhw", y2, wat)       # conv_attn bias is softmax-invariant
    attn = jax.nn.softmax(logits.reshape(B, H * W), axis=-1)
    context = jnp.einsum("bcs,bs->bc", y2.reshape(B, C, H * W), attn)
    h = context @ P["wf1"] + P["bf1"]
    mu = h.mean(-1, keepdims=True)
    var = ((h - mu) ** 2).mean(-1, keepdims=True)
    h = (h - mu) / jnp.sqrt(var + 1e-5) * P["lnw"] + P["lnb"]
    h = jnp.maximum(h, 0.0)
    gate = jax.nn.sigmoid(h @ P["wf2"] + P["bf2"])
    out = y2 * gate[:, :, None, None]
    if shortcut and x_nchw.shape[1] == C:
        out = out + x_nchw
    return out


if __name__ == "__main__":
    key = jax.random.PRNGKey(0)
    kx, kp = jax.random.split(key)

    # Small shapes consistent with the module: c1 == c2 so the shortcut branch runs.
    B, C, H, W = 2, 16, 16, 16
    x = jax.random.normal(kx, (B, C, H, W), jnp.float32)
    P = init_params(kp, C, C, e=0.5)

    fwd = jax.jit(lambda xx: global_c_bottleneck_pallas(xx, P, shortcut=True))
    out = jax.block_until_ready(fwd(x))
    ref = jax.block_until_ready(reference_forward(x, P, shortcut=True))

    assert out.shape == x.shape
    assert bool(jnp.all(jnp.isfinite(out)))
    max_err = float(jnp.max(jnp.abs(out - ref)))
    assert bool(jnp.allclose(out, ref, rtol=2e-2, atol=2e-2)), f"max_err={max_err}"

    print("KERNEL_OK")
</pallas_src>

<mosaic_0001>
module attributes {stable_mosaic.version = 11 : i64} {
  func.func @_mm_bn_silu_kernel(%arg0: i32, %arg1: i32, %arg2: i32, %arg3: memref<512x128xbf16, #tpu.memory_space<vmem>>, %arg4: memref<128x128xbf16, #tpu.memory_space<vmem>>, %arg5: memref<1x128xf32, #tpu.memory_space<vmem>>, %arg6: memref<1x128xf32, #tpu.memory_space<vmem>>, %arg7: memref<512x128xbf16, #tpu.memory_space<vmem>>, %arg8: memref<512x128xf32, #tpu.memory_space<vmem>>) attributes {dimension_semantics = [#tpu.dimension_semantics<parallel>, #tpu.dimension_semantics<parallel>, #tpu.dimension_semantics<arbitrary>], iteration_bounds = array<i64: 1, 1, 1>, scalar_prefetch = 0 : i64, scratch_operands = 1 : i64, tpu.core_type = #tpu.core_type<tc>, window_params = [{transform_indices = @transform_0, window_bounds = array<i64: 512, 128>}, {transform_indices = @transform_1, window_bounds = array<i64: 128, 128>}, {transform_indices = @transform_2, window_bounds = array<i64: 1, 128>}, {transform_indices = @transform_3, window_bounds = array<i64: 1, 128>}, {transform_indices = @transform_4, window_bounds = array<i64: 512, 128>}]} {
    %c0_i32 = arith.constant 0 : i32
    %0 = arith.cmpi eq, %arg2, %c0_i32 : i32
    %1 = arith.extui %0 : i1 to i32
    %c0_i32_0 = arith.constant 0 : i32
    %2 = arith.cmpi ne, %1, %c0_i32_0 : i32
    scf.if %2 {
      %cst_10 = arith.constant 0.000000e+00 : f32
      %12 = vector.broadcast %cst_10 : f32 to vector<512x128xf32>
      %c0_11 = arith.constant 0 : index
      %c0_12 = arith.constant 0 : index
      %13 = vector.load %arg8[%c0_11, %c0_12] : memref<512x128xf32, #tpu.memory_space<vmem>>, vector<512x128xf32>
      tpu.vector_store %arg8[%c0_11, %c0_12], %12 {strides = array<i32>} : memref<512x128xf32, #tpu.memory_space<vmem>>, vector<512x128xf32>,
    } else {
    }
    %c0 = arith.constant 0 : index
    %c0_1 = arith.constant 0 : index
    %3 = vector.load %arg8[%c0, %c0_1] : memref<512x128xf32, #tpu.memory_space<vmem>>, vector<512x128xf32>
    %c0_2 = arith.constant 0 : index
    %c0_3 = arith.constant 0 : index
    %4 = vector.load %arg3[%c0_2, %c0_3] : memref<512x128xbf16, #tpu.memory_space<vmem>>, vector<512x128xbf16>
    %c0_4 = arith.constant 0 : index
    %c0_5 = arith.constant 0 : index
    %5 = vector.load %arg4[%c0_4, %c0_5] : memref<128x128xbf16, #tpu.memory_space<vmem>>, vector<128x128xbf16>
    %cst = arith.constant dense<0.000000e+00> : vector<512x128xf32>
    %6 = tpu.matmul %4, %5, %cst {dimension_numbers = #tpu.dot_dimension_numbers<[1], [0], [0], [1], [0, 0, 1, 1], [], []>} : vector<512x128xbf16>, vector<128x128xbf16>, vector<512x128xf32> -> vector<512x128xf32>
    %7 = arith.addf %3, %6 : vector<512x128xf32>
    %c0_6 = arith.constant 0 : index
    %c0_7 = arith.constant 0 : index
    %8 = vector.load %arg8[%c0_6, %c0_7] : memref<512x128xf32, #tpu.memory_space<vmem>>, vector<512x128xf32>
    tpu.vector_store %arg8[%c0_6, %c0_7], %7 {strides = array<i32>} : memref<512x128xf32, #tpu.memory_space<vmem>>, vector<512x128xf32>,
    %c0_i32_8 = arith.constant 0 : i32
    %9 = arith.cmpi eq, %arg2, %c0_i32_8 : i32
    %10 = arith.extui %9 : i1 to i32
    %c0_i32_9 = arith.constant 0 : i32
    %11 = arith.cmpi ne, %10, %c0_i32_9 : i32
    scf.if %11 {
      %c0_10 = arith.constant 0 : index
      %c0_11 = arith.constant 0 : index
      %12 = vector.load %arg8[%c0_10, %c0_11] : memref<512x128xf32, #tpu.memory_space<vmem>>, vector<512x128xf32>
      %c0_12 = arith.constant 0 : index
      %c0_13 = arith.constant 0 : index
      %13 = vector.load %arg5[%c0_12, %c0_13] : memref<1x128xf32, #tpu.memory_space<vmem>>, vector<1x128xf32>
      %14 = vector.broadcast %13 : vector<1x128xf32> to vector<512x128xf32>
      %15 = arith.mulf %12, %14 : vector<512x128xf32>
      %c0_14 = arith.constant 0 : index
      %c0_15 = arith.constant 0 : index
      %16 = vector.load %arg6[%c0_14, %c0_15] : memref<1x128xf32, #tpu.memory_space<vmem>>, vector<1x128xf32>
      %17 = vector.broadcast %16 : vector<1x128xf32> to vector<512x128xf32>
      %18 = arith.addf %15, %17 : vector<512x128xf32>
      %19 = arith.negf %18 : vector<512x128xf32>
      %20 = math.exp %19 : vector<512x128xf32>
      %cst_16 = arith.constant 1.000000e+00 : f32
      %21 = vector.broadcast %cst_16 : f32 to vector<512x128xf32>
      %22 = arith.addf %21, %20 : vector<512x128xf32>
      %23 = arith.divf %21, %22 : vector<512x128xf32>
      %24 = arith.mulf %18, %23 : vector<512x128xf32>
      %25 = arith.truncf %24 : vector<512x128xf32> to vector<512x128xbf16>
      %c0_17 = arith.constant 0 : index
      %c0_18 = arith.constant 0 : index
      %26 = vector.load %arg7[%c0_17, %c0_18] : memref<512x128xbf16, #tpu.memory_space<vmem>>, vector<512x128xbf16>
      tpu.vector_store %arg7[%c0_17, %c0_18], %25 {strides = array<i32>} : memref<512x128xbf16, #tpu.memory_space<vmem>>, vector<512x128xbf16>,
    } else {
    }
    return
  }
  func.func @transform_0(%arg0: i32, %arg1: i32, %arg2: i32) -> (i32, i32) {
    %c0_i32 = arith.constant 0 : i32
    return %arg0, %arg2 : i32, i32
  }
  func.func @transform_1(%arg0: i32, %arg1: i32, %arg2: i32) -> (i32, i32) {
    %c0_i32 = arith.constant 0 : i32
    return %arg2, %arg1 : i32, i32
  }
  func.func @transform_2(%arg0: i32, %arg1: i32, %arg2: i32) -> (i32, i32) {
    %c0_i32 = arith.constant 0 : i32
    %c0_i32_0 = arith.constant 0 : i32
    return %c0_i32, %arg1 : i32, i32
  }
  func.func @transform_3(%arg0: i32, %arg1: i32, %arg2: i32) -> (i32, i32) {
    %c0_i32 = arith.constant 0 : i32
    %c0_i32_0 = arith.constant 0 : i32
    return %c0_i32, %arg1 : i32, i32
  }
  func.func @transform_4(%arg0: i32, %arg1: i32, %arg2: i32) -> (i32, i32) {
    %c0_i32 = arith.constant 0 : i32
    return %arg0, %arg1 : i32, i32
  }
}

module attributes {stable_mosaic.version = 11 : i64} {
  func.func @_conv3x3_bn_silu_kernel(%arg0: i32, %arg1: i32, %arg2: memref<1x18x18x128xbf16, #tpu.memory_space<vmem>>, %arg3: memref<9x128x128xbf16, #tpu.memory_space<vmem>>, %arg4: memref<1x128xf32, #tpu.memory_space<vmem>>, %arg5: memref<1x128xf32, #tpu.memory_space<vmem>>, %arg6: memref<1x256x128xbf16, #tpu.memory_space<vmem>>, %arg7: memref<256x128xf32, #tpu.memory_space<vmem>>) attributes {dimension_semantics = [#tpu.dimension_semantics<parallel>, #tpu.dimension_semantics<parallel>], iteration_bounds = array<i64: 2, 1>, scalar_prefetch = 0 : i64, scratch_operands = 1 : i64, tpu.core_type = #tpu.core_type<tc>, window_params = [{transform_indices = @transform_0, window_bounds = array<i64: 1, 18, 18, 128>}, {transform_indices = @transform_1, window_bounds = array<i64: 9, 128, 128>}, {transform_indices = @transform_2, window_bounds = array<i64: 1, 128>}, {transform_indices = @transform_3, window_bounds = array<i64: 1, 128>}, {transform_indices = @transform_4, window_bounds = array<i64: 1, 256, 128>}]} {
    %cst = arith.constant 0.000000e+00 : f32
    %0 = vector.broadcast %cst : f32 to vector<256x128xf32>
    %c0 = arith.constant 0 : index
    %c0_0 = arith.constant 0 : index
    %1 = vector.load %arg7[%c0, %c0_0] : memref<256x128xf32, #tpu.memory_space<vmem>>, vector<256x128xf32>
    tpu.vector_store %arg7[%c0, %c0_0], %0 {strides = array<i32>} : memref<256x128xf32, #tpu.memory_space<vmem>>, vector<256x128xf32>,
    %c0_1 = arith.constant 0 : index
    %c0_2 = arith.constant 0 : index
    %c0_3 = arith.constant 0 : index
    %c0_4 = arith.constant 0 : index
    %2 = vector.load %arg2[%c0_1, %c0_2, %c0_3, %c0_4] : memref<1x18x18x128xbf16, #tpu.memory_space<vmem>>, vector<1x16x16x128xbf16>
    %3 = vector.shape_cast %2 : vector<1x16x16x128xbf16> to vector<256x128xbf16>
    %c0_5 = arith.constant 0 : index
    %c0_6 = arith.constant 0 : index
    %4 = vector.load %arg7[%c0_5, %c0_6] : memref<256x128xf32, #tpu.memory_space<vmem>>, vector<256x128xf32>
    %c0_7 = arith.constant 0 : index
    %c0_8 = arith.constant 0 : index
    %c0_9 = arith.constant 0 : index
    %5 = vector.load %arg3[%c0_7, %c0_8, %c0_9] : memref<9x128x128xbf16, #tpu.memory_space<vmem>>, vector<1x128x128xbf16>
    %6 = vector.shape_cast %5 : vector<1x128x128xbf16> to vector<128x128xbf16>
    %cst_10 = arith.constant dense<0.000000e+00> : vector<256x128xf32>
    %7 = tpu.matmul %3, %6, %cst_10 {dimension_numbers = #tpu.dot_dimension_numbers<[1], [0], [0], [1], [0, 0, 1, 1], [], []>} : vector<256x128xbf16>, vector<128x128xbf16>, vector<256x128xf32> -> vector<256x128xf32>
    %8 = arith.addf %4, %7 : vector<256x128xf32>
    %c0_11 = arith.constant 0 : index
    %c0_12 = arith.constant 0 : index
    %9 = vector.load %arg7[%c0_11, %c0_12] : memref<256x128xf32, #tpu.memory_space<vmem>>, vector<256x128xf32>
    tpu.vector_store %arg7[%c0_11, %c0_12], %8 {strides = array<i32>} : memref<256x128xf32, #tpu.memory_space<vmem>>, vector<256x128xf32>,
    %c0_13 = arith.constant 0 : index
    %c0_14 = arith.constant 0 : index
    %c1 = arith.constant 1 : index
    %c0_15 = arith.constant 0 : index
    %10 = vector.load %arg2[%c0_13, %c0_14, %c1, %c0_15] : memref<1x18x18x128xbf16, #tpu.memory_space<vmem>>, vector<1x16x16x128xbf16>
    %11 = vector.shape_cast %10 : vector<1x16x16x128xbf16> to vector<256x128xbf16>
    %c0_16 = arith.constant 0 : index
    %c0_17 = arith.constant 0 : index
    %12 = vector.load %arg7[%c0_16, %c0_17] : memref<256x128xf32, #tpu.memory_space<vmem>>, vector<256x128xf32>
    %c1_18 = arith.constant 1 : index
    %c0_19 = arith.constant 0 : index
    %c0_20 = arith.constant 0 : index
    %13 = vector.load %arg3[%c1_18, %c0_19, %c0_20] : memref<9x128x128xbf16, #tpu.memory_space<vmem>>, vector<1x128x128xbf16>
    %14 = vector.shape_cast %13 : vector<1x128x128xbf16> to vector<128x128xbf16>
    %cst_21 = arith.constant dense<0.000000e+00> : vector<256x128xf32>
    %15 = tpu.matmul %11, %14, %cst_21 {dimension_numbers = #tpu.dot_dimension_numbers<[1], [0], [0], [1], [0, 0, 1, 1], [], []>} : vector<256x128xbf16>, vector<128x128xbf16>, vector<256x128xf32> -> vector<256x128xf32>
    %16 = arith.addf %12, %15 : vector<256x128xf32>
    %c0_22 = arith.constant 0 : index
    %c0_23 = arith.constant 0 : index
    %17 = vector.load %arg7[%c0_22, %c0_23] : memref<256x128xf32, #tpu.memory_space<vmem>>, vector<256x128xf32>
    tpu.vector_store %arg7[%c0_22, %c0_23], %16 {strides = array<i32>} : memref<256x128xf32, #tpu.memory_space<vmem>>, vector<256x128xf32>,
    %c0_24 = arith.constant 0 : index
    %c0_25 = arith.constant 0 : index
    %c2 = arith.constant 2 : index
    %c0_26 = arith.constant 0 : index
    %18 = vector.load %arg2[%c0_24, %c0_25, %c2, %c0_26] : memref<1x18x18x128xbf16, #tpu.memory_space<vmem>>, vector<1x16x16x128xbf16>
    %19 = vector.shape_cast %18 : vector<1x16x16x128xbf16> to vector<256x128xbf16>
    %c0_27 = arith.constant 0 : index
    %c0_28 = arith.constant 0 : index
    %20 = vector.load %arg7[%c0_27, %c0_28] : memref<256x128xf32, #tpu.memory_space<vmem>>, vector<256x128xf32>
    %c2_29 = arith.constant 2 : index
    %c0_30 = arith.constant 0 : index
    %c0_31 = arith.constant 0 : index
    %21 = vector.load %arg3[%c2_29, %c0_30, %c0_31] : memref<9x128x128xbf16, #tpu.memory_space<vmem>>, vector<1x128x128xbf16>
    %22 = vector.shape_cast %21 : vector<1x128x128xbf16> to vector<128x128xbf16>
    %cst_32 = arith.constant dense<0.000000e+00> : vector<256x128xf32>
    %23 = tpu.matmul %19, %22, %cst_32 {dimension_numbers = #tpu.dot_dimension_numbers<[1], [0], [0], [1], [0, 0, 1, 1], [], []>} : vector<256x128xbf16>, vector<128x128xbf16>, vector<256x128xf32> -> vector<256x128xf32>
    %24 = arith.addf %20, %23 : vector<256x128xf32>
    %c0_33 = arith.constant 0 : index
    %c0_34 = arith.constant 0 : index
    %25 = vector.load %arg7[%c0_33, %c0_34] : memref<256x128xf32, #tpu.memory_space<vmem>>, vector<256x128xf32>
    tpu.vector_store %arg7[%c0_33, %c0_34], %24 {strides = array<i32>} : memref<256x128xf32, #tpu.memory_space<vmem>>, vector<256x128xf32>,
    %c0_35 = arith.constant 0 : index
    %c1_36 = arith.constant 1 : index
    %c0_37 = arith.constant 0 : index
    %c0_38 = arith.constant 0 : index
    %26 = vector.load %arg2[%c0_35, %c1_36, %c0_37, %c0_38] : memref<1x18x18x128xbf16, #tpu.memory_space<vmem>>, vector<1x16x16x128xbf16>
    %27 = vector.shape_cast %26 : vector<1x16x16x128xbf16> to vector<256x128xbf16>
    %c0_39 = arith.constant 0 : index
    %c0_40 = arith.constant 0 : index
    %28 = vector.load %arg7[%c0_39, %c0_40] : memref<256x128xf32, #tpu.memory_space<vmem>>, vector<256x128xf32>
    %c3 = arith.constant 3 : index
    %c0_41 = arith.constant 0 : index
    %c0_42 = arith.constant 0 : index
    %29 = vector.load %arg3[%c3, %c0_41, %c0_42] : memref<9x128x128xbf16, #tpu.memory_space<vmem>>, vector<1x128x128xbf16>
    %30 = vector.shape_cast %29 : vector<1x128x128xbf16> to vector<128x128xbf16>
    %cst_43 = arith.constant dense<0.000000e+00> : vector<256x128xf32>
    %31 = tpu.matmul %27, %30, %cst_43 {dimension_numbers = #tpu.dot_dimension_numbers<[1], [0], [0], [1], [0, 0, 1, 1], [], []>} : vector<256x128xbf16>, vector<128x128xbf16>, vector<256x128xf32> -> vector<256x128xf32>
    %32 = arith.addf %28, %31 : vector<256x128xf32>
    %c0_44 = arith.constant 0 : index
    %c0_45 = arith.constant 0 : index
    %33 = vector.load %arg7[%c0_44, %c0_45] : memref<256x128xf32, #tpu.memory_space<vmem>>, vector<256x128xf32>
    tpu.vector_store %arg7[%c0_44, %c0_45], %32 {strides = array<i32>} : memref<256x128xf32, #tpu.memory_space<vmem>>, vector<256x128xf32>,
    %c0_46 = arith.constant 0 : index
    %c1_47 = arith.constant 1 : index
    %c1_48 = arith.constant 1 : index
    %c0_49 = arith.constant 0 : index
    %34 = vector.load %arg2[%c0_46, %c1_47, %c1_48, %c0_49] : memref<1x18x18x128xbf16, #tpu.memory_space<vmem>>, vector<1x16x16x128xbf16>
    %35 = vector.shape_cast %34 : vector<1x16x16x128xbf16> to vector<256x128xbf16>
    %c0_50 = arith.constant 0 : index
    %c0_51 = arith.constant 0 : index
    %36 = vector.load %arg7[%c0_50, %c0_51] : memref<256x128xf32, #tpu.memory_space<vmem>>, vector<256x128xf32>
    %c4 = arith.constant 4 : index
    %c0_52 = arith.constant 0 : index
    %c0_53 = arith.constant 0 : index
    %37 = vector.load %arg3[%c4, %c0_52, %c0_53] : memref<9x128x128xbf16, #tpu.memory_space<vmem>>, vector<1x128x128xbf16>
    %38 = vector.shape_cast %37 : vector<1x128x128xbf16> to vector<128x128xbf16>
    %cst_54 = arith.constant dense<0.000000e+00> : vector<256x128xf32>
    %39 = tpu.matmul %35, %38, %cst_54 {dimension_numbers = #tpu.dot_dimension_numbers<[1], [0], [0], [1], [0, 0, 1, 1], [], []>} : vector<256x128xbf16>, vector<128x128xbf16>, vector<256x128xf32> -> vector<256x128xf32>
    %40 = arith.addf %36, %39 : vector<256x128xf32>
    %c0_55 = arith.constant 0 : index
    %c0_56 = arith.constant 0 : index
    %41 = vector.load %arg7[%c0_55, %c0_56] : memref<256x128xf32, #tpu.memory_space<vmem>>, vector<256x128xf32>
    tpu.vector_store %arg7[%c0_55, %c0_56], %40 {strides = array<i32>} : memref<256x128xf32, #tpu.memory_space<vmem>>, vector<256x128xf32>,
    %c0_57 = arith.constant 0 : index
    %c1_58 = arith.constant 1 : index
    %c2_59 = arith.constant 2 : index
    %c0_60 = arith.constant 0 : index
    %42 = vector.load %arg2[%c0_57, %c1_58, %c2_59, %c0_60] : memref<1x18x18x128xbf16, #tpu.memory_space<vmem>>, vector<1x16x16x128xbf16>
    %43 = vector.shape_cast %42 : vector<1x16x16x128xbf16> to vector<256x128xbf16>
    %c0_61 = arith.constant 0 : index
    %c0_62 = arith.constant 0 : index
    %44 = vector.load %arg7[%c0_61, %c0_62] : memref<256x128xf32, #tpu.memory_space<vmem>>, vector<256x128xf32>
    %c5 = arith.constant 5 : index
    %c0_63 = arith.constant 0 : index
    %c0_64 = arith.constant 0 : index
    %45 = vector.load %arg3[%c5, %c0_63, %c0_64] : memref<9x128x128xbf16, #tpu.memory_space<vmem>>, vector<1x128x128xbf16>
    %46 = vector.shape_cast %45 : vector<1x128x128xbf16> to vector<128x128xbf16>
    %cst_65 = arith.constant dense<0.000000e+00> : vector<256x128xf32>
    %47 = tpu.matmul %43, %46, %cst_65 {dimension_numbers = #tpu.dot_dimension_numbers<[1], [0], [0], [1], [0, 0, 1, 1], [], []>} : vector<256x128xbf16>, vector<128x128xbf16>, vector<256x128xf32> -> vector<256x128xf32>
    %48 = arith.addf %44, %47 : vector<256x128xf32>
    %c0_66 = arith.constant 0 : index
    %c0_67 = arith.constant 0 : index
    %49 = vector.load %arg7[%c0_66, %c0_67] : memref<256x128xf32, #tpu.memory_space<vmem>>, vector<256x128xf32>
    tpu.vector_store %arg7[%c0_66, %c0_67], %48 {strides = array<i32>} : memref<256x128xf32, #tpu.memory_space<vmem>>, vector<256x128xf32>,
    %c0_68 = arith.constant 0 : index
    %c2_69 = arith.constant 2 : index
    %c0_70 = arith.constant 0 : index
    %c0_71 = arith.constant 0 : index
    %50 = vector.load %arg2[%c0_68, %c2_69, %c0_70, %c0_71] : memref<1x18x18x128xbf16, #tpu.memory_space<vmem>>, vector<1x16x16x128xbf16>
    %51 = vector.shape_cast %50 : vector<1x16x16x128xbf16> to vector<256x128xbf16>
    %c0_72 = arith.constant 0 : index
    %c0_73 = arith.constant 0 : index
    %52 = vector.load %arg7[%c0_72, %c0_73] : memref<256x128xf32, #tpu.memory_space<vmem>>, vector<256x128xf32>
    %c6 = arith.constant 6 : index
    %c0_74 = arith.constant 0 : index
    %c0_75 = arith.constant 0 : index
    %53 = vector.load %arg3[%c6, %c0_74, %c0_75] : memref<9x128x128xbf16, #tpu.memory_space<vmem>>, vector<1x128x128xbf16>
    %54 = vector.shape_cast %53 : vector<1x128x128xbf16> to vector<128x128xbf16>
    %cst_76 = arith.constant dense<0.000000e+00> : vector<256x128xf32>
    %55 = tpu.matmul %51, %54, %cst_76 {dimension_numbers = #tpu.dot_dimension_numbers<[1], [0], [0], [1], [0, 0, 1, 1], [], []>} : vector<256x128xbf16>, vector<128x128xbf16>, vector<256x128xf32> -> vector<256x128xf32>
    %56 = arith.addf %52, %55 : vector<256x128xf32>
    %c0_77 = arith.constant 0 : index
    %c0_78 = arith.constant 0 : index
    %57 = vector.load %arg7[%c0_77, %c0_78] : memref<256x128xf32, #tpu.memory_space<vmem>>, vector<256x128xf32>
    tpu.vector_store %arg7[%c0_77, %c0_78], %56 {strides = array<i32>} : memref<256x128xf32, #tpu.memory_space<vmem>>, vector<256x128xf32>,
    %c0_79 = arith.constant 0 : index
    %c2_80 = arith.constant 2 : index
    %c1_81 = arith.constant 1 : index
    %c0_82 = arith.constant 0 : index
    %58 = vector.load %arg2[%c0_79, %c2_80, %c1_81, %c0_82] : memref<1x18x18x128xbf16, #tpu.memory_space<vmem>>, vector<1x16x16x128xbf16>
    %59 = vector.shape_cast %58 : vector<1x16x16x128xbf16> to vector<256x128xbf16>
    %c0_83 = arith.constant 0 : index
    %c0_84 = arith.constant 0 : index
    %60 = vector.load %arg7[%c0_83, %c0_84] : memref<256x128xf32, #tpu.memory_space<vmem>>, vector<256x128xf32>
    %c7 = arith.constant 7 : index
    %c0_85 = arith.constant 0 : index
    %c0_86 = arith.constant 0 : index
    %61 = vector.load %arg3[%c7, %c0_85, %c0_86] : memref<9x128x128xbf16, #tpu.memory_space<vmem>>, vector<1x128x128xbf16>
    %62 = vector.shape_cast %61 : vector<1x128x128xbf16> to vector<128x128xbf16>
    %cst_87 = arith.constant dense<0.000000e+00> : vector<256x128xf32>
    %63 = tpu.matmul %59, %62, %cst_87 {dimension_numbers = #tpu.dot_dimension_numbers<[1], [0], [0], [1], [0, 0, 1, 1], [], []>} : vector<256x128xbf16>, vector<128x128xbf16>, vector<256x128xf32> -> vector<256x128xf32>
    %64 = arith.addf %60, %63 : vector<256x128xf32>
    %c0_88 = arith.constant 0 : index
    %c0_89 = arith.constant 0 : index
    %65 = vector.load %arg7[%c0_88, %c0_89] : memref<256x128xf32, #tpu.memory_space<vmem>>, vector<256x128xf32>
    tpu.vector_store %arg7[%c0_88, %c0_89], %64 {strides = array<i32>} : memref<256x128xf32, #tpu.memory_space<vmem>>, vector<256x128xf32>,
    %c0_90 = arith.constant 0 : index
    %c2_91 = arith.constant 2 : index
    %c2_92 = arith.constant 2 : index
    %c0_93 = arith.constant 0 : index
    %66 = vector.load %arg2[%c0_90, %c2_91, %c2_92, %c0_93] : memref<1x18x18x128xbf16, #tpu.memory_space<vmem>>, vector<1x16x16x128xbf16>
    %67 = vector.shape_cast %66 : vector<1x16x16x128xbf16> to vector<256x128xbf16>
    %c0_94 = arith.constant 0 : index
    %c0_95 = arith.constant 0 : index
    %68 = vector.load %arg7[%c0_94, %c0_95] : memref<256x128xf32, #tpu.memory_space<vmem>>, vector<256x128xf32>
    %c8 = arith.constant 8 : index
    %c0_96 = arith.constant 0 : index
    %c0_97 = arith.constant 0 : index
    %69 = vector.load %arg3[%c8, %c0_96, %c0_97] : memref<9x128x128xbf16, #tpu.memory_space<vmem>>, vector<1x128x128xbf16>
    %70 = vector.shape_cast %69 : vector<1x128x128xbf16> to vector<128x128xbf16>
    %cst_98 = arith.constant dense<0.000000e+00> : vector<256x128xf32>
    %71 = tpu.matmul %67, %70, %cst_98 {dimension_numbers = #tpu.dot_dimension_numbers<[1], [0], [0], [1], [0, 0, 1, 1], [], []>} : vector<256x128xbf16>, vector<128x128xbf16>, vector<256x128xf32> -> vector<256x128xf32>
    %72 = arith.addf %68, %71 : vector<256x128xf32>
    %c0_99 = arith.constant 0 : index
    %c0_100 = arith.constant 0 : index
    %73 = vector.load %arg7[%c0_99, %c0_100] : memref<256x128xf32, #tpu.memory_space<vmem>>, vector<256x128xf32>
    tpu.vector_store %arg7[%c0_99, %c0_100], %72 {strides = array<i32>} : memref<256x128xf32, #tpu.memory_space<vmem>>, vector<256x128xf32>,
    %c0_101 = arith.constant 0 : index
    %c0_102 = arith.constant 0 : index
    %74 = vector.load %arg7[%c0_101, %c0_102] : memref<256x128xf32, #tpu.memory_space<vmem>>, vector<256x128xf32>
    %c0_103 = arith.constant 0 : index
    %c0_104 = arith.constant 0 : index
    %75 = vector.load %arg4[%c0_103, %c0_104] : memref<1x128xf32, #tpu.memory_space<vmem>>, vector<1x128xf32>
    %76 = vector.broadcast %75 : vector<1x128xf32> to vector<256x128xf32>
    %77 = arith.mulf %74, %76 : vector<256x128xf32>
    %c0_105 = arith.constant 0 : index
    %c0_106 = arith.constant 0 : index
    %78 = vector.load %arg5[%c0_105, %c0_106] : memref<1x128xf32, #tpu.memory_space<vmem>>, vector<1x128xf32>
    %79 = vector.broadcast %78 : vector<1x128xf32> to vector<256x128xf32>
    %80 = arith.addf %77, %79 : vector<256x128xf32>
    %81 = arith.negf %80 : vector<256x128xf32>
    %82 = math.exp %81 : vector<256x128xf32>
    %cst_107 = arith.constant 1.000000e+00 : f32
    %83 = vector.broadcast %cst_107 : f32 to vector<256x128xf32>
    %84 = arith.addf %83, %82 : vector<256x128xf32>
    %85 = arith.divf %83, %84 : vector<256x128xf32>
    %86 = arith.mulf %80, %85 : vector<256x128xf32>
    %87 = arith.truncf %86 : vector<256x128xf32> to vector<256x128xbf16>
    %c0_108 = arith.constant 0 : index
    %c0_109 = arith.constant 0 : index
    %c0_110 = arith.constant 0 : index
    %88 = vector.load %arg6[%c0_108, %c0_109, %c0_110] : memref<1x256x128xbf16, #tpu.memory_space<vmem>>, vector<1x256x128xbf16>
    %89 = vector.shape_cast %88 : vector<1x256x128xbf16> to vector<256x128xbf16>
    %90 = vector.shape_cast %87 : vector<256x128xbf16> to vector<1x256x128xbf16>
    tpu.vector_store %arg6[%c0_108, %c0_109, %c0_110], %90 {strides = array<i32>} : memref<1x256x128xbf16, #tpu.memory_space<vmem>>, vector<1x256x128xbf16>,
    return
  }
  func.func @transform_0(%arg0: i32, %arg1: i32) -> (i32, i32, i32, i32) {
    %c0_i32 = arith.constant 0 : i32
    %c0_i32_0 = arith.constant 0 : i32
    %c0_i32_1 = arith.constant 0 : i32
    %c0_i32_2 = arith.constant 0 : i32
    return %arg0, %c0_i32, %c0_i32_0, %c0_i32_1 : i32, i32, i32, i32
  }
  func.func @transform_1(%arg0: i32, %arg1: i32) -> (i32, i32, i32) {
    %c0_i32 = arith.constant 0 : i32
    %c0_i32_0 = arith.constant 0 : i32
    %c0_i32_1 = arith.constant 0 : i32
    return %c0_i32, %c0_i32_0, %arg1 : i32, i32, i32
  }
  func.func @transform_2(%arg0: i32, %arg1: i32) -> (i32, i32) {
    %c0_i32 = arith.constant 0 : i32
    %c0_i32_0 = arith.constant 0 : i32
    return %c0_i32, %arg1 : i32, i32
  }
  func.func @transform_3(%arg0: i32, %arg1: i32) -> (i32, i32) {
    %c0_i32 = arith.constant 0 : i32
    %c0_i32_0 = arith.constant 0 : i32
    return %c0_i32, %arg1 : i32, i32
  }
  func.func @transform_4(%arg0: i32, %arg1: i32) -> (i32, i32, i32) {
    %c0_i32 = arith.constant 0 : i32
    %c0_i32_0 = arith.constant 0 : i32
    return %arg0, %c0_i32, %arg1 : i32, i32, i32
  }
}

module attributes {stable_mosaic.version = 11 : i64} {
  func.func @_gc_gate_kernel(%arg0: i32, %arg1: memref<1x256x128xbf16, #tpu.memory_space<vmem>>, %arg2: memref<1x256x128xf32, #tpu.memory_space<vmem>>, %arg3: memref<128x1xbf16, #tpu.memory_space<vmem>>, %arg4: memref<128x2xf32, #tpu.memory_space<vmem>>, %arg5: memref<1x2xf32, #tpu.memory_space<vmem>>, %arg6: memref<1x2xf32, #tpu.memory_space<vmem>>, %arg7: memref<1x2xf32, #tpu.memory_space<vmem>>, %arg8: memref<2x128xf32, #tpu.memory_space<vmem>>, %arg9: memref<1x128xf32, #tpu.memory_space<vmem>>, %arg10: memref<1x256x128xf32, #tpu.memory_space<vmem>>) attributes {dimension_semantics = [#tpu.dimension_semantics<parallel>], iteration_bounds = array<i64: 2>, scalar_prefetch = 0 : i64, scratch_operands = 0 : i64, tpu.core_type = #tpu.core_type<tc>, window_params = [{transform_indices = @transform_0, window_bounds = array<i64: 1, 256, 128>}, {transform_indices = @transform_1, window_bounds = array<i64: 1, 256, 128>}, {pipeline_mode = #tpu.pipeline_mode<synchronous>, transform_indices = @transform_2, window_bounds = array<i64: 128, 1>}, {pipeline_mode = #tpu.pipeline_mode<synchronous>, transform_indices = @transform_3, window_bounds = array<i64: 128, 2>}, {pipeline_mode = #tpu.pipeline_mode<synchronous>, transform_indices = @transform_4, window_bounds = array<i64: 1, 2>}, {pipeline_mode = #tpu.pipeline_mode<synchronous>, transform_indices = @transform_5, window_bounds = array<i64: 1, 2>}, {pipeline_mode = #tpu.pipeline_mode<synchronous>, transform_indices = @transform_6, window_bounds = array<i64: 1, 2>}, {pipeline_mode = #tpu.pipeline_mode<synchronous>, transform_indices = @transform_7, window_bounds = array<i64: 2, 128>}, {pipeline_mode = #tpu.pipeline_mode<synchronous>, transform_indices = @transform_8, window_bounds = array<i64: 1, 128>}, {transform_indices = @transform_9, window_bounds = array<i64: 1, 256, 128>}]} {
    %c0 = arith.constant 0 : index
    %c0_0 = arith.constant 0 : index
    %c0_1 = arith.constant 0 : index
    %0 = vector.load %arg1[%c0, %c0_0, %c0_1] : memref<1x256x128xbf16, #tpu.memory_space<vmem>>, vector<1x256x128xbf16>
    %1 = vector.shape_cast %0 : vector<1x256x128xbf16> to vector<256x128xbf16>
    %c0_2 = arith.constant 0 : index
    %c0_3 = arith.constant 0 : index
    %2 = vector.load %arg3[%c0_2, %c0_3] : memref<128x1xbf16, #tpu.memory_space<vmem>>, vector<128x1xbf16>
    %cst = arith.constant dense<0.000000e+00> : vector<256x1xf32>
    %3 = tpu.matmul %1, %2, %cst {dimension_numbers = #tpu.dot_dimension_numbers<[1], [0], [0], [1], [0, 0, 1, 1], [], []>} : vector<256x128xbf16>, vector<128x1xbf16>, vector<256x1xf32> -> vector<256x1xf32>
    %cst_4 = arith.constant dense<0xFF800000> : vector<1xf32>
    %4 = vector.multi_reduction <maximumf>, %3, %cst_4 [0] : vector<256x1xf32> to vector<1xf32>
    %5 = vector.shape_cast %4 : vector<1xf32> to vector<1x1xf32>
    %6 = vector.broadcast %5 : vector<1x1xf32> to vector<256x1xf32>
    %7 = arith.subf %3, %6 : vector<256x1xf32>
    %8 = math.exp %7 : vector<256x1xf32>
    %cst_5 = arith.constant dense<0.000000e+00> : vector<1xf32>
    %9 = vector.multi_reduction <add>, %8, %cst_5 [0] : vector<256x1xf32> to vector<1xf32>
    %10 = vector.shape_cast %9 : vector<1xf32> to vector<1x1xf32>
    %11 = arith.truncf %8 : vector<256x1xf32> to vector<256x1xbf16>
    %cst_6 = arith.constant dense<0.000000e+00> : vector<1x128xf32>
    %12 = tpu.matmul %11, %1, %cst_6 {dimension_numbers = #tpu.dot_dimension_numbers<[0], [0], [1], [1], [0, 1, 1, 1], [], []>} : vector<256x1xbf16>, vector<256x128xbf16>, vector<1x128xf32> -> vector<1x128xf32>
    %13 = tpu.reciprocal %10 {approx = true} : vector<1x1xf32> -> vector<1x1xf32>
    %14 = vector.broadcast %13 : vector<1x1xf32> to vector<1x128xf32>
    %15 = arith.mulf %12, %14 : vector<1x128xf32>
    %c0_7 = arith.constant 0 : index
    %c0_8 = arith.constant 0 : index
    %16 = vector.load %arg4[%c0_7, %c0_8] : memref<128x2xf32, #tpu.memory_space<vmem>>, vector<128x2xf32>
    %cst_9 = arith.constant dense<0.000000e+00> : vector<1x2xf32>
    %17 = tpu.matmul %15, %16, %cst_9 {dimension_numbers = #tpu.dot_dimension_numbers<[1], [0], [0], [1], [0, 0, 1, 1], [], []>} : vector<1x128xf32>, vector<128x2xf32>, vector<1x2xf32> -> vector<1x2xf32>
    %c0_10 = arith.constant 0 : index
    %c0_11 = arith.constant 0 : index
    %18 = vector.load %arg5[%c0_10, %c0_11] : memref<1x2xf32, #tpu.memory_space<vmem>>, vector<1x2xf32>
    %19 = arith.addf %17, %18 : vector<1x2xf32>
    %cst_12 = arith.constant dense<0.000000e+00> : vector<1xf32>
    %20 = vector.multi_reduction <add>, %19, %cst_12 [1] : vector<1x2xf32> to vector<1xf32>
    %21 = vector.shape_cast %20 : vector<1xf32> to vector<1x1xf32>
    %cst_13 = arith.constant 2.000000e+00 : f32
    %22 = vector.broadcast %cst_13 : f32 to vector<1x1xf32>
    %23 = arith.divf %21, %22 : vector<1x1xf32>
    %24 = vector.broadcast %23 : vector<1x1xf32> to vector<1x2xf32>
    %25 = arith.subf %19, %24 : vector<1x2xf32>
    %26 = arith.mulf %25, %25 : vector<1x2xf32>
    %cst_14 = arith.constant dense<0.000000e+00> : vector<1xf32>
    %27 = vector.multi_reduction <add>, %26, %cst_14 [1] : vector<1x2xf32> to vector<1xf32>
    %28 = vector.shape_cast %27 : vector<1xf32> to vector<1x1xf32>
    %cst_15 = arith.constant 2.000000e+00 : f32
    %29 = vector.broadcast %cst_15 : f32 to vector<1x1xf32>
    %30 = arith.divf %28, %29 : vector<1x1xf32>
    %31 = vector.broadcast %23 : vector<1x1xf32> to vector<1x2xf32>
    %32 = arith.subf %19, %31 : vector<1x2xf32>
    %cst_16 = arith.constant 9.99999974E-6 : f32
    %33 = vector.broadcast %cst_16 : f32 to vector<1x1xf32>
    %34 = arith.addf %30, %33 : vector<1x1xf32>
    %35 = math.rsqrt %34 : vector<1x1xf32>
    %36 = vector.broadcast %35 : vector<1x1xf32> to vector<1x2xf32>
    %37 = arith.mulf %32, %36 : vector<1x2xf32>
    %c0_17 = arith.constant 0 : index
    %c0_18 = arith.constant 0 : index
    %38 = vector.load %arg6[%c0_17, %c0_18] : memref<1x2xf32, #tpu.memory_space<vmem>>, vector<1x2xf32>
    %39 = arith.mulf %37, %38 : vector<1x2xf32>
    %c0_19 = arith.constant 0 : index
    %c0_20 = arith.constant 0 : index
    %40 = vector.load %arg7[%c0_19, %c0_20] : memref<1x2xf32, #tpu.memory_space<vmem>>, vector<1x2xf32>
    %41 = arith.addf %39, %40 : vector<1x2xf32>
    %cst_21 = arith.constant 0.000000e+00 : f32
    %42 = vector.broadcast %cst_21 : f32 to vector<1x2xf32>
    %43 = arith.maximumf %41, %42 : vector<1x2xf32>
    %c0_22 = arith.constant 0 : index
    %c0_23 = arith.constant 0 : index
    %44 = vector.load %arg8[%c0_22, %c0_23] : memref<2x128xf32, #tpu.memory_space<vmem>>, vector<2x128xf32>
    %cst_24 = arith.constant dense<0.000000e+00> : vector<1x128xf32>
    %45 = tpu.matmul %43, %44, %cst_24 {dimension_numbers = #tpu.dot_dimension_numbers<[1], [0], [0], [1], [0, 0, 1, 1], [], []>} : vector<1x2xf32>, vector<2x128xf32>, vector<1x128xf32> -> vector<1x128xf32>
    %c0_25 = arith.constant 0 : index
    %c0_26 = arith.constant 0 : index
    %46 = vector.load %arg9[%c0_25, %c0_26] : memref<1x128xf32, #tpu.memory_space<vmem>>, vector<1x128xf32>
    %47 = arith.addf %45, %46 : vector<1x128xf32>
    %48 = arith.negf %47 : vector<1x128xf32>
    %49 = math.exp %48 : vector<1x128xf32>
    %cst_27 = arith.constant 1.000000e+00 : f32
    %50 = vector.broadcast %cst_27 : f32 to vector<1x128xf32>
    %51 = arith.addf %50, %49 : vector<1x128xf32>
    %52 = arith.divf %50, %51 : vector<1x128xf32>
    %53 = arith.extf %1 : vector<256x128xbf16> to vector<256x128xf32>
    %54 = vector.broadcast %52 : vector<1x128xf32> to vector<256x128xf32>
    %55 = arith.mulf %53, %54 : vector<256x128xf32>
    %c0_28 = arith.constant 0 : index
    %c0_29 = arith.constant 0 : index
    %c0_30 = arith.constant 0 : index
    %56 = vector.load %arg2[%c0_28, %c0_29, %c0_30] : memref<1x256x128xf32, #tpu.memory_space<vmem>>, vector<1x256x128xf32>
    %57 = vector.shape_cast %56 : vector<1x256x128xf32> to vector<256x128xf32>
    %58 = arith.addf %55, %57 : vector<256x128xf32>
    %c0_31 = arith.constant 0 : index
    %c0_32 = arith.constant 0 : index
    %c0_33 = arith.constant 0 : index
    %59 = vector.load %arg10[%c0_31, %c0_32, %c0_33] : memref<1x256x128xf32, #tpu.memory_space<vmem>>, vector<1x256x128xf32>
    %60 = vector.shape_cast %59 : vector<1x256x128xf32> to vector<256x128xf32>
    %61 = vector.shape_cast %58 : vector<256x128xf32> to vector<1x256x128xf32>
    tpu.vector_store %arg10[%c0_31, %c0_32, %c0_33], %61 {strides = array<i32>} : memref<1x256x128xf32, #tpu.memory_space<vmem>>, vector<1x256x128xf32>,
    return
  }
  func.func @transform_0(%arg0: i32) -> (i32, i32, i32) {
    %c0_i32 = arith.constant 0 : i32
    %c0_i32_0 = arith.constant 0 : i32
    %c0_i32_1 = arith.constant 0 : i32
    return %arg0, %c0_i32, %c0_i32_0 : i32, i32, i32
  }
  func.func @transform_1(%arg0: i32) -> (i32, i32, i32) {
    %c0_i32 = arith.constant 0 : i32
    %c0_i32_0 = arith.constant 0 : i32
    %c0_i32_1 = arith.constant 0 : i32
    return %arg0, %c0_i32, %c0_i32_0 : i32, i32, i32
  }
  func.func @transform_2(%arg0: i32) -> (i32, i32) {
    %c0_i32 = arith.constant 0 : i32
    %c0_i32_0 = arith.constant 0 : i32
    %c0_i32_1 = arith.constant 0 : i32
    return %c0_i32, %c0_i32_0 : i32, i32
  }
  func.func @transform_3(%arg0: i32) -> (i32, i32) {
    %c0_i32 = arith.constant 0 : i32
    %c0_i32_0 = arith.constant 0 : i32
    %c0_i32_1 = arith.constant 0 : i32
    return %c0_i32, %c0_i32_0 : i32, i32
  }
  func.func @transform_4(%arg0: i32) -> (i32, i32) {
    %c0_i32 = arith.constant 0 : i32
    %c0_i32_0 = arith.constant 0 : i32
    %c0_i32_1 = arith.constant 0 : i32
    return %c0_i32, %c0_i32_0 : i32, i32
  }
  func.func @transform_5(%arg0: i32) -> (i32, i32) {
    %c0_i32 = arith.constant 0 : i32
    %c0_i32_0 = arith.constant 0 : i32
    %c0_i32_1 = arith.constant 0 : i32
    return %c0_i32, %c0_i32_0 : i32, i32
  }
  func.func @transform_6(%arg0: i32) -> (i32, i32) {
    %c0_i32 = arith.constant 0 : i32
    %c0_i32_0 = arith.constant 0 : i32
    %c0_i32_1 = arith.constant 0 : i32
    return %c0_i32, %c0_i32_0 : i32, i32
  }
  func.func @transform_7(%arg0: i32) -> (i32, i32) {
    %c0_i32 = arith.constant 0 : i32
    %c0_i32_0 = arith.constant 0 : i32
    %c0_i32_1 = arith.constant 0 : i32
    return %c0_i32, %c0_i32_0 : i32, i32
  }
  func.func @transform_8(%arg0: i32) -> (i32, i32) {
    %c0_i32 = arith.constant 0 : i32
    %c0_i32_0 = arith.constant 0 : i32
    %c0_i32_1 = arith.constant 0 : i32
    return %c0_i32, %c0_i32_0 : i32, i32
  }
  func.func @transform_9(%arg0: i32) -> (i32, i32, i32) {
    %c0_i32 = arith.constant 0 : i32
    %c0_i32_0 = arith.constant 0 : i32
    %c0_i32_1 = arith.constant 0 : i32
    return %arg0, %c0_i32, %c0_i32_0 : i32, i32, i32
  }
}

</mosaic_0001>

<bundles_post_ra>
// kernel: _lambda_.5
= control target key start
LH: loop header
LB: loop body
LE: loop exit
PB: predicated region body
PF: predicated region fallthrough
CT: control target
= control target key end

     0   :  { %s1637_s30 = smov 0   ;;  %s2180_s0 = inlined_call_operand.vmem [shape: bf16[2,256,128], index: 0, kind: input, shape index: {}]   ;;  %s2181_s1 = inlined_call_operand.vmem [shape: f32[2,256,128], index: 1, kind: input, shape index: {}]   ;;  %s2182_s2 = inlined_call_operand.vmem [shape: bf16[128,1], index: 2, kind: input, shape index: {}]   ;;  %s2183_s3 = inlined_call_operand.vmem [shape: f32[128,2], index: 3, kind: input, shape index: {}]   ;;  %s2184_s4 = inlined_call_operand.vmem [shape: f32[1,2], index: 4, kind: input, shape index: {}]   ;;  %s2185_s5 = inlined_call_operand.vmem [shape: f32[1,2], index: 5, kind: input, shape index: {}]   ;;  %s2186_s6 = inlined_call_operand.vmem [shape: f32[1,2], index: 6, kind: input, shape index: {}]   ;;  %s2187_s7 = inlined_call_operand.vmem [shape: f32[2,128], index: 7, kind: input, shape index: {}]   ;;  %s2188_s8 = inlined_call_operand.vmem [shape: f32[1,128], index: 8, kind: input, shape index: {}]   ;;  %s2189_s9 = inlined_call_operand.vmem [shape: f32[2,256,128], index: 9, kind: output, shape index: {}]  }
   0x1 LB: > { %s1299_s10 = sadd.s32 4294967295, %s1581_s30   ;;  %p1303_p0 = scmp.ge.s32.totalorder %s1581_s30, 1  ;;  %s1581_s30 = sphi %s1637_s30, %s19_s30  }
   0x2   : > { %p297_p1 = scmp.lt.s32.totalorder %s1581_s30, 3 }
   0x4   : > { %p298_p2 = pnand %p1303_p0, %p297_p1 }
   0x5   : > { %p338_p3 = scmp.lt.s32.totalorder (!%p298_p2), %s1299_s10, 1 }
   0x6   : > { %301 = sbr.rel (%p298_p2) target bundleno = 1106 (0x452), region = 56 }
   0xb   : > { %v1437_v0 = vld [vmem:[%s2182_s2 + $0x38] sm:$0xff]  ;;  %v1436_v1 = vld [vmem:[%s2182_s2 + $0x30] sm:$0xff]  ;;  %v1435_v2 = vld [vmem:[%s2182_s2 + $0x28] sm:$0xff]  ;;  %s2191_s10 = smov (!%p338_p3, %s1299_s10), 1  ;;  %vm634_vm0 = vcmask 7168   ;;  %vm987_vm1 = vcmask 8192  }
   0xc   : > { %545 = vmatpush.bf16.msra.mxu0 %v1437_v0  ;;  %1439 = vmatpush.bf16.msra.mxu2 %v1437_v0  ;;  %v1434_v3 = vld [vmem:[%s2182_s2 + $0x20] sm:$0xff]  ;;  %v1433_v4 = vld [vmem:[%s2182_s2 + $0x18] sm:$0xff]  ;;  %v1432_v5 = vld [vmem:[%s2182_s2 + $0x10] sm:$0xff]  ;;  %s1411_s25 = sshll.u32 %s2191_s10, 7  ;;  %vm1028_vm3 = vcmask 1041408   ;;  %vm1024_vm7 = vcmask 15360  }
   0xd   : > { %1438 = vmatpush.bf16.msra.mxu1 %v1437_v0  ;;  %1440 = vmatpush.bf16.msra.mxu3 %v1437_v0  ;;  %v1431_v6 = vld [vmem:[%s2182_s2 + $0x8] sm:$0xff]  ;;  %v1430_v7 = vld [vmem:[%s2182_s2] sm:$0xff]  ;;  %s1679_s11 = scalar_lea.vmem %s2180_s0, %s1411_s25  ;;  %s1412_s18 = sshll.u32 %s2191_s10, 8 }
   0xe   : > { %v1414_v8 = vld [vmem:[%s1679_s11] sm:$0xff]  ;;  %v1423_v9 = vld [vmem:[%s1679_s11 + $0x48] sm:$0xff]  ;;  %v1421_v12 = vld [vmem:[%s1679_s11 + $0x38] sm:$0xff]  ;;  %s2062_s21 = scalar_lea.vmem %s2181_s1, %s1412_s18  ;;  %s2078_s23 = scalar_lea.vmem %s2189_s9, %s1412_s18 }
   0xf   : > { %v1419_v10 = vld [vmem:[%s1679_s11 + $0x28] sm:$0xff]  ;;  %v1420_v13 = vld [vmem:[%s1679_s11 + $0x30] sm:$0xff]  ;;  %v1429_v17 = vld [vmem:[%s1679_s11 + $0x78] sm:$0xff] }
  0x10   : > { %546 = vmatpush.bf16.msra.mxu0 %v1436_v1  ;;  %1442 = vmatpush.bf16.msra.mxu2 %v1436_v1  ;;  %v1427_v11 = vld [vmem:[%s1679_s11 + $0x68] sm:$0xff]  ;;  %v1424_v15 = vld [vmem:[%s1679_s11 + $0x50] sm:$0xff]  ;;  %v1418_v18 = vld [vmem:[%s1679_s11 + $0x20] sm:$0xff] }
  0x11   : > { %1441 = vmatpush.bf16.msra.mxu1 %v1436_v1  ;;  %1443 = vmatpush.bf16.msra.mxu3 %v1436_v1  ;;  %v1415_v14 = vld [vmem:[%s1679_s11 + $0x8] sm:$0xff]  ;;  %v1428_v16 = vld [vmem:[%s1679_s11 + $0x70] sm:$0xff]  ;;  %v1417_v19 = vld [vmem:[%s1679_s11 + $0x18] sm:$0xff] }
  0x12   : > { %v1416_v20 = vld [vmem:[%s1679_s11 + $0x10] sm:$0xff]  ;;  %v1425_v21 = vld [vmem:[%s1679_s11 + $0x58] sm:$0xff]  ;;  %v1426_v22 = vld [vmem:[%s1679_s11 + $0x60] sm:$0xff] }
  0x13   : > { %v1422_v23 = vld [vmem:[%s1679_s11 + $0x40] sm:$0xff] }
  0x14   : > { %547 = vmatpush.bf16.msra.mxu0 %v1435_v2  ;;  %1445 = vmatpush.bf16.msra.mxu2 %v1435_v2 }
  0x15   : > { %1444 = vmatpush.bf16.msra.mxu1 %v1435_v2  ;;  %1446 = vmatpush.bf16.msra.mxu3 %v1435_v2 }
  0x18   : > { %548 = vmatpush.bf16.msra.mxu0 %v1434_v3  ;;  %1448 = vmatpush.bf16.msra.mxu2 %v1434_v3 }
  0x19   : > { %1447 = vmatpush.bf16.msra.mxu1 %v1434_v3  ;;  %1449 = vmatpush.bf16.msra.mxu3 %v1434_v3 }
  0x1c   : > { %549 = vmatpush.bf16.msra.mxu0 %v1433_v4  ;;  %1451 = vmatpush.bf16.msra.mxu2 %v1433_v4 }
  0x1d   : > { %1450 = vmatpush.bf16.msra.mxu1 %v1433_v4  ;;  %1452 = vmatpush.bf16.msra.mxu3 %v1433_v4 }
  0x20   : > { %550 = vmatpush.bf16.msra.mxu0 %v1432_v5  ;;  %1454 = vmatpush.bf16.msra.mxu2 %v1432_v5 }
  0x21   : > { %1453 = vmatpush.bf16.msra.mxu1 %v1432_v5  ;;  %1455 = vmatpush.bf16.msra.mxu3 %v1432_v5 }
  0x24   : > { %551 = vmatpush.bf16.msra.mxu0 %v1431_v6  ;;  %1457 = vmatpush.bf16.msra.mxu2 %v1431_v6 }
  0x25   : > { %1456 = vmatpush.bf16.msra.mxu1 %v1431_v6  ;;  %1458 = vmatpush.bf16.msra.mxu3 %v1431_v6 }
  0x28   : > { %552 = vmatpush.bf16.msra.mxu0 %v1430_v7  ;;  %1460 = vmatpush.bf16.msra.mxu2 %v1430_v7 }
  0x29   : > { %1459 = vmatpush.bf16.msra.mxu1 %v1430_v7  ;;  %1461 = vmatpush.bf16.msra.mxu3 %v1430_v7 }
  0x2b   : > { %553 = vmatmul.bf16.vlgmr.msra.gmra.mxu0 %v1414_v8  ;;  %598 = vmatmul.bf16.vlgmr.msra.gmra.mxu2 %v1423_v9 }
  0x2c   : > { %578 = vmatmul.bf16.vlgmr.msra.gmra.mxu1 %v1419_v10  ;;  %618 = vmatmul.bf16.vlgmr.msra.gmra.mxu3 %v1427_v11 }
  0x2d   : > { %917 = vmatpush.bf16.msra.mxu1 %v1421_v12  ;;  %930 = vmatpush.bf16.msra.mxu2 %v1429_v17 }
  0x31   : > { %918 = vmatpush.bf16.msra.mxu1 %v1420_v13  ;;  %931 = vmatpush.bf16.msra.mxu2 %v1428_v16 }
  0x35   : > { %919 = vmatpush.bf16.msra.mxu1 %v1419_v10  ;;  %932 = vmatpush.bf16.msra.mxu2 %v1427_v11 }
  0x39   : > { %920 = vmatpush.bf16.msra.mxu1 %v1418_v18  ;;  %933 = vmatpush.bf16.msra.mxu2 %v1426_v22 }
  0x3b   : > { %558 = vmatmul.bf16.gmra.mxu0 %v1415_v14  ;;  %603 = vmatmul.bf16.gmra.mxu2 %v1424_v15 }
  0x3c   : > { %583 = vmatmul.bf16.gmra.mxu1 %v1420_v13  ;;  %623 = vmatmul.bf16.gmra.mxu3 %v1428_v16 }
  0x3d   : > { %921 = vmatpush.bf16.msra.mxu1 %v1417_v19  ;;  %934 = vmatpush.bf16.msra.mxu2 %v1425_v21 }
  0x41   : > { %922 = vmatpush.bf16.msra.mxu1 %v1416_v20  ;;  %935 = vmatpush.bf16.msra.mxu2 %v1424_v15 }
  0x45   : > { %923 = vmatpush.bf16.msra.mxu1 %v1415_v14  ;;  %936 = vmatpush.bf16.msra.mxu2 %v1423_v9 }
  0x49   : > { %924 = vmatpush.bf16.msra.mxu1 %v1414_v8  ;;  %937 = vmatpush.bf16.msra.mxu2 %v1422_v23 }
  0x4b   : > { %563 = vmatmul.bf16.gmra.mxu0 %v1416_v20  ;;  %608 = vmatmul.bf16.gmra.mxu2 %v1425_v21 }
  0x4c   : > { %588 = vmatmul.bf16.gmra.mxu1 %v1421_v12  ;;  %628 = vmatmul.bf16.gmra.mxu3 %v1429_v17 }
  0x5b   : > { %568 = vmatmul.bf16.gmra.mxu0 %v1417_v19  ;;  %613 = vmatmul.bf16.gmra.mxu2 %v1426_v22 }
  0x5c   : > { %593 = vmatmul.bf16.gmra.mxu1 %v1422_v23 }
  0x6b   : > { %573 = vmatmul.bf16.gmra.mxu0 %v1418_v18 }
  0xa8   : > { %v1697_v24 = vpop.f32.mrf.mxu0 }
  0xa9   : > { %v1699_v25 = vpop.f32.mrf.mxu1  ;;  %v635_v57 = vsel %vm634_vm0, %v1697_v24, -inf }
  0xaa   : > { %v651_v58 = vsel %vm634_vm0, %v1699_v25, -inf }
  0xae   : > { %v1703_v27 = vpop.f32.mrf.mxu2 }
  0xaf   : > { %v1715_v33 = vpop.f32.mrf.mxu3  ;;  %v667_v14 = vsel %vm634_vm0, %v1703_v27, -inf }
  0xb0   : > { %v1701_v26 = vpop.f32.mrf.mxu0 }
  0xb1   : > { %v1705_v28 = vpop.f32.mrf.mxu1  ;;  %v636_v13 = vsel %vm634_vm0, %v1701_v26, -inf }
  0xb2   : > { %v653_v54 = vsel %vm634_vm0, %v1705_v28, -inf }
  0xb6   : > { %v1709_v30 = vpop.f32.mrf.mxu2 }
  0xb7   : > { %v1723_v37 = vpop.f32.mrf.mxu3  ;;  %v669_v9 = vsel %vm634_vm0, %v1709_v30, -inf }
  0xb8   : > { %v1707_v29 = vpop.f32.mrf.mxu0 }
  0xb9   : > { %v1713_v32 = vpop.f32.mrf.mxu1  ;;  %v637_v52 = vsel %vm634_vm0, %v1707_v29, -inf }
  0xba   : > { %v655_v5 = vsel %vm634_vm0, %v1713_v32, -inf }
  0xbe   : > { %v1717_v34 = vpop.f32.mrf.mxu2 }
  0xbf   : > { %v1731_v41 = vpop.f32.mrf.mxu3 }
  0xc0   : > { %v1711_v31 = vpop.f32.mrf.mxu0 }
  0xc1   : > { %v1721_v36 = vpop.f32.mrf.mxu1  ;;  %v638_v47 = vsel %vm634_vm0, %v1711_v31, -inf }
  0xc6   : > { %v1725_v38 = vpop.f32.mrf.mxu2 }
  0xc7   : > { %v1739_v45 = vpop.f32.mrf.mxu3 }
  0xc8   : > { %v1719_v35 = vpop.f32.mrf.mxu0 }
  0xc9   : > { %v1729_v40 = vpop.f32.mrf.mxu1  ;;  %v639_v55 = vsel %vm634_vm0, %v1719_v35, -inf }
  0xca   : > { %v640_v59 = vmax.f32 %v635_v57, %v639_v55  ;;  %v659_v63 = vsel %vm634_vm0, %v1729_v40, -inf  ;;  %v685_v55 = vsel %vm634_vm0, %v1723_v37, -inf }
  0xce   : > { %v1735_v43 = vpop.f32.mrf.mxu2 }
  0xcf   : > { %v1771_v3 = vpop.f32.mrf.mxu3  ;;  %v675_v19 = vsel %vm634_vm0, %v1735_v43, -inf }
  0xd0   : > { %v1727_v39 = vpop.f32.mrf.mxu0 }
  0xd1   : > { %v1737_v44 = vpop.f32.mrf.mxu1  ;;  %v641_v10 = vsel %vm634_vm0, %v1727_v39, -inf }
  0xd2   : > { %v661_v0 = vsel %vm634_vm0, %v1737_v44, -inf  ;;  %v642_v15 = vmax.f32 %v636_v13, %v641_v10 }
  0xd6   : > { %v1749_v51 = vpop.f32.mrf.mxu2 }
  0xd7   : > { %v677_v20 = vsel %vm634_vm0, %v1749_v51, -inf }
  0xd8   : > { %v1733_v42 = vpop.f32.mrf.mxu0 }
  0xd9   : > { %v643_v48 = vsel %vm634_vm0, %v1733_v42, -inf  ;;  %v1761_v61 = vpop.f32.mrf.mxu1 }
  0xda   : > { %v644_v53 = vmax.f32 %v637_v52, %v643_v48  ;;  %v663_v11 = vsel %vm634_vm0, %v1761_v61, -inf  ;;  %v671_v48 = vsel %vm634_vm0, %v1717_v34, -inf }
  0xdc   : > { %v652_v60 = vmax.f32 %v644_v53, %v651_v58  ;;  %v1801_v53 = vpop.f32.mrf.mxu3 }
  0xde   : > { %v660_v6 = vmax.f32 %v652_v60, %v659_v63  ;;  %v1775_v8 = vpop.f32.mrf.mxu2  ;;  %v683_v63 = vsel %vm634_vm0, %v1715_v33, -inf }
  0xe0   : > { %v1741_v46 = vpop.f32.mrf.mxu0  ;;  %v668_v16 = vmax.f32 %v660_v6, %v667_v14  ;;  %v691_v6 = vsel %vm634_vm0, %v1771_v3, -inf }
  0xe1   : > { %v645_v49 = vsel %vm634_vm0, %v1741_v46, -inf  ;;  %v1795_v23 = vpop.f32.mrf.mxu1 }
  0xe2   : > { %v646_v50 = vmax.f32 %v638_v47, %v645_v49  ;;  %v657_v49 = vsel %vm634_vm0, %v1721_v36, -inf  ;;  %v665_v57 = vsel %vm634_vm0, %v1795_v23, -inf }
  0xe4   : > { %v654_v56 = vmax.f32 %v646_v50, %v653_v54  ;;  %v676_v50 = vmax.f32 %v668_v16, %v675_v19 }
  0xe6   : > { %v662_v2 = vmax.f32 %v654_v56, %v661_v0  ;;  %v679_v56 = vsel %vm634_vm0, %v1775_v8, -inf  ;;  %v1809_v60 = vpop.f32.mrf.mxu2  ;;  %v673_v0 = vsel %vm634_vm0, %v1725_v38, -inf }
  0xe8   : > { %v1763_v62 = vpop.f32.mrf.mxu0  ;;  %v670_v12 = vmax.f32 %v662_v2, %v669_v9  ;;  %v684_v2 = vmax.f32 %v676_v50, %v683_v63 }
  0xe9   : > { %v647_v1 = vsel %vm634_vm0, %v1763_v62, -inf }
  0xea   : > { %v648_v4 = vmax.f32 %v640_v59, %v647_v1  ;;  %v678_v22 = vmax.f32 %v670_v12, %v677_v20  ;;  %v693_v1 = vsel %vm634_vm0, %v1801_v53, -inf  ;;  %v689_v12 = vsel %vm634_vm0, %v1739_v45, -inf }
  0xeb   : > { %v692_v13 = vmax.f32 %v684_v2, %v691_v6 }
  0xec   : > { %v656_v7 = vmax.f32 %v648_v4, %v655_v5  ;;  %v686_v58 = vmax.f32 %v678_v22, %v685_v55 }
  0xee   : > { %v664_v17 = vmax.f32 %v656_v7, %v663_v11  ;;  %v681_v7 = vsel %vm634_vm0, %v1809_v60, -inf  ;;  %v694_v9 = vmax.f32 %v686_v58, %v693_v1  ;;  %v687_v11 = vsel %vm634_vm0, %v1731_v41, -inf }
  0xf0   : > { %v1787_v18 = vpop.f32.mrf.mxu0  ;;  %v672_v52 = vmax.f32 %v664_v17, %v671_v48  ;;  %v696_v16 = vmax.f32 %v692_v13, %v694_v9 }
  0xf1   : > { %v649_v21 = vsel %vm634_vm0, %v1787_v18, -inf }
  0xf2   : > { %v650_v47 = vmax.f32 %v642_v15, %v649_v21  ;;  %v680_v4 = vmax.f32 %v672_v52, %v679_v56 }
  0xf4   : > { %v658_v54 = vmax.f32 %v650_v47, %v657_v49  ;;  %v688_v14 = vmax.f32 %v680_v4, %v687_v11 }
  0xf6   : > { %v666_v59 = vmax.f32 %v658_v54, %v665_v57 }
  0xf8   : > { %v674_v5 = vmax.f32 %v666_v59, %v673_v0 }
  0xfa   : > { %v682_v10 = vmax.f32 %v674_v5, %v681_v7 }
  0xfc   : > { %v690_v15 = vmax.f32 %v682_v10, %v689_v12 }
  0xfe   : > { %v695_v17 = vmax.f32 %v688_v14, %v690_v15 }
 0x100   : > { %v697_v19 = vmax.f32 %v695_v17, %v696_v16 }
 0x102   : > { %v698_v20 = vrot.slane %v697_v19, 4 }
 0x104   : > { %v699_v21 = vmax.f32 %v697_v19, %v698_v20 }
 0x106   : > { %v700_v22 = vrot.slane %v699_v21, 2 }
 0x108   : > { %v701_v47 = vmax.f32 %v699_v21, %v700_v22 }
 0x10a   : > { %v702_v48 = vrot.slane %v701_v47, 1 }
 0x10c   : > { %v1825_v49 = vmax.f32 %v701_v47, %v702_v48 }
 0x10e   : > { %v704_v50 = vsub.f32 %v1697_v24, %v1825_v49  ;;  %v705_v52 = vsub.f32 %v1701_v26, %v1825_v49  ;;  %v706_v54 = vsub.f32 %v1707_v29, %v1825_v49  ;;  %v707_v55 = vsub.f32 %v1711_v31, %v1825_v49 }
 0x10f   : > { %v708_v56 = vsub.f32 %v1719_v35, %v1825_v49  ;;  %v709_v63 = vsub.f32 %v1727_v39, %v1825_v49  ;;  %v710_v24 = vsub.f32 %v1733_v42, %v1825_v49  ;;  %v711_v29 = vsub.f32 %v1741_v46, %v1825_v49 }
 0x110   : > { %v736_v57 = vmul.f32 1.442695, %v704_v50  ;;  %v738_v58 = vmul.f32 1.442695, %v705_v52  ;;  %v740_v59 = vmul.f32 1.442695, %v706_v54  ;;  %v712_v31 = vsub.f32 %v1763_v62, %v1825_v49 }
 0x111   : > { %v742_v0 = vmul.f32 1.442695, %v707_v55  ;;  %v744_v26 = vmul.f32 1.442695, %v708_v56  ;;  %v746_v35 = vmul.f32 1.442695, %v709_v63  ;;  %v713_v1 = vsub.f32 %v1787_v18, %v1825_v49 }
 0x112   : > { %1501 = vpow2.f32 %v736_v57  ;;  %v714_v39 = vsub.f32 %v1699_v25, %v1825_v49  ;;  %v748_v2 = vmul.f32 1.442695, %v710_v24  ;;  %v718_v4 = vsub.f32 %v1729_v40, %v1825_v49 }
 0x113   : > { %1503 = vpow2.f32 %v738_v58  ;;  %v750_v46 = vmul.f32 1.442695, %v711_v29  ;;  %v719_v62 = vsub.f32 %v1737_v44, %v1825_v49  ;;  %v752_v6 = vmul.f32 1.442695, %v712_v31 }
 0x114   : > { %1505 = vpow2.f32 %v740_v59  ;;  %v716_v25 = vsub.f32 %v1713_v32, %v1825_v49  ;;  %v754_v9 = vmul.f32 1.442695, %v713_v1  ;;  %v717_v11 = vsub.f32 %v1721_v36, %v1825_v49 }
 0x115   : > { %1507 = vpow2.f32 %v742_v0  ;;  %v756_v44 = vmul.f32 1.442695, %v714_v39  ;;  %v764_v13 = vmul.f32 1.442695, %v718_v4  ;;  %v715_v32 = vsub.f32 %v1705_v28, %v1825_v49 }
 0x116   : > { %1509 = vpow2.f32 %v744_v26  ;;  %v766_v16 = vmul.f32 1.442695, %v719_v62  ;;  %v760_v19 = vmul.f32 1.442695, %v716_v25  ;;  %v762_v21 = vmul.f32 1.442695, %v717_v11 }
 0x117   : > { %1511 = vpow2.f32 %v746_v35  ;;  %v758_v28 = vmul.f32 1.442695, %v715_v32  ;;  %v720_v63 = vsub.f32 %v1761_v61, %v1825_v49  ;;  %v721_v26 = vsub.f32 %v1795_v23, %v1825_v49 }
 0x118   : > { %v1849_v42 = vpop.eup %1501  ;;  %1513 = vpow2.f32 %v748_v2  ;;  %v722_v35 = vsub.f32 %v1703_v27, %v1825_v49  ;;  %v734_v61 = vsub.f32 %v1771_v3, %v1825_v49  ;;  %v723_v3 = vsub.f32 %v1709_v30, %v1825_v49 }
 0x119   : > { %v1853_v5 = vpop.eup %1503  ;;  %v800_v18 = vsel %vm634_vm0, %v1849_v42, 0.0  ;;  %1515 = vpow2.f32 %v750_v46  ;;  %v768_v23 = vmul.f32 1.442695, %v720_v63  ;;  %v770_v27 = vmul.f32 1.442695, %v721_v26 }
 0x11a   : > { %v1859_v7 = vpop.eup %1505  ;;  %v801_v40 = vsel %vm634_vm0, %v1853_v5, 0.0  ;;  %1517 = vpow2.f32 %v752_v6  ;;  %v735_v6 = vsub.f32 %v1801_v53, %v1825_v49  ;;  %v724_v53 = vsub.f32 %v1717_v34, %v1825_v49 }
 0x11b   : > { %v1865_v10 = vpop.eup %1507  ;;  %v802_v12 = vadd.f32 %v801_v40, %v800_v18  ;;  %v803_v14 = vsel %vm634_vm0, %v1859_v7, 0.0  ;;  %1519 = vpow2.f32 %v754_v9  ;;  %v732_v18 = vsub.f32 %v1731_v41, %v1825_v49 }
 0x11c   : > { %v1871_v15 = vpop.eup %1509  ;;  %v805_v36 = vsel %vm634_vm0, %v1865_v10, 0.0  ;;  %1521 = vpow2.f32 %v756_v44  ;;  %v772_v40 = vmul.f32 1.442695, %v722_v35  ;;  %v733_v44 = vsub.f32 %v1739_v45, %v1825_v49 }
 0x11d   : > { %v804_v17 = vadd.f32 %v803_v14, %v802_v12  ;;  %v1877_v20 = vpop.eup %1511  ;;  %1523 = vpow2.f32 %v764_v13  ;;  %v807_v47 = vsel %vm634_vm0, %v1871_v15, 0.0  ;;  %v796_v41 = vmul.f32 1.442695, %v734_v61 }
 0x11e   : > { %v1881_v48 = vpop.eup %1513  ;;  %1525 = vpow2.f32 %v766_v16  ;;  %v809_v54 = vsel %vm634_vm0, %v1877_v20, 0.0  ;;  %v725_v14 = vsub.f32 %v1725_v38, %v1825_v49  ;;  %v798_v16 = vmul.f32 1.442695, %v735_v6 }
 0x11f   : > { %v806_v22 = vadd.f32 %v805_v36, %v804_v17  ;;  %v1883_v52 = vpop.eup %1515  ;;  %1527 = vpow2.f32 %v760_v19  ;;  %v811_v58 = vsel %vm634_vm0, %v1881_v48, 0.0  ;;  %v730_v30 = vsub.f32 %v1715_v33, %v1825_v49 }
 0x120   : > { %v1887_v55 = vpop.eup %1517  ;;  %1529 = vpow2.f32 %v762_v21  ;;  %v813_v29 = vsel %vm634_vm0, %v1883_v52, 0.0  ;;  %v792_v17 = vmul.f32 1.442695, %v732_v18  ;;  %v731_v34 = vsub.f32 %v1723_v37, %v1825_v49 }
 0x121   : > { %v808_v50 = vadd.f32 %v807_v47, %v806_v22  ;;  %v1889_v57 = vpop.eup %1519  ;;  %1531 = vpow2.f32 %v758_v28  ;;  %v815_v2 = vsel %vm634_vm0, %v1887_v55, 0.0  ;;  %v794_v36 = vmul.f32 1.442695, %v733_v44 }
 0x122   : > { %v1522_v59 = vpop.eup %1521  ;;  %v817_v25 = vsel %vm634_vm0, %v1889_v57, 0.0  ;;  %1533 = vpow2.f32 %v768_v23  ;;  %v774_v21 = vmul.f32 1.442695, %v723_v3  ;;  %v726_v47 = vsub.f32 %v1735_v43, %v1825_v49 }
 0x123   : > { %v810_v56 = vadd.f32 %v809_v54, %v808_v50  ;;  %v1524_v24 = vpop.eup %1523  ;;  %v819_v12 = vsel %vm634_vm0, %v1522_v59, 0.0  ;;  %1535 = vpow2.f32 %v770_v27  ;;  %v776_v33 = vmul.f32 1.442695, %v724_v53 }
 0x124   : > { %v1899_v31 = vpop.eup %1525  ;;  %1537 = vpow2.f32 %v772_v40  ;;  %v728_v50 = vsub.f32 %v1775_v8, %v1825_v49  ;;  %v788_v54 = vmul.f32 1.442695, %v730_v30  ;;  %v827_v26 = vsel %vm634_vm0, %v1524_v24, 0.0 }
 0x125   : > { %v812_v0 = vadd.f32 %v811_v58, %v810_v56  ;;  %v1528_v39 = vpop.eup %1527  ;;  %v876_v4 = vpack.c.bf16 %v1899_v31, %v1524_v24  ;;  %1539 = vpow2.f32 %v796_v41  ;;  %v729_v58 = vsub.f32 %v1809_v60, %v1825_v49 }
 0x126   : > { %v1530_v46 = vpop.eup %1529  ;;  %v823_v38 = vsel %vm634_vm0, %v1528_v39, 0.0  ;;  %1541 = vpow2.f32 %v798_v16  ;;  %v873_v8 = vpack.c.bf16 %v1889_v57, %v1887_v55  ;;  %v727_v35 = vsub.f32 %v1749_v51, %v1825_v49 }
 0x127   : > { %v814_v1 = vadd.f32 %v813_v29, %v812_v0  ;;  %1465 = vmatpush.lsf.bf16.msrb.mxu1 %v876_v4  ;;  %v1532_v9 = vpop.eup %1531  ;;  %v875_v13 = vpack.c.bf16 %v1530_v46, %v1528_v39  ;;  %1543 = vpow2.f32 %v792_v17  ;;  %v825_v37 = vsel %vm634_vm0, %v1530_v46, 0.0 }
 0x128   : > { %v821_v45 = vsel %vm634_vm0, %v1532_v9, 0.0  ;;  %v874_v22 = vpack.c.bf16 %v1532_v9, %v1522_v59  ;;  %v1934_v56 = vpop.eup %1533  ;;  %v790_v59 = vmul.f32 1.442695, %v731_v34  ;;  %1545 = vpow2.f32 %v794_v36 }
 0x129   : > { %v816_v62 = vadd.f32 %v815_v2, %v814_v1  ;;  %v1938_v43 = vpop.eup %1535  ;;  %1547 = vpow2.f32 %v774_v21  ;;  %v778_v0 = vmul.f32 1.442695, %v725_v14  ;;  %v780_v1 = vmul.f32 1.442695, %v726_v47 }
 0x12a   : > { %v1943_v29 = vpop.eup %1537  ;;  %1549 = vpow2.f32 %v776_v33  ;;  %v784_v2 = vmul.f32 1.442695, %v728_v50  ;;  %v829_v61 = vsel %vm634_vm0, %v1899_v31, 0.0  ;;  %v786_v4 = vmul.f32 1.442695, %v729_v58 }
 0x12b   : > { %v818_v11 = vadd.f32 %v817_v25, %v816_v62  ;;  %1466 = vmatpush.lsf.bf16.msrb.mxu1 %v875_v13  ;;  %v1947_v39 = vpop.eup %1539  ;;  %1551 = vpow2.f32 %v788_v54  ;;  %v831_v51 = vsel %vm634_vm0, %v1934_v56, 0.0  ;;  %v872_v46 = vpack.c.bf16 %v1883_v52, %v1881_v48 }
 0x12c   : > { %v1951_v24 = vpop.eup %1541  ;;  %1553 = vpow2.f32 %v790_v59  ;;  %v782_v31 = vmul.f32 1.442695, %v727_v35  ;;  %v833_v18 = vsel %vm634_vm0, %v1938_v43, 0.0  ;;  %v835_v3 = vsel %vm634_vm0, %v1943_v29, 0.0 }
 0x12d   : > { %v820_v32 = vadd.f32 %v819_v12, %v818_v11  ;;  %v1544_v57 = vpop.eup %1543  ;;  %1555 = vpow2.f32 %v778_v0  ;;  %v884_v49 = vpack.c.bf16 %v1951_v24, %v1947_v39  ;;  %v871_v48 = vpack.c.bf16 %v1877_v20, %v1871_v15 }
 0x12e   : > { %v1546_v23 = vpop.eup %1545  ;;  %1557 = vpow2.f32 %v780_v1  ;;  %v870_v16 = vpack.c.bf16 %v1865_v10, %v1859_v7  ;;  %v869_v36 = vpack.c.bf16 %v1853_v5, %v1849_v42  ;;  %v855_v58 = vsel %vm634_vm0, %v1544_v57, 0.0 }
 0x12f   : > { %v822_v19 = vadd.f32 %v821_v45, %v820_v32  ;;  %1467 = vmatpush.lsf.bf16.msrb.mxu1 %v874_v22  ;;  %v1548_v6 = vpop.eup %1547  ;;  %1559 = vpow2.f32 %v784_v2  ;;  %1479 = vmatpush.lsf.bf16.msrb.mxu2 %v884_v49  ;;  %v883_v40 = vpack.c.bf16 %v1546_v23, %v1544_v57  ;;  %v857_v0 = vsel %vm634_vm0, %v1546_v23, 0.0 }
 0x130   : > { %v1550_v27 = vpop.eup %1549  ;;  %1561 = vpow2.f32 %v786_v4  ;;  %v837_v53 = vsel %vm634_vm0, %v1548_v6, 0.0  ;;  %v878_v59 = vpack.c.bf16 %v1548_v6, %v1943_v29  ;;  %v877_v35 = vpack.c.bf16 %v1938_v43, %v1934_v56  ;;  %v965_v29 = vld [vmem:[%s2183_s3 + $0x78] sm:$0xff]  ;;  %v964_v4 = vld [vmem:[%s2183_s3 + $0x70] sm:$0xff]  ;;  %v963_v43 = vld [vmem:[%s2183_s3 + $0x68] sm:$0xff] }
 0x131   : > { %v824_v28 = vadd.f32 %v823_v38, %v822_v19  ;;  %v1552_v9 = vpop.eup %1551  ;;  %1563 = vpow2.f32 %v782_v31  ;;  %v839_v14 = vsel %vm634_vm0, %v1550_v27, 0.0  ;;  %967 = vmatpush.msrb.mxu3 %v965_v29  ;;  %v959_v31 = vld [vmem:[%s2183_s3 + $0x48] sm:$0xff]  ;;  %v957_v6 = vld [vmem:[%s2183_s3 + $0x38] sm:$0xff] }
 0x132   : > { %v1554_v52 = vpop.eup %1553  ;;  %v851_v50 = vsel %vm634_vm0, %v1552_v9, 0.0 }
 0x133   : > { %v826_v63 = vadd.f32 %v825_v37, %v824_v28  ;;  %1468 = vmatpush.lsf.bf16.msrb.mxu1 %v873_v8  ;;  %v1556_v44 = vpop.eup %1555  ;;  %1480 = vmatpush.lsf.bf16.msrb.mxu2 %v883_v40  ;;  %v882_v32 = vpack.c.bf16 %v1554_v52, %v1552_v9  ;;  %v853_v42 = vsel %vm634_vm0, %v1554_v52, 0.0  ;;  %v859_v8 = vsel %vm634_vm0, %v1947_v39, 0.0  ;;  %v954_v9 = vld [vmem:[%s2183_s3 + $0x20] sm:$0xff]  ;;  %v952_v40 = vld [vmem:[%s2183_s3 + $0x10] sm:$0xff] }
 0x134   : > { %v1558_v12 = vpop.eup %1557  ;;  %v841_v15 = vsel %vm634_vm0, %v1556_v44, 0.0  ;;  %v879_v54 = vpack.c.bf16 %v1556_v44, %v1550_v27  ;;  %v1583_v39 = vmov 0   ;;  %968 = vmatpush.msrb.mxu3 %v964_v4  ;;  %v950_v52 = vld [vmem:[%s2183_s3] sm:$0xff] }
 0x135   : > { %v828_v60 = vadd.f32 %v827_v26, %v826_v63  ;;  %v1560_v13 = vpop.eup %1559  ;;  %v843_v34 = vsel %vm634_vm0, %v1558_v12, 0.0  ;;  %1500 = vset.pattern.permute.xlu0 %v1583_v39 }
 0x136   : > { %v1562_v30 = vpop.eup %1561  ;;  %v847_v10 = vsel %vm634_vm0, %v1560_v13, 0.0  ;;  %969 = vmatpush.msrb.mxu3 %v963_v43 }
 0x137   : > { %v830_v55 = vadd.f32 %v829_v61, %v828_v60  ;;  %1469 = vmatpush.lsf.bf16.msrb.mxu1 %v872_v46  ;;  %1481 = vmatpush.lsf.bf16.msrb.mxu2 %v882_v32  ;;  %v1564_v20 = vpop.eup %1563  ;;  %v881_v19 = vpack.c.bf16 %v1562_v30, %v1560_v13  ;;  %v849_v33 = vsel %vm634_vm0, %v1562_v30, 0.0  ;;  %v861_v60 = vsel %vm634_vm0, %v1951_v24, 0.0  ;;  %v960_v46 = vld [vmem:[%s2183_s3 + $0x50] sm:$0xff]  ;;  %v966_v32 = vld [vmem:[%s2184_s4] sm:$0x1] }
 0x138   : > { %v845_v38 = vsel %vm634_vm0, %v1564_v20, 0.0  ;;  %v880_v22 = vpack.c.bf16 %v1564_v20, %v1558_v12 }
 0x139   : > { %v832_v62 = vadd.f32 %v831_v51, %v830_v55  ;;  %v962_v55 = vld [vmem:[%s2183_s3 + $0x60] sm:$0xff]  ;;  %v961_v51 = vld [vmem:[%s2183_s3 + $0x58] sm:$0xff] }
 0x13a   : > { %970 = vmatpush.msrb.mxu3 %v962_v55 }
 0x13b   : > { %v834_v25 = vadd.f32 %v833_v18, %v832_v62  ;;  %1470 = vmatpush.lsf.bf16.msrb.mxu1 %v871_v48  ;;  %1482 = vmatpush.lsf.bf16.msrb.mxu2 %v881_v19  ;;  %v958_v62 = vld [vmem:[%s2183_s3 + $0x40] sm:$0xff]  ;;  %v956_v18 = vld [vmem:[%s2183_s3 + $0x30] sm:$0xff]  ;;  %v951_v48 = vld [vmem:[%s2183_s3 + $0x8] sm:$0xff] }
 0x13c   : > { %971 = vmatpush.msrb.mxu3 %v961_v51 }
 0x13d   : > { %v836_v11 = vadd.f32 %v835_v3, %v834_v25  ;;  %v955_v25 = vld [vmem:[%s2183_s3 + $0x28] sm:$0xff]  ;;  %v953_v3 = vld [vmem:[%s2183_s3 + $0x18] sm:$0xff] }
 0x13e   : > { %972 = vmatpush.msrb.mxu3 %v960_v46 }
 0x13f   : > { %v838_v41 = vadd.f32 %v837_v53, %v836_v11  ;;  %1471 = vmatpush.lsf.bf16.msrb.mxu1 %v870_v16  ;;  %1483 = vmatpush.lsf.bf16.msrb.mxu2 %v880_v22 }
 0x140   : > { %973 = vmatpush.msrb.mxu3 %v959_v31 }
 0x141   : > { %v840_v17 = vadd.f32 %v839_v14, %v838_v41 }
 0x142   : > { %974 = vmatpush.msrb.mxu3 %v958_v62 }
 0x143   : > { %v842_v45 = vadd.f32 %v841_v15, %v840_v17  ;;  %1472 = vmatpush.lsf.bf16.msrb.mxu1 %v869_v36  ;;  %1484 = vmatpush.lsf.bf16.msrb.mxu2 %v879_v54  ;;  %v1584_v15 = vmov 2.0  }
 0x144   : > { %975 = vmatpush.msrb.mxu3 %v957_v6  ;;  %v353_v6 = vld [vmem:[%s1679_s11] sm:$0xff]  }
 0x145   : > { %v844_v21 = vadd.f32 %v843_v34, %v842_v45  ;;  %1473 = vllmr.2.mxu1 }
 0x146   : > { %976 = vmatpush.msrb.mxu3 %v956_v18  ;;  %v355_v18 = vld [vmem:[%s1679_s11 + $0x8] sm:$0xff]  }
 0x147   : > { %v846_v7 = vadd.f32 %v845_v38, %v844_v21  ;;  %1485 = vmatpush.lsf.bf16.msrb.mxu2 %v878_v59 }
 0x148   : > { %977 = vmatpush.msrb.mxu3 %v955_v25  ;;  %v357_v25 = vld [vmem:[%s1679_s11 + $0x10] sm:$0xff]  }
 0x149   : > { %v848_v47 = vadd.f32 %v847_v10, %v846_v7 }
 0x14a   : > { %978 = vmatpush.msrb.mxu3 %v954_v9  ;;  %v1071_v9 = vunpack.c.l.bf16 %v353_v6 }
 0x14b   : > { %v850_v28 = vadd.f32 %v849_v33, %v848_v47  ;;  %1486 = vmatpush.lsf.bf16.msrb.mxu2 %v877_v35  ;;  %v1022_v33 = vld [vmem:[%s2187_s7] sm:$0x3] }
 0x14c   : > { %979 = vmatpush.msrb.mxu3 %v953_v3  ;;  %v1019_v35 = vld [vmem:[%s2186_s6] sm:$0x1]  ;;  %v1072_v3 = vunpack.c.h.bf16 %v353_v6 }
 0x14d   : > { %v852_v37 = vadd.f32 %v851_v50, %v850_v28  ;;  %1487 = vllmr.2.mxu2 }
 0x14e   : > { %980 = vmatpush.msrb.mxu3 %v952_v40  ;;  %v1073_v40 = vunpack.c.l.bf16 %v355_v18 }
 0x14f   : > { %v854_v5 = vadd.f32 %v853_v42, %v852_v37 }
 0x150   : > { %981 = vmatpush.msrb.mxu3 %v951_v48 }
 0x151   : > { %v856_v63 = vadd.f32 %v855_v58, %v854_v5 }
 0x152   : > { %982 = vmatpush.msrb.mxu3 %v950_v52  ;;  %v359_v52 = vld [vmem:[%s1679_s11 + $0x18] sm:$0xff]  }
 0x153   : > { %v858_v26 = vadd.f32 %v857_v0, %v856_v63  ;;  %v1017_v0 = vld [vmem:[%s2185_s5] sm:$0x1] }
 0x154   : > { %1406 = vmatpush.msk.msra.mxu3 %vm1028_vm3, %v1022_v33  ;;  %v1141_v33 = vld [vmem:[%s2062_s21 + $0x28] sm:$0xff] }
 0x155   : > { %v860_v1 = vadd.f32 %v859_v8, %v858_v26 }
 0x157   : > { %v862_v2 = vadd.f32 %v861_v60, %v860_v1 }
 0x159   : > { %v863_v61 = vrot.slane %v862_v2, 4 }
 0x15b   : > { %v864_v56 = vadd.f32 %v863_v61, %v862_v2  ;;  %v1023_v61 = vld [vmem:[%s2188_s8] sm:$0x1] }
 0x15d   : > { %v865_v24 = vrot.slane %v864_v56, 2 }
 0x15f   : > { %v866_v57 = vadd.f32 %v865_v24, %v864_v56 }
 0x161   : > { %v867_v49 = vrot.slane %v866_v57, 1 }
 0x163   : > { %v868_v23 = vadd.f32 %v867_v49, %v866_v57 }
 0x165   : > { %1565 = vrcp.f32 %v868_v23 }
 0x166   : > { %1474 = vmatmul.lmr.bf16.vlgmr.msra.gmra.2.mxu1  ;;  %1567 = vrcp.f32 %v1584_v15  ;;  %v1136_v15 = vld [vmem:[%s2062_s21] sm:$0xff] }
 0x16b   : > { %v1566_v27 = vpop.eup %1565 }
 0x16c   : > { %946 = vperm.xlu0 %1500, %v1566_v27   ;;  %v1568_v20 = vpop.eup %1567 }
 0x16d   : > { %v992_v45 = vmul.f32 2.0, %v1568_v20  ;;  %vm996_vm2 = vweird.f32 %v1568_v20 }
 0x16e   : > { %1475 = vmatmul.lmr.bf16.gmra.2.mxu1  ;;  %1488 = vmatmul.lmr.bf16.vlgmr.msra.gmra.2.mxu2 }
 0x16f   : > { %v993_v34 = vsub.f32 1.0, %v992_v45  ;;  %v1138_v45 = vld [vmem:[%s2062_s21 + $0x10] sm:$0xff] }
 0x171   : > { %v994_v19 = vmul.f32 %v1568_v20, %v993_v34 }
 0x173   : > { %v995_v36 = vadd.f32 %v1568_v20, %v994_v19 }
 0x175   : > { %v997_v21 = vsel %vm996_vm2, %v1568_v20, %v995_v36  ;;  %v1137_v20 = vld [vmem:[%s2062_s21 + $0x8] sm:$0xff]  ;;  %v1139_v36 = vld [vmem:[%s2062_s21 + $0x18] sm:$0xff] }
 0x176   : > { %1489 = vmatmul.lmr.bf16.gmra.2.mxu2 }
 0x1de   : > { %v947_v41 = vpop.permute.xlu0 %946 }
 0x1e3   : > { %v926_v11 = vpop.f32.mrf.mxu1 }
 0x1eb   : > { %v928_v44 = vpop.f32.mrf.mxu1 }
 0x1ec   : > { %v1075_v44 = vunpack.c.l.bf16 %v357_v25 }
 0x1f1   : > { %v939_v53 = vpop.f32.mrf.mxu2 }
 0x1f2   : > { %v940_v12 = vadd.f32 %v939_v53, %v926_v11  ;;  %v1074_v11 = vunpack.c.h.bf16 %v355_v18  ;;  %v361_v53 = vld [vmem:[%s1679_s11 + $0x20] sm:$0xff]  }
 0x1f3   : > { %v1079_v34 = vunpack.c.l.bf16 %v361_v53 }
 0x1f4   : > { %v949_v13 = vmul.f32 %v947_v41, %v940_v12  ;;  %v1076_v12 = vunpack.c.h.bf16 %v357_v25  ;;  %v363_v41 = vld [vmem:[%s1679_s11 + $0x28] sm:$0xff]  }
 0x1f6   : > { %983 = vmatmul.f32.vlgmr.msrb.gmra.mxu3 %v949_v13  ;;  %v1077_v13 = vunpack.c.l.bf16 %v359_v52 }
 0x1f9   : > { %v941_v14 = vpop.f32.mrf.mxu2 }
 0x279   : > { %v984_v16 = vpop.f32.mrf.mxu3 }
 0x27a   : > { %v985_v30 = vadd.f32 %v984_v16, %v966_v32 }
 0x27c   : > { %v988_v17 = vsel %vm987_vm1, %v985_v30, 0.0 }
 0x27d   : > { %989 = vadd.xlane.f32.xlu0 %v988_v17 }
 0x2f0   : > { %v990_v38 = vpop.xlane.xlu0 %989 }
 0x2f1   : > { %v998_v7 = vmul.f32 %v997_v21, %v990_v38  ;;  %v1080_v38 = vunpack.c.h.bf16 %v361_v53 }
 0x2f3   : > { %v999_v10 = vsub.f32 %v985_v30, %v998_v7  ;;  %v1078_v30 = vunpack.c.h.bf16 %v359_v52  ;;  %v1081_v7 = vunpack.c.l.bf16 %v363_v41 }
 0x2f5   : > { %v1000_v22 = vmul.f32 %v999_v10, %v999_v10 }
 0x2f7   : > { %v1001_v47 = vsel %vm987_vm1, %v1000_v22, 0.0  ;;  %v1140_v22 = vld [vmem:[%s2062_s21 + $0x20] sm:$0xff] }
 0x2f8   : > { %1002 = vadd.xlane.f32.xlu1 %v1001_v47 }
 0x36b   : > { %v1003_v28 = vpop.xlane.xlu1 %1002 }
 0x36c   : > { %v1004_v50 = vmul.f32 %v1003_v28, %v997_v21  ;;  %v365_v21 = vld [vmem:[%s1679_s11 + $0x30] sm:$0xff]  }
 0x36e   : > { %v1005_v54 = vadd.f32 1e-05, %v1004_v50 }
 0x370   : > { %1569 = vrsqrt.f32 %v1005_v54  ;;  %vm1012_vm5 = vweird.f32 %v1005_v54 }
 0x376   : > { %v1570_v37 = vpop.eup %1569 }
 0x377   : > { %v1007_v42 = vmul.f32 %v1570_v37, %v1005_v54  ;;  %vm1013_vm4 = vweird.f32 %v1570_v37 }
 0x378   : > { %vm1014_vm6 = vmor %vm1012_vm5, %vm1013_vm4 }
 0x379   : > { %v1008_v5 = vmul.f32 %v1570_v37, %v1007_v42  ;;  %v1082_v42 = vunpack.c.h.bf16 %v363_v41 }
 0x37b   : > { %v1009_v58 = vmul.f32 0.5, %v1008_v5 }
 0x37d   : > { %v1010_v59 = vsub.f32 1.5, %v1009_v58  ;;  %v1142_v58 = vld [vmem:[%s2062_s21 + $0x30] sm:$0xff] }
 0x37f   : > { %v1011_v63 = vmul.f32 %v1570_v37, %v1010_v59 }
 0x381   : > { %v1015_v26 = vsel %vm1014_vm6, %v1570_v37, %v1011_v63  ;;  %v367_v37 = vld [vmem:[%s1679_s11 + $0x38] sm:$0xff]   ;;  %v1083_v63 = vunpack.c.l.bf16 %v365_v21 }
 0x382   : > { %v1016_v8 = vmul.f32 %v1015_v26, %v999_v10  ;;  %v1143_v26 = vld [vmem:[%s2062_s21 + $0x38] sm:$0xff] }
 0x384   : > { %v1018_v1 = vmul.f32 %v1017_v0, %v1016_v8 }
 0x386   : > { %v1020_v60 = vadd.f32 %v1019_v35, %v1018_v1  ;;  %v369_v35 = vld [vmem:[%s1679_s11 + $0x40] sm:$0xff]   ;;  %v1084_v1 = vunpack.c.h.bf16 %v365_v21 }
 0x387   : > { %v1088_v6 = vunpack.c.h.bf16 %v369_v35 }
 0x388   : > { %v1021_v2 = vmax.f32 %v1020_v60, 0.0 }
 0x38a   : > { %1407 = vmatmul.msk.f32.vlgmr.msra.gmra.mxu3 %vm1024_vm7, %v1021_v2  ;;  %v1144_v2 = vld [vmem:[%s2062_s21 + $0x40] sm:$0xff] }
 0x40d   : > { %v1049_v29 = vpop.f32.mrf.mxu3 }
 0x40e   : > { %v1050_v4 = vadd.f32 %v1049_v29, %v1023_v61  ;;  %v1085_v29 = vunpack.c.l.bf16 %v367_v37 }
 0x410   : > { %v1408_v39 = vmul.f32 -1.442695, %v1050_v4 }
 0x412   : > { %1571 = vpow2.f32 %v1408_v39  ;;  %v1145_v39 = vld [vmem:[%s2062_s21 + $0x48] sm:$0xff] }
 0x418   : > { %v1572_v56 = vpop.eup %1571 }
 0x419   : > { %v1055_v43 = vadd.f32 1.0, %v1572_v56 }
 0x41b   : > { %1573 = vrcp.f32 %v1055_v43  ;;  %v1067_v51 = vand.u32 2147483648, %v1055_v43  ;;  %v1065_v46 = vand.u32 2147483647, %v1055_v43  ;;  %vm1061_vm9 = vweird.f32 %v1055_v43 }
 0x41d   : > { %v1068_v31 = vor.u32 1.1754944e-38, %v1067_v51  ;;  %vm1066_vm11 = vcmp.eq.f32.partialorder %v1065_v46, 8.507059e+37 }
 0x421   : > { %v1574_v24 = vpop.eup %1573 }
 0x422   : > { %v1057_v55 = vmul.f32 %v1574_v24, %v1055_v43  ;;  %vm1062_vm8 = vweird.f32 %v1574_v24  ;;  %v371_v43 = vld [vmem:[%s1679_s11 + $0x48] sm:$0xff]  }
 0x423   : > { %vm1063_vm10 = vmor %vm1061_vm9, %vm1062_vm8 }
 0x424   : > { %v1058_v57 = vsub.f32 1.0, %v1057_v55 }
 0x426   : > { %v1059_v49 = vmul.f32 %v1574_v24, %v1058_v57  ;;  %v1146_v57 = vld [vmem:[%s2062_s21 + $0x50] sm:$0xff] }
 0x428   : > { %v1060_v23 = vadd.f32 %v1574_v24, %v1059_v49  ;;  %v1087_v49 = vunpack.c.l.bf16 %v369_v35  ;;  %v383_v35 = vld [vmem:[%s1679_s11 + $0x78] sm:$0xff]  }
 0x42a   : > { %v1064_v62 = vsel %vm1063_vm10, %v1574_v24, %v1060_v23  ;;  %v1086_v24 = vunpack.c.h.bf16 %v367_v37  ;;  %v1147_v23 = vld [vmem:[%s2062_s21 + $0x58] sm:$0xff]  ;;  %v381_v37 = vld [vmem:[%s1679_s11 + $0x70] sm:$0xff]  }
 0x42b   : > { %v1069_v27 = vsel %vm1066_vm11, %v1068_v31, %v1064_v62  ;;  %v373_v62 = vld [vmem:[%s1679_s11 + $0x50] sm:$0xff]  }
 0x42c   : > { %v2056_v48 = vperm.slane %v1069_v27, 0  ;;  %v1148_v27 = vld [vmem:[%s2062_s21 + $0x60] sm:$0xff] }
 0x42e   : > { %v1104_v14 = vmul.f32 %v2056_v48, %v1071_v9  ;;  %v1105_v32 = vmul.f32 %v2056_v48, %v1072_v3  ;;  %v1106_v16 = vmul.f32 %v2056_v48, %v1073_v40  ;;  %v1107_v17 = vmul.f32 %v2056_v48, %v1074_v11  ;;  %v1149_v40 = vld [vmem:[%s2062_s21 + $0x68] sm:$0xff]  ;;  %v375_v11 = vld [vmem:[%s1679_s11 + $0x58] sm:$0xff]  }
 0x42f   : > { %v1108_v19 = vmul.f32 %v2056_v48, %v1075_v44  ;;  %v1109_v10 = vmul.f32 %v2056_v48, %v1076_v12  ;;  %v1110_v47 = vmul.f32 %v2056_v48, %v1077_v13  ;;  %v1111_v5 = vmul.f32 %v2056_v48, %v1078_v30  ;;  %v1150_v12 = vld [vmem:[%s2062_s21 + $0x70] sm:$0xff]  ;;  %v377_v30 = vld [vmem:[%s1679_s11 + $0x60] sm:$0xff]  }
 0x430   : > { %v1168_v28 = vadd.f32 %v1136_v15, %v1104_v14  ;;  %v1169_v50 = vadd.f32 %v1137_v20, %v1105_v32  ;;  %v1170_v54 = vadd.f32 %v1138_v45, %v1106_v16  ;;  %v1171_v59 = vadd.f32 %v1139_v36, %v1107_v17  ;;  %v1151_v32 = vld [vmem:[%s2062_s21 + $0x78] sm:$0xff]  ;;  %v1152_v20 = vld [vmem:[%s2062_s21 + $0x80] sm:$0xff]  ;;  %v1153_v36 = vld [vmem:[%s2062_s21 + $0x88] sm:$0xff] }
 0x431   : > { %v1112_v0 = vmul.f32 %v2056_v48, %v1079_v34  ;;  %v1172_v8 = vadd.f32 %v1140_v22, %v1108_v19  ;;  %v1113_v60 = vmul.f32 %v2056_v48, %v1080_v38  ;;  %v1173_v61 = vadd.f32 %v1141_v33, %v1109_v10  ;;  %v379_v38 = vld [vmem:[%s1679_s11 + $0x68] sm:$0xff]   ;;  %v1154_v22 = vld [vmem:[%s2062_s21 + $0x90] sm:$0xff] }
 0x432   : > { %1200 = vst [vmem:[%s2078_s23] sm:$0xff] %v1168_v28  ;;  %v1114_v4 = vmul.f32 %v2056_v48, %v1081_v7  ;;  %v1174_v56 = vadd.f32 %v1142_v58, %v1110_v47  ;;  %v1115_v55 = vmul.f32 %v2056_v48, %v1082_v42  ;;  %v1175_v51 = vadd.f32 %v1143_v26, %v1111_v5  ;;  %v1156_v58 = vld [vmem:[%s2062_s21 + $0xa0] sm:$0xff]  ;;  %v1157_v26 = vld [vmem:[%s2062_s21 + $0xa8] sm:$0xff] }
 0x433   : > { %1201 = vst [vmem:[%s2078_s23 + $0x8] sm:$0xff] %v1169_v50  ;;  %v1116_v46 = vmul.f32 %v2056_v48, %v1083_v63  ;;  %v1176_v31 = vadd.f32 %v1144_v2, %v1112_v0  ;;  %v1117_v18 = vmul.f32 %v2056_v48, %v1084_v1  ;;  %v1177_v25 = vadd.f32 %v1145_v39, %v1113_v60  ;;  %v1155_v50 = vld [vmem:[%s2062_s21 + $0x98] sm:$0xff]  ;;  %v1158_v2 = vld [vmem:[%s2062_s21 + $0xb0] sm:$0xff] }
 0x434   : > { %1202 = vst [vmem:[%s2078_s23 + $0x10] sm:$0xff] %v1170_v54  ;;  %v1089_v9 = vunpack.c.l.bf16 %v371_v43  ;;  %v1118_v3 = vmul.f32 %v2056_v48, %v1085_v29  ;;  %v1178_v52 = vadd.f32 %v1146_v57, %v1114_v4  ;;  %v1090_v44 = vunpack.c.h.bf16 %v371_v43  ;;  %v1159_v39 = vld [vmem:[%s2062_s21 + $0xb8] sm:$0xff] }
 0x435   : > { %1203 = vst [vmem:[%s2078_s23 + $0x18] sm:$0xff] %v1171_v59  ;;  %v1119_v53 = vmul.f32 %v2056_v48, %v1086_v24  ;;  %v1179_v41 = vadd.f32 %v1147_v23, %v1115_v55  ;;  %v1091_v13 = vunpack.c.l.bf16 %v373_v62  ;;  %v1120_v14 = vmul.f32 %v2056_v48, %v1087_v49  ;;  %v1160_v55 = vld [vmem:[%s2062_s21 + $0xc0] sm:$0xff] }
 0x436   : > { %1204 = vst [vmem:[%s2078_s23 + $0x20] sm:$0xff] %v1172_v8  ;;  %v1180_v16 = vadd.f32 %v1148_v27, %v1116_v46  ;;  %v1092_v17 = vunpack.c.h.bf16 %v373_v62  ;;  %v1121_v15 = vmul.f32 %v2056_v48, %v1088_v6  ;;  %v1181_v45 = vadd.f32 %v1149_v40, %v1117_v18  ;;  %v1161_v46 = vld [vmem:[%s2062_s21 + $0xc8] sm:$0xff]  ;;  %v1162_v6 = vld [vmem:[%s2062_s21 + $0xd0] sm:$0xff]  ;;  %v1164_v40 = vld [vmem:[%s2062_s21 + $0xe0] sm:$0xff] }
 0x437   : > { %1205 = vst [vmem:[%s2078_s23 + $0x28] sm:$0xff] %v1173_v61  ;;  %v1093_v34 = vunpack.c.l.bf16 %v375_v11  ;;  %v1122_v19 = vmul.f32 %v2056_v48, %v1089_v9  ;;  %v1182_v21 = vadd.f32 %v1150_v12, %v1118_v3  ;;  %v1094_v7 = vunpack.c.h.bf16 %v375_v11 }
 0x438   : > { %1206 = vst [vmem:[%s2078_s23 + $0x30] sm:$0xff] %v1174_v56  ;;  %v1123_v10 = vmul.f32 %v2056_v48, %v1090_v44  ;;  %v1183_v47 = vadd.f32 %v1151_v32, %v1119_v53  ;;  %v1095_v33 = vunpack.c.l.bf16 %v377_v30  ;;  %v1124_v28 = vmul.f32 %v2056_v48, %v1091_v13  ;;  %v1165_v44 = vld [vmem:[%s2062_s21 + $0xe8] sm:$0xff] }
 0x439   : > { %1207 = vst [vmem:[%s2078_s23 + $0x38] sm:$0xff] %v1175_v51  ;;  %v1184_v54 = vadd.f32 %v1152_v20, %v1120_v14  ;;  %v1096_v42 = vunpack.c.h.bf16 %v377_v30  ;;  %v1125_v5 = vmul.f32 %v2056_v48, %v1092_v17  ;;  %v1185_v59 = vadd.f32 %v1153_v36, %v1121_v15  ;;  %v1167_v14 = vld [vmem:[%s2062_s21 + $0xf8] sm:$0xff] }
 0x43a   : > { %1208 = vst [vmem:[%s2078_s23 + $0x40] sm:$0xff] %v1176_v31  ;;  %v1097_v63 = vunpack.c.l.bf16 %v379_v38  ;;  %v1126_v0 = vmul.f32 %v2056_v48, %v1093_v34  ;;  %v1186_v8 = vadd.f32 %v1154_v22, %v1122_v19  ;;  %v1098_v1 = vunpack.c.h.bf16 %v379_v38 }
 0x43b   : > { %1209 = vst [vmem:[%s2078_s23 + $0x48] sm:$0xff] %v1177_v25  ;;  %v1127_v60 = vmul.f32 %v2056_v48, %v1094_v7  ;;  %v1187_v61 = vadd.f32 %v1155_v50, %v1123_v10  ;;  %v1099_v29 = vunpack.c.l.bf16 %v381_v37  ;;  %v1128_v4 = vmul.f32 %v2056_v48, %v1095_v33  ;;  %v1163_v25 = vld [vmem:[%s2062_s21 + $0xd8] sm:$0xff] }
 0x43c   : > { %1210 = vst [vmem:[%s2078_s23 + $0x50] sm:$0xff] %v1178_v52  ;;  %v1188_v56 = vadd.f32 %v1156_v58, %v1124_v28  ;;  %v1100_v43 = vunpack.c.h.bf16 %v381_v37  ;;  %v1129_v24 = vmul.f32 %v2056_v48, %v1096_v42  ;;  %v1189_v57 = vadd.f32 %v1157_v26, %v1125_v5 }
 0x43d   : > { %1211 = vst [vmem:[%s2078_s23 + $0x58] sm:$0xff] %v1179_v41  ;;  %v1101_v51 = vunpack.c.l.bf16 %v383_v35  ;;  %v1130_v49 = vmul.f32 %v2056_v48, %v1097_v63  ;;  %v1190_v23 = vadd.f32 %v1158_v2, %v1126_v0  ;;  %v1102_v31 = vunpack.c.h.bf16 %v383_v35  ;;  %v1166_v41 = vld [vmem:[%s2062_s21 + $0xf0] sm:$0xff] }
 0x43e   : > { %1212 = vst [vmem:[%s2078_s23 + $0x60] sm:$0xff] %v1180_v16  ;;  %v1131_v62 = vmul.f32 %v2056_v48, %v1098_v1  ;;  %v1191_v18 = vadd.f32 %v1159_v39, %v1127_v60  ;;  %v1132_v27 = vmul.f32 %v2056_v48, %v1099_v29  ;;  %v1192_v9 = vadd.f32 %v1160_v55, %v1128_v4 }
 0x43f   : > { %1213 = vst [vmem:[%s2078_s23 + $0x68] sm:$0xff] %v1181_v45  ;;  %v1133_v3 = vmul.f32 %v2056_v48, %v1100_v43  ;;  %v1193_v52 = vadd.f32 %v1161_v46, %v1129_v24  ;;  %v1134_v11 = vmul.f32 %v2056_v48, %v1101_v51  ;;  %v1194_v53 = vadd.f32 %v1162_v6, %v1130_v49 }
 0x440   : > { %1214 = vst [vmem:[%s2078_s23 + $0x70] sm:$0xff] %v1182_v21  ;;  %v1135_v12 = vmul.f32 %v2056_v48, %v1102_v31  ;;  %v1195_v13 = vadd.f32 %v1163_v25, %v1131_v62  ;;  %v1196_v32 = vadd.f32 %v1164_v40, %v1132_v27 }
 0x441   : > { %1215 = vst [vmem:[%s2078_s23 + $0x78] sm:$0xff] %v1183_v47  ;;  %v1197_v16 = vadd.f32 %v1165_v44, %v1133_v3  ;;  %v1198_v30 = vadd.f32 %v1166_v41, %v1134_v11 }
 0x442   : > { %1216 = vst [vmem:[%s2078_s23 + $0x80] sm:$0xff] %v1184_v54  ;;  %v1199_v17 = vadd.f32 %v1167_v14, %v1135_v12 }
 0x443   : > { %1217 = vst [vmem:[%s2078_s23 + $0x88] sm:$0xff] %v1185_v59 }
 0x444   : > { %1218 = vst [vmem:[%s2078_s23 + $0x90] sm:$0xff] %v1186_v8 }
 0x445   : > { %1219 = vst [vmem:[%s2078_s23 + $0x98] sm:$0xff] %v1187_v61 }
 0x446   : > { %1220 = vst [vmem:[%s2078_s23 + $0xa0] sm:$0xff] %v1188_v56 }
 0x447   : > { %1221 = vst [vmem:[%s2078_s23 + $0xa8] sm:$0xff] %v1189_v57 }
 0x448   : > { %1222 = vst [vmem:[%s2078_s23 + $0xb0] sm:$0xff] %v1190_v23 }
 0x449   : > { %1223 = vst [vmem:[%s2078_s23 + $0xb8] sm:$0xff] %v1191_v18 }
 0x44a   : > { %1224 = vst [vmem:[%s2078_s23 + $0xc0] sm:$0xff] %v1192_v9 }
 0x44b   : > { %1225 = vst [vmem:[%s2078_s23 + $0xc8] sm:$0xff] %v1193_v52 }
 0x44c   : > { %1226 = vst [vmem:[%s2078_s23 + $0xd0] sm:$0xff] %v1194_v53 }
 0x44d   : > { %1227 = vst [vmem:[%s2078_s23 + $0xd8] sm:$0xff] %v1195_v13 }
 0x44e   : > { %1228 = vst [vmem:[%s2078_s23 + $0xe0] sm:$0xff] %v1196_v32 }
 0x44f   : > { %1229 = vst [vmem:[%s2078_s23 + $0xe8] sm:$0xff] %v1197_v16 }
 0x450   : > { %1230 = vst [vmem:[%s2078_s23 + $0xf0] sm:$0xff] %v1198_v30 }
 0x451   : > { %1231 = vst [vmem:[%s2078_s23 + $0xf8] sm:$0xff] %v1199_v17 }
 0x452 PF: > { %s19_s30 = sadd.s32 1, %s1581_s30  }
 0x453   : > { %p16_p4 = scmp.ge.s32.totalorder %s19_s30, 4  }
 0x455   :  { %18 = sbr.rel (!%p16_p4) target bundleno = 1 (0x1), region = 89 }

// kernel: _lambda_.3
= control target key start
LH: loop header
LB: loop body
LE: loop exit
PB: predicated region body
PF: predicated region fallthrough
CT: control target
= control target key end

     0   :  { %s5153_s1 = inlined_call_operand.vmem [shape: bf16[128,128], index: 1, kind: input, shape index: {}]   ;;  %s5154_s2 = inlined_call_operand.vmem [shape: f32[1,128], index: 2, kind: input, shape index: {}]   ;;  %s5155_s3 = inlined_call_operand.vmem [shape: f32[1,128], index: 3, kind: input, shape index: {}]   ;;  %s5156_s0 = inlined_call_operand.vmem [shape: bf16[512,128], index: 0, kind: input, shape index: {}]   ;;  %s5157_s4 = inlined_call_operand.vmem [shape: bf16[512,128], index: 4, kind: output, shape index: {}]  }
   0x1   :  { %v2644_v0 = vld [vmem:[%s5153_s1 + $0x38] sm:$0xff]  ;;  %v2643_v1 = vld [vmem:[%s5153_s1 + $0x30] sm:$0xff]  ;;  %v2642_v2 = vld [vmem:[%s5153_s1 + $0x28] sm:$0xff] }
   0x2   :  { %469 = vmatpush.bf16.msra.mxu0 %v2644_v0  ;;  %2836 = vmatpush.bf16.msra.mxu1 %v2644_v0  ;;  %v2641_v3 = vld [vmem:[%s5153_s1 + $0x20] sm:$0xff]  ;;  %v2640_v4 = vld [vmem:[%s5153_s1 + $0x18] sm:$0xff]  ;;  %v2639_v5 = vld [vmem:[%s5153_s1 + $0x10] sm:$0xff] }
   0x3   :  { %2837 = vmatpush.bf16.msra.mxu2 %v2644_v0  ;;  %2838 = vmatpush.bf16.msra.mxu3 %v2644_v0  ;;  %v2638_v6 = vld [vmem:[%s5153_s1 + $0x8] sm:$0xff]  ;;  %v2637_v7 = vld [vmem:[%s5153_s1] sm:$0xff]  ;;  %v2607_v16 = vld [vmem:[%s5156_s0 + $0x10] sm:$0xff] }
   0x4   :  { %v2605_v8 = vld [vmem:[%s5156_s0] sm:$0xff]  ;;  %v2606_v12 = vld [vmem:[%s5156_s0 + $0x8] sm:$0xff]  ;;  %v2615_v17 = vld [vmem:[%s5156_s0 + $0x50] sm:$0xff] }
   0x5   :  { %v2613_v9 = vld [vmem:[%s5156_s0 + $0x40] sm:$0xff]  ;;  %v2614_v13 = vld [vmem:[%s5156_s0 + $0x48] sm:$0xff]  ;;  %v2623_v18 = vld [vmem:[%s5156_s0 + $0x90] sm:$0xff] }
   0x6   :  { %470 = vmatpush.bf16.msra.mxu0 %v2643_v1  ;;  %2839 = vmatpush.bf16.msra.mxu1 %v2643_v1  ;;  %v2621_v10 = vld [vmem:[%s5156_s0 + $0x80] sm:$0xff]  ;;  %v2622_v14 = vld [vmem:[%s5156_s0 + $0x88] sm:$0xff]  ;;  %v2631_v19 = vld [vmem:[%s5156_s0 + $0xd0] sm:$0xff] }
   0x7   :  { %2840 = vmatpush.bf16.msra.mxu2 %v2643_v1  ;;  %2841 = vmatpush.bf16.msra.mxu3 %v2643_v1  ;;  %v2629_v11 = vld [vmem:[%s5156_s0 + $0xc0] sm:$0xff]  ;;  %v2630_v15 = vld [vmem:[%s5156_s0 + $0xc8] sm:$0xff]  ;;  %v2608_v20 = vld [vmem:[%s5156_s0 + $0x18] sm:$0xff] }
   0x8   :  { %v2616_v21 = vld [vmem:[%s5156_s0 + $0x58] sm:$0xff]  ;;  %v2609_v24 = vld [vmem:[%s5156_s0 + $0x20] sm:$0xff]  ;;  %v2610_v28 = vld [vmem:[%s5156_s0 + $0x28] sm:$0xff] }
   0x9   :  { %v2624_v22 = vld [vmem:[%s5156_s0 + $0x98] sm:$0xff]  ;;  %v2617_v25 = vld [vmem:[%s5156_s0 + $0x60] sm:$0xff]  ;;  %v2618_v29 = vld [vmem:[%s5156_s0 + $0x68] sm:$0xff] }
   0xa   :  { %471 = vmatpush.bf16.msra.mxu0 %v2642_v2  ;;  %2842 = vmatpush.bf16.msra.mxu1 %v2642_v2  ;;  %v2632_v23 = vld [vmem:[%s5156_s0 + $0xd8] sm:$0xff]  ;;  %v2625_v26 = vld [vmem:[%s5156_s0 + $0xa0] sm:$0xff]  ;;  %v2626_v30 = vld [vmem:[%s5156_s0 + $0xa8] sm:$0xff] }
   0xb   :  { %2843 = vmatpush.bf16.msra.mxu2 %v2642_v2  ;;  %2844 = vmatpush.bf16.msra.mxu3 %v2642_v2  ;;  %v2633_v27 = vld [vmem:[%s5156_s0 + $0xe0] sm:$0xff]  ;;  %v2634_v31 = vld [vmem:[%s5156_s0 + $0xe8] sm:$0xff]  ;;  %v2611_v32 = vld [vmem:[%s5156_s0 + $0x30] sm:$0xff] }
   0xc   :  { %v2619_v33 = vld [vmem:[%s5156_s0 + $0x70] sm:$0xff]  ;;  %v2612_v36 = vld [vmem:[%s5156_s0 + $0x38] sm:$0xff]  ;;  %v3270_v40 = vld [vmem:[%s5154_s2] ss:$0 sm:$0xff] }
   0xd   :  { %v2627_v34 = vld [vmem:[%s5156_s0 + $0xb0] sm:$0xff]  ;;  %v2620_v37 = vld [vmem:[%s5156_s0 + $0x78] sm:$0xff]  ;;  %v3275_v41 = vld [vmem:[%s5155_s3] ss:$0 sm:$0xff] }
   0xe   :  { %472 = vmatpush.bf16.msra.mxu0 %v2641_v3  ;;  %2845 = vmatpush.bf16.msra.mxu1 %v2641_v3  ;;  %v2635_v35 = vld [vmem:[%s5156_s0 + $0xf0] sm:$0xff]  ;;  %v2628_v38 = vld [vmem:[%s5156_s0 + $0xb8] sm:$0xff] }
   0xf   :  { %2846 = vmatpush.bf16.msra.mxu2 %v2641_v3  ;;  %2847 = vmatpush.bf16.msra.mxu3 %v2641_v3  ;;  %v2636_v39 = vld [vmem:[%s5156_s0 + $0xf8] sm:$0xff] }
  0x12   :  { %473 = vmatpush.bf16.msra.mxu0 %v2640_v4  ;;  %2848 = vmatpush.bf16.msra.mxu1 %v2640_v4 }
  0x13   :  { %2849 = vmatpush.bf16.msra.mxu2 %v2640_v4  ;;  %2850 = vmatpush.bf16.msra.mxu3 %v2640_v4 }
  0x16   :  { %474 = vmatpush.bf16.msra.mxu0 %v2639_v5  ;;  %2851 = vmatpush.bf16.msra.mxu1 %v2639_v5 }
  0x17   :  { %2852 = vmatpush.bf16.msra.mxu2 %v2639_v5  ;;  %2853 = vmatpush.bf16.msra.mxu3 %v2639_v5 }
  0x1a   :  { %475 = vmatpush.bf16.msra.mxu0 %v2638_v6  ;;  %2854 = vmatpush.bf16.msra.mxu1 %v2638_v6 }
  0x1b   :  { %2855 = vmatpush.bf16.msra.mxu2 %v2638_v6  ;;  %2856 = vmatpush.bf16.msra.mxu3 %v2638_v6 }
  0x1e   :  { %476 = vmatpush.bf16.msra.mxu0 %v2637_v7  ;;  %2857 = vmatpush.bf16.msra.mxu1 %v2637_v7 }
  0x1f   :  { %2858 = vmatpush.bf16.msra.mxu2 %v2637_v7  ;;  %2859 = vmatpush.bf16.msra.mxu3 %v2637_v7 }
  0x21   :  { %477 = vmatmul.bf16.vlgmr.msra.gmra.mxu0 %v2605_v8  ;;  %517 = vmatmul.bf16.vlgmr.msra.gmra.mxu1 %v2613_v9 }
  0x22   :  { %557 = vmatmul.bf16.vlgmr.msra.gmra.mxu2 %v2621_v10  ;;  %597 = vmatmul.bf16.vlgmr.msra.gmra.mxu3 %v2629_v11 }
  0x31   :  { %482 = vmatmul.bf16.gmra.mxu0 %v2606_v12  ;;  %522 = vmatmul.bf16.gmra.mxu1 %v2614_v13 }
  0x32   :  { %562 = vmatmul.bf16.gmra.mxu2 %v2622_v14  ;;  %602 = vmatmul.bf16.gmra.mxu3 %v2630_v15 }
  0x41   :  { %487 = vmatmul.bf16.gmra.mxu0 %v2607_v16  ;;  %527 = vmatmul.bf16.gmra.mxu1 %v2615_v17 }
  0x42   :  { %567 = vmatmul.bf16.gmra.mxu2 %v2623_v18  ;;  %607 = vmatmul.bf16.gmra.mxu3 %v2631_v19 }
  0x51   :  { %492 = vmatmul.bf16.gmra.mxu0 %v2608_v20  ;;  %532 = vmatmul.bf16.gmra.mxu1 %v2616_v21 }
  0x52   :  { %572 = vmatmul.bf16.gmra.mxu2 %v2624_v22  ;;  %612 = vmatmul.bf16.gmra.mxu3 %v2632_v23 }
  0x61   :  { %497 = vmatmul.bf16.gmra.mxu0 %v2609_v24  ;;  %537 = vmatmul.bf16.gmra.mxu1 %v2617_v25 }
  0x62   :  { %577 = vmatmul.bf16.gmra.mxu2 %v2625_v26  ;;  %617 = vmatmul.bf16.gmra.mxu3 %v2633_v27 }
  0x71   :  { %502 = vmatmul.bf16.gmra.mxu0 %v2610_v28  ;;  %542 = vmatmul.bf16.gmra.mxu1 %v2618_v29 }
  0x72   :  { %582 = vmatmul.bf16.gmra.mxu2 %v2626_v30  ;;  %622 = vmatmul.bf16.gmra.mxu3 %v2634_v31 }
  0x81   :  { %507 = vmatmul.bf16.gmra.mxu0 %v2611_v32  ;;  %547 = vmatmul.bf16.gmra.mxu1 %v2619_v33 }
  0x82   :  { %587 = vmatmul.bf16.gmra.mxu2 %v2627_v34  ;;  %627 = vmatmul.bf16.gmra.mxu3 %v2635_v35 }
  0x91   :  { %512 = vmatmul.bf16.gmra.mxu0 %v2612_v36  ;;  %552 = vmatmul.bf16.gmra.mxu1 %v2620_v37 }
  0x92   :  { %592 = vmatmul.bf16.gmra.mxu2 %v2628_v38  ;;  %632 = vmatmul.bf16.gmra.mxu3 %v2636_v39 }
  0x9e   :  { %v478_v42 = vpop.f32.mrf.mxu0  ;;  %v518_v43 = vpop.f32.mrf.mxu1 }
  0x9f   :  { %v837_v44 = vmul.f32 %v3270_v40, %v478_v42  ;;  %v853_v45 = vmul.f32 %v3270_v40, %v518_v43 }
  0xa1   :  { %v3280_v46 = vadd.f32 %v3275_v41, %v837_v44  ;;  %v3283_v47 = vadd.f32 %v3275_v41, %v853_v45 }
  0xa3   :  { %v2541_v48 = vmul.f32 -1.442695, %v3280_v46  ;;  %v2557_v49 = vmul.f32 -1.442695, %v3283_v47 }
  0xa5   :  { %2862 = vpow2.f32 %v2541_v48  ;;  %v558_v50 = vpop.f32.mrf.mxu2  ;;  %v598_v51 = vpop.f32.mrf.mxu3 }
  0xa6   :  { %2864 = vpow2.f32 %v2557_v49  ;;  %v869_v52 = vmul.f32 %v3270_v40, %v558_v50  ;;  %v885_v53 = vmul.f32 %v3270_v40, %v598_v51  ;;  %v480_v54 = vpop.f32.mrf.mxu0  ;;  %v520_v55 = vpop.f32.mrf.mxu1 }
  0xa7   :  { %v838_v56 = vmul.f32 %v3270_v40, %v480_v54  ;;  %v854_v57 = vmul.f32 %v3270_v40, %v520_v55 }
  0xa8   :  { %v3292_v58 = vadd.f32 %v3275_v41, %v869_v52  ;;  %v3295_v59 = vadd.f32 %v3275_v41, %v885_v53 }
  0xa9   :  { %v3298_v60 = vadd.f32 %v3275_v41, %v838_v56  ;;  %v3301_v61 = vadd.f32 %v3275_v41, %v854_v57 }
  0xaa   :  { %v2573_v62 = vmul.f32 -1.442695, %v3292_v58  ;;  %v2589_v63 = vmul.f32 -1.442695, %v3295_v59 }
  0xab   :  { %v2863_v0 = vpop.eup %2862  ;;  %v2542_v3 = vmul.f32 -1.442695, %v3298_v60  ;;  %v2558_v5 = vmul.f32 -1.442695, %v3301_v61 }
  0xac   :  { %v2865_v1 = vpop.eup %2864  ;;  %v3305_v2 = vadd.f32 1.0, %v2863_v0  ;;  %2866 = vpow2.f32 %v2573_v62 }
  0xad   :  { %v3308_v4 = vadd.f32 1.0, %v2865_v1  ;;  %2868 = vpow2.f32 %v2589_v63  ;;  %v560_v6 = vpop.f32.mrf.mxu2  ;;  %v600_v10 = vpop.f32.mrf.mxu3 }
  0xae   :  { %2870 = vrcp.f32 %v3305_v2  ;;  %v870_v7 = vmul.f32 %v3270_v40, %v560_v6  ;;  %v1236_v14 = vand.u32 2147483648, %v3305_v2  ;;  %v1234_v18 = vand.u32 2147483647, %v3305_v2  ;;  %v483_v20 = vpop.f32.mrf.mxu0  ;;  %v523_v21 = vpop.f32.mrf.mxu1 }
  0xaf   :  { %2872 = vrcp.f32 %v3308_v4  ;;  %v886_v19 = vmul.f32 %v3270_v40, %v600_v10  ;;  %vm1230_vm0 = vweird.f32 %v3305_v2  ;;  %v1476_v24 = vand.u32 2147483648, %v3308_v4 }
  0xb0   :  { %2874 = vpow2.f32 %v2542_v3  ;;  %v3315_v9 = vadd.f32 %v3275_v41, %v870_v7  ;;  %vm1470_vm1 = vweird.f32 %v3308_v4  ;;  %v1474_v28 = vand.u32 2147483647, %v3308_v4 }
  0xb1   :  { %2876 = vpow2.f32 %v2558_v5  ;;  %v1237_v29 = vor.u32 1.1754944e-38, %v1236_v14  ;;  %v839_v31 = vmul.f32 %v3270_v40, %v483_v20  ;;  %v855_v32 = vmul.f32 %v3270_v40, %v523_v21 }
  0xb2   :  { %v2867_v8 = vpop.eup %2866  ;;  %v2574_v25 = vmul.f32 -1.442695, %v3315_v9  ;;  %vm3342_vm2 = vcmp.eq.f32.partialorder %v1234_v18, 8.507059e+37  ;;  %v3351_v37 = vadd.f32 %v3275_v41, %v886_v19  ;;  %v1477_v39 = vor.u32 1.1754944e-38, %v1476_v24 }
  0xb3   :  { %v2869_v11 = vpop.eup %2868  ;;  %v3317_v12 = vadd.f32 1.0, %v2867_v8  ;;  %vm3358_vm4 = vcmp.eq.f32.partialorder %v1474_v28, 8.507059e+37  ;;  %v3369_v51 = vadd.f32 %v3275_v41, %v839_v31  ;;  %v3372_v52 = vadd.f32 %v3275_v41, %v855_v32 }
  0xb4   :  { %v3319_v13 = vpop.eup %2870  ;;  %v3322_v15 = vadd.f32 1.0, %v2869_v11  ;;  %v2590_v55 = vmul.f32 -1.442695, %v3351_v37 }
  0xb5   :  { %v3324_v16 = vpop.eup %2872  ;;  %v1226_v17 = vmul.f32 %v3319_v13, %v3305_v2  ;;  %2878 = vrcp.f32 %v3317_v12  ;;  %vm1231_vm3 = vweird.f32 %v3319_v13  ;;  %v1716_v45 = vand.u32 2147483648, %v3317_v12 }
  0xb6   :  { %v2875_v22 = vpop.eup %2874  ;;  %v1466_v23 = vmul.f32 %v3324_v16, %v3308_v4  ;;  %2880 = vrcp.f32 %v3322_v15  ;;  %v1956_v48 = vand.u32 2147483648, %v3322_v15  ;;  %v1714_v50 = vand.u32 2147483647, %v3317_v12  ;;  %vm3384_vm6 = vmor %vm1230_vm0, %vm1231_vm3  ;;  %v485_v56 = vpop.f32.mrf.mxu0 }
  0xb7   :  { %v2877_v26 = vpop.eup %2876  ;;  %v1227_v27 = vsub.f32 1.0, %v1226_v17  ;;  %v3346_v35 = vadd.f32 1.0, %v2875_v22  ;;  %2882 = vpow2.f32 %v2574_v25  ;;  %vm1471_vm5 = vweird.f32 %v3324_v16 }
  0xb8   :  { %v1467_v30 = vsub.f32 1.0, %v1466_v23  ;;  %v3348_v36 = vadd.f32 1.0, %v2877_v26  ;;  %vm1710_vm7 = vweird.f32 %v3317_v12  ;;  %v1717_v1 = vor.u32 1.1754944e-38, %v1716_v45  ;;  %vm3400_vm8 = vmor %vm1470_vm1, %vm1471_vm5 }
  0xb9   :  { %v1228_v33 = vmul.f32 %v3319_v13, %v1227_v27  ;;  %2884 = vrcp.f32 %v3346_v35  ;;  %v1249_v63 = vand.u32 2147483647, %v3346_v35  ;;  %v1954_v3 = vand.u32 2147483647, %v3322_v15  ;;  %v563_v27 = vpop.f32.mrf.mxu2 }
  0xba   :  { %v1468_v38 = vmul.f32 %v3324_v16, %v1467_v30  ;;  %2886 = vrcp.f32 %v3348_v36  ;;  %v3396_v2 = vor.u32 1.1754944e-38, %v1956_v48  ;;  %vm3406_vm10 = vcmp.eq.f32.partialorder %v1714_v50, 8.507059e+37  ;;  %v603_v48 = vpop.f32.mrf.mxu3 }
  0xbb   :  { %v3355_v42 = vpop.eup %2878  ;;  %v1229_v43 = vadd.f32 %v3319_v13, %v1228_v33  ;;  %vm1245_vm11 = vweird.f32 %v3346_v35  ;;  %v1251_v10 = vand.u32 2147483648, %v3346_v35  ;;  %2888 = vpow2.f32 %v2590_v55 }
  0xbc   :  { %v1706_v49 = vmul.f32 %v3355_v42, %v3317_v12  ;;  %v3374_v53 = vpop.eup %2880  ;;  %v1469_v54 = vadd.f32 %v3324_v16, %v1468_v38  ;;  %vm1711_vm9 = vweird.f32 %v3355_v42  ;;  %vm3421_vm12 = vcmp.eq.f32.partialorder %v1249_v63, 8.507059e+37 }
  0xbd   :  { %v1946_v62 = vmul.f32 %v3374_v53, %v3322_v15  ;;  %v1233_v0 = vsel %vm3384_vm6, %v3319_v13, %v1229_v43  ;;  %v2883_v5 = vpop.eup %2882  ;;  %vm1950_vm13 = vweird.f32 %v3322_v15  ;;  %v1491_v22 = vand.u32 2147483648, %v3348_v36  ;;  %vm3439_vm15 = vmor %vm1710_vm7, %vm1711_vm9 }
  0xbe   :  { %v1707_v57 = vsub.f32 1.0, %v1706_v49  ;;  %v1473_v4 = vsel %vm3400_vm8, %v3324_v16, %v1469_v54  ;;  %v3415_v14 = vadd.f32 1.0, %v2883_v5  ;;  %v1238_v17 = vsel %vm3342_vm2, %v1237_v29, %v1233_v0 }
  0xbf   :  { %v2885_v11 = vpop.eup %2884  ;;  %v1947_v13 = vsub.f32 1.0, %v1946_v62  ;;  %v1489_v16 = vand.u32 2147483647, %v3348_v36  ;;  %v2543_v23 = vmul.f32 -1.442695, %v3369_v51  ;;  %v1478_v24 = vsel %vm3358_vm4, %v1477_v39, %v1473_v4 }
  0xc0   :  { %v1708_v7 = vmul.f32 %v3355_v42, %v1707_v57  ;;  %v1241_v19 = vmul.f32 %v2885_v11, %v3346_v35  ;;  %v2887_v21 = vpop.eup %2886  ;;  %2890 = vrcp.f32 %v3415_v14  ;;  %vm1485_vm14 = vweird.f32 %v3348_v36 }
  0xc1   :  { %v1481_v26 = vmul.f32 %v2887_v21, %v3348_v36  ;;  %v2185_v28 = vmul.f32 %v1238_v17, %v3280_v46  ;;  %v1948_v30 = vmul.f32 %v3374_v53, %v1947_v13  ;;  %vm1951_vm0 = vweird.f32 %v3374_v53  ;;  %v2889_v34 = vpop.eup %2888 }
  0xc2   :  { %v1709_v18 = vadd.f32 %v3355_v42, %v1708_v7  ;;  %v1242_v25 = vsub.f32 1.0, %v1241_v19  ;;  %v1252_v31 = vor.u32 1.1754944e-38, %v1251_v10  ;;  %vm1246_vm1 = vweird.f32 %v2885_v11  ;;  %vm3482_vm8 = vmor %vm1950_vm13, %vm1951_vm0  ;;  %v565_v19 = vpop.f32.mrf.mxu2 }
  0xc3   :  { %v1482_v46 = vsub.f32 1.0, %v1481_v26  ;;  %v2201_v38 = vmul.f32 %v1478_v24, %v3283_v47  ;;  %vm3449_vm2 = vcmp.eq.f32.partialorder %v1954_v3, 8.507059e+37  ;;  %vm3453_vm3 = vcmp.eq.f32.partialorder %v1489_v16, 8.507059e+37  ;;  %vm1247_vm6 = vmor %vm1245_vm11, %vm1246_vm1 }
  0xc4   :  { %v1713_v32 = vsel %vm3439_vm15, %v3355_v42, %v1709_v18  ;;  %v1243_v33 = vmul.f32 %v2885_v11, %v1242_v25  ;;  %v1492_v43 = vor.u32 1.1754944e-38, %v1491_v22  ;;  %2892 = vpow2.f32 %v2543_v23  ;;  %v525_v18 = vpop.f32.mrf.mxu1 }
  0xc5   :  { %v1483_v45 = vmul.f32 %v2887_v21, %v1482_v46  ;;  %vm1486_vm4 = vweird.f32 %v2887_v21  ;;  %vm1725_vm5 = vweird.f32 %v3415_v14  ;;  %v3458_v42 = vadd.f32 1.0, %v2889_v34 }
  0xc6   :  { %v1244_v44 = vadd.f32 %v2885_v11, %v1243_v33  ;;  %v2891_v49 = vpop.eup %2890  ;;  %v1718_v47 = vsel %vm3406_vm10, %v1717_v1, %v1713_v32  ;;  %v1949_v50 = vadd.f32 %v3374_v53, %v1948_v30  ;;  %v2559_v54 = vmul.f32 -1.442695, %v3372_v52  ;;  %vm1487_vm7 = vmor %vm1485_vm14, %vm1486_vm4  ;;  %v605_v33 = vpop.f32.mrf.mxu3 }
  0xc7   :  { %v871_v55 = vmul.f32 %v3270_v40, %v563_v27  ;;  %v1484_v62 = vadd.f32 %v2887_v21, %v1483_v45  ;;  %v1721_v63 = vmul.f32 %v2891_v49, %v3415_v14  ;;  %v1729_v0 = vand.u32 2147483647, %v3415_v14 }
  0xc8   :  { %v1248_v57 = vsel %vm1247_vm6, %v2885_v11, %v1244_v44  ;;  %v1731_v35 = vand.u32 2147483648, %v3415_v14  ;;  %2894 = vrcp.f32 %v3458_v42  ;;  %v887_v3 = vmul.f32 %v3270_v40, %v603_v48 }
  0xc9   :  { %v1253_v1 = vsel %vm3421_vm12, %v1252_v31, %v1248_v57  ;;  %v1488_v7 = vsel %vm1487_vm7, %v2887_v21, %v1484_v62  ;;  %v1722_v8 = vsub.f32 1.0, %v1721_v63  ;;  %v840_v36 = vmul.f32 %v3270_v40, %v485_v56 }
  0xca   :  { %v2186_v6 = vmul.f32 %v1253_v1, %v3298_v60  ;;  %v2893_v10 = vpop.eup %2892  ;;  %v1953_v11 = vsel %vm3482_vm8, %v3374_v53, %v1949_v50  ;;  %v1493_v4 = vsel %vm3453_vm3, %v1492_v43, %v1488_v7  ;;  %2896 = vpow2.f32 %v2559_v54 }
  0xcb   :  { %v3494_v15 = vadd.f32 %v3275_v41, %v871_v55  ;;  %v2202_v17 = vmul.f32 %v1493_v4, %v3301_v61  ;;  %v1723_v60 = vmul.f32 %v2891_v49, %v1722_v8  ;;  %vm1726_vm9 = vweird.f32 %v2891_v49 }
  0xcc   :  { %v2648_v13 = vpack.c.bf16 %v2186_v6, %v2185_v28  ;;  %v2217_v20 = vmul.f32 %v1718_v47, %v3292_v58  ;;  %v3498_v21 = vadd.f32 1.0, %v2893_v10  ;;  %v3502_v16 = vadd.f32 %v3275_v41, %v887_v3  ;;  %vm1727_vm10 = vmor %vm1725_vm5, %vm1726_vm9 }
  0xcd   :  { %v2575_v53 = vmul.f32 -1.442695, %v3494_v15  ;;  %v1958_v22 = vsel %vm3449_vm2, %v3396_v2, %v1953_v11  ;;  %v2688_v61 = vpack.c.bf16 %v2202_v17, %v2201_v38  ;;  %v1724_v23 = vadd.f32 %v2891_v49, %v1723_v60 }
  0xce   :  { %2649 = vst [vmem:[%s5157_s4] sm:$0xff] %v2648_v13   ;;  %v3511_v24 = vadd.f32 %v3275_v41, %v840_v36  ;;  %v2895_v58 = vpop.eup %2894  ;;  %v1732_v25 = vor.u32 1.1754944e-38, %v1731_v35  ;;  %2898 = vrcp.f32 %v3498_v21  ;;  %v856_v26 = vmul.f32 %v3270_v40, %v525_v18 }
  0xcf   :  { %v872_v2 = vmul.f32 %v3270_v40, %v565_v19  ;;  %2812 = vst [vmem:[%s5157_s4 + $0x40] sm:$0xff] %v2688_v61   ;;  %v1728_v27 = vsel %vm1727_vm10, %v2891_v49, %v1724_v23  ;;  %vm1730_vm11 = vcmp.eq.f32.partialorder %v1729_v0, 8.507059e+37  ;;  %v1961_v28 = vmul.f32 %v2895_v58, %v3458_v42 }
  0xd0   :  { %2900 = vpow2.f32 %v2575_v53  ;;  %v2897_v29 = vpop.eup %2896  ;;  %v1733_v30 = vsel %vm1730_vm11, %v1732_v25, %v1728_v27  ;;  %v1969_v14 = vand.u32 2147483647, %v3458_v42  ;;  %v1971_v31 = vand.u32 2147483648, %v3458_v42 }
  0xd1   :  { %v2591_v32 = vmul.f32 -1.442695, %v3502_v16  ;;  %v2218_v46 = vmul.f32 %v1733_v30, %v3315_v9  ;;  %v1962_v34 = vsub.f32 1.0, %v1961_v28  ;;  %v3526_v38 = vadd.f32 1.0, %v2897_v29 }
  0xd2   :  { %v2544_v12 = vmul.f32 -1.442695, %v3511_v24  ;;  %vm1966_vm12 = vweird.f32 %v2895_v58  ;;  %v3530_v39 = vadd.f32 %v3275_v41, %v856_v26  ;;  %v3533_v43 = vadd.f32 %v3275_v41, %v872_v2 }
  0xd3   :  { %2902 = vpow2.f32 %v2591_v32  ;;  %v2728_v44 = vpack.c.bf16 %v2218_v46, %v2217_v20  ;;  %v1963_v45 = vmul.f32 %v2895_v58, %v1962_v34  ;;  %v888_v48 = vmul.f32 %v3270_v40, %v605_v33 }
  0xd4   :  { %2904 = vrcp.f32 %v3526_v38  ;;  %v3537_v9 = vpop.eup %2898  ;;  %v2560_v49 = vmul.f32 -1.442695, %v3530_v39  ;;  %v2233_v50 = vmul.f32 %v1958_v22, %v3295_v59  ;;  %vm1965_vm13 = vweird.f32 %v3458_v42 }
  0xd5   :  { %2906 = vpow2.f32 %v2544_v12  ;;  %2820 = vst [vmem:[%s5157_s4 + $0x80] sm:$0xff] %v2728_v44   ;;  %v1964_v54 = vadd.f32 %v2895_v58, %v1963_v45  ;;  %v1256_v55 = vmul.f32 %v3537_v9, %v3498_v21  ;;  %vm1967_vm14 = vmor %vm1965_vm13, %vm1966_vm12  ;;  %v1972_v56 = vor.u32 1.1754944e-38, %v1971_v31 }
  0xd6   :  { %v2901_v47 = vpop.eup %2900  ;;  %2908 = vpow2.f32 %v2560_v49  ;;  %v2576_v62 = vmul.f32 -1.442695, %v3533_v43  ;;  %vm1970_vm15 = vcmp.eq.f32.partialorder %v1969_v14, 8.507059e+37  ;;  %v3552_v0 = vadd.f32 %v3275_v41, %v888_v48 }
  0xd7   :  { %v3548_v57 = vadd.f32 1.0, %v2901_v47  ;;  %v1968_v63 = vsel %vm1967_vm14, %v2895_v58, %v1964_v54  ;;  %v1257_v59 = vsub.f32 1.0, %v1256_v55  ;;  %vm1260_vm0 = vweird.f32 %v3498_v21 }
  0xd8   :  { %v1973_v35 = vsel %vm1970_vm15, %v1972_v56, %v1968_v63  ;;  %v1264_v42 = vand.u32 2147483647, %v3498_v21  ;;  %v1266_v7 = vand.u32 2147483648, %v3498_v21  ;;  %v1504_v11 = vand.u32 2147483647, %v3526_v38 }
  0xd9   :  { %v2903_v1 = vpop.eup %2902  ;;  %2910 = vrcp.f32 %v3548_v57  ;;  %v2234_v5 = vmul.f32 %v1973_v35, %v3351_v37  ;;  %v1258_v6 = vmul.f32 %v3537_v9, %v1257_v59  ;;  %v2592_v4 = vmul.f32 -1.442695, %v3552_v0 }
  0xda   :  { %v3557_v3 = vpop.eup %2904  ;;  %v3562_v8 = vadd.f32 1.0, %v2903_v1  ;;  %2912 = vpow2.f32 %v2576_v62  ;;  %vm1261_vm1 = vweird.f32 %v3537_v9  ;;  %vm3571_vm2 = vcmp.eq.f32.partialorder %v1264_v42, 8.507059e+37 }
  0xdb   :  { %v2907_v36 = vpop.eup %2906  ;;  %v1496_v10 = vmul.f32 %v3557_v3, %v3526_v38  ;;  %v2768_v13 = vpack.c.bf16 %v2234_v5, %v2233_v50  ;;  %v1259_v17 = vadd.f32 %v3537_v9, %v1258_v6  ;;  %v1506_v19 = vand.u32 2147483648, %v3526_v38  ;;  %vm3587_vm3 = vmor %vm1260_vm0, %vm1261_vm1  ;;  %v488_v5 = vpop.f32.mrf.mxu0 }
  0xdc   :  { %2914 = vrcp.f32 %v3562_v8  ;;  %v2909_v37 = vpop.eup %2908  ;;  %v1744_v20 = vand.u32 2147483647, %v3548_v57  ;;  %v1746_v53 = vand.u32 2147483648, %v3548_v57  ;;  %v3581_v22 = vadd.f32 1.0, %v2907_v36  ;;  %v528_v6 = vpop.f32.mrf.mxu1 }
  0xdd   :  { %v1497_v18 = vsub.f32 1.0, %v1496_v10  ;;  %2828 = vst [vmem:[%s5157_s4 + $0xc0] sm:$0xff] %v2768_v13   ;;  %v3583_v61 = vadd.f32 1.0, %v2909_v37  ;;  %2916 = vpow2.f32 %v2592_v4  ;;  %v1267_v25 = vor.u32 1.1754944e-38, %v1266_v7 }
  0xde   :  { %vm1500_vm4 = vweird.f32 %v3526_v38  ;;  %vm3593_vm5 = vcmp.eq.f32.partialorder %v1504_v11, 8.507059e+37  ;;  %v1263_v27 = vsel %vm3587_vm3, %v3537_v9, %v1259_v17  ;;  %vm1501_vm6 = vweird.f32 %v3557_v3  ;;  %v568_v11 = vpop.f32.mrf.mxu2 }
  0xdf   :  { %v2911_v23 = vpop.eup %2910  ;;  %v1498_v26 = vmul.f32 %v3557_v3, %v1497_v18  ;;  %2918 = vrcp.f32 %v3581_v22  ;;  %v1507_v30 = vor.u32 1.1754944e-38, %v1506_v19  ;;  %vm1740_vm7 = vweird.f32 %v3548_v57  ;;  %vm3617_vm9 = vmor %vm1500_vm4, %vm1501_vm6 }
  0xe0   :  { %v1736_v21 = vmul.f32 %v2911_v23, %v3548_v57  ;;  %v2913_v28 = vpop.eup %2912  ;;  %v1986_v14 = vand.u32 2147483648, %v3562_v8  ;;  %vm3608_vm8 = vcmp.eq.f32.partialorder %v1744_v20, 8.507059e+37  ;;  %v1747_v46 = vor.u32 1.1754944e-38, %v1746_v53 }
  0xe1   :  { %v1499_v29 = vadd.f32 %v3557_v3, %v1498_v26  ;;  %2920 = vrcp.f32 %v3583_v61  ;;  %v1268_v34 = vsel %vm3571_vm2, %v1267_v25, %v1263_v27  ;;  %vm1980_vm10 = vweird.f32 %v3562_v8 }
  0xe2   :  { %v3606_v31 = vpop.eup %2914  ;;  %v1737_v32 = vsub.f32 1.0, %v1736_v21  ;;  %v1984_v45 = vand.u32 2147483647, %v3562_v8  ;;  %v1279_v48 = vand.u32 2147483647, %v3581_v22  ;;  %vm1741_vm11 = vweird.f32 %v2911_v23 }
  0xe3   :  { %v1976_v44 = vmul.f32 %v3606_v31, %v3562_v8  ;;  %v2917_v9 = vpop.eup %2916  ;;  %v1503_v49 = vsel %vm3617_vm9, %v3557_v3, %v1499_v29  ;;  %v1281_v38 = vand.u32 2147483648, %v3581_v22  ;;  %v3630_v54 = vor.u32 1.1754944e-38, %v1986_v14  ;;  %vm1742_vm14 = vmor %vm1740_vm7, %vm1741_vm11 }
  0xe4   :  { %v1738_v47 = vmul.f32 %v2911_v23, %v1737_v32  ;;  %v1519_v55 = vand.u32 2147483647, %v3583_v61  ;;  %v3633_v56 = vadd.f32 1.0, %v2913_v28  ;;  %v3636_v63 = vmul.f32 %v1268_v34, %v3369_v51 }
  0xe5   :  { %v1977_v50 = vsub.f32 1.0, %v1976_v44  ;;  %v2919_v62 = vpop.eup %2918  ;;  %vm1981_vm12 = vweird.f32 %v3606_v31  ;;  %vm1275_vm13 = vweird.f32 %v3581_v22  ;;  %v1508_v1 = vsel %vm3593_vm5, %v1507_v30, %v1503_v49  ;;  %v608_v44 = vpop.f32.mrf.mxu3 }
  0xe6   :  { %v1739_v59 = vadd.f32 %v2911_v23, %v1738_v47  ;;  %v1271_v42 = vmul.f32 %v2919_v62, %v3581_v22  ;;  %vm3646_vm15 = vcmp.eq.f32.partialorder %v1279_v48, 8.507059e+37  ;;  %vm1515_vm0 = vweird.f32 %v3583_v61  ;;  %vm3678_vm3 = vmor %vm1980_vm10, %vm1981_vm12 }
  0xe7   :  { %v1978_v35 = vmul.f32 %v3606_v31, %v1977_v50  ;;  %v3651_v51 = vadd.f32 1.0, %v2917_v9  ;;  %v2921_v7 = vpop.eup %2920  ;;  %v1282_v10 = vor.u32 1.1754944e-38, %v1281_v38  ;;  %v1521_v57 = vand.u32 2147483648, %v3583_v61 }
  0xe8   :  { %v1743_v36 = vsel %vm1742_vm14, %v2911_v23, %v1739_v59  ;;  %2922 = vrcp.f32 %v3633_v56  ;;  %v1272_v17 = vsub.f32 1.0, %v1271_v42  ;;  %v1511_v37 = vmul.f32 %v2921_v7, %v3583_v61 }
  0xe9   :  { %v1748_v4 = vsel %vm3608_vm8, %v1747_v46, %v1743_v36  ;;  %v3658_v13 = vadd.f32 %v3606_v31, %v1978_v35  ;;  %vm3661_vm1 = vcmp.eq.f32.partialorder %v1519_v55, 8.507059e+37  ;;  %vm1276_vm2 = vweird.f32 %v2919_v62  ;;  %v570_v35 = vpop.f32.mrf.mxu2 }
  0xea   :  { %v1761_v18 = vand.u32 2147483648, %v3633_v56  ;;  %v841_v19 = vmul.f32 %v3270_v40, %v488_v5  ;;  %v857_v20 = vmul.f32 %v3270_v40, %v528_v6  ;;  %v1273_v53 = vmul.f32 %v2919_v62, %v1272_v17  ;;  %vm1277_vm7 = vmor %vm1275_vm13, %vm1276_vm2 }
  0xeb   :  { %v1512_v23 = vsub.f32 1.0, %v1511_v37  ;;  %v1759_v58 = vand.u32 2147483647, %v3633_v56  ;;  %2924 = vrcp.f32 %v3651_v51  ;;  %v2203_v25 = vmul.f32 %v1508_v1, %v3372_v52  ;;  %v530_v1 = vpop.f32.mrf.mxu1 }
  0xec   :  { %v3672_v26 = vmul.f32 %v1748_v4, %v3494_v15  ;;  %vm1516_vm4 = vweird.f32 %v2921_v7  ;;  %v1522_v27 = vor.u32 1.1754944e-38, %v1521_v57  ;;  %v1983_v21 = vsel %vm3678_vm3, %v3606_v31, %v3658_v13 }
  0xed   :  { %v1274_v28 = vadd.f32 %v2919_v62, %v1273_v53  ;;  %v1513_v52 = vmul.f32 %v2921_v7, %v1512_v23  ;;  %vm1755_vm5 = vweird.f32 %v3633_v56  ;;  %v1762_v15 = vor.u32 1.1754944e-38, %v1761_v18  ;;  %vm1517_vm9 = vmor %vm1515_vm0, %vm1516_vm4  ;;  %v610_v2 = vpop.f32.mrf.mxu3 }
  0xee   :  { %v2923_v29 = vpop.eup %2922  ;;  %vm3687_vm6 = vcmp.eq.f32.partialorder %v1984_v45, 8.507059e+37  ;;  %v1999_v8 = vand.u32 2147483647, %v3651_v51  ;;  %v3696_v14 = vadd.f32 %v3275_v41, %v841_v19  ;;  %v3699_v31 = vadd.f32 %v3275_v41, %v857_v20 }
  0xef   :  { %v873_v32 = vmul.f32 %v3270_v40, %v568_v11  ;;  %v1278_v33 = vsel %vm1277_vm7, %v2919_v62, %v1274_v28  ;;  %v1514_v46 = vadd.f32 %v2921_v7, %v1513_v52  ;;  %v1751_v34 = vmul.f32 %v2923_v29, %v3633_v56  ;;  %v490_v62 = vpop.f32.mrf.mxu0 }
  0xf0   :  { %vm3703_vm8 = vcmp.eq.f32.partialorder %v1759_v58, 8.507059e+37  ;;  %v2001_v22 = vand.u32 2147483648, %v3651_v51  ;;  %v1283_v45 = vsel %vm3646_vm15, %v1282_v10, %v1278_v33  ;;  %vm1756_vm10 = vweird.f32 %v2923_v29 }
  0xf1   :  { %v2545_v48 = vmul.f32 -1.442695, %v3696_v14  ;;  %v2561_v9 = vmul.f32 -1.442695, %v3699_v31  ;;  %v2925_v49 = vpop.eup %2924  ;;  %v2188_v47 = vmul.f32 %v1283_v45, %v3511_v24  ;;  %v1518_v38 = vsel %vm1517_vm9, %v2921_v7, %v1514_v46  ;;  %vm1757_vm12 = vmor %vm1755_vm5, %vm1756_vm10 }
  0xf2   :  { %v1752_v50 = vsub.f32 1.0, %v1751_v34  ;;  %v3717_v55 = vadd.f32 %v3275_v41, %v873_v32  ;;  %v1523_v59 = vsel %vm3661_vm1, %v1522_v27, %v1518_v38  ;;  %v1991_v61 = vmul.f32 %v2925_v49, %v3651_v51 }
  0xf3   :  { %vm1996_vm11 = vweird.f32 %v2925_v49  ;;  %2926 = vpow2.f32 %v2545_v48  ;;  %v2653_v42 = vpack.c.bf16 %v2188_v47, %v3636_v63  ;;  %v2204_v3 = vmul.f32 %v1523_v59, %v3530_v39 }
  0xf4   :  { %v1753_v24 = vmul.f32 %v2923_v29, %v1752_v50  ;;  %2928 = vpow2.f32 %v2561_v9  ;;  %v1992_v5 = vsub.f32 1.0, %v1991_v61  ;;  %v2577_v6 = vmul.f32 -1.442695, %v3717_v55 }
  0xf5   :  { %v889_v7 = vmul.f32 %v3270_v40, %v608_v44  ;;  %v842_v36 = vmul.f32 %v3270_v40, %v490_v62  ;;  %2805 = vst [vmem:[%s5157_s4 + $0x8] sm:$0xff] %v2653_v42   ;;  %v2693_v10 = vpack.c.bf16 %v2204_v3, %v2203_v25  ;;  %v858_v11 = vmul.f32 %v3270_v40, %v530_v1  ;;  %v533_v62 = vpop.f32.mrf.mxu1 }
  0xf6   :  { %v1754_v57 = vadd.f32 %v2923_v29, %v1753_v24  ;;  %v874_v63 = vmul.f32 %v3270_v40, %v570_v35  ;;  %v1993_v39 = vmul.f32 %v2925_v49, %v1992_v5  ;;  %2930 = vpow2.f32 %v2577_v6 }
  0xf7   :  { %v3736_v4 = vadd.f32 %v3275_v41, %v889_v7  ;;  %v3739_v13 = vadd.f32 %v3275_v41, %v842_v36  ;;  %v1988_v17 = vsel %vm3687_vm6, %v3630_v54, %v1983_v21  ;;  %2813 = vst [vmem:[%s5157_s4 + $0x48] sm:$0xff] %v2693_v10   ;;  %vm1995_vm13 = vweird.f32 %v3651_v51 }
  0xf8   :  { %v1758_v37 = vsel %vm1757_vm12, %v2923_v29, %v1754_v57  ;;  %vm3748_vm14 = vcmp.eq.f32.partialorder %v1999_v8, 8.507059e+37  ;;  %v1994_v19 = vadd.f32 %v2925_v49, %v1993_v39  ;;  %v3756_v54 = vadd.f32 %v3275_v41, %v858_v11  ;;  %vm1997_vm15 = vmor %vm1995_vm13, %vm1996_vm11 }
  0xf9   :  { %v2927_v60 = vpop.eup %2926  ;;  %v1763_v18 = vsel %vm3703_vm8, %v1762_v15, %v1758_v37  ;;  %v2593_v20 = vmul.f32 -1.442695, %v3736_v4  ;;  %v2002_v51 = vor.u32 1.1754944e-38, %v2001_v22  ;;  %v3763_v25 = vadd.f32 %v3275_v41, %v874_v63 }
  0xfa   :  { %v2929_v53 = vpop.eup %2928  ;;  %v2220_v23 = vmul.f32 %v1763_v18, %v3533_v43  ;;  %v3760_v58 = vadd.f32 1.0, %v2927_v60  ;;  %v1998_v27 = vsel %vm1997_vm15, %v2925_v49, %v1994_v19  ;;  %v2546_v28 = vmul.f32 -1.442695, %v3739_v13  ;;  %v493_v49 = vpop.f32.mrf.mxu0 }
  0xfb   :  { %v3765_v21 = vadd.f32 1.0, %v2929_v53  ;;  %2932 = vpow2.f32 %v2593_v20  ;;  %v2235_v52 = vmul.f32 %v1988_v17, %v3502_v16  ;;  %v2003_v43 = vsel %vm3748_vm14, %v2002_v51, %v1998_v27 }
  0xfc   :  { %v2733_v15 = vpack.c.bf16 %v2220_v23, %v3672_v26  ;;  %2934 = vrcp.f32 %v3760_v58  ;;  %v2931_v29 = vpop.eup %2930  ;;  %v2236_v30 = vmul.f32 %v2003_v43, %v3552_v0  ;;  %v2562_v8 = vmul.f32 -1.442695, %v3756_v54 }
  0xfd   :  { %2936 = vrcp.f32 %v3765_v21  ;;  %v890_v32 = vmul.f32 %v3270_v40, %v610_v2  ;;  %v3780_v16 = vadd.f32 1.0, %v2931_v29  ;;  %v2578_v33 = vmul.f32 -1.442695, %v3763_v25 }
  0xfe   :  { %2821 = vst [vmem:[%s5157_s4 + $0x88] sm:$0xff] %v2733_v15   ;;  %v2773_v26 = vpack.c.bf16 %v2236_v30, %v2235_v52  ;;  %2938 = vpow2.f32 %v2546_v28  ;;  %v1296_v0 = vand.u32 2147483648, %v3760_v58  ;;  %v1294_v22 = vand.u32 2147483647, %v3760_v58  ;;  %v3970_v30 = vld [vmem:[%s5155_s3] ss:$0 sm:$0xff] }
  0xff   :  { %2940 = vrcp.f32 %v3780_v16  ;;  %v3789_v34 = vadd.f32 %v3275_v41, %v890_v32  ;;  %v1536_v44 = vand.u32 2147483648, %v3765_v21  ;;  %vm1290_vm0 = vweird.f32 %v3760_v58 }
 0x100   :  { %2829 = vst [vmem:[%s5157_s4 + $0xc8] sm:$0xff] %v2773_v26   ;;  %2942 = vpow2.f32 %v2562_v8  ;;  %vm1530_vm1 = vweird.f32 %v3765_v21  ;;  %v1534_v38 = vand.u32 2147483647, %v3765_v21  ;;  %v1776_v50 = vand.u32 2147483648, %v3780_v16 }
 0x101   :  { %v2933_v46 = vpop.eup %2932  ;;  %2944 = vpow2.f32 %v2578_v33  ;;  %v1297_v1 = vor.u32 1.1754944e-38, %v1296_v0  ;;  %v1774_v35 = vand.u32 2147483647, %v3780_v16  ;;  %v2594_v42 = vmul.f32 -1.442695, %v3789_v34 }
 0x102   :  { %v3791_v12 = vpop.eup %2934  ;;  %v3795_v45 = vadd.f32 1.0, %v2933_v46  ;;  %vm3812_vm2 = vcmp.eq.f32.partialorder %v1294_v22, 8.507059e+37  ;;  %v1537_v6 = vor.u32 1.1754944e-38, %v1536_v44  ;;  %v843_v36 = vmul.f32 %v3270_v40, %v493_v49 }
 0x103   :  { %v3797_v48 = vpop.eup %2936  ;;  %v1286_v9 = vmul.f32 %v3791_v12, %v3760_v58  ;;  %vm1770_vm3 = vweird.f32 %v3780_v16  ;;  %v859_v63 = vmul.f32 %v3270_v40, %v533_v62  ;;  %vm1291_vm4 = vweird.f32 %v3791_v12 }
 0x104   :  { %v1526_v47 = vmul.f32 %v3797_v48, %v3765_v21  ;;  %2946 = vrcp.f32 %v3795_v45  ;;  %v2939_v59 = vpop.eup %2938  ;;  %vm3826_vm5 = vcmp.eq.f32.partialorder %v1534_v38, 8.507059e+37  ;;  %v1777_v37 = vor.u32 1.1754944e-38, %v1776_v50  ;;  %vm3850_vm8 = vmor %vm1290_vm0, %vm1291_vm4 }
 0x105   :  { %v1287_v61 = vsub.f32 1.0, %v1286_v9  ;;  %v3810_v3 = vpop.eup %2940  ;;  %v3816_v7 = vadd.f32 1.0, %v2939_v59  ;;  %vm3832_vm6 = vcmp.eq.f32.partialorder %v1774_v35, 8.507059e+37  ;;  %v2016_v40 = vand.u32 2147483648, %v3795_v45 }
 0x106   :  { %v1527_v5 = vsub.f32 1.0, %v1526_v47  ;;  %v2943_v10 = vpop.eup %2942  ;;  %v1766_v11 = vmul.f32 %v3810_v3, %v3780_v16  ;;  %vm1531_vm7 = vweird.f32 %v3797_v48  ;;  %v3844_v51 = vadd.f32 %v3275_v41, %v843_v36 }
 0x107   :  { %v1288_v57 = vmul.f32 %v3791_v12, %v1287_v61  ;;  %2948 = vrcp.f32 %v3816_v7  ;;  %v2945_v56 = vpop.eup %2944  ;;  %v3841_v23 = vadd.f32 1.0, %v2943_v10  ;;  %vm1771_vm9 = vweird.f32 %v3810_v3  ;;  %vm3869_vm11 = vmor %vm1530_vm1, %vm1531_vm7 }
 0x108   :  { %v1528_v39 = vmul.f32 %v3797_v48, %v1527_v5  ;;  %v1767_v18 = vsub.f32 1.0, %v1766_v11  ;;  %2950 = vpow2.f32 %v2594_v42  ;;  %vm2010_vm10 = vweird.f32 %v3795_v45  ;;  %vm3884_vm12 = vmor %vm1770_vm3, %vm1771_vm9 }
 0x109   :  { %v1289_v60 = vadd.f32 %v3791_v12, %v1288_v57  ;;  %v2014_v52 = vand.u32 2147483647, %v3795_v45  ;;  %v1309_v58 = vand.u32 2147483647, %v3816_v7  ;;  %v1311_v43 = vand.u32 2147483648, %v3816_v7 }
 0x10a   :  { %v3837_v20 = vpop.eup %2946  ;;  %v1529_v53 = vadd.f32 %v3797_v48, %v1528_v39  ;;  %v1768_v27 = vmul.f32 %v3810_v3, %v1767_v18  ;;  %v3865_v29 = vadd.f32 1.0, %v2945_v56  ;;  %v2017_v26 = vor.u32 1.1754944e-38, %v2016_v40 }
 0x10b   :  { %v2006_v28 = vmul.f32 %v3837_v20, %v3795_v45  ;;  %v1293_v15 = vsel %vm3850_vm8, %v3791_v12, %v1289_v60  ;;  %v3875_v33 = vadd.f32 %v3275_v41, %v859_v63  ;;  %vm1305_vm13 = vweird.f32 %v3816_v7  ;;  %v573_v45 = vpop.f32.mrf.mxu2 }
 0x10c   :  { %v1769_v8 = vadd.f32 %v3810_v3, %v1768_v27  ;;  %v1533_v0 = vsel %vm3869_vm11, %v3797_v48, %v1529_v53  ;;  %2952 = vrcp.f32 %v3841_v23  ;;  %v2547_v41 = vmul.f32 -1.442695, %v3844_v51 }
 0x10d   :  { %v2007_v32 = vsub.f32 1.0, %v2006_v28  ;;  %v2949_v46 = vpop.eup %2948  ;;  %v1298_v22 = vsel %vm3812_vm2, %v1297_v1, %v1293_v15  ;;  %vm3897_vm14 = vcmp.eq.f32.partialorder %v2014_v52, 8.507059e+37  ;;  %vm2011_vm15 = vweird.f32 %v3837_v20  ;;  %v613_v52 = vpop.f32.mrf.mxu3 }
 0x10e   :  { %v2951_v12 = vpop.eup %2950  ;;  %v1773_v44 = vsel %vm3884_vm12, %v3810_v3, %v1769_v8  ;;  %v1301_v9 = vmul.f32 %v2949_v46, %v3816_v7  ;;  %vm3903_vm0 = vcmp.eq.f32.partialorder %v1309_v58, 8.507059e+37  ;;  %v1312_v47 = vor.u32 1.1754944e-38, %v1311_v43  ;;  %vm3926_vm2 = vmor %vm2010_vm10, %vm2011_vm15  ;;  %v3961_v7 = vld [vmem:[%s5154_s2] ss:$0 sm:$0xff] }
 0x10f   :  { %v2008_v16 = vmul.f32 %v3837_v20, %v2007_v32  ;;  %2954 = vrcp.f32 %v3865_v29  ;;  %v1538_v38 = vsel %vm3826_vm5, %v1537_v6, %v1533_v0  ;;  %v1549_v59 = vand.u32 2147483647, %v3841_v23  ;;  %v495_v32 = vpop.f32.mrf.mxu0 }
 0x110   :  { %v1302_v62 = vsub.f32 1.0, %v1301_v9  ;;  %v2189_v61 = vmul.f32 %v1298_v22, %v3696_v14  ;;  %v1778_v1 = vsel %vm3832_vm6, %v1777_v37, %v1773_v44  ;;  %vm1306_vm1 = vweird.f32 %v2949_v46  ;;  %v535_v9 = vpop.f32.mrf.mxu1 }
 0x111   :  { %v2009_v50 = vadd.f32 %v3837_v20, %v2008_v16  ;;  %v3915_v35 = vadd.f32 1.0, %v2951_v12  ;;  %v1551_v3 = vand.u32 2147483648, %v3841_v23  ;;  %2956 = vpow2.f32 %v2547_v41  ;;  %vm1307_vm5 = vmor %vm1305_vm13, %vm1306_vm1 }
 0x112   :  { %v1303_v42 = vmul.f32 %v2949_v46, %v1302_v62  ;;  %v2563_v24 = vmul.f32 -1.442695, %v3875_v33  ;;  %v2953_v5 = vpop.eup %2952  ;;  %v3920_v6 = vmul.f32 %v1538_v38, %v3699_v31  ;;  %vm1545_vm3 = vweird.f32 %v3841_v23 }
 0x113   :  { %v1789_v36 = vand.u32 2147483647, %v3865_v29  ;;  %2958 = vrcp.f32 %v3915_v35  ;;  %v2013_v10 = vsel %vm3926_vm2, %v3837_v20, %v2009_v50  ;;  %v1541_v57 = vmul.f32 %v2953_v5, %v3841_v23 }
 0x114   :  { %v1304_v31 = vadd.f32 %v2949_v46, %v1303_v42  ;;  %vm3937_vm4 = vcmp.eq.f32.partialorder %v1549_v59, 8.507059e+37  ;;  %v3942_v39 = vmul.f32 %v1778_v1, %v3717_v55  ;;  %vm1785_vm6 = vweird.f32 %v3865_v29 }
 0x115   :  { %v2955_v63 = vpop.eup %2954  ;;  %v1791_v17 = vand.u32 2147483648, %v3865_v29  ;;  %2960 = vpow2.f32 %v2563_v24  ;;  %v1542_v56 = vsub.f32 1.0, %v1541_v57  ;;  %v1552_v60 = vor.u32 1.1754944e-38, %v1551_v3 }
 0x116   :  { %v1308_v37 = vsel %vm1307_vm5, %v2949_v46, %v1304_v31  ;;  %v1781_v18 = vmul.f32 %v2955_v63, %v3865_v29  ;;  %v2018_v19 = vsel %vm3897_vm14, %v2017_v26, %v2013_v10  ;;  %vm3954_vm7 = vcmp.eq.f32.partialorder %v1789_v36, 8.507059e+37  ;;  %v575_v36 = vpop.f32.mrf.mxu2  ;;  %v615_v31 = vpop.f32.mrf.mxu3 }
 0x117   :  { %v1313_v55 = vsel %vm3903_vm0, %v1312_v47, %v1308_v37  ;;  %v875_v20 = vmul.f32 %v3961_v7, %v573_v45  ;;  %v2957_v53 = vpop.eup %2956  ;;  %v1543_v27 = vmul.f32 %v2953_v5, %v1542_v56  ;;  %vm1546_vm8 = vweird.f32 %v2953_v5 }
 0x118   :  { %v2190_v2 = vmul.f32 %v1313_v55, %v3739_v13  ;;  %v1782_v28 = vsub.f32 1.0, %v1781_v18  ;;  %vm1786_vm9 = vweird.f32 %v2955_v63  ;;  %v1792_v58 = vor.u32 1.1754944e-38, %v1791_v17  ;;  %vm1547_vm10 = vmor %vm1545_vm3, %vm1546_vm8  ;;  %v498_v17 = vpop.f32.mrf.mxu0 }
 0x119   :  { %v2959_v15 = vpop.eup %2958  ;;  %v3965_v43 = vadd.f32 1.0, %v2957_v53  ;;  %v3973_v8 = vadd.f32 %v3970_v30, %v875_v20  ;;  %v1544_v13 = vadd.f32 %v2953_v5, %v1543_v27  ;;  %v3977_v41 = vmul.f32 %v2018_v19, %v3736_v4  ;;  %vm1787_vm11 = vmor %vm1785_vm6, %vm1786_vm9 }
 0x11a   :  { %v2658_v26 = vpack.c.bf16 %v2190_v2, %v2189_v61  ;;  %v1783_v46 = vmul.f32 %v2955_v63, %v1782_v28  ;;  %v2021_v0 = vmul.f32 %v2959_v15, %v3915_v35  ;;  %v2029_v12 = vand.u32 2147483647, %v3915_v35  ;;  %v538_v2 = vpop.f32.mrf.mxu1 }
 0x11b   :  { %v2961_v21 = vpop.eup %2960  ;;  %v2031_v22 = vand.u32 2147483648, %v3915_v35  ;;  %2962 = vrcp.f32 %v3965_v43  ;;  %v1548_v44 = vsel %vm1547_vm10, %v2953_v5, %v1544_v13  ;;  %v891_v4 = vmul.f32 %v3961_v7, %v613_v52 }
 0x11c   :  { %2806 = vst [vmem:[%s5157_s4 + $0x10] sm:$0xff] %v2658_v26   ;;  %v1784_v16 = vadd.f32 %v2955_v63, %v1783_v46  ;;  %v2022_v48 = vsub.f32 1.0, %v2021_v0  ;;  %v1553_v23 = vsel %vm3937_vm4, %v1552_v60, %v1548_v44  ;;  %v3994_v49 = vadd.f32 1.0, %v2961_v21 }
 0x11d   :  { %v2579_v47 = vmul.f32 -1.442695, %v3973_v8  ;;  %v844_v38 = vmul.f32 %v3961_v7, %v495_v32  ;;  %v2206_v50 = vmul.f32 %v1553_v23, %v3756_v54  ;;  %vm2026_vm12 = vweird.f32 %v2959_v15 }
 0x11e   :  { %v1788_v62 = vsel %vm1787_vm11, %v2955_v63, %v1784_v16  ;;  %v2023_v59 = vmul.f32 %v2959_v15, %v2022_v48  ;;  %vm2025_vm13 = vweird.f32 %v3915_v35  ;;  %vm4002_vm14 = vcmp.eq.f32.partialorder %v2029_v12, 8.507059e+37 }
 0x11f   :  { %v1793_v61 = vsel %vm3954_vm7, %v1792_v58, %v1788_v62  ;;  %2964 = vrcp.f32 %v3994_v49  ;;  %v2698_v29 = vpack.c.bf16 %v2206_v50, %v3920_v6  ;;  %v860_v54 = vmul.f32 %v3961_v7, %v535_v9  ;;  %vm2027_vm15 = vmor %vm2025_vm13, %vm2026_vm12 }
 0x120   :  { %v2222_v42 = vmul.f32 %v1793_v61, %v3763_v25  ;;  %v2024_v3 = vadd.f32 %v2959_v15, %v2023_v59  ;;  %v2032_v5 = vor.u32 1.1754944e-38, %v2031_v22  ;;  %2966 = vpow2.f32 %v2579_v47 }
 0x121   :  { %v4010_v24 = vpop.eup %2962  ;;  %v4013_v35 = vadd.f32 %v3970_v30, %v891_v4  ;;  %v4016_v14 = vadd.f32 %v3970_v30, %v844_v38  ;;  %2814 = vst [vmem:[%s5157_s4 + $0x50] sm:$0xff] %v2698_v29   ;;  %vm1320_vm0 = vweird.f32 %v3965_v43  ;;  %v1324_v11 = vand.u32 2147483647, %v3965_v43 }
 0x122   :  { %v2738_v25 = vpack.c.bf16 %v2222_v42, %v3942_v39  ;;  %v2028_v6 = vsel %vm2027_vm15, %v2959_v15, %v2024_v3  ;;  %v1316_v10 = vmul.f32 %v4010_v24, %v3965_v43  ;;  %v4035_v56 = vadd.f32 %v3970_v30, %v860_v54 }
 0x123   :  { %v2033_v57 = vsel %vm4002_vm14, %v2032_v5, %v2028_v6  ;;  %v2595_v45 = vmul.f32 -1.442695, %v4013_v35  ;;  %v2548_v63 = vmul.f32 -1.442695, %v4016_v14  ;;  %v876_v60 = vmul.f32 %v3961_v7, %v575_v36 }
 0x124   :  { %2822 = vst [vmem:[%s5157_s4 + $0x90] sm:$0xff] %v2738_v25   ;;  %v2238_v39 = vmul.f32 %v2033_v57, %v3789_v34  ;;  %v1317_v37 = vsub.f32 1.0, %v1316_v10  ;;  %v1326_v19 = vand.u32 2147483648, %v3965_v43  ;;  %vm1560_vm1 = vweird.f32 %v3994_v49 }
 0x125   :  { %v2965_v18 = vpop.eup %2964  ;;  %2968 = vpow2.f32 %v2595_v45  ;;  %v892_v55 = vmul.f32 %v3961_v7, %v615_v31  ;;  %v845_v53 = vmul.f32 %v3961_v7, %v498_v17  ;;  %v2564_v28 = vmul.f32 -1.442695, %v4035_v56  ;;  %v618_v17 = vpop.f32.mrf.mxu3 }
 0x126   :  { %v2778_v40 = vpack.c.bf16 %v2238_v39, %v3977_v41  ;;  %v1318_v20 = vmul.f32 %v4010_v24, %v1317_v37  ;;  %v1556_v34 = vmul.f32 %v2965_v18, %v3994_v49  ;;  %v2967_v27 = vpop.eup %2966  ;;  %2970 = vpow2.f32 %v2548_v63 }
 0x127   :  { %v4047_v52 = vadd.f32 %v3970_v30, %v876_v60  ;;  %v4050_v15 = vadd.f32 %v3970_v30, %v892_v55  ;;  %vm1321_vm2 = vweird.f32 %v4010_v24  ;;  %v4057_v26 = vadd.f32 1.0, %v2967_v27 }
 0x128   :  { %2830 = vst [vmem:[%s5157_s4 + $0xd0] sm:$0xff] %v2778_v40   ;;  %v1319_v58 = vadd.f32 %v4010_v24, %v1318_v20  ;;  %v1557_v32 = vsub.f32 1.0, %v1556_v34  ;;  %2972 = vpow2.f32 %v2564_v28  ;;  %v861_v0 = vmul.f32 %v3961_v7, %v538_v2  ;;  %vm4066_vm4 = vmor %vm1320_vm0, %vm1321_vm2 }
 0x129   :  { %v2580_v13 = vmul.f32 -1.442695, %v4047_v52  ;;  %v2596_v46 = vmul.f32 -1.442695, %v4050_v15  ;;  %vm1561_vm3 = vweird.f32 %v2965_v18  ;;  %v1566_v41 = vand.u32 2147483648, %v3994_v49 }
 0x12a   :  { %v1558_v21 = vmul.f32 %v2965_v18, %v1557_v32  ;;  %2974 = vrcp.f32 %v4057_v26  ;;  %v1564_v44 = vand.u32 2147483647, %v3994_v49  ;;  %v4072_v16 = vadd.f32 %v3970_v30, %v845_v53  ;;  %vm1562_vm6 = vmor %vm1560_vm1, %vm1561_vm3 }
 0x12b   :  { %v2969_v12 = vpop.eup %2968  ;;  %2976 = vpow2.f32 %v2580_v13  ;;  %v1323_v48 = vsel %vm4066_vm4, %v4010_v24, %v1319_v58  ;;  %vm1325_vm5 = vcmp.eq.f32.partialorder %v1324_v11, 8.507059e+37  ;;  %v1327_v43 = vor.u32 1.1754944e-38, %v1326_v19 }
 0x12c   :  { %v1559_v4 = vadd.f32 %v2965_v18, %v1558_v21  ;;  %v4077_v9 = vadd.f32 1.0, %v2969_v12  ;;  %2978 = vpow2.f32 %v2596_v46  ;;  %v2971_v23 = vpop.eup %2970  ;;  %v4083_v47 = vadd.f32 %v3970_v30, %v861_v0 }
 0x12d   :  { %v1567_v50 = vor.u32 1.1754944e-38, %v1566_v41  ;;  %v1806_v62 = vand.u32 2147483648, %v4057_v26  ;;  %v1328_v61 = vsel %vm1325_vm5, %v1327_v43, %v1323_v48  ;;  %vm1565_vm7 = vcmp.eq.f32.partialorder %v1564_v44, 8.507059e+37 }
 0x12e   :  { %v1563_v38 = vsel %vm1562_vm6, %v2965_v18, %v1559_v4  ;;  %2980 = vrcp.f32 %v4077_v9  ;;  %v2973_v59 = vpop.eup %2972  ;;  %v4087_v1 = vadd.f32 1.0, %v2971_v23  ;;  %v2549_v29 = vmul.f32 -1.442695, %v4072_v16 }
 0x12f   :  { %v1568_v49 = vsel %vm1565_vm7, %v1567_v50, %v1563_v38  ;;  %v1804_v3 = vand.u32 2147483647, %v4057_v26  ;;  %v4093_v54 = vadd.f32 1.0, %v2973_v59  ;;  %vm1800_vm8 = vweird.f32 %v4057_v26 }
 0x130   :  { %v4090_v42 = vpop.eup %2974  ;;  %2982 = vrcp.f32 %v4087_v1  ;;  %v2565_v36 = vmul.f32 -1.442695, %v4083_v47  ;;  %v4101_v6 = vmul.f32 %v1328_v61, %v3844_v51  ;;  %v1807_v10 = vor.u32 1.1754944e-38, %v1806_v62 }
 0x131   :  { %v2977_v24 = vpop.eup %2976  ;;  %v1796_v5 = vmul.f32 %v4090_v42, %v4057_v26  ;;  %v2046_v31 = vand.u32 2147483648, %v4077_v9  ;;  %2984 = vrcp.f32 %v4093_v54  ;;  %v4106_v57 = vmul.f32 %v1568_v49, %v3875_v33 }
 0x132   :  { %v2979_v25 = vpop.eup %2978  ;;  %v2044_v45 = vand.u32 2147483647, %v4077_v9  ;;  %2986 = vpow2.f32 %v2549_v29  ;;  %vm4111_vm9 = vcmp.eq.f32.partialorder %v1804_v3, 8.507059e+37  ;;  %vm2040_vm10 = vweird.f32 %v4077_v9 }
 0x133   :  { %v1797_v11 = vsub.f32 1.0, %v1796_v5  ;;  %v1339_v51 = vand.u32 2147483647, %v4087_v1  ;;  %v1341_v39 = vand.u32 2147483648, %v4087_v1  ;;  %v4118_v37 = vadd.f32 1.0, %v2977_v24 }
 0x134   :  { %v4109_v63 = vpop.eup %2980  ;;  %v4120_v33 = vadd.f32 1.0, %v2979_v25  ;;  %vm1801_vm11 = vweird.f32 %v4090_v42  ;;  %2988 = vpow2.f32 %v2565_v36  ;;  %v2047_v19 = vor.u32 1.1754944e-38, %v2046_v31  ;;  %v578_v25 = vpop.f32.mrf.mxu2 }
 0x135   :  { %v1798_v60 = vmul.f32 %v4090_v42, %v1797_v11  ;;  %v2036_v18 = vmul.f32 %v4109_v63, %v4077_v9  ;;  %v1579_v55 = vand.u32 2147483647, %v4093_v54  ;;  %v1581_v40 = vand.u32 2147483648, %v4093_v54  ;;  %vm4146_vm0 = vmor %vm1800_vm8, %vm1801_vm11 }
 0x136   :  { %2990 = vrcp.f32 %v4118_v37  ;;  %v2983_v20 = vpop.eup %2982  ;;  %vm1335_vm12 = vweird.f32 %v4087_v1  ;;  %vm4132_vm13 = vcmp.eq.f32.partialorder %v2044_v45, 8.507059e+37  ;;  %vm4137_vm14 = vcmp.eq.f32.partialorder %v1339_v51, 8.507059e+37 }
 0x137   :  { %v1799_v34 = vadd.f32 %v4090_v42, %v1798_v60  ;;  %v2037_v53 = vsub.f32 1.0, %v2036_v18  ;;  %2992 = vrcp.f32 %v4120_v33  ;;  %v2985_v2 = vpop.eup %2984  ;;  %v1331_v28 = vmul.f32 %v2983_v20, %v4087_v1 }
 0x138   :  { %v1342_v32 = vor.u32 1.1754944e-38, %v1341_v39  ;;  %vm1575_vm15 = vweird.f32 %v4093_v54  ;;  %v2987_v13 = vpop.eup %2986  ;;  %vm2041_vm1 = vweird.f32 %v4109_v63  ;;  %v1571_v21 = vmul.f32 %v2985_v2, %v4093_v54  ;;  %v500_v54 = vpop.f32.mrf.mxu0 }
 0x139   :  { %v2038_v0 = vmul.f32 %v4109_v63, %v2037_v53  ;;  %v1819_v41 = vand.u32 2147483647, %v4118_v37  ;;  %v1803_v12 = vsel %vm4146_vm0, %v4090_v42, %v1799_v34  ;;  %v1332_v22 = vsub.f32 1.0, %v1331_v28  ;;  %vm4173_vm6 = vmor %vm2040_vm10, %vm2041_vm1 }
 0x13a   :  { %vm4157_vm2 = vcmp.eq.f32.partialorder %v1579_v55, 8.507059e+37  ;;  %v1582_v26 = vor.u32 1.1754944e-38, %v1581_v40  ;;  %v2989_v48 = vpop.eup %2988  ;;  %v1572_v23 = vsub.f32 1.0, %v1571_v21  ;;  %vm1815_vm3 = vweird.f32 %v4118_v37 }
 0x13b   :  { %v2039_v4 = vadd.f32 %v4109_v63, %v2038_v0  ;;  %v1821_v43 = vand.u32 2147483648, %v4118_v37  ;;  %v1333_v50 = vmul.f32 %v2983_v20, %v1332_v22  ;;  %vm1336_vm4 = vweird.f32 %v2983_v20 }
 0x13c   :  { %v2991_v38 = vpop.eup %2990  ;;  %vm2055_vm5 = vweird.f32 %v4120_v33  ;;  %v4165_v62 = vadd.f32 1.0, %v2987_v13  ;;  %v1808_v61 = vsel %vm4111_vm9, %v1807_v10, %v1803_v12  ;;  %v1573_v42 = vmul.f32 %v2985_v2, %v1572_v23  ;;  %vm1337_vm9 = vmor %vm1335_vm12, %vm1336_vm4  ;;  %v580_v44 = vpop.f32.mrf.mxu2 }
 0x13d   :  { %v2993_v59 = vpop.eup %2992  ;;  %vm1576_vm7 = vweird.f32 %v2985_v2  ;;  %v1811_v49 = vmul.f32 %v2991_v38, %v4118_v37  ;;  %vm4178_vm8 = vcmp.eq.f32.partialorder %v1819_v41, 8.507059e+37  ;;  %v2043_v24 = vsel %vm4173_vm6, %v4109_v63, %v2039_v4 }
 0x13e   :  { %v1334_v5 = vadd.f32 %v2983_v20, %v1333_v50  ;;  %v2051_v36 = vmul.f32 %v2993_v59, %v4120_v33  ;;  %v2059_v9 = vand.u32 2147483647, %v4120_v33  ;;  %v1574_v10 = vadd.f32 %v2985_v2, %v1573_v42  ;;  %vm1577_vm10 = vmor %vm1575_vm15, %vm1576_vm7 }
 0x13f   :  { %v1812_v31 = vsub.f32 1.0, %v1811_v49  ;;  %v2061_v11 = vand.u32 2147483648, %v4120_v33  ;;  %v4191_v45 = vadd.f32 1.0, %v2989_v48  ;;  %vm1816_vm11 = vweird.f32 %v2991_v38 }
 0x140   :  { %v1338_v51 = vsel %vm1337_vm9, %v2983_v20, %v1334_v5  ;;  %v2052_v63 = vsub.f32 1.0, %v2051_v36  ;;  %2994 = vrcp.f32 %v4165_v62  ;;  %v2048_v1 = vsel %vm4132_vm13, %v2047_v19, %v2043_v24  ;;  %v540_v19 = vpop.f32.mrf.mxu1  ;;  %vm1817_vm13 = vmor %vm1815_vm3, %vm1816_vm11  ;;  %v503_v36 = vpop.f32.mrf.mxu0 }
 0x141   :  { %v1343_v39 = vsel %vm4137_vm14, %v1342_v32, %v1338_v51  ;;  %v1578_v60 = vsel %vm1577_vm10, %v2985_v2, %v1574_v10  ;;  %v1813_v18 = vmul.f32 %v2991_v38, %v1812_v31  ;;  %vm2056_vm12 = vweird.f32 %v2993_v59 }
 0x142   :  { %v2192_v55 = vmul.f32 %v1343_v39, %v4016_v14  ;;  %v1583_v40 = vsel %vm4157_vm2, %v1582_v26, %v1578_v60  ;;  %v2053_v20 = vmul.f32 %v2993_v59, %v2052_v63  ;;  %v1822_v28 = vor.u32 1.1754944e-38, %v1821_v43  ;;  %vm2057_vm15 = vmor %vm2055_vm5, %vm2056_vm12  ;;  %v620_v43 = vpop.f32.mrf.mxu3 }
 0x143   :  { %v2208_v34 = vmul.f32 %v1583_v40, %v4035_v56  ;;  %v1814_v53 = vadd.f32 %v2991_v38, %v1813_v18  ;;  %2996 = vrcp.f32 %v4191_v45  ;;  %v2223_v27 = vmul.f32 %v1808_v61, %v3973_v8 }
 0x144   :  { %v2663_v2 = vpack.c.bf16 %v2192_v55, %v4101_v6  ;;  %v2054_v14 = vadd.f32 %v2993_v59, %v2053_v20  ;;  %vm2060_vm14 = vcmp.eq.f32.partialorder %v2059_v9, 8.507059e+37  ;;  %v2239_v58 = vmul.f32 %v2048_v1, %v4013_v35 }
 0x145   :  { %v2703_v32 = vpack.c.bf16 %v2208_v34, %v4106_v57  ;;  %v1818_v56 = vsel %vm1817_vm13, %v2991_v38, %v1814_v53  ;;  %v2062_v13 = vor.u32 1.1754944e-38, %v2061_v11  ;;  %vm1350_vm0 = vweird.f32 %v4165_v62 }
 0x146   :  { %v4216_v46 = vpop.eup %2994  ;;  %2807 = vst [vmem:[%s5157_s4 + $0x18] sm:$0xff] %v2663_v2   ;;  %v1823_v8 = vsel %vm4178_vm8, %v1822_v28, %v1818_v56  ;;  %v2058_v6 = vsel %vm2057_vm15, %v2993_v59, %v2054_v14  ;;  %v877_v35 = vmul.f32 %v3961_v7, %v578_v25  ;;  %v893_v57 = vmul.f32 %v3961_v7, %v618_v17 }
 0x147   :  { %2815 = vst [vmem:[%s5157_s4 + $0x58] sm:$0xff] %v2703_v32   ;;  %v2224_v37 = vmul.f32 %v1823_v8, %v4047_v52  ;;  %v2063_v33 = vsel %vm2060_vm14, %v2062_v13, %v2058_v6  ;;  %v1346_v0 = vmul.f32 %v4216_v46, %v4165_v62  ;;  %v1354_v21 = vand.u32 2147483647, %v4165_v62 }
 0x148   :  { %v2240_v41 = vmul.f32 %v2063_v33, %v4050_v15  ;;  %v1356_v12 = vand.u32 2147483648, %v4165_v62  ;;  %vm1590_vm1 = vweird.f32 %v4191_v45  ;;  %v4237_v22 = vadd.f32 %v3970_v30, %v877_v35  ;;  %v543_v10 = vpop.f32.mrf.mxu1  ;;  %v583_v62 = vpop.f32.mrf.mxu2 }
 0x149   :  { %v4239_v26 = vpop.eup %2996  ;;  %v2743_v48 = vpack.c.bf16 %v2224_v37, %v2223_v27  ;;  %v1347_v52 = vsub.f32 1.0, %v1346_v0  ;;  %v4242_v4 = vadd.f32 %v3970_v30, %v893_v57  ;;  %v846_v23 = vmul.f32 %v3961_v7, %v500_v54 }
 0x14a   :  { %v2783_v38 = vpack.c.bf16 %v2240_v41, %v2239_v58  ;;  %v1586_v15 = vmul.f32 %v4239_v26, %v4191_v45  ;;  %v1596_v50 = vand.u32 2147483648, %v4191_v45  ;;  %v2581_v59 = vmul.f32 -1.442695, %v4237_v22  ;;  %v623_v6 = vpop.f32.mrf.mxu3 }
 0x14b   :  { %2823 = vst [vmem:[%s5157_s4 + $0x98] sm:$0xff] %v2743_v48   ;;  %v1348_v61 = vmul.f32 %v4216_v46, %v1347_v52  ;;  %v2597_v29 = vmul.f32 -1.442695, %v4242_v4  ;;  %v4255_v42 = vadd.f32 %v3970_v30, %v846_v23  ;;  %v862_v49 = vmul.f32 %v3961_v7, %v540_v19 }
 0x14c   :  { %2831 = vst [vmem:[%s5157_s4 + $0xd8] sm:$0xff] %v2783_v38   ;;  %v1587_v3 = vsub.f32 1.0, %v1586_v15  ;;  %2998 = vpow2.f32 %v2581_v59  ;;  %v878_v24 = vmul.f32 %v3961_v7, %v580_v44  ;;  %v894_v5 = vmul.f32 %v3961_v7, %v620_v43 }
 0x14d   :  { %vm1351_vm2 = vweird.f32 %v4216_v46  ;;  %3000 = vpow2.f32 %v2597_v29  ;;  %v2550_v9 = vmul.f32 -1.442695, %v4255_v42  ;;  %v4266_v25 = vadd.f32 %v3970_v30, %v862_v49 }
 0x14e   :  { %v1349_v31 = vadd.f32 %v4216_v46, %v1348_v61  ;;  %v1588_v11 = vmul.f32 %v4239_v26, %v1587_v3  ;;  %v4271_v17 = vadd.f32 %v3970_v30, %v878_v24  ;;  %v4274_v51 = vadd.f32 %v3970_v30, %v894_v5  ;;  %vm4287_vm4 = vmor %vm1350_vm0, %vm1351_vm2 }
 0x14f   :  { %vm1591_vm3 = vweird.f32 %v4239_v26  ;;  %3002 = vpow2.f32 %v2550_v9  ;;  %v2566_v63 = vmul.f32 -1.442695, %v4266_v25  ;;  %v847_v1 = vmul.f32 %v3961_v7, %v503_v36 }
 0x150   :  { %v1589_v39 = vadd.f32 %v4239_v26, %v1588_v11  ;;  %v2582_v60 = vmul.f32 -1.442695, %v4271_v17  ;;  %v2598_v18 = vmul.f32 -1.442695, %v4274_v51  ;;  %v863_v55 = vmul.f32 %v3961_v7, %v543_v10  ;;  %vm4297_vm5 = vmor %vm1590_vm1, %vm1591_vm3 }
 0x151   :  { %v1594_v20 = vand.u32 2147483647, %v4191_v45  ;;  %3004 = vpow2.f32 %v2566_v63  ;;  %v1353_v34 = vsel %vm4287_vm4, %v4216_v46, %v1349_v31  ;;  %v1357_v53 = vor.u32 1.1754944e-38, %v1356_v12 }
 0x152   :  { %v2999_v54 = vpop.eup %2998  ;;  %3006 = vpow2.f32 %v2582_v60  ;;  %v1593_v27 = vsel %vm4297_vm5, %v4239_v26, %v1589_v39  ;;  %v4307_v14 = vadd.f32 %v3970_v30, %v847_v1  ;;  %vm1355_vm6 = vcmp.eq.f32.partialorder %v1354_v21, 8.507059e+37 }
 0x153   :  { %v3001_v19 = vpop.eup %3000  ;;  %v4304_v2 = vadd.f32 1.0, %v2999_v54  ;;  %3008 = vpow2.f32 %v2598_v18  ;;  %v1597_v58 = vor.u32 1.1754944e-38, %v1596_v50  ;;  %v4312_v32 = vadd.f32 %v3970_v30, %v863_v55 }
 0x154   :  { %v4309_v45 = vadd.f32 1.0, %v3001_v19  ;;  %v1358_v13 = vsel %vm1355_vm6, %v1357_v53, %v1353_v34  ;;  %vm1595_vm7 = vcmp.eq.f32.partialorder %v1594_v20, 8.507059e+37  ;;  %v879_v46 = vmul.f32 %v3961_v7, %v583_v62 }
 0x155   :  { %v3003_v56 = vpop.eup %3002  ;;  %3010 = vrcp.f32 %v4304_v2  ;;  %v1598_v8 = vsel %vm1595_vm7, %v1597_v58, %v1593_v27  ;;  %v2551_v37 = vmul.f32 -1.442695, %v4307_v14  ;;  %v4321_v0 = vmul.f32 %v1358_v13, %v4072_v16 }
 0x156   :  { %3012 = vrcp.f32 %v4309_v45  ;;  %v4317_v57 = vadd.f32 1.0, %v3003_v56  ;;  %v2567_v41 = vmul.f32 -1.442695, %v4312_v32  ;;  %v4327_v44 = vmul.f32 %v1598_v8, %v4083_v47 }
 0x157   :  { %v3005_v35 = vpop.eup %3004  ;;  %v4331_v26 = vadd.f32 %v3970_v30, %v879_v46  ;;  %v4334_v48 = vmul.f32 %v3961_v7, %v623_v6  ;;  %v1834_v52 = vand.u32 2147483647, %v4304_v2  ;;  %v1836_v16 = vand.u32 2147483648, %v4304_v2 }
 0x158   :  { %v3007_v33 = vpop.eup %3006  ;;  %v4323_v21 = vadd.f32 1.0, %v3005_v35  ;;  %3014 = vrcp.f32 %v4317_v57  ;;  %v2076_v23 = vand.u32 2147483648, %v4309_v45  ;;  %vm1830_vm8 = vweird.f32 %v4304_v2 }
 0x159   :  { %v3009_v12 = vpop.eup %3008  ;;  %v1371_v47 = vand.u32 2147483648, %v4317_v57  ;;  %v4344_v38 = vadd.f32 1.0, %v3007_v33  ;;  %v2074_v61 = vand.u32 2147483647, %v4309_v45  ;;  %v1369_v29 = vand.u32 2147483647, %v4317_v57 }
 0x15a   :  { %3016 = vrcp.f32 %v4323_v21  ;;  %v4346_v15 = vadd.f32 1.0, %v3009_v12  ;;  %vm2070_vm9 = vweird.f32 %v4309_v45  ;;  %v1609_v3 = vand.u32 2147483647, %v4323_v21 }
 0x15b   :  { %v4340_v43 = vpop.eup %3010  ;;  %3018 = vpow2.f32 %v2551_v37  ;;  %v1611_v24 = vand.u32 2147483648, %v4323_v21  ;;  %v1837_v36 = vor.u32 1.1754944e-38, %v1836_v16  ;;  %v4360_v9 = vor.u32 1.1754944e-38, %v2076_v23 }
 0x15c   :  { %v4348_v50 = vpop.eup %3012  ;;  %v1826_v59 = vmul.f32 %v4340_v43, %v4304_v2  ;;  %3020 = vpow2.f32 %v2567_v41  ;;  %vm4363_vm10 = vcmp.eq.f32.partialorder %v1834_v52, 8.507059e+37  ;;  %vm1365_vm11 = vweird.f32 %v4317_v57 }
 0x15d   :  { %v2066_v49 = vmul.f32 %v4348_v50, %v4309_v45  ;;  %3022 = vrcp.f32 %v4344_v38  ;;  %v1372_v63 = vor.u32 1.1754944e-38, %v1371_v47  ;;  %vm1605_vm12 = vweird.f32 %v4323_v21 }
 0x15e   :  { %v1827_v5 = vsub.f32 1.0, %v1826_v59  ;;  %3024 = vrcp.f32 %v4346_v15  ;;  %v3015_v10 = vpop.eup %3014  ;;  %vm1831_vm13 = vweird.f32 %v4340_v43  ;;  %vm4372_vm14 = vcmp.eq.f32.partialorder %v1369_v29, 8.507059e+37 }
 0x15f   :  { %v2067_v11 = vsub.f32 1.0, %v2066_v49  ;;  %v1361_v60 = vmul.f32 %v3015_v10, %v4317_v57  ;;  %v1849_v55 = vand.u32 2147483647, %v4344_v38  ;;  %vm2071_vm15 = vweird.f32 %v4348_v50  ;;  %vm4399_vm5 = vmor %vm1830_vm8, %vm1831_vm13 }
 0x160   :  { %v3017_v1 = vpop.eup %3016  ;;  %v1828_v39 = vmul.f32 %v4340_v43, %v1827_v5  ;;  %vm4379_vm0 = vcmp.eq.f32.partialorder %v2074_v61, 8.507059e+37  ;;  %vm4384_vm1 = vcmp.eq.f32.partialorder %v1609_v3, 8.507059e+37  ;;  %v1612_v28 = vor.u32 1.1754944e-38, %v1611_v24  ;;  %vm4418_vm8 = vmor %vm2070_vm9, %vm2071_vm15  ;;  %v505_v24 = vpop.f32.mrf.mxu0 }
 0x161   :  { %v3019_v40 = vpop.eup %3018  ;;  %v2068_v20 = vmul.f32 %v4348_v50, %v2067_v11  ;;  %v1601_v34 = vmul.f32 %v3017_v1, %v4323_v21  ;;  %v1362_v27 = vsub.f32 1.0, %v1361_v60  ;;  %vm1845_vm2 = vweird.f32 %v4344_v38 }
 0x162   :  { %v3021_v62 = vpop.eup %3020  ;;  %v1829_v19 = vadd.f32 %v4340_v43, %v1828_v39  ;;  %v1851_v58 = vand.u32 2147483648, %v4344_v38  ;;  %v2089_v56 = vand.u32 2147483647, %v4346_v15  ;;  %vm1366_vm3 = vweird.f32 %v3015_v10 }
 0x163   :  { %v3023_v13 = vpop.eup %3022  ;;  %v2069_v46 = vadd.f32 %v4348_v50, %v2068_v20  ;;  %v1602_v8 = vsub.f32 1.0, %v1601_v34  ;;  %vm2085_vm4 = vweird.f32 %v4346_v15  ;;  %v2091_v6 = vand.u32 2147483648, %v4346_v15  ;;  %vm1367_vm13 = vmor %vm1365_vm11, %vm1366_vm3 }
 0x164   :  { %v3025_v35 = vpop.eup %3024  ;;  %v1363_v33 = vmul.f32 %v3015_v10, %v1362_v27  ;;  %v1841_v41 = vmul.f32 %v3023_v13, %v4344_v38  ;;  %vm4404_vm6 = vcmp.eq.f32.partialorder %v1849_v55, 8.507059e+37  ;;  %v4408_v52 = vadd.f32 1.0, %v3019_v40  ;;  %v545_v55 = vpop.f32.mrf.mxu1 }
 0x165   :  { %v1833_v16 = vsel %vm4399_vm5, %v4340_v43, %v1829_v19  ;;  %v1603_v23 = vmul.f32 %v3017_v1, %v1602_v8  ;;  %vm1606_vm7 = vweird.f32 %v3017_v1  ;;  %v2081_v2 = vmul.f32 %v3025_v35, %v4346_v15  ;;  %v625_v27 = vpop.f32.mrf.mxu3 }
 0x166   :  { %v1364_v59 = vadd.f32 %v3015_v10, %v1363_v33  ;;  %v1842_v61 = vsub.f32 1.0, %v1841_v41  ;;  %v1852_v29 = vor.u32 1.1754944e-38, %v1851_v58  ;;  %v4422_v49 = vadd.f32 1.0, %v3021_v62  ;;  %vm1607_vm9 = vmor %vm1605_vm12, %vm1606_vm7  ;;  %v585_v62 = vpop.f32.mrf.mxu2 }
 0x167   :  { %v2073_v43 = vsel %vm4418_vm8, %v4348_v50, %v2069_v46  ;;  %v1604_v3 = vadd.f32 %v3017_v1, %v1603_v23  ;;  %vm1846_vm5 = vweird.f32 %v3023_v13  ;;  %v2082_v45 = vsub.f32 1.0, %v2081_v2 }
 0x168   :  { %v1838_v5 = vsel %vm4363_vm10, %v1837_v36, %v1833_v16  ;;  %v1368_v11 = vsel %vm1367_vm13, %v3015_v10, %v1364_v59  ;;  %v1843_v39 = vmul.f32 %v3023_v13, %v1842_v61  ;;  %3026 = vrcp.f32 %v4408_v52  ;;  %vm1847_vm10 = vmor %vm1845_vm2, %vm1846_vm5  ;;  %v508_v8 = vpop.f32.mrf.mxu0 }
 0x169   :  { %v1373_v50 = vsel %vm4372_vm14, %v1372_v63, %v1368_v11  ;;  %v1608_v57 = vsel %vm1607_vm9, %v3017_v1, %v1604_v3  ;;  %v2083_v60 = vmul.f32 %v3025_v35, %v2082_v45  ;;  %vm2086_vm11 = vweird.f32 %v3025_v35 }
 0x16a   :  { %v2078_v31 = vsel %vm4379_vm0, %v4360_v9, %v2073_v43  ;;  %v2194_v36 = vmul.f32 %v1373_v50, %v4255_v42  ;;  %v1613_v21 = vsel %vm4384_vm1, %v1612_v28, %v1608_v57  ;;  %v1844_v10 = vadd.f32 %v3023_v13, %v1843_v39  ;;  %vm2087_vm14 = vmor %vm2085_vm4, %vm2086_vm11 }
 0x16b   :  { %v2210_v40 = vmul.f32 %v1613_v21, %v4266_v25  ;;  %v2084_v63 = vadd.f32 %v3025_v35, %v2083_v60  ;;  %vm2090_vm12 = vcmp.eq.f32.partialorder %v2089_v56, 8.507059e+37  ;;  %3028 = vrcp.f32 %v4422_v49 }
 0x16c   :  { %v2225_v1 = vmul.f32 %v1838_v5, %v4237_v22  ;;  %v2668_v9 = vpack.c.bf16 %v2194_v36, %v4321_v0  ;;  %v1848_v18 = vsel %vm1847_vm10, %v3023_v13, %v1844_v10  ;;  %v2092_v42 = vor.u32 1.1754944e-38, %v2091_v6  ;;  %v548_v16 = vpop.f32.mrf.mxu1 }
 0x16d   :  { %v2241_v20 = vmul.f32 %v2078_v31, %v4242_v4  ;;  %v2708_v25 = vpack.c.bf16 %v2210_v40, %v4327_v44  ;;  %v1853_v38 = vsel %vm4404_vm6, %v1852_v29, %v1848_v18  ;;  %v2088_v54 = vsel %vm2087_vm14, %v3025_v35, %v2084_v63 }
 0x16e   :  { %v4457_v34 = vpop.eup %3026  ;;  %2808 = vst [vmem:[%s5157_s4 + $0x20] sm:$0xff] %v2668_v9   ;;  %v2226_v22 = vmul.f32 %v1853_v38, %v4271_v17  ;;  %v2093_v0 = vsel %vm2090_vm12, %v2092_v42, %v2088_v54  ;;  %vm1380_vm15 = vweird.f32 %v4408_v52  ;;  %v2583_v15 = vmul.f32 -1.442695, %v4331_v26 }
 0x16f   :  { %2816 = vst [vmem:[%s5157_s4 + $0x60] sm:$0xff] %v2708_v25   ;;  %v2242_v4 = vmul.f32 %v2093_v0, %v4274_v51  ;;  %v1376_v44 = vmul.f32 %v4457_v34, %v4408_v52  ;;  %v1384_v53 = vand.u32 2147483647, %v4408_v52  ;;  %v1386_v28 = vand.u32 2147483648, %v4408_v52 }
 0x170   :  { %v2748_v17 = vpack.c.bf16 %v2226_v22, %v2225_v1  ;;  %vm1620_vm0 = vweird.f32 %v4422_v49  ;;  %3030 = vpow2.f32 %v2583_v15  ;;  %v4476_v19 = vadd.f32 %v3970_v30, %v4334_v48  ;;  %v588_v15 = vpop.f32.mrf.mxu2 }
 0x171   :  { %v3029_v58 = vpop.eup %3028  ;;  %v2788_v56 = vpack.c.bf16 %v2242_v4, %v2241_v20  ;;  %v1377_v51 = vsub.f32 1.0, %v1376_v44  ;;  %v848_v13 = vmul.f32 %v3961_v7, %v505_v24  ;;  %v864_v46 = vmul.f32 %v3961_v7, %v545_v55 }
 0x172   :  { %2824 = vst [vmem:[%s5157_s4 + $0xa0] sm:$0xff] %v2748_v17   ;;  %vm1381_vm1 = vweird.f32 %v4457_v34  ;;  %v1616_v6 = vmul.f32 %v3029_v58, %v4422_v49  ;;  %v2599_v48 = vmul.f32 -1.442695, %v4476_v19  ;;  %v880_v35 = vmul.f32 %v3961_v7, %v585_v62 }
 0x173   :  { %2832 = vst [vmem:[%s5157_s4 + $0xe0] sm:$0xff] %v2788_v56   ;;  %v1378_v37 = vmul.f32 %v4457_v34, %v1377_v51  ;;  %v4492_v33 = vadd.f32 %v3970_v30, %v848_v13  ;;  %v4495_v41 = vadd.f32 %v3970_v30, %v864_v46  ;;  %v896_v12 = vmul.f32 %v3961_v7, %v625_v27  ;;  %vm4520_vm3 = vmor %vm1380_vm15, %vm1381_vm1  ;;  %v4572_v13 = vld [vmem:[%s5154_s2] ss:$0 sm:$0xff] }
 0x174   :  { %v1617_v23 = vsub.f32 1.0, %v1616_v6  ;;  %3032 = vpow2.f32 %v2599_v48  ;;  %v4499_v2 = vadd.f32 %v3970_v30, %v880_v35  ;;  %v849_v47 = vmul.f32 %v3961_v7, %v508_v8 }
 0x175   :  { %v1379_v59 = vadd.f32 %v4457_v34, %v1378_v37  ;;  %v2552_v61 = vmul.f32 -1.442695, %v4492_v33  ;;  %v2568_v29 = vmul.f32 -1.442695, %v4495_v41  ;;  %v4506_v43 = vadd.f32 %v3970_v30, %v896_v12 }
 0x176   :  { %v3031_v3 = vpop.eup %3030  ;;  %v1618_v45 = vmul.f32 %v3029_v58, %v1617_v23  ;;  %v2584_v24 = vmul.f32 -1.442695, %v4499_v2  ;;  %v4510_v5 = vadd.f32 %v3970_v30, %v849_v47  ;;  %v865_v11 = vmul.f32 %v3961_v7, %v548_v16 }
 0x177   :  { %vm1621_vm2 = vweird.f32 %v3029_v58  ;;  %v4513_v39 = vadd.f32 1.0, %v3031_v3  ;;  %3034 = vpow2.f32 %v2552_v61  ;;  %v2600_v50 = vmul.f32 -1.442695, %v4506_v43 }
 0x178   :  { %v1619_v60 = vadd.f32 %v3029_v58, %v1618_v45  ;;  %v1626_v55 = vand.u32 2147483648, %v4422_v49  ;;  %3036 = vpow2.f32 %v2568_v29  ;;  %v1383_v7 = vsel %vm4520_vm3, %v4457_v34, %v1379_v59  ;;  %vm4532_vm4 = vmor %vm1620_vm0, %vm1621_vm2 }
 0x179   :  { %v1624_v31 = vand.u32 2147483647, %v4422_v49  ;;  %3038 = vrcp.f32 %v4513_v39  ;;  %v1387_v21 = vor.u32 1.1754944e-38, %v1386_v28  ;;  %v2553_v10 = vmul.f32 -1.442695, %v4510_v5  ;;  %v628_v28 = vpop.f32.mrf.mxu3 }
 0x17a   :  { %v3033_v36 = vpop.eup %3032  ;;  %3040 = vpow2.f32 %v2584_v24  ;;  %v4538_v40 = vadd.f32 %v3970_v30, %v865_v11  ;;  %vm1385_vm6 = vcmp.eq.f32.partialorder %v1384_v53, 8.507059e+37  ;;  %v1623_v63 = vsel %vm4532_vm4, %v3029_v58, %v1619_v60  ;;  %v510_v58 = vpop.f32.mrf.mxu0 }
 0x17b   :  { %v4542_v1 = vadd.f32 1.0, %v3033_v36  ;;  %3042 = vpow2.f32 %v2600_v50  ;;  %v1388_v9 = vsel %vm1385_vm6, %v1387_v21, %v1383_v7  ;;  %v1627_v18 = vor.u32 1.1754944e-38, %v1626_v55 }
 0x17c   :  { %vm1625_vm7 = vcmp.eq.f32.partialorder %v1624_v31, 8.507059e+37  ;;  %v1866_v42 = vand.u32 2147483648, %v4513_v39  ;;  %v2569_v30 = vmul.f32 -1.442695, %v4538_v40  ;;  %v4552_v34 = vmul.f32 %v1388_v9, %v4307_v14 }
 0x17d   :  { %v3035_v49 = vpop.eup %3034  ;;  %3044 = vrcp.f32 %v4542_v1  ;;  %v1628_v25 = vsel %vm1625_vm7, %v1627_v18, %v1623_v63  ;;  %v2106_v22 = vand.u32 2147483648, %v4542_v1  ;;  %vm1860_vm8 = vweird.f32 %v4513_v39 }
 0x17e   :  { %v3037_v20 = vpop.eup %3036  ;;  %v4546_v38 = vadd.f32 1.0, %v3035_v49  ;;  %3046 = vpow2.f32 %v2553_v10  ;;  %v1864_v53 = vand.u32 2147483647, %v4513_v39  ;;  %v4563_v14 = vmul.f32 %v1628_v25, %v4312_v32 }
 0x17f   :  { %v4549_v54 = vpop.eup %3038  ;;  %v4555_v0 = vadd.f32 1.0, %v3037_v20  ;;  %v1867_v17 = vor.u32 1.1754944e-38, %v1866_v42  ;;  %v2104_v27 = vand.u32 2147483647, %v4542_v1  ;;  %v4575_v46 = vmul.f32 %v4572_v13, %v588_v15 }
 0x180   :  { %v3041_v4 = vpop.eup %3040  ;;  %v1856_v44 = vmul.f32 %v4549_v54, %v4513_v39  ;;  %3048 = vrcp.f32 %v4546_v38  ;;  %v4579_v8 = vor.u32 1.1754944e-38, %v2106_v22  ;;  %v1399_v6 = vand.u32 2147483647, %v4546_v38 }
 0x181   :  { %v3043_v62 = vpop.eup %3042  ;;  %3050 = vrcp.f32 %v4555_v0  ;;  %v4567_v51 = vadd.f32 1.0, %v3041_v4  ;;  %v4585_v35 = vmul.f32 %v4572_v13, %v628_v28  ;;  %vm4588_vm13 = vcmp.eq.f32.partialorder %v1864_v53, 8.507059e+37  ;;  %v630_v52 = vpop.f32.mrf.mxu3 }
 0x182   :  { %v1857_v56 = vsub.f32 1.0, %v1856_v44  ;;  %3052 = vpow2.f32 %v2569_v30  ;;  %v4582_v48 = vadd.f32 1.0, %v3043_v62  ;;  %vm2100_vm5 = vweird.f32 %v4542_v1 }
 0x183   :  { %v4577_v32 = vpop.eup %3044  ;;  %v1401_v47 = vand.u32 2147483648, %v4546_v38  ;;  %v4597_v59 = vmul.f32 %v4572_v13, %v510_v58  ;;  %vm1861_vm9 = vweird.f32 %v4549_v54  ;;  %v1639_v61 = vand.u32 2147483647, %v4555_v0 }
 0x184   :  { %v3047_v37 = vpop.eup %3046  ;;  %v1858_v12 = vmul.f32 %v4549_v54, %v1857_v56  ;;  %v2096_v23 = vmul.f32 %v4577_v32, %v4542_v1  ;;  %v1641_v29 = vand.u32 2147483648, %v4555_v0  ;;  %3054 = vrcp.f32 %v4567_v51  ;;  %vm4621_vm14 = vmor %vm1860_vm8, %vm1861_vm9 }
 0x185   :  { %vm1395_vm11 = vweird.f32 %v4546_v38  ;;  %3056 = vrcp.f32 %v4582_v48  ;;  %vm4607_vm10 = vcmp.eq.f32.partialorder %v1399_v6, 8.507059e+37  ;;  %vm1635_vm12 = vweird.f32 %v4555_v0 }
 0x186   :  { %v3049_v3 = vpop.eup %3048  ;;  %v1859_v45 = vadd.f32 %v4549_v54, %v1858_v12  ;;  %v2097_v24 = vsub.f32 1.0, %v2096_v23  ;;  %v4612_v60 = vadd.f32 1.0, %v3047_v37  ;;  %v1402_v31 = vor.u32 1.1754944e-38, %v1401_v47 }
 0x187   :  { %v3051_v11 = vpop.eup %3050  ;;  %v1391_v50 = vmul.f32 %v3049_v3, %v4546_v38  ;;  %v1879_v21 = vand.u32 2147483647, %v4567_v51  ;;  %vm2101_vm15 = vweird.f32 %v4577_v32  ;;  %vm4626_vm0 = vcmp.eq.f32.partialorder %v1639_v61, 8.507059e+37 }
 0x188   :  { %v3053_v55 = vpop.eup %3052  ;;  %v2098_v7 = vmul.f32 %v4577_v32, %v2097_v24  ;;  %v1631_v36 = vmul.f32 %v3051_v11, %v4555_v0  ;;  %v1642_v9 = vor.u32 1.1754944e-38, %v1641_v29  ;;  %v1863_v18 = vsel %vm4621_vm14, %v4549_v54, %v1859_v45  ;;  %vm4652_vm7 = vmor %vm2100_vm5, %vm2101_vm15 }
 0x189   :  { %v1392_v10 = vsub.f32 1.0, %v1391_v50  ;;  %vm4633_vm1 = vcmp.eq.f32.partialorder %v2104_v27, 8.507059e+37  ;;  %vm1875_vm2 = vweird.f32 %v4567_v51  ;;  %v1881_v42 = vand.u32 2147483648, %v4567_v51 }
 0x18a   :  { %v1632_v39 = vsub.f32 1.0, %v1631_v36  ;;  %v3055_v20 = vpop.eup %3054  ;;  %v2099_v25 = vadd.f32 %v4577_v32, %v2098_v7  ;;  %vm1396_vm3 = vweird.f32 %v3049_v3  ;;  %3058 = vrcp.f32 %v4612_v60 }
 0x18b   :  { %v1393_v30 = vmul.f32 %v3049_v3, %v1392_v10  ;;  %v3057_v22 = vpop.eup %3056  ;;  %vm1636_vm4 = vweird.f32 %v3051_v11  ;;  %v1871_v54 = vmul.f32 %v3055_v20, %v4567_v51  ;;  %vm4642_vm6 = vcmp.eq.f32.partialorder %v1879_v21, 8.507059e+37  ;;  %vm1397_vm9 = vmor %vm1395_vm11, %vm1396_vm3 }
 0x18c   :  { %v1633_v15 = vmul.f32 %v3051_v11, %v1632_v39  ;;  %v1868_v44 = vsel %vm4588_vm13, %v1867_v17, %v1863_v18  ;;  %v2111_v62 = vmul.f32 %v3057_v22, %v4582_v48  ;;  %vm2115_vm8 = vweird.f32 %v4582_v48  ;;  %vm1637_vm13 = vmor %vm1635_vm12, %vm1636_vm4 }
 0x18d   :  { %v1394_v28 = vadd.f32 %v3049_v3, %v1393_v30  ;;  %v1872_v58 = vsub.f32 1.0, %v1871_v54  ;;  %v2119_v17 = vand.u32 2147483647, %v4582_v48  ;;  %v2121_v56 = vand.u32 2147483648, %v4582_v48 }
 0x18e   :  { %v1634_v27 = vadd.f32 %v3051_v11, %v1633_v15  ;;  %v2103_v1 = vsel %vm4652_vm7, %v4577_v32, %v2099_v25  ;;  %vm1876_vm5 = vweird.f32 %v3055_v20  ;;  %v2112_v37 = vsub.f32 1.0, %v2111_v62 }
 0x18f   :  { %v1398_v6 = vsel %vm1397_vm9, %v3049_v3, %v1394_v28  ;;  %v1873_v16 = vmul.f32 %v3055_v20, %v1872_v58  ;;  %v4670_v23 = vadd.f32 1.0, %v3053_v55  ;;  %vm2116_vm11 = vweird.f32 %v3057_v22 }
 0x190   :  { %v1403_v38 = vsel %vm4607_vm10, %v1402_v31, %v1398_v6  ;;  %v1638_v12 = vsel %vm1637_vm13, %v3051_v11, %v1634_v27  ;;  %v4672_v47 = vpop.eup %3058  ;;  %v2113_v29 = vmul.f32 %v3057_v22, %v2112_v37  ;;  %v1882_v45 = vor.u32 1.1754944e-38, %v1881_v42  ;;  %v550_v11 = vpop.f32.mrf.mxu1  ;;  %vm1877_vm10 = vmor %vm1875_vm2, %vm1876_vm5 }
 0x191   :  { %v2196_v61 = vmul.f32 %v1403_v38, %v4492_v33  ;;  %v1643_v32 = vsel %vm4626_vm0, %v1642_v9, %v1638_v12  ;;  %v1874_v3 = vadd.f32 %v3055_v20, %v1873_v16  ;;  %v1406_v24 = vmul.f32 %v4672_v47, %v4612_v60  ;;  %vm2117_vm12 = vmor %vm2115_vm8, %vm2116_vm11 }
 0x192   :  { %v2212_v0 = vmul.f32 %v1643_v32, %v4495_v41  ;;  %v2108_v50 = vsel %vm4633_vm1, %v4579_v8, %v2103_v1  ;;  %v2114_v33 = vadd.f32 %v3057_v22, %v2113_v29  ;;  %3060 = vrcp.f32 %v4670_v23  ;;  %v590_v41 = vpop.f32.mrf.mxu2 }
 0x193   :  { %v2673_v57 = vpack.c.bf16 %v2196_v61, %v4552_v34  ;;  %v1878_v7 = vsel %vm1877_vm10, %v3055_v20, %v1874_v3  ;;  %v2122_v31 = vor.u32 1.1754944e-38, %v2121_v56  ;;  %v1407_v36 = vsub.f32 1.0, %v1406_v24 }
 0x194   :  { %v2713_v55 = vpack.c.bf16 %v2212_v0, %v4563_v14  ;;  %v2227_v8 = vmul.f32 %v1868_v44, %v4331_v26  ;;  %v1883_v34 = vsel %vm4642_vm6, %v1882_v45, %v1878_v7  ;;  %v2118_v51 = vsel %vm2117_vm12, %v3057_v22, %v2114_v33  ;;  %v4705_v26 = vld [vmem:[%s5155_s3] ss:$0 sm:$0xff]  ;;  %v633_v0 = vpop.f32.mrf.mxu3 }
 0x195   :  { %2809 = vst [vmem:[%s5157_s4 + $0x28] sm:$0xff] %v2673_v57   ;;  %vm2120_vm14 = vcmp.eq.f32.partialorder %v2119_v17, 8.507059e+37  ;;  %v2228_v14 = vmul.f32 %v1883_v34, %v4499_v2  ;;  %vm1410_vm15 = vweird.f32 %v4612_v60  ;;  %v4709_v21 = vadd.f32 %v4705_v26, %v4575_v46 }
 0x196   :  { %2817 = vst [vmem:[%s5157_s4 + $0x68] sm:$0xff] %v2713_v55   ;;  %v2123_v48 = vsel %vm2120_vm14, %v2122_v31, %v2118_v51  ;;  %v2243_v10 = vmul.f32 %v2108_v50, %v4476_v19  ;;  %v1408_v9 = vmul.f32 %v4672_v47, %v1407_v36  ;;  %v4716_v2 = vadd.f32 %v4705_v26, %v4585_v35 }
 0x197   :  { %v2244_v63 = vmul.f32 %v2123_v48, %v4506_v43  ;;  %v2753_v18 = vpack.c.bf16 %v2228_v14, %v2227_v8  ;;  %v1414_v49 = vand.u32 2147483647, %v4612_v60  ;;  %v2585_v39 = vmul.f32 -1.442695, %v4709_v21 }
 0x198   :  { %v4722_v46 = vadd.f32 %v4705_v26, %v4597_v59  ;;  %v3061_v42 = vpop.eup %3060  ;;  %v2601_v19 = vmul.f32 -1.442695, %v4716_v2  ;;  %v866_v43 = vmul.f32 %v4572_v13, %v550_v11  ;;  %v882_v25 = vmul.f32 %v4572_v13, %v590_v41  ;;  %v513_v59 = vpop.f32.mrf.mxu0 }
 0x199   :  { %v2793_v20 = vpack.c.bf16 %v2244_v63, %v2243_v10  ;;  %2825 = vst [vmem:[%s5157_s4 + $0xa8] sm:$0xff] %v2753_v18   ;;  %vm1411_vm0 = vweird.f32 %v4672_v47  ;;  %v1416_v35 = vand.u32 2147483648, %v4612_v60  ;;  %v1646_v30 = vmul.f32 %v3061_v42, %v4670_v23  ;;  %v553_v28 = vpop.f32.mrf.mxu1 }
 0x19a   :  { %3062 = vpow2.f32 %v2585_v39  ;;  %v1409_v22 = vadd.f32 %v4672_v47, %v1408_v9  ;;  %v2554_v15 = vmul.f32 -1.442695, %v4722_v46  ;;  %v4739_v54 = vadd.f32 %v4705_v26, %v866_v43  ;;  %v593_v17 = vpop.f32.mrf.mxu2  ;;  %vm4753_vm2 = vmor %vm1410_vm15, %vm1411_vm0 }
 0x19b   :  { %2833 = vst [vmem:[%s5157_s4 + $0xe8] sm:$0xff] %v2793_v20   ;;  %3064 = vpow2.f32 %v2601_v19  ;;  %v1647_v4 = vsub.f32 1.0, %v1646_v30  ;;  %vm1650_vm1 = vweird.f32 %v4670_v23  ;;  %v4743_v44 = vadd.f32 %v4705_v26, %v882_v25 }
 0x19c   :  { %v898_v53 = vmul.f32 %v4572_v13, %v630_v52  ;;  %v1656_v62 = vand.u32 2147483648, %v4670_v23  ;;  %3066 = vpow2.f32 %v2554_v15  ;;  %v2570_v27 = vmul.f32 -1.442695, %v4739_v54 }
 0x19d   :  { %v851_v58 = vmul.f32 %v4572_v13, %v513_v59  ;;  %v1648_v1 = vmul.f32 %v3061_v42, %v1647_v4  ;;  %vm1651_vm3 = vweird.f32 %v3061_v42  ;;  %v2586_v6 = vmul.f32 -1.442695, %v4743_v44 }
 0x19e   :  { %v4759_v37 = vadd.f32 %v4705_v26, %v898_v53  ;;  %v1413_v38 = vsel %vm4753_vm2, %v4672_v47, %v1409_v22  ;;  %v1654_v12 = vand.u32 2147483647, %v4670_v23  ;;  %3068 = vpow2.f32 %v2570_v27  ;;  %vm4771_vm6 = vmor %vm1650_vm1, %vm1651_vm3 }
 0x19f   :  { %v867_v60 = vmul.f32 %v4572_v13, %v553_v28  ;;  %v1649_v61 = vadd.f32 %v3061_v42, %v1648_v1  ;;  %3070 = vpow2.f32 %v2586_v6  ;;  %v883_v29 = vmul.f32 %v4572_v13, %v593_v17 }
 0x1a0   :  { %v3063_v16 = vpop.eup %3062  ;;  %v2602_v32 = vmul.f32 -1.442695, %v4759_v37  ;;  %vm1415_vm4 = vcmp.eq.f32.partialorder %v1414_v49, 8.507059e+37  ;;  %v1417_v45 = vor.u32 1.1754944e-38, %v1416_v35  ;;  %v4778_v11 = vadd.f32 %v4705_v26, %v851_v58 }
 0x1a1   :  { %v3065_v3 = vpop.eup %3064  ;;  %v4775_v24 = vadd.f32 1.0, %v3063_v16  ;;  %v1653_v50 = vsel %vm4771_vm6, %v3061_v42, %v1649_v61  ;;  %v1657_v57 = vor.u32 1.1754944e-38, %v1656_v62  ;;  %v4786_v23 = vadd.f32 %v4705_v26, %v867_v60 }
 0x1a2   :  { %v4782_v33 = vadd.f32 1.0, %v3065_v3  ;;  %3072 = vpow2.f32 %v2602_v32  ;;  %v3067_v41 = vpop.eup %3066  ;;  %v1418_v55 = vsel %vm1415_vm4, %v1417_v45, %v1413_v38  ;;  %v899_v7 = vmul.f32 %v4572_v13, %v633_v0 }
 0x1a3   :  { %3074 = vrcp.f32 %v4775_v24  ;;  %vm1655_vm7 = vcmp.eq.f32.partialorder %v1654_v12, 8.507059e+37  ;;  %v4791_v31 = vadd.f32 %v4705_v26, %v883_v29  ;;  %v4793_v34 = vadd.f32 1.0, %v3067_v41 }
 0x1a4   :  { %3076 = vrcp.f32 %v4782_v33  ;;  %v3069_v36 = vpop.eup %3068  ;;  %v1658_v8 = vsel %vm1655_vm7, %v1657_v57, %v1653_v50  ;;  %v2555_v51 = vmul.f32 -1.442695, %v4778_v11  ;;  %v4797_v48 = vmul.f32 %v1418_v55, %v4510_v5 }
 0x1a5   :  { %v3071_v14 = vpop.eup %3070  ;;  %v1896_v52 = vand.u32 2147483648, %v4775_v24  ;;  %v4800_v10 = vadd.f32 1.0, %v3069_v36  ;;  %v2136_v63 = vand.u32 2147483648, %v4782_v33  ;;  %3078 = vrcp.f32 %v4793_v34 }
 0x1a6   :  { %v2571_v9 = vmul.f32 -1.442695, %v4786_v23  ;;  %v4806_v18 = vadd.f32 %v4705_v26, %v899_v7  ;;  %v4809_v39 = vmul.f32 %v1658_v8, %v4538_v40  ;;  %v1894_v5 = vand.u32 2147483647, %v4775_v24 }
 0x1a7   :  { %3080 = vrcp.f32 %v4800_v10  ;;  %v4814_v42 = vmul.f32 -1.442695, %v4791_v31  ;;  %v2134_v19 = vand.u32 2147483647, %v4782_v33  ;;  %v4819_v43 = vadd.f32 1.0, %v3071_v14 }
 0x1a8   :  { %v3073_v49 = vpop.eup %3072  ;;  %3082 = vpow2.f32 %v2555_v51  ;;  %vm1890_vm8 = vweird.f32 %v4775_v24  ;;  %v4828_v30 = vor.u32 1.1754944e-38, %v1896_v52  ;;  %v1429_v59 = vand.u32 2147483647, %v4793_v34 }
 0x1a9   :  { %v4816_v20 = vpop.eup %3074  ;;  %v4821_v25 = vadd.f32 1.0, %v3073_v49  ;;  %v1431_v22 = vand.u32 2147483648, %v4793_v34  ;;  %vm2130_vm9 = vweird.f32 %v4782_v33  ;;  %v4835_v4 = vor.u32 1.1754944e-38, %v2136_v63 }
 0x1aa   :  { %v4823_v35 = vpop.eup %3076  ;;  %v1886_v40 = vmul.f32 %v4816_v20, %v4775_v24  ;;  %v1669_v53 = vand.u32 2147483647, %v4800_v10  ;;  %v4839_v28 = vmul.f32 -1.442695, %v4806_v18  ;;  %vm1425_vm13 = vweird.f32 %v4793_v34 }
 0x1ab   :  { %v2126_v15 = vmul.f32 %v4823_v35, %v4782_v33  ;;  %v1671_v27 = vand.u32 2147483648, %v4800_v10  ;;  %3084 = vrcp.f32 %v4819_v43  ;;  %v3079_v58 = vpop.eup %3078  ;;  %vm1891_vm5 = vweird.f32 %v4816_v20 }
 0x1ac   :  { %v1887_v62 = vsub.f32 1.0, %v1886_v40  ;;  %vm1665_vm11 = vweird.f32 %v4800_v10  ;;  %3086 = vrcp.f32 %v4821_v25  ;;  %v1421_v6 = vmul.f32 %v3079_v58, %v4793_v34  ;;  %vm4879_vm3 = vmor %vm1890_vm8, %vm1891_vm5 }
 0x1ad   :  { %v2127_v17 = vsub.f32 1.0, %v2126_v15  ;;  %v3081_v56 = vpop.eup %3080  ;;  %vm4849_vm10 = vcmp.eq.f32.partialorder %v1429_v59, 8.507059e+37  ;;  %v1432_v12 = vor.u32 1.1754944e-38, %v1431_v22  ;;  %vm2131_vm12 = vweird.f32 %v4823_v35 }
 0x1ae   :  { %v1888_v1 = vmul.f32 %v4816_v20, %v1887_v62  ;;  %v3083_v60 = vpop.eup %3082  ;;  %v1661_v61 = vmul.f32 %v3081_v56, %v4800_v10  ;;  %vm4856_vm14 = vcmp.eq.f32.partialorder %v1669_v53, 8.507059e+37  ;;  %v1422_v29 = vsub.f32 1.0, %v1421_v6  ;;  %vm4889_vm7 = vmor %vm2130_vm9, %vm2131_vm12 }
 0x1af   :  { %v2128_v16 = vmul.f32 %v4823_v35, %v2127_v17  ;;  %v1672_v0 = vor.u32 1.1754944e-38, %v1671_v27  ;;  %v1909_v3 = vand.u32 2147483647, %v4819_v43  ;;  %v1911_v45 = vand.u32 2147483648, %v4819_v43 }
 0x1b0   :  { %v1889_v47 = vadd.f32 %v4816_v20, %v1888_v1  ;;  %vm4863_vm15 = vcmp.eq.f32.partialorder %v1894_v5, 8.507059e+37  ;;  %vm4867_vm0 = vcmp.eq.f32.partialorder %v2134_v19, 8.507059e+37  ;;  %v1662_v41 = vsub.f32 1.0, %v1661_v61 }
 0x1b1   :  { %3088 = vpow2.f32 %v2571_v9  ;;  %v3085_v55 = vpop.eup %3084  ;;  %v2129_v7 = vadd.f32 %v4823_v35, %v2128_v16  ;;  %v1423_v36 = vmul.f32 %v3079_v58, %v1422_v29  ;;  %vm1426_vm2 = vweird.f32 %v3079_v58  ;;  %v555_v29 = vpop.f32.mrf.mxu1 }
 0x1b2   :  { %v4873_v8 = vadd.f32 1.0, %v3083_v60  ;;  %v3087_v51 = vpop.eup %3086  ;;  %v1663_v52 = vmul.f32 %v3081_v56, %v1662_v41  ;;  %vm1666_vm4 = vweird.f32 %v3081_v56  ;;  %v1901_v63 = vmul.f32 %v3085_v55, %v4819_v43  ;;  %vm1427_vm8 = vmor %vm1425_vm13, %vm1426_vm2 }
 0x1b3   :  { %vm2145_vm6 = vweird.f32 %v4821_v25  ;;  %v1424_v49 = vadd.f32 %v3079_v58, %v1423_v36  ;;  %vm4893_vm1 = vcmp.eq.f32.partialorder %v1909_v3, 8.507059e+37  ;;  %v1912_v5 = vor.u32 1.1754944e-38, %v1911_v45  ;;  %vm1667_vm9 = vmor %vm1665_vm11, %vm1666_vm4 }
 0x1b4   :  { %v2149_v19 = vand.u32 2147483647, %v4821_v25  ;;  %v1893_v40 = vsel %vm4879_vm3, %v4816_v20, %v1889_v47  ;;  %v1664_v33 = vadd.f32 %v3081_v56, %v1663_v52  ;;  %v1902_v59 = vsub.f32 1.0, %v1901_v63 }
 0x1b5   :  { %v2141_v22 = vmul.f32 %v3087_v51, %v4821_v25  ;;  %v2133_v15 = vsel %vm4889_vm7, %v4823_v35, %v2129_v7  ;;  %v1428_v53 = vsel %vm1427_vm8, %v3079_v58, %v1424_v49  ;;  %vm1906_vm5 = vweird.f32 %v3085_v55  ;;  %v635_v7 = vpop.f32.mrf.mxu3 }
 0x1b6   :  { %3090 = vrcp.f32 %v4873_v8  ;;  %v1433_v34 = vsel %vm4849_vm10, %v1432_v12, %v1428_v53  ;;  %v1668_v62 = vsel %vm1667_vm9, %v3081_v56, %v1664_v33  ;;  %v1903_v27 = vmul.f32 %v3085_v55, %v1902_v59 }
 0x1b7   :  { %v3089_v20 = vpop.eup %3088  ;;  %v2142_v17 = vsub.f32 1.0, %v2141_v22  ;;  %v2198_v1 = vmul.f32 %v1433_v34, %v4722_v46  ;;  %v1673_v35 = vsel %vm4856_vm14, %v1672_v0, %v1668_v62  ;;  %vm2146_vm13 = vweird.f32 %v3087_v51  ;;  %v595_v0 = vpop.f32.mrf.mxu2 }
 0x1b8   :  { %v2151_v58 = vand.u32 2147483648, %v4821_v25  ;;  %v2214_v10 = vmul.f32 %v1673_v35, %v4739_v54  ;;  %v1904_v6 = vadd.f32 %v3085_v55, %v1903_v27  ;;  %v4918_v16 = vadd.f32 1.0, %v3089_v20  ;;  %vm2147_vm12 = vmor %vm2145_vm6, %vm2146_vm13 }
 0x1b9   :  { %v2143_v60 = vmul.f32 %v3087_v51, %v2142_v17  ;;  %v1898_v56 = vsel %vm4863_vm15, %v4828_v30, %v1893_v40  ;;  %v2138_v46 = vsel %vm4867_vm0, %v4835_v4, %v2133_v15  ;;  %v2678_v38 = vpack.c.bf16 %v2198_v1, %v4797_v48 }
 0x1ba   :  { %vm5294_vm11 = vweird.f32 %v4819_v43  ;;  %3092 = vpow2.f32 %v4814_v42  ;;  %v2718_v54 = vpack.c.bf16 %v2214_v10, %v4809_v39  ;;  %v2152_v42 = vor.u32 1.1754944e-38, %v2151_v58  ;;  %v515_v43 = vpop.f32.mrf.mxu0 }
 0x1bb   :  { %vm1907_vm10 = vmor %vm5294_vm11, %vm1906_vm5  ;;  %v2144_v61 = vadd.f32 %v3087_v51, %v2143_v60  ;;  %3094 = vrcp.f32 %v4918_v16  ;;  %2810 = vst [vmem:[%s5157_s4 + $0x30] sm:$0xff] %v2678_v38   ;;  %v2229_v39 = vmul.f32 %v1898_v56, %v4709_v21  ;;  %vm2150_vm14 = vcmp.eq.f32.partialorder %v2149_v19, 8.507059e+37 }
 0x1bc   :  { %v1908_v12 = vsel %vm1907_vm10, %v3085_v55, %v1904_v6  ;;  %v4933_v32 = vpop.eup %3090  ;;  %2818 = vst [vmem:[%s5157_s4 + $0x70] sm:$0xff] %v2718_v54   ;;  %v2245_v3 = vmul.f32 %v2138_v46, %v4716_v2  ;;  %3096 = vpow2.f32 %v4839_v28  ;;  %v852_v50 = vmul.f32 %v4572_v13, %v515_v43 }
 0x1bd   :  { %v1913_v48 = vsel %vm4893_vm1, %v1912_v5, %v1908_v12  ;;  %v2148_v4 = vsel %vm2147_vm12, %v3087_v51, %v2144_v61  ;;  %v1436_v21 = vmul.f32 %v4933_v32, %v4873_v8  ;;  %v884_v41 = vmul.f32 %v4572_v13, %v595_v0 }
 0x1be   :  { %v2230_v30 = vmul.f32 %v1913_v48, %v4743_v44  ;;  %v2153_v45 = vsel %vm2150_vm14, %v2152_v42, %v2148_v4  ;;  %v868_v44 = vmul.f32 %v4572_v13, %v555_v29  ;;  %v900_v24 = vmul.f32 %v4572_v13, %v635_v7 }
 0x1bf   :  { %v2246_v47 = vmul.f32 %v2153_v45, %v4759_v37  ;;  %v4964_v37 = vadd.f32 %v4705_v26, %v852_v50  ;;  %v4970_v51 = vadd.f32 %v4705_v26, %v884_v41  ;;  %v1437_v14 = vsub.f32 1.0, %v1436_v21 }
 0x1c0   :  { %v2758_v25 = vpack.c.bf16 %v2230_v30, %v2229_v39  ;;  %v3093_v57 = vpop.eup %3092  ;;  %v4967_v36 = vadd.f32 %v4705_v26, %v868_v44  ;;  %v4987_v59 = vadd.f32 %v4705_v26, %v900_v24  ;;  %v1446_v15 = vand.u32 2147483648, %v4873_v8 }
 0x1c1   :  { %v4956_v55 = vpop.eup %3094  ;;  %v2798_v2 = vpack.c.bf16 %v2246_v47, %v2245_v3  ;;  %v4961_v28 = vadd.f32 1.0, %v3093_v57  ;;  %v2556_v9 = vmul.f32 -1.442695, %v4964_v37  ;;  %v2588_v19 = vmul.f32 -1.442695, %v4970_v51 }
 0x1c2   :  { %2826 = vst [vmem:[%s5157_s4 + $0xb0] sm:$0xff] %v2758_v25   ;;  %v3097_v52 = vpop.eup %3096  ;;  %v1676_v63 = vmul.f32 %v4956_v55, %v4918_v16  ;;  %v2572_v49 = vmul.f32 -1.442695, %v4967_v36  ;;  %v1438_v40 = vmul.f32 %v4933_v32, %v1437_v14  ;;  %vm1440_vm15 = vweird.f32 %v4873_v8 }
 0x1c3   :  { %2834 = vst [vmem:[%s5157_s4 + $0xf0] sm:$0xff] %v2798_v2   ;;  %3098 = vrcp.f32 %v4961_v28  ;;  %v4981_v5 = vadd.f32 1.0, %v3097_v52  ;;  %vm1441_vm0 = vweird.f32 %v4933_v32  ;;  %v2604_v20 = vmul.f32 -1.442695, %v4987_v59 }
 0x1c4   :  { %3100 = vpow2.f32 %v2556_v9  ;;  %v1677_v33 = vsub.f32 1.0, %v1676_v63  ;;  %v1439_v53 = vadd.f32 %v4933_v32, %v1438_v40  ;;  %v1444_v17 = vand.u32 2147483647, %v4873_v8  ;;  %vm5004_vm1 = vmor %vm1440_vm15, %vm1441_vm0 }
 0x1c5   :  { %3102 = vrcp.f32 %v4981_v5  ;;  %v1447_v1 = vor.u32 1.1754944e-38, %v1446_v15  ;;  %vm1680_vm2 = vweird.f32 %v4918_v16  ;;  %vm1681_vm3 = vweird.f32 %v4956_v55 }
 0x1c6   :  { %3104 = vpow2.f32 %v2572_v49  ;;  %v1678_v26 = vmul.f32 %v4956_v55, %v1677_v33  ;;  %v1684_v6 = vand.u32 2147483647, %v4918_v16  ;;  %v1686_v60 = vand.u32 2147483648, %v4918_v16  ;;  %vm5035_vm7 = vmor %vm1680_vm2, %vm1681_vm3 }
 0x1c7   :  { %3106 = vpow2.f32 %v2588_v19  ;;  %v1443_v8 = vsel %vm5004_vm1, %v4933_v32, %v1439_v53  ;;  %v1924_v46 = vand.u32 2147483647, %v4961_v28  ;;  %vm1445_vm4 = vcmp.eq.f32.partialorder %v1444_v17, 8.507059e+37 }
 0x1c8   :  { %3108 = vpow2.f32 %v2604_v20  ;;  %v1679_v54 = vadd.f32 %v4956_v55, %v1678_v26  ;;  %v1926_v42 = vand.u32 2147483648, %v4961_v28  ;;  %v1448_v43 = vsel %vm1445_vm4, %v1447_v1, %v1443_v8 }
 0x1c9   :  { %v4989_v22 = vpop.eup %3098  ;;  %vm5026_vm6 = vcmp.eq.f32.partialorder %v1684_v6, 8.507059e+37  ;;  %v1687_v39 = vor.u32 1.1754944e-38, %v1686_v60  ;;  %vm1920_vm8 = vweird.f32 %v4961_v28  ;;  %vm5040_vm9 = vcmp.eq.f32.partialorder %v1924_v46, 8.507059e+37 }
 0x1ca   :  { %v1916_v13 = vmul.f32 %v4989_v22, %v4961_v28  ;;  %v3101_v34 = vpop.eup %3100  ;;  %v1683_v3 = vsel %vm5035_vm7, %v4956_v55, %v1679_v54  ;;  %vm1921_vm5 = vweird.f32 %v4989_v22  ;;  %v5052_v47 = vmul.f32 %v1448_v43, %v4778_v11 }
 0x1cb   :  { %v4999_v27 = vpop.eup %3102  ;;  %v5002_v35 = vadd.f32 1.0, %v3101_v34  ;;  %v1927_v21 = vor.u32 1.1754944e-38, %v1926_v42  ;;  %vm2160_vm13 = vweird.f32 %v4981_v5  ;;  %v2164_v44 = vand.u32 2147483647, %v4981_v5  ;;  %vm5065_vm11 = vmor %vm1920_vm8, %vm1921_vm5 }
 0x1cc   :  { %v1917_v62 = vsub.f32 1.0, %v1916_v13  ;;  %v3105_v58 = vpop.eup %3104  ;;  %v2156_v38 = vmul.f32 %v4999_v27, %v4981_v5  ;;  %v2166_v41 = vand.u32 2147483648, %v4981_v5  ;;  %v1688_v2 = vsel %vm5026_vm6, %v1687_v39, %v1683_v3 }
 0x1cd   :  { %v3107_v56 = vpop.eup %3106  ;;  %3110 = vrcp.f32 %v5002_v35  ;;  %v5021_v61 = vadd.f32 1.0, %v3105_v58  ;;  %v1459_v16 = vand.u32 2147483647, %v5002_v35  ;;  %v1461_v50 = vand.u32 2147483648, %v5002_v35 }
 0x1ce   :  { %v1918_v12 = vmul.f32 %v4989_v22, %v1917_v62  ;;  %v5023_v48 = vadd.f32 1.0, %v3107_v56  ;;  %v3109_v30 = vpop.eup %3108  ;;  %v2157_v0 = vsub.f32 1.0, %v2156_v38  ;;  %vm2161_vm10 = vweird.f32 %v4999_v27 }
 0x1cf   :  { %3112 = vrcp.f32 %v5021_v61  ;;  %v5055_v57 = vadd.f32 1.0, %v3109_v30  ;;  %vm1455_vm12 = vweird.f32 %v5002_v35  ;;  %vm5076_vm14 = vcmp.eq.f32.partialorder %v1459_v16, 8.507059e+37  ;;  %vm5105_vm7 = vmor %vm2160_vm13, %vm2161_vm10 }
 0x1d0   :  { %3114 = vrcp.f32 %v5023_v48  ;;  %v1919_v45 = vadd.f32 %v4989_v22, %v1918_v12  ;;  %v2158_v7 = vmul.f32 %v4999_v27, %v2157_v0  ;;  %v1462_v49 = vor.u32 1.1754944e-38, %v1461_v50 }
 0x1d1   :  { %3116 = vrcp.f32 %v5055_v57  ;;  %v1699_v19 = vand.u32 2147483647, %v5021_v61  ;;  %v1701_v40 = vand.u32 2147483648, %v5021_v61  ;;  %vm1695_vm0 = vweird.f32 %v5021_v61 }
 0x1d2   :  { %v1923_v52 = vsel %vm5065_vm11, %v4989_v22, %v1919_v45  ;;  %v2159_v13 = vadd.f32 %v4999_v27, %v2158_v7  ;;  %v1939_v20 = vand.u32 2147483647, %v5023_v48  ;;  %vm5089_vm1 = vcmp.eq.f32.partialorder %v2164_v44, 8.507059e+37 }
 0x1d3   :  { %v3111_v25 = vpop.eup %3110  ;;  %v1928_v15 = vsel %vm5040_vm9, %v1927_v21, %v1923_v52  ;;  %vm1935_vm2 = vweird.f32 %v5023_v48  ;;  %v1941_v17 = vand.u32 2147483648, %v5023_v48  ;;  %vm5097_vm6 = vcmp.eq.f32.partialorder %v1699_v19, 8.507059e+37 }
 0x1d4   :  { %v1451_v55 = vmul.f32 %v3111_v25, %v5002_v35  ;;  %vm1456_vm15 = vweird.f32 %v3111_v25  ;;  %v1702_v6 = vor.u32 1.1754944e-38, %v1701_v40  ;;  %v2163_v46 = vsel %vm5105_vm7, %v4999_v27, %v2159_v13 }
 0x1d5   :  { %v3113_v14 = vpop.eup %3112  ;;  %vm1457_vm3 = vmor %vm1455_vm12, %vm1456_vm15  ;;  %vm5115_vm9 = vcmp.eq.f32.partialorder %v1939_v20, 8.507059e+37  ;;  %v1942_v43 = vor.u32 1.1754944e-38, %v1941_v17  ;;  %v2179_v27 = vand.u32 2147483647, %v5055_v57  ;;  %v2181_v30 = vand.u32 2147483648, %v5055_v57 }
 0x1d6   :  { %v1452_v63 = vsub.f32 1.0, %v1451_v55  ;;  %v3115_v9 = vpop.eup %3114  ;;  %v1691_v24 = vmul.f32 %v3113_v14, %v5021_v61  ;;  %vm1696_vm4 = vweird.f32 %v3113_v14  ;;  %v2215_v0 = vmul.f32 %v1688_v2, %v4786_v23 }
 0x1d7   :  { %v1931_v22 = vmul.f32 %v3115_v9, %v5023_v48  ;;  %v3117_v1 = vpop.eup %3116  ;;  %vm1936_vm8 = vweird.f32 %v3115_v9  ;;  %vm1697_vm5 = vmor %vm1695_vm0, %vm1696_vm4  ;;  %v2167_v3 = vor.u32 1.1754944e-38, %v2166_v41  ;;  %v2231_v16 = vmul.f32 %v1928_v15, %v4791_v31 }
 0x1d8   :  { %v1453_v33 = vmul.f32 %v3111_v25, %v1452_v63  ;;  %v1692_v53 = vsub.f32 1.0, %v1691_v24  ;;  %v2171_v35 = vmul.f32 %v3117_v1, %v5055_v57  ;;  %vm1937_vm13 = vmor %vm1935_vm2, %vm1936_vm8  ;;  %vm2176_vm11 = vweird.f32 %v3117_v1 }
 0x1d9   :  { %v1932_v62 = vsub.f32 1.0, %v1931_v22  ;;  %vm2175_vm10 = vweird.f32 %v5055_v57  ;;  %v2168_v23 = vsel %vm5089_vm1, %v2167_v3, %v2163_v46 }
 0x1da   :  { %v1454_v26 = vadd.f32 %v3111_v25, %v1453_v33  ;;  %v1693_v58 = vmul.f32 %v3113_v14, %v1692_v53  ;;  %v2172_v32 = vsub.f32 1.0, %v2171_v35  ;;  %vm2177_vm12 = vmor %vm2175_vm10, %vm2176_vm11 }
 0x1db   :  { %v1933_v8 = vmul.f32 %v3115_v9, %v1932_v62 }
 0x1dc   :  { %v1458_v56 = vsel %vm1457_vm3, %v3111_v25, %v1454_v26  ;;  %v1694_v54 = vadd.f32 %v3113_v14, %v1693_v58  ;;  %v2173_v61 = vmul.f32 %v3117_v1, %v2172_v32 }
 0x1dd   :  { %v1463_v38 = vsel %vm5076_vm14, %v1462_v49, %v1458_v56  ;;  %v1934_v42 = vadd.f32 %v3115_v9, %v1933_v8  ;;  %vm2180_vm14 = vcmp.eq.f32.partialorder %v2179_v27, 8.507059e+37 }
 0x1de   :  { %v2200_v5 = vmul.f32 %v1463_v38, %v4964_v37  ;;  %v1698_v39 = vsel %vm1697_vm5, %v3113_v14, %v1694_v54 }
 0x1df   :  { %v1703_v37 = vsel %vm5097_vm6, %v1702_v6, %v1698_v39  ;;  %v1938_v29 = vsel %vm1937_vm13, %v3115_v9, %v1934_v42 }
 0x1e0   :  { %v2683_v4 = vpack.c.bf16 %v2200_v5, %v5052_v47  ;;  %v2216_v45 = vmul.f32 %v1703_v37, %v4967_v36  ;;  %v1943_v48 = vsel %vm5115_vm9, %v1942_v43, %v1938_v29  ;;  %v2174_v47 = vadd.f32 %v3117_v1, %v2173_v61 }
 0x1e1   :  { %v2232_v25 = vmul.f32 %v1943_v48, %v4970_v51  ;;  %v2182_v36 = vor.u32 1.1754944e-38, %v2181_v30  ;;  %v2247_v51 = vmul.f32 %v2168_v23, %v4806_v18 }
 0x1e2   :  { %2811 = vst [vmem:[%s5157_s4 + $0x38] sm:$0xff] %v2683_v4   ;;  %v2723_v21 = vpack.c.bf16 %v2216_v45, %v2215_v0  ;;  %v2178_v44 = vsel %vm2177_vm12, %v3117_v1, %v2174_v47 }
 0x1e3   :  { %v2763_v50 = vpack.c.bf16 %v2232_v25, %v2231_v16  ;;  %v2183_v31 = vsel %vm2180_vm14, %v2182_v36, %v2178_v44 }
 0x1e4   :  { %2819 = vst [vmem:[%s5157_s4 + $0x78] sm:$0xff] %v2723_v21   ;;  %v2248_v57 = vmul.f32 %v2183_v31, %v4987_v59 }
 0x1e5   :  { %2827 = vst [vmem:[%s5157_s4 + $0xb8] sm:$0xff] %v2763_v50  }
 0x1e6   :  { %v2803_v41 = vpack.c.bf16 %v2248_v57, %v2247_v51 }
 0x1e8   :  { %2835 = vst [vmem:[%s5157_s4 + $0xf8] sm:$0xff] %v2803_v41  }

// kernel: _lambda_.4
= control target key start
LH: loop header
LB: loop body
LE: loop exit
PB: predicated region body
PF: predicated region fallthrough
CT: control target
= control target key end

     0   :  { %s7570_s15 = smov 0   ;;  %s7572_s16 = smov 0   ;;  %s9705_s0 = inlined_call_operand.vmem [shape: bf16[2,18,18,128], index: 0, kind: input, shape index: {}]   ;;  %s9706_s1 = inlined_call_operand.vmem [shape: bf16[9,128,128], index: 1, kind: input, shape index: {}]   ;;  %s9707_s2 = inlined_call_operand.vmem [shape: f32[1,128], index: 2, kind: input, shape index: {}]   ;;  %s9708_s3 = inlined_call_operand.vmem [shape: f32[1,128], index: 3, kind: input, shape index: {}]   ;;  %s9709_s4 = inlined_call_operand.vmem [shape: bf16[2,256,128], index: 4, kind: output, shape index: {}]  }
   0x1   :  { %s7574_s17 = smov 0  }
   0x2 LB: > { %s26_s18 = sadd.s32 1, %s7539_s16  ;;  %p6172_p0 = scmp.ge.s32.totalorder %s7543_s17, 1  ;;  %s7543_s17 = sphi %s7574_s17, %s14_s17   ;;  %s7539_s16 = sphi %s7572_s16, %s9800_s16   ;;  %s7535_s15 = sphi %s7570_s15, %s9799_s15  }
   0x3   : > { %p28_p1 = scmp.ge.s32.totalorder %s26_s18, 2  ;;  %p201_p2 = scmp.lt.s32.totalorder %s7543_s17, 3 }
   0x5   : > { %s9802_s18 = smov (%p28_p1, %s26_s18), 0  ;;  %p202_p3 = pnand %p6172_p0, %p201_p2 }
   0x7   : > { %205 = sbr.rel (%p202_p3) target bundleno = 812 (0x32c), region = 36 }
   0xc   : > { %v7146_v0 = vld [vmem:[%s9706_s1 + $0x38] sm:$0xff]  ;;  %v7145_v1 = vld [vmem:[%s9706_s1 + $0x30] sm:$0xff]  ;;  %v7144_v2 = vld [vmem:[%s9706_s1 + $0x28] sm:$0xff]  ;;  %p240_p4 = scmp.lt.s32.totalorder %s7535_s15, 1  ;;  %vm720_vm0 = vsmask.f32 3328 }
   0xd   : > { %7338 = vmatpush.bf16.msra.mxu1 %v7146_v0  ;;  %7339 = vmatpush.bf16.msra.mxu2 %v7146_v0  ;;  %v7143_v3 = vld [vmem:[%s9706_s1 + $0x20] sm:$0xff]  ;;  %v7142_v4 = vld [vmem:[%s9706_s1 + $0x18] sm:$0xff]  ;;  %v7141_v5 = vld [vmem:[%s9706_s1 + $0x10] sm:$0xff]  ;;  %vm721_vm1 = vsmask.f32 7440  ;;  %vm1517_vm2 = vcmask 1042432  }
   0xe   : > { %7340 = vmatpush.bf16.msra.mxu3 %v7146_v0  ;;  %519 = vmatpush.bf16.msra.mxu0 %v7146_v0  ;;  %s9804_s15 = smov (!%p240_p4, %s7535_s15), 1  ;;  %v7140_v6 = vld [vmem:[%s9706_s1 + $0x8] sm:$0xff]  ;;  %v7139_v7 = vld [vmem:[%s9706_s1] sm:$0xff]  ;;  %v7162_v8 = vld [vmem:[%s9706_s1 + $0xb8] sm:$0xff]  ;;  %vm1518_vm3 = vcmask 1046532  }
   0xf   : > { %s7362_s7 = smul.u32 216, %s9804_s15  ;;  %v7186_v9 = vld [vmem:[%s9706_s1 + $0xf8] sm:$0xff]  ;;  %v7161_v16 = vld [vmem:[%s9706_s1 + $0xb0] sm:$0xff]  ;;  %v7160_v20 = vld [vmem:[%s9706_s1 + $0xa8] sm:$0xff]  ;;  %s7122_s23 = sshll.u32 %s9804_s15, 7 }
  0x10   : > { %v7154_v14 = vld [vmem:[%s9706_s1 + $0x78] sm:$0xff]  ;;  %v7185_v17 = vld [vmem:[%s9706_s1 + $0xf0] sm:$0xff]  ;;  %v7184_v21 = vld [vmem:[%s9706_s1 + $0xe8] sm:$0xff]  ;;  %s8955_s25 = scalar_lea.vmem %s9709_s4, %s7122_s23 }
  0x11   : > { %7341 = vmatpush.bf16.msra.mxu1 %v7145_v1  ;;  %7342 = vmatpush.bf16.msra.mxu2 %v7145_v1  ;;  %s7622_s12 = scalar_lea.vmem %s9705_s0, %s7362_s7  ;;  %v7194_v15 = vld [vmem:[%s9706_s1 + $0x138] sm:$0xff]  ;;  %v7153_v18 = vld [vmem:[%s9706_s1 + $0x70] sm:$0xff]  ;;  %v7152_v22 = vld [vmem:[%s9706_s1 + $0x68] sm:$0xff] }
  0x12   : > { %7343 = vmatpush.bf16.msra.mxu3 %v7145_v1  ;;  %520 = vmatpush.bf16.msra.mxu0 %v7145_v1  ;;  %v7127_v10 = vld [vmem:[%s7622_s12 + $0x30] sm:$0xff]  ;;  %v7131_v11 = vld [vmem:[%s7622_s12 + $0x60] sm:$0xff]  ;;  %v7192_v23 = vld [vmem:[%s9706_s1 + $0x128] sm:$0xff] }
  0x13   : > { %v7135_v12 = vld [vmem:[%s7622_s12 + $0x90] sm:$0xff]  ;;  %v7123_v13 = vld [vmem:[%s7622_s12] sm:$0xff]  ;;  %v7158_v28 = vld [vmem:[%s9706_s1 + $0x98] sm:$0xff] }
  0x14   : > { %v7193_v19 = vld [vmem:[%s9706_s1 + $0x130] sm:$0xff]  ;;  %v7159_v24 = vld [vmem:[%s9706_s1 + $0xa0] sm:$0xff]  ;;  %v7182_v29 = vld [vmem:[%s9706_s1 + $0xd8] sm:$0xff] }
  0x15   : > { %7344 = vmatpush.bf16.msra.mxu1 %v7144_v2  ;;  %7345 = vmatpush.bf16.msra.mxu2 %v7144_v2  ;;  %v7183_v25 = vld [vmem:[%s9706_s1 + $0xe0] sm:$0xff]  ;;  %v7132_v31 = vld [vmem:[%s7622_s12 + $0x6c] sm:$0xff]  ;;  %v7150_v34 = vld [vmem:[%s9706_s1 + $0x58] sm:$0xff] }
  0x16   : > { %7346 = vmatpush.bf16.msra.mxu3 %v7144_v2  ;;  %521 = vmatpush.bf16.msra.mxu0 %v7144_v2  ;;  %v7151_v26 = vld [vmem:[%s9706_s1 + $0x60] sm:$0xff]  ;;  %v7124_v33 = vld [vmem:[%s7622_s12 + $0xc] sm:$0xff]  ;;  %v7190_v35 = vld [vmem:[%s9706_s1 + $0x118] sm:$0xff] }
  0x17   : > { %v7191_v27 = vld [vmem:[%s9706_s1 + $0x120] sm:$0xff]  ;;  %v7157_v36 = vld [vmem:[%s9706_s1 + $0x90] sm:$0xff]  ;;  %v7156_v40 = vld [vmem:[%s9706_s1 + $0x88] sm:$0xff] }
  0x18   : > { %v7128_v30 = vld [vmem:[%s7622_s12 + $0x3c] sm:$0xff]  ;;  %v7181_v37 = vld [vmem:[%s9706_s1 + $0xd0] sm:$0xff]  ;;  %v7180_v41 = vld [vmem:[%s9706_s1 + $0xc8] sm:$0xff] }
  0x19   : > { %7347 = vmatpush.bf16.msra.mxu1 %v7143_v3  ;;  %7348 = vmatpush.bf16.msra.mxu2 %v7143_v3  ;;  %v7136_v32 = vld [vmem:[%s7622_s12 + $0x9c] sm:$0xff]  ;;  %v7149_v38 = vld [vmem:[%s9706_s1 + $0x50] sm:$0xff]  ;;  %v7148_v42 = vld [vmem:[%s9706_s1 + $0x48] sm:$0xff] }
  0x1a   : > { %7349 = vmatpush.bf16.msra.mxu3 %v7143_v3  ;;  %522 = vmatpush.bf16.msra.mxu0 %v7143_v3  ;;  %v7189_v39 = vld [vmem:[%s9706_s1 + $0x110] sm:$0xff]  ;;  %v7188_v43 = vld [vmem:[%s9706_s1 + $0x108] sm:$0xff]  ;;  %v7155_v44 = vld [vmem:[%s9706_s1 + $0x80] sm:$0xff] }
  0x1b   : > { %v7179_v45 = vld [vmem:[%s9706_s1 + $0xc0] sm:$0xff]  ;;  %v7129_v48 = vld [vmem:[%s7622_s12 + $0x48] sm:$0xff]  ;;  %v7133_v49 = vld [vmem:[%s7622_s12 + $0x78] sm:$0xff] }
  0x1c   : > { %v7147_v46 = vld [vmem:[%s9706_s1 + $0x40] sm:$0xff]  ;;  %v7137_v50 = vld [vmem:[%s7622_s12 + $0xa8] sm:$0xff]  ;;  %v7125_v51 = vld [vmem:[%s7622_s12 + $0x18] sm:$0xff] }
  0x1d   : > { %7350 = vmatpush.bf16.msra.mxu1 %v7142_v4  ;;  %7351 = vmatpush.bf16.msra.mxu2 %v7142_v4  ;;  %v7187_v47 = vld [vmem:[%s9706_s1 + $0x100] sm:$0xff]  ;;  %v6528_v54 = vld [vmem:[%s7622_s12 + $0xc] sm:$0xf]  ;;  %v6529_v55 = vld [vmem:[%s7622_s12 + $0x10] sm:$0xf] }
  0x1e   : > { %7352 = vmatpush.bf16.msra.mxu3 %v7142_v4  ;;  %523 = vmatpush.bf16.msra.mxu0 %v7142_v4  ;;  %v672_v52 = vld [vmem:[%s7622_s12] sm:$0xf]  ;;  %v673_v53 = vld [vmem:[%s7622_s12 + $0x4] sm:$0xf]  ;;  %v7226_v56 = vld [vmem:[%s9706_s1 + $0x1b8] sm:$0xff]  ;;  %v2374_v0 = vshrl.u32 %v6528_v54, 16 }
  0x1f   : > { %v7234_v57 = vld [vmem:[%s9706_s1 + $0x1f8] sm:$0xff]  ;;  %v724_v60 = vshrl.u32 %v672_v52, 16  ;;  %v727_v61 = vshll.u32 %v672_v52, 16  ;;  %v733_v62 = vshll.u32 %v673_v53, 16  ;;  %v737_v63 = vshrl.u32 %v673_v53, 16  ;;  %vm7766_vm4 = vmor %vm720_vm0, %vm721_vm1 }
  0x20   : > { %v7202_v58 = vld [vmem:[%s9706_s1 + $0x178] sm:$0xff]  ;;  %v2377_v1 = vshll.u32 %v6528_v54, 16  ;;  %v2383_v2 = vshll.u32 %v6529_v55, 16  ;;  %v2387_v3 = vshrl.u32 %v6529_v55, 16  ;;  %v674_v4 = vld [vmem:[%s7622_s12 + $0x8] sm:$0x1]  ;;  %vm7770_vm5 = vmor %vm1517_vm2, %vm1518_vm3 }
  0x21   : > { %7353 = vmatpush.bf16.msra.mxu1 %v7141_v5  ;;  %7354 = vmatpush.bf16.msra.mxu2 %v7141_v5  ;;  %v7242_v59 = vld [vmem:[%s9706_s1 + $0x238] sm:$0xff]  ;;  %v677_v53 = vld [vmem:[%s7622_s12 + $0x14] sm:$0x1] }
  0x22   : > { %7355 = vmatpush.bf16.msra.mxu3 %v7141_v5  ;;  %524 = vmatpush.bf16.msra.mxu0 %v7141_v5  ;;  %v726_v5 = vrot.slane %v724_v60, 4 }
  0x25   : > { %7356 = vmatpush.bf16.msra.mxu1 %v7140_v6  ;;  %7357 = vmatpush.bf16.msra.mxu2 %v7140_v6 }
  0x26   : > { %7358 = vmatpush.bf16.msra.mxu3 %v7140_v6  ;;  %525 = vmatpush.bf16.msra.mxu0 %v7140_v6  ;;  %v729_v6 = vrot.slane %v727_v61, 5 }
  0x29   : > { %7359 = vmatpush.bf16.msra.mxu1 %v7139_v7  ;;  %7360 = vmatpush.bf16.msra.mxu2 %v7139_v7 }
  0x2a   : > { %7361 = vmatpush.bf16.msra.mxu3 %v7139_v7  ;;  %526 = vmatpush.bf16.msra.mxu0 %v7139_v7  ;;  %v7749_v7 = vrot.slane %v733_v62, 5 }
  0x2c   : > { %547 = vmatmul.bf16.vlgmr.msra.gmra.mxu1 %v7127_v10  ;;  %567 = vmatmul.bf16.vlgmr.msra.gmra.mxu2 %v7131_v11  ;;  %v2376_v10 = vrot.slane %v2374_v0, 4  ;;  %v2379_v11 = vrot.slane %v2377_v1, 5 }
  0x2d   : > { %1793 = vmatpush.bf16.msrb.mxu2 %v7162_v8  ;;  %587 = vmatmul.bf16.vlgmr.msra.gmra.mxu3 %v7135_v12  ;;  %v739_v8 = vrot.slane %v737_v63, 4  ;;  %v7752_v12 = vrot.slane %v2383_v2, 5 }
  0x2e   : > { %2172 = vmatpush.bf16.msrb.mxu3 %v7186_v9  ;;  %527 = vmatmul.bf16.vlgmr.msra.gmra.mxu0 %v7123_v13  ;;  %v1422_v9 = vld [vmem:[%s7622_s12 + $0x4] sm:$0xf]  ;;  %v2389_v13 = vrot.slane %v2387_v3, 4 }
  0x2f   : > { %1268 = vmatpush.bf16.msrb.mxu1 %v7154_v14  ;;  %2918 = vmatpush.bf16.msrb.mxu0 %v7194_v15  ;;  %v6530_v14 = vld [vmem:[%s7622_s12 + $0x14] sm:$0x1]  ;;  %v743_v15 = vshll.u32 %v674_v4, 16 }
  0x31   : > { %1794 = vmatpush.bf16.msrb.mxu2 %v7161_v16  ;;  %v7130_v16 = vld [vmem:[%s7622_s12 + $0x54] sm:$0xff] }
  0x32   : > { %2173 = vmatpush.bf16.msrb.mxu3 %v7185_v17  ;;  %v730_v17 = vor.u32 %v729_v6, %v726_v5  ;;  %v767_v5 = vshll.u32 %v677_v53, 16 }
  0x33   : > { %1269 = vmatpush.bf16.msrb.mxu1 %v7153_v18  ;;  %2919 = vmatpush.bf16.msrb.mxu0 %v7193_v19  ;;  %v740_v18 = vor.u32 %v739_v8, %v7749_v7  ;;  %v1522_v19 = vrot.slane %v1422_v9, 5  ;;  %v1424_v9 = vld [vmem:[%s7622_s12 + $0xc] sm:$0xe] }
  0x35   : > { %1795 = vmatpush.bf16.msrb.mxu2 %v7160_v20  ;;  %v7134_v20 = vld [vmem:[%s7622_s12 + $0x84] sm:$0xff] }
  0x36   : > { %2174 = vmatpush.bf16.msrb.mxu3 %v7184_v21  ;;  %v1421_v21 = vld [vmem:[%s7622_s12] sm:$0xe] }
  0x37   : > { %1270 = vmatpush.bf16.msrb.mxu1 %v7152_v22  ;;  %2920 = vmatpush.bf16.msrb.mxu0 %v7192_v23  ;;  %v2380_v22 = vor.u32 %v2379_v11, %v2376_v10  ;;  %v2390_v23 = vor.u32 %v2389_v13, %v7752_v12 }
  0x39   : > { %1796 = vmatpush.bf16.msrb.mxu2 %v7159_v24  ;;  %v2393_v24 = vshll.u32 %v6530_v14, 16  ;;  %v1426_v14 = vld [vmem:[%s7622_s12 + $0x14] sm:$0x1] }
  0x3a   : > { %2175 = vmatpush.bf16.msrb.mxu3 %v7183_v25  ;;  %v7138_v25 = vld [vmem:[%s7622_s12 + $0xb4] sm:$0xff] }
  0x3b   : > { %1271 = vmatpush.bf16.msrb.mxu1 %v7151_v26  ;;  %2921 = vmatpush.bf16.msrb.mxu0 %v7191_v27  ;;  %v7126_v26 = vld [vmem:[%s7622_s12 + $0x24] sm:$0xff] }
  0x3c   : > { %552 = vmatmul.bf16.gmra.mxu1 %v7128_v30  ;;  %572 = vmatmul.bf16.gmra.mxu2 %v7132_v31  ;;  %v1423_v27 = vld [vmem:[%s7622_s12 + $0x8] sm:$0x1]  ;;  %v676_v30 = vld [vmem:[%s7622_s12 + $0x10] sm:$0xf] }
  0x3d   : > { %1797 = vmatpush.bf16.msrb.mxu2 %v7158_v28  ;;  %592 = vmatmul.bf16.gmra.mxu3 %v7136_v32  ;;  %v745_v28 = vrot.slane %v743_v15, 5  ;;  %v731_v32 = vrot.slane %v730_v17, 4  ;;  %v6533_v15 = vld [vmem:[%s7622_s12 + $0x20] sm:$0x1] }
  0x3e   : > { %2176 = vmatpush.bf16.msrb.mxu3 %v7182_v29  ;;  %532 = vmatmul.bf16.gmra.mxu0 %v7124_v33  ;;  %v675_v29 = vld [vmem:[%s7622_s12 + $0xc] sm:$0xf]  ;;  %v741_v33 = vrot.slane %v740_v18, 4 }
  0x3f   : > { %1272 = vmatpush.bf16.msrb.mxu1 %v7150_v34  ;;  %2922 = vmatpush.bf16.msrb.mxu0 %v7190_v35  ;;  %v6320_v34 = vrot.slane %v1421_v21, 9  ;;  %v1524_v35 = vrot.slane %v1522_v19, 4 }
  0x41   : > { %1798 = vmatpush.bf16.msrb.mxu2 %v7157_v36 }
  0x42   : > { %2177 = vmatpush.bf16.msrb.mxu3 %v7181_v37  ;;  %v1525_v37 = vrot.slane %v1423_v27, 5 }
  0x43   : > { %1273 = vmatpush.bf16.msrb.mxu1 %v7149_v38  ;;  %2923 = vmatpush.bf16.msrb.mxu0 %v7189_v39  ;;  %v2381_v38 = vrot.slane %v2380_v22, 4  ;;  %v2391_v39 = vrot.slane %v2390_v23, 4  ;;  %v6321_v23 = vrot.slane %v1424_v9, 9 }
  0x45   : > { %1799 = vmatpush.bf16.msrb.mxu2 %v7156_v40  ;;  %v2395_v40 = vrot.slane %v2393_v24, 5 }
  0x46   : > { %2178 = vmatpush.bf16.msrb.mxu3 %v7180_v41  ;;  %v748_v41 = vshrl.u32 %v675_v29, 16 }
  0x47   : > { %1274 = vmatpush.bf16.msrb.mxu1 %v7148_v42  ;;  %2924 = vmatpush.bf16.msrb.mxu0 %v7188_v43  ;;  %v751_v42 = vshll.u32 %v675_v29, 16  ;;  %v757_v43 = vshll.u32 %v676_v30, 16  ;;  %v2396_v52 = vsel %vm7766_vm4, %v2391_v39, %v2395_v40  ;;  %v678_v29 = vld [vmem:[%s7622_s12 + $0x18] sm:$0xf]  ;;  %v7233_v39 = vld [vmem:[%s9706_s1 + $0x1f0] sm:$0xff] }
  0x48   : > { %v750_v54 = vrot.slane %v748_v41, 4  ;;  %v2807_v4 = vunpack.c.l.b16 %v2396_v52  ;;  %v7201_v40 = vld [vmem:[%s9706_s1 + $0x170] sm:$0xff] }
  0x49   : > { %1800 = vmatpush.bf16.msrb.mxu2 %v7155_v44  ;;  %v761_v44 = vshrl.u32 %v676_v30, 16  ;;  %v753_v55 = vrot.slane %v751_v42, 5  ;;  %v679_v30 = vld [vmem:[%s7622_s12 + $0x1c] sm:$0xf] }
  0x4a   : > { %2179 = vmatpush.bf16.msrb.mxu3 %v7179_v45  ;;  %v736_v45 = vsel %vm7766_vm4, %v731_v32, %v7749_v7  ;;  %v6534_v32 = vld [vmem:[%s7622_s12 + $0x24] sm:$0xf] }
  0x4b   : > { %1275 = vmatpush.bf16.msrb.mxu1 %v7147_v46  ;;  %2925 = vmatpush.bf16.msrb.mxu0 %v7187_v47  ;;  %v1523_v46 = vsel %vm7770_vm5, %v6320_v34, %v1522_v19  ;;  %v6531_v47 = vld [vmem:[%s7622_s12 + $0x18] sm:$0xf]  ;;  %v1156_v63 = vunpack.c.l.b16 %v736_v45  ;;  %v754_v6 = vor.u32 %v753_v55, %v750_v54  ;;  %v769_v19 = vrot.slane %v767_v5, 5  ;;  %v7241_v45 = vld [vmem:[%s9706_s1 + $0x230] sm:$0xff] }
  0x4c   : > { %557 = vmatmul.bf16.gmra.mxu1 %v7129_v48  ;;  %577 = vmatmul.bf16.gmra.mxu2 %v7133_v49  ;;  %v6532_v48 = vld [vmem:[%s7622_s12 + $0x1c] sm:$0xf]  ;;  %v746_v49 = vsel %vm7766_vm4, %v741_v33, %v745_v28  ;;  %v2401_v60 = vshll.u32 %v6531_v47, 16  ;;  %v1681_v1 = vunpack.c.l.b16 %v1523_v46  ;;  %v2417_v28 = vshll.u32 %v6533_v15, 16  ;;  %v6535_v33 = vld [vmem:[%s7622_s12 + $0x28] sm:$0xf] }
  0x4d   : > { %597 = vmatmul.bf16.gmra.mxu3 %v7137_v50  ;;  %3819 = vmatpush.bf16.msra.mxu2 %v7226_v56  ;;  %v1526_v50 = vsel %vm7770_vm5, %v1524_v35, %v1525_v37  ;;  %v7791_v56 = vrot.slane %v757_v43, 5  ;;  %v2407_v61 = vshll.u32 %v6532_v48, 16  ;;  %v2411_v62 = vshrl.u32 %v6532_v48, 16  ;;  %v1427_v15 = vld [vmem:[%s7622_s12 + $0x18] sm:$0xe] }
  0x4e   : > { %537 = vmatmul.bf16.gmra.mxu0 %v7125_v51  ;;  %4565 = vmatpush.bf16.msra.mxu3 %v7234_v57  ;;  %v2386_v51 = vsel %vm7766_vm4, %v2381_v38, %v7752_v12  ;;  %v763_v57 = vrot.slane %v761_v44, 4  ;;  %v1157_v0 = vunpack.c.l.b16 %v746_v49  ;;  %v1682_v2 = vunpack.c.l.b16 %v1526_v50  ;;  %v7225_v38 = vld [vmem:[%s9706_s1 + $0x1b0] sm:$0xff] }
  0x4f   : > { %3440 = vmatpush.bf16.msra.mxu1 %v7202_v58  ;;  %5087 = vmatpush.bf16.msra.mxu0 %v7242_v59  ;;  %v1425_v58 = vld [vmem:[%s7622_s12 + $0x10] sm:$0xf]  ;;  %v2398_v59 = vshrl.u32 %v6531_v47, 16  ;;  %v2806_v3 = vunpack.c.l.b16 %v2386_v51  ;;  %v2403_v11 = vrot.slane %v2401_v60, 5  ;;  %v7796_v12 = vrot.slane %v2407_v61, 5 }
  0x50   : > { %v764_v7 = vor.u32 %v763_v57, %v7791_v56  ;;  %v1529_v8 = vrot.slane %v1425_v58, 5  ;;  %v2413_v13 = vrot.slane %v2411_v62, 4  ;;  %v1713_v17 = vpack.c.b16 %v1682_v2, %v1681_v1  ;;  %v680_v60 = vld [vmem:[%s7622_s12 + $0x20] sm:$0x1]  ;;  %v1428_v1 = vld [vmem:[%s7622_s12 + $0x1c] sm:$0xf] }
  0x51   : > { %v2400_v10 = vrot.slane %v2398_v59, 4  ;;  %v2838_v18 = vpack.c.b16 %v2807_v4, %v2806_v3  ;;  %v755_v21 = vrot.slane %v754_v6, 4  ;;  %v2419_v44 = vrot.slane %v2417_v28, 5  ;;  %3820 = vmatpush.bf16.msra.mxu2 %v7225_v38 }
  0x52   : > { %v765_v22 = vrot.slane %v764_v7, 4  ;;  %v1531_v24 = vrot.slane %v1529_v8, 4  ;;  %v2414_v27 = vor.u32 %v2413_v13, %v7796_v12  ;;  %v1530_v37 = vsel %vm7770_vm5, %v6321_v23, %v1529_v8  ;;  %4566 = vmatpush.bf16.msra.mxu3 %v7233_v39  ;;  %v6536_v8 = vld [vmem:[%s7622_s12 + $0x2c] sm:$0x1]  ;;  %v681_v23 = vld [vmem:[%s7622_s12 + $0x24] sm:$0xf] }
  0x53   : > { %v760_v34 = vsel %vm7766_vm4, %v755_v21, %v7791_v56  ;;  %v772_v46 = vshrl.u32 %v678_v29, 16  ;;  %v775_v47 = vshll.u32 %v678_v29, 16  ;;  %v781_v48 = vshll.u32 %v679_v30, 16  ;;  %3441 = vmatpush.bf16.msra.mxu1 %v7201_v40  ;;  %5088 = vmatpush.bf16.msra.mxu0 %v7241_v45  ;;  %v1429_v21 = vld [vmem:[%s7622_s12 + $0x20] sm:$0x1] }
  0x54   : > { %v770_v35 = vsel %vm7766_vm4, %v765_v22, %v769_v19  ;;  %v2415_v43 = vrot.slane %v2414_v27, 4  ;;  %v785_v49 = vshrl.u32 %v679_v30, 16  ;;  %v2422_v50 = vshrl.u32 %v6534_v32, 16  ;;  %v7164_v19 = vld [vmem:[%s7622_s12 + $0x18] sm:$0xff] }
  0x55   : > { %v2425_v51 = vshll.u32 %v6534_v32, 16  ;;  %v2431_v52 = vshll.u32 %v6535_v33, 16  ;;  %v2435_v53 = vshrl.u32 %v6535_v33, 16  ;;  %v1158_v54 = vunpack.c.l.b16 %v760_v34 }
  0x56   : > { %v1159_v55 = vunpack.c.l.b16 %v770_v35  ;;  %v1683_v56 = vunpack.c.l.b16 %v1530_v37  ;;  %v2420_v59 = vsel %vm7766_vm4, %v2415_v43, %v2419_v44  ;;  %v774_v61 = vrot.slane %v772_v46, 4 }
  0x57   : > { %v777_v62 = vrot.slane %v775_v47, 5  ;;  %v2424_v2 = vrot.slane %v2422_v50, 4  ;;  %v2427_v3 = vrot.slane %v2425_v51, 5  ;;  %v2433_v4 = vrot.slane %v2431_v52, 5  ;;  %v683_v51 = vld [vmem:[%s7622_s12 + $0x2c] sm:$0x1] }
  0x58   : > { %v2437_v5 = vrot.slane %v2435_v53, 4  ;;  %v2809_v7 = vunpack.c.l.b16 %v2420_v59  ;;  %v791_v9 = vshll.u32 %v680_v60, 16  ;;  %v1536_v13 = vrot.slane %v1428_v1, 5  ;;  %v1431_v1 = vld [vmem:[%s7622_s12 + $0x28] sm:$0xf] }
  0x59   : > { %v6322_v27 = vrot.slane %v1427_v15, 9  ;;  %v1539_v29 = vrot.slane %v1429_v21, 5  ;;  %v796_v34 = vshrl.u32 %v681_v23, 16  ;;  %v799_v35 = vshll.u32 %v681_v23, 16  ;;  %v684_v21 = vld [vmem:[%s7622_s12 + $0x30] sm:$0xf] }
  0x5a   : > { %v793_v22 = vrot.slane %v791_v9, 5  ;;  %v1538_v28 = vrot.slane %v1536_v13, 4  ;;  %v7165_v9 = vld [vmem:[%s7622_s12 + $0x24] sm:$0xff] }
  0x5b   : > { %v1537_v43 = vsel %vm7770_vm5, %v6322_v27, %v1536_v13  ;;  %v798_v47 = vrot.slane %v796_v34, 4  ;;  %v1430_v13 = vld [vmem:[%s7622_s12 + $0x24] sm:$0xe]  ;;  %v6540_v27 = vld [vmem:[%s7622_s12 + $0x3c] sm:$0xf]  ;;  %v820_v34 = vshrl.u32 %v684_v21, 16 }
  0x5c   : > { %562 = vmatmul.bf16.gmra.mxu1 %v7130_v16  ;;  %582 = vmatmul.bf16.gmra.mxu2 %v7134_v20  ;;  %v1188_v16 = vpack.c.b16 %v1157_v0, %v1156_v63  ;;  %v7163_v20 = vld [vmem:[%s7622_s12 + $0xc] sm:$0xff]  ;;  %v783_v63 = vrot.slane %v781_v48, 5  ;;  %v787_v0 = vrot.slane %v785_v49, 4  ;;  %v1540_v44 = vsel %vm7770_vm5, %v1538_v28, %v1539_v29 }
  0x5d   : > { %602 = vmatmul.bf16.gmra.mxu3 %v7138_v25  ;;  %v1532_v25 = vrot.slane %v1426_v14, 5  ;;  %v801_v48 = vrot.slane %v799_v35, 5  ;;  %v1686_v59 = vunpack.c.l.b16 %v1540_v44  ;;  %v7232_v28 = vld [vmem:[%s9706_s1 + $0x1e8] sm:$0xff]  ;;  %v823_v35 = vshll.u32 %v684_v21, 16 }
  0x5e   : > { %542 = vmatmul.bf16.gmra.mxu0 %v7126_v26  ;;  %v2404_v26 = vor.u32 %v2403_v11, %v2400_v10  ;;  %v1189_v10 = vpack.c.b16 %v1159_v55, %v1158_v54  ;;  %v778_v11 = vor.u32 %v777_v62, %v774_v61  ;;  %4567 = vmatpush.bf16.msra.mxu3 %v7232_v28 }
  0x5f   : > { %v1533_v41 = vsel %vm7770_vm5, %v1531_v24, %v1532_v25  ;;  %v682_v24 = vld [vmem:[%s7622_s12 + $0x28] sm:$0xf]  ;;  %v802_v62 = vor.u32 %v801_v48, %v798_v47 }
  0x60   : > { %v2405_v42 = vrot.slane %v2404_v26, 4  ;;  %v1684_v57 = vunpack.c.l.b16 %v1533_v41  ;;  %v779_v25 = vrot.slane %v778_v11, 4  ;;  %v805_v37 = vshll.u32 %v682_v24, 16  ;;  %v6537_v41 = vld [vmem:[%s7622_s12 + $0x30] sm:$0xf] }
  0x61   : > { %v809_v38 = vshrl.u32 %v682_v24, 16  ;;  %v2446_v52 = vshrl.u32 %v6537_v41, 16  ;;  %v2449_v53 = vshll.u32 %v6537_v41, 16  ;;  %v803_v11 = vrot.slane %v802_v62, 4 }
  0x62   : > { %v2410_v58 = vsel %vm7766_vm4, %v2405_v42, %v7796_v12  ;;  %v788_v12 = vor.u32 %v787_v0, %v783_v63  ;;  %v1714_v14 = vpack.c.b16 %v1684_v57, %v1683_v56  ;;  %v784_v39 = vsel %vm7766_vm4, %v779_v25, %v783_v63  ;;  %v6538_v42 = vld [vmem:[%s7622_s12 + $0x34] sm:$0xf] }
  0x63   : > { %v2808_v6 = vunpack.c.l.b16 %v2410_v58  ;;  %v807_v49 = vrot.slane %v805_v37, 5  ;;  %v811_v50 = vrot.slane %v809_v38, 4  ;;  %v2455_v54 = vshll.u32 %v6538_v42, 16 }
  0x64   : > { %v789_v26 = vrot.slane %v788_v12, 4  ;;  %v2459_v55 = vshrl.u32 %v6538_v42, 16  ;;  %v1160_v56 = vunpack.c.l.b16 %v784_v39  ;;  %v1685_v58 = vunpack.c.l.b16 %v1537_v43  ;;  %v6541_v39 = vld [vmem:[%s7622_s12 + $0x40] sm:$0xf]  ;;  %v7200_v42 = vld [vmem:[%s9706_s1 + $0x168] sm:$0xff] }
  0x65   : > { %v812_v63 = vor.u32 %v811_v50, %v807_v49  ;;  %v815_v0 = vshll.u32 %v683_v51, 16  ;;  %v808_v23 = vsel %vm7766_vm4, %v803_v11, %v807_v49  ;;  %v2473_v41 = vshll.u32 %v6540_v27, 16  ;;  %3442 = vmatpush.bf16.msra.mxu1 %v7200_v42  ;;  %v7240_v51 = vld [vmem:[%s9706_s1 + $0x228] sm:$0xff] }
  0x66   : > { %v794_v40 = vsel %vm7766_vm4, %v789_v26, %v793_v22  ;;  %v685_v22 = vld [vmem:[%s7622_s12 + $0x34] sm:$0xf]  ;;  %v7224_v26 = vld [vmem:[%s9706_s1 + $0x1a8] sm:$0xff]  ;;  %v1162_v43 = vunpack.c.l.b16 %v808_v23  ;;  %v2479_v49 = vshll.u32 %v6541_v39, 16  ;;  %v2483_v50 = vshrl.u32 %v6541_v39, 16  ;;  %5089 = vmatpush.bf16.msra.mxu0 %v7240_v51 }
  0x67   : > { %v1161_v57 = vunpack.c.l.b16 %v794_v40  ;;  %v817_v12 = vrot.slane %v815_v0, 5  ;;  %v813_v15 = vrot.slane %v812_v63, 4  ;;  %v829_v37 = vshll.u32 %v685_v22, 16  ;;  %3821 = vmatpush.bf16.msra.mxu2 %v7224_v26  ;;  %v1434_v63 = vld [vmem:[%s7622_s12 + $0x34] sm:$0xf] }
  0x68   : > { %v833_v38 = vshrl.u32 %v685_v22, 16  ;;  %v2470_v40 = vshrl.u32 %v6540_v27, 16  ;;  %v2481_v0 = vrot.slane %v2479_v49, 5 }
  0x69   : > { %v818_v29 = vsel %vm7766_vm4, %v813_v15, %v817_v12  ;;  %v1433_v12 = vld [vmem:[%s7622_s12 + $0x30] sm:$0xe] }
  0x6a   : > { %v1163_v44 = vunpack.c.l.b16 %v818_v29  ;;  %v6543_v29 = vld [vmem:[%s7622_s12 + $0x48] sm:$0xf] }
  0x6b   : > { %v2494_v42 = vshrl.u32 %v6543_v29, 16 }
  0x6c   : > { %1276 = vmatmul.bf16.vlgmr.msrb.gmra.mxu1 %v1188_v16  ;;  %1801 = vmatmul.bf16.vlgmr.msrb.gmra.mxu2 %v1713_v17  ;;  %v2428_v16 = vor.u32 %v2427_v3, %v2424_v2  ;;  %v2438_v17 = vor.u32 %v2437_v5, %v2433_v4  ;;  %v2448_v2 = vrot.slane %v2446_v52, 4  ;;  %v2451_v3 = vrot.slane %v2449_v53, 5 }
  0x6d   : > { %2180 = vmatmul.bf16.vlgmr.msrb.gmra.mxu3 %v7163_v20  ;;  %v2839_v20 = vpack.c.b16 %v2809_v7, %v2808_v6  ;;  %v2461_v5 = vrot.slane %v2459_v55, 4  ;;  %v6539_v6 = vld [vmem:[%s7622_s12 + $0x38] sm:$0x1]  ;;  %v1190_v7 = vpack.c.b16 %v1161_v57, %v1160_v56  ;;  %v822_v52 = vrot.slane %v820_v34, 4  ;;  %v6544_v34 = vld [vmem:[%s7622_s12 + $0x4c] sm:$0xf] }
  0x6e   : > { %2926 = vmatmul.bf16.vlgmr.msrb.gmra.mxu0 %v2838_v18  ;;  %v2441_v18 = vshll.u32 %v6536_v8, 16  ;;  %v2429_v30 = vrot.slane %v2428_v16, 4  ;;  %v2439_v32 = vrot.slane %v2438_v17, 4  ;;  %v1715_v8 = vpack.c.b16 %v1686_v59, %v1685_v58  ;;  %v1432_v16 = vld [vmem:[%s7622_s12 + $0x2c] sm:$0x1] }
  0x6f   : > { %v2452_v17 = vor.u32 %v2451_v3, %v2448_v2  ;;  %v1546_v25 = vrot.slane %v1432_v16, 5  ;;  %v825_v53 = vrot.slane %v823_v35, 5  ;;  %v835_v55 = vrot.slane %v833_v38, 4  ;;  %v686_v58 = vld [vmem:[%s7622_s12 + $0x38] sm:$0x1] }
  0x70   : > { %v2443_v33 = vrot.slane %v2441_v18, 5  ;;  %v2434_v45 = vsel %vm7766_vm4, %v2429_v30, %v2433_v4  ;;  %v7856_v4 = vrot.slane %v2455_v54, 5  ;;  %v831_v54 = vrot.slane %v829_v37, 5  ;;  %v687_v16 = vld [vmem:[%s7622_s12 + $0x3c] sm:$0xf] }
  0x71   : > { %v2810_v60 = vunpack.c.l.b16 %v2434_v45  ;;  %v2453_v30 = vrot.slane %v2452_v17, 4  ;;  %v2472_v59 = vrot.slane %v2470_v40, 4  ;;  %v826_v2 = vor.u32 %v825_v53, %v822_v52 }
  0x72   : > { %v2444_v46 = vsel %vm7766_vm4, %v2439_v32, %v2443_v33  ;;  %v2462_v18 = vor.u32 %v2461_v5, %v7856_v4  ;;  %v836_v3 = vor.u32 %v835_v55, %v831_v54  ;;  %v6542_v5 = vld [vmem:[%s7622_s12 + $0x44] sm:$0x1]  ;;  %v847_v26 = vshll.u32 %v687_v16, 16  ;;  %v1437_v55 = vld [vmem:[%s7622_s12 + $0x40] sm:$0xf] }
  0x73   : > { %v2811_v61 = vunpack.c.l.b16 %v2444_v46  ;;  %v2458_v47 = vsel %vm7766_vm4, %v2453_v30, %v7856_v4  ;;  %v839_v4 = vshll.u32 %v686_v58, 16  ;;  %v2489_v15 = vshll.u32 %v6542_v5, 16  ;;  %v1438_v5 = vld [vmem:[%s7622_s12 + $0x44] sm:$0x1] }
  0x74   : > { %v2463_v32 = vrot.slane %v2462_v18, 4  ;;  %v827_v17 = vrot.slane %v826_v2, 4  ;;  %v837_v18 = vrot.slane %v836_v3, 4  ;;  %v2496_v58 = vrot.slane %v2494_v42, 4  ;;  %v6545_v2 = vld [vmem:[%s7622_s12 + $0x50] sm:$0x1] }
  0x75   : > { %v2491_v28 = vrot.slane %v2489_v15, 5 }
  0x76   : > { %v832_v30 = vsel %vm7766_vm4, %v827_v17, %v831_v54  ;;  %v689_v54 = vld [vmem:[%s7622_s12 + $0x44] sm:$0x1] }
  0x7c   : > { %1281 = vmatmul.bf16.gmra.mxu1 %v1189_v10  ;;  %1806 = vmatmul.bf16.gmra.mxu2 %v1714_v14  ;;  %v2840_v10 = vpack.c.b16 %v2811_v61, %v2810_v60  ;;  %v1543_v14 = vrot.slane %v1431_v1, 5  ;;  %v2475_v60 = vrot.slane %v2473_v41, 5  ;;  %v2812_v61 = vunpack.c.l.b16 %v2458_v47 }
  0x7d   : > { %2185 = vmatmul.bf16.gmra.mxu3 %v7164_v19  ;;  %v2465_v19 = vshll.u32 %v6539_v6, 16  ;;  %v2485_v1 = vrot.slane %v2483_v50, 4  ;;  %v1191_v6 = vpack.c.b16 %v1163_v44, %v1162_v43  ;;  %v849_v41 = vrot.slane %v847_v26, 5  ;;  %v6547_v26 = vld [vmem:[%s7622_s12 + $0x58] sm:$0xf] }
  0x7e   : > { %2931 = vmatmul.bf16.gmra.mxu0 %v2839_v20  ;;  %v6323_v20 = vrot.slane %v1430_v13, 9  ;;  %v1545_v24 = vrot.slane %v1543_v14, 4  ;;  %v1435_v13 = vld [vmem:[%s7622_s12 + $0x38] sm:$0x1]  ;;  %v2497_v43 = vshll.u32 %v6543_v29, 16  ;;  %v1164_v47 = vunpack.c.l.b16 %v832_v30 }
  0x7f   : > { %v2467_v33 = vrot.slane %v2465_v19, 5  ;;  %v841_v19 = vrot.slane %v839_v4, 5  ;;  %v1553_v22 = vrot.slane %v1435_v13, 5  ;;  %v2527_v42 = vshll.u32 %v6547_v26, 16 }
  0x80   : > { %v1544_v45 = vsel %vm7770_vm5, %v6323_v20, %v1543_v14  ;;  %v1547_v46 = vsel %vm7770_vm5, %v1545_v24, %v1546_v25  ;;  %v2486_v14 = vor.u32 %v2485_v1, %v2481_v0  ;;  %v6324_v20 = vrot.slane %v1433_v12, 9  ;;  %v688_v24 = vld [vmem:[%s7622_s12 + $0x40] sm:$0xf] }
  0x81   : > { %v2468_v48 = vsel %vm7766_vm4, %v2463_v32, %v2467_v33  ;;  %v1687_v56 = vunpack.c.l.b16 %v1544_v45  ;;  %v1688_v57 = vunpack.c.l.b16 %v1547_v46  ;;  %v844_v25 = vshrl.u32 %v687_v16, 16 }
  0x82   : > { %v2813_v62 = vunpack.c.l.b16 %v2468_v48  ;;  %v2487_v27 = vrot.slane %v2486_v14, 4  ;;  %v853_v32 = vshll.u32 %v688_v24, 16  ;;  %v857_v33 = vshrl.u32 %v688_v24, 16 }
  0x83   : > { %v842_v35 = vsel %vm7766_vm4, %v837_v18, %v841_v19  ;;  %v846_v40 = vrot.slane %v844_v25, 4  ;;  %v2503_v45 = vshll.u32 %v6544_v34, 16  ;;  %v2507_v46 = vshrl.u32 %v6544_v34, 16  ;;  %v690_v19 = vld [vmem:[%s7622_s12 + $0x48] sm:$0xf]  ;;  %v7223_v25 = vld [vmem:[%s9706_s1 + $0x1a0] sm:$0xff] }
  0x84   : > { %v2841_v11 = vpack.c.b16 %v2813_v62, %v2812_v61  ;;  %v2492_v44 = vsel %vm7766_vm4, %v2487_v27, %v2491_v28  ;;  %v7914_v48 = vrot.slane %v853_v32, 5  ;;  %v859_v49 = vrot.slane %v857_v33, 4  ;;  %v7231_v27 = vld [vmem:[%s9706_s1 + $0x1e0] sm:$0xff]  ;;  %3822 = vmatpush.bf16.msra.mxu2 %v7223_v25 }
  0x85   : > { %v1165_v50 = vunpack.c.l.b16 %v842_v35  ;;  %v7919_v61 = vrot.slane %v2503_v45, 5  ;;  %v2509_v62 = vrot.slane %v2507_v46, 4  ;;  %v1557_v1 = vrot.slane %v1437_v55, 5  ;;  %4568 = vmatpush.bf16.msra.mxu3 %v7231_v27 }
  0x86   : > { %v2513_v14 = vshll.u32 %v6545_v2, 16  ;;  %v1560_v18 = vrot.slane %v1438_v5, 5  ;;  %v868_v30 = vshrl.u32 %v690_v19, 16  ;;  %v871_v32 = vshll.u32 %v690_v19, 16  ;;  %v6548_v2 = vld [vmem:[%s7622_s12 + $0x5c] sm:$0x1] }
  0x87   : > { %v1192_v3 = vpack.c.b16 %v1165_v50, %v1164_v47  ;;  %v2510_v13 = vor.u32 %v2509_v62, %v7919_v61  ;;  %v1559_v17 = vrot.slane %v1557_v1, 4  ;;  %v7972_v62 = vrot.slane %v2527_v42, 5  ;;  %v7168_v19 = vld [vmem:[%s7622_s12 + $0x48] sm:$0xff] }
  0x88   : > { %v2515_v29 = vrot.slane %v2513_v14, 5  ;;  %v1441_v14 = vld [vmem:[%s7622_s12 + $0x50] sm:$0x1] }
  0x89   : > { %v2511_v28 = vrot.slane %v2510_v13, 4  ;;  %v1561_v35 = vsel %vm7770_vm5, %v1559_v17, %v1560_v18  ;;  %v2537_v17 = vshll.u32 %v6548_v2, 16  ;;  %v1567_v27 = vrot.slane %v1441_v14, 5 }
  0x8a   : > { %v1692_v55 = vunpack.c.l.b16 %v1561_v35 }
  0x8b   : > { %v2516_v50 = vsel %vm7766_vm4, %v2511_v28, %v2515_v29 }
  0x8c   : > { %1286 = vmatmul.bf16.gmra.mxu1 %v1190_v7  ;;  %1811 = vmatmul.bf16.gmra.mxu2 %v1715_v8  ;;  %v1716_v7 = vpack.c.b16 %v1688_v57, %v1687_v56  ;;  %v1550_v8 = vrot.slane %v1434_v63, 5  ;;  %v2815_v56 = vunpack.c.l.b16 %v2492_v44  ;;  %v850_v57 = vor.u32 %v849_v41, %v846_v40  ;;  %v7199_v44 = vld [vmem:[%s9706_s1 + $0x160] sm:$0xff] }
  0x8d   : > { %2190 = vmatmul.bf16.gmra.mxu3 %v7165_v9  ;;  %v2476_v9 = vor.u32 %v2475_v60, %v2472_v59  ;;  %v2499_v59 = vrot.slane %v2497_v43, 5  ;;  %v1436_v60 = vld [vmem:[%s7622_s12 + $0x3c] sm:$0xe]  ;;  %v860_v63 = vor.u32 %v859_v49, %v7914_v48  ;;  %v2531_v43 = vshrl.u32 %v6547_v26, 16  ;;  %3443 = vmatpush.bf16.msra.mxu1 %v7199_v44 }
  0x8e   : > { %2936 = vmatmul.bf16.gmra.mxu0 %v2840_v10  ;;  %v7166_v10 = vld [vmem:[%s7622_s12 + $0x30] sm:$0xff]  ;;  %v1552_v21 = vrot.slane %v1550_v8, 4  ;;  %v1551_v37 = vsel %vm7770_vm5, %v6324_v20, %v1550_v8  ;;  %v691_v20 = vld [vmem:[%s7622_s12 + $0x4c] sm:$0xf] }
  0x8f   : > { %v2477_v23 = vrot.slane %v2476_v9, 4  ;;  %v1689_v51 = vunpack.c.l.b16 %v1551_v37  ;;  %v851_v9 = vrot.slane %v850_v57, 4  ;;  %v861_v15 = vrot.slane %v860_v63, 4 }
  0x90   : > { %v1554_v38 = vsel %vm7770_vm5, %v1552_v21, %v1553_v22  ;;  %v6546_v21 = vld [vmem:[%s7622_s12 + $0x54] sm:$0xf]  ;;  %v877_v37 = vshll.u32 %v691_v20, 16  ;;  %v2533_v63 = vrot.slane %v2531_v43, 4 }
  0x91   : > { %v2482_v39 = vsel %vm7766_vm4, %v2477_v23, %v2481_v0  ;;  %v1690_v52 = vunpack.c.l.b16 %v1554_v38  ;;  %v863_v0 = vshll.u32 %v689_v54, 16  ;;  %v856_v22 = vsel %vm7766_vm4, %v851_v9, %v7914_v48  ;;  %v1439_v9 = vld [vmem:[%s7622_s12 + $0x48] sm:$0xe] }
  0x92   : > { %v2814_v53 = vunpack.c.l.b16 %v2482_v39  ;;  %v881_v38 = vshrl.u32 %v691_v20, 16  ;;  %v2518_v40 = vshrl.u32 %v6546_v21, 16  ;;  %v2521_v41 = vshll.u32 %v6546_v21, 16 }
  0x93   : > { %v1717_v4 = vpack.c.b16 %v1690_v52, %v1689_v51  ;;  %v865_v16 = vrot.slane %v863_v0, 5  ;;  %v1166_v46 = vunpack.c.l.b16 %v856_v22  ;;  %v870_v51 = vrot.slane %v868_v30, 4 }
  0x94   : > { %v2842_v8 = vpack.c.b16 %v2815_v56, %v2814_v53  ;;  %v873_v52 = vrot.slane %v871_v32, 5  ;;  %v7239_v53 = vld [vmem:[%s9706_s1 + $0x220] sm:$0xff]  ;;  %v692_v56 = vld [vmem:[%s7622_s12 + $0x50] sm:$0x1]  ;;  %v7969_v57 = vrot.slane %v877_v37, 5  ;;  %v2539_v30 = vrot.slane %v2537_v17, 5 }
  0x95   : > { %v866_v34 = vsel %vm7766_vm4, %v861_v15, %v865_v16  ;;  %5090 = vmatpush.bf16.msra.mxu0 %v7239_v53  ;;  %v2534_v16 = vor.u32 %v2533_v63, %v7972_v62  ;;  %v693_v32 = vld [vmem:[%s7622_s12 + $0x54] sm:$0xf] }
  0x96   : > { %v1167_v54 = vunpack.c.l.b16 %v866_v34  ;;  %v694_v34 = vld [vmem:[%s7622_s12 + $0x58] sm:$0xf]  ;;  %v892_v44 = vshrl.u32 %v693_v32, 16 }
  0x97   : > { %v2535_v29 = vrot.slane %v2534_v16, 4 }
  0x98   : > { %v1193_v5 = vpack.c.b16 %v1167_v54, %v1166_v46  ;;  %v895_v46 = vshll.u32 %v693_v32, 16  ;;  %v894_v63 = vrot.slane %v892_v44, 4  ;;  %v1444_v32 = vld [vmem:[%s7622_s12 + $0x5c] sm:$0x1] }
  0x9c   : > { %1291 = vmatmul.bf16.gmra.mxu1 %v1191_v6  ;;  %1816 = vmatmul.bf16.gmra.mxu2 %v1716_v7  ;;  %v7167_v7 = vld [vmem:[%s7622_s12 + $0x3c] sm:$0xff] }
  0x9d   : > { %2195 = vmatmul.bf16.gmra.mxu3 %v7166_v10  ;;  %v6325_v10 = vrot.slane %v1436_v60, 9  ;;  %v2520_v60 = vrot.slane %v2518_v40, 4  ;;  %v6550_v40 = vld [vmem:[%s7622_s12 + $0x64] sm:$0xf] }
  0x9e   : > { %2941 = vmatmul.bf16.gmra.mxu0 %v2841_v11  ;;  %v2500_v11 = vor.u32 %v2499_v59, %v2496_v58  ;;  %v883_v58 = vrot.slane %v881_v38, 4  ;;  %v1440_v59 = vld [vmem:[%s7622_s12 + $0x4c] sm:$0xf]  ;;  %v6549_v38 = vld [vmem:[%s7622_s12 + $0x60] sm:$0xf] }
  0x9f   : > { %v1558_v23 = vsel %vm7770_vm5, %v6325_v10, %v1557_v1  ;;  %v2817_v1 = vunpack.c.l.b16 %v2516_v50  ;;  %v1564_v10 = vrot.slane %v1440_v59, 5  ;;  %v2540_v50 = vsel %vm7766_vm4, %v2535_v29, %v2539_v30  ;;  %v7169_v29 = vld [vmem:[%s7622_s12 + $0x54] sm:$0xff] }
  0xa0   : > { %v2501_v24 = vrot.slane %v2500_v11, 4  ;;  %v1691_v47 = vunpack.c.l.b16 %v1558_v23  ;;  %v6326_v23 = vrot.slane %v1439_v9, 9  ;;  %v2542_v54 = vshrl.u32 %v6549_v38, 16  ;;  %v6551_v9 = vld [vmem:[%s7622_s12 + $0x68] sm:$0x1] }
  0xa1   : > { %v1566_v26 = vrot.slane %v1564_v10, 4  ;;  %v2819_v2 = vunpack.c.l.b16 %v2540_v50 }
  0xa2   : > { %v2506_v49 = vsel %vm7766_vm4, %v2501_v24, %v7919_v61  ;;  %v2523_v61 = vrot.slane %v2521_v41, 5  ;;  %v1718_v13 = vpack.c.b16 %v1692_v55, %v1691_v47  ;;  %v1565_v37 = vsel %vm7770_vm5, %v6326_v23, %v1564_v10 }
  0xa3   : > { %v2816_v0 = vunpack.c.l.b16 %v2506_v49  ;;  %v1568_v43 = vsel %vm7770_vm5, %v1566_v26, %v1567_v27  ;;  %v2545_v55 = vshll.u32 %v6549_v38, 16  ;;  %v2544_v10 = vrot.slane %v2542_v54, 4  ;;  %v696_v38 = vld [vmem:[%s7622_s12 + $0x60] sm:$0xf] }
  0xa4   : > { %v2524_v15 = vor.u32 %v2523_v61, %v2520_v60  ;;  %v1693_v60 = vunpack.c.l.b16 %v1565_v37  ;;  %v2561_v27 = vshll.u32 %v6551_v9, 16 }
  0xa5   : > { %v2843_v20 = vpack.c.b16 %v2817_v1, %v2816_v0  ;;  %v897_v0 = vrot.slane %v895_v46, 5 }
  0xa6   : > { %v2525_v28 = vrot.slane %v2524_v15, 4  ;;  %v2563_v50 = vrot.slane %v2561_v27, 5 }
  0xa8   : > { %v2530_v49 = vsel %vm7766_vm4, %v2525_v28, %v7972_v62  ;;  %v1694_v62 = vunpack.c.l.b16 %v1568_v43 }
  0xa9   : > { %v7924_v6 = vpop.f32.mrf.mxu1  ;;  %v2818_v1 = vunpack.c.l.b16 %v2530_v49  ;;  %v1574_v49 = vrot.slane %v1444_v32, 5 }
  0xaa   : > { %v1719_v23 = vpack.c.b16 %v1694_v62, %v1693_v60 }
  0xab   : > { %v7927_v12 = vpop.f32.mrf.mxu0  ;;  %v2844_v30 = vpack.c.b16 %v2819_v2, %v2818_v1 }
  0xac   : > { %1296 = vmatmul.bf16.gmra.mxu1 %v1192_v3  ;;  %1821 = vmatmul.bf16.gmra.mxu2 %v1717_v4  ;;  %v874_v3 = vor.u32 %v873_v52, %v870_v51  ;;  %v901_v51 = vshll.u32 %v694_v34, 16  ;;  %v905_v52 = vshrl.u32 %v694_v34, 16 }
  0xad   : > { %2200 = vmatmul.bf16.gmra.mxu3 %v7167_v7  ;;  %v884_v7 = vor.u32 %v883_v58, %v7969_v57 }
  0xae   : > { %2946 = vmatmul.bf16.gmra.mxu0 %v2842_v8  ;;  %v887_v8 = vshll.u32 %v692_v56, 16  ;;  %v875_v22 = vrot.slane %v874_v3, 4  ;;  %v2551_v56 = vshll.u32 %v6550_v40, 16  ;;  %v695_v3 = vld [vmem:[%s7622_s12 + $0x5c] sm:$0x1] }
  0xaf   : > { %v7945_v33 = vpop.f32.mrf.mxu2  ;;  %v885_v24 = vrot.slane %v884_v7, 4  ;;  %v907_v7 = vrot.slane %v905_v52, 4 }
  0xb0   : > { %v7951_v39 = vpop.f32.mrf.mxu3  ;;  %v889_v25 = vrot.slane %v887_v8, 5  ;;  %v880_v35 = vsel %vm7766_vm4, %v875_v22, %v7969_v57  ;;  %v2555_v57 = vshrl.u32 %v6550_v40, 16  ;;  %v1443_v8 = vld [vmem:[%s7622_s12 + $0x58] sm:$0xf]  ;;  %v8019_v14 = vrot.slane %v2551_v56, 5 }
  0xb1   : > { %v7956_v45 = vpop.f32.mrf.mxu1  ;;  %v1168_v59 = vunpack.c.l.b16 %v880_v35  ;;  %v1571_v26 = vrot.slane %v1443_v8, 5  ;;  %v919_v56 = vshll.u32 %v696_v38, 16 }
  0xb2   : > { %v890_v42 = vsel %vm7766_vm4, %v885_v24, %v889_v25  ;;  %v2557_v15 = vrot.slane %v2555_v57, 4  ;;  %v1442_v25 = vld [vmem:[%s7622_s12 + $0x54] sm:$0xe]  ;;  %v7222_v57 = vld [vmem:[%s9706_s1 + $0x198] sm:$0xff] }
  0xb3   : > { %v7958_v48 = vpop.f32.mrf.mxu0  ;;  %v1169_v61 = vunpack.c.l.b16 %v890_v42  ;;  %v6327_v43 = vrot.slane %v1442_v25, 9  ;;  %v1573_v46 = vrot.slane %v1571_v26, 4  ;;  %3823 = vmatpush.bf16.msra.mxu2 %v7222_v57  ;;  %v7198_v25 = vld [vmem:[%s9706_s1 + $0x158] sm:$0xff] }
  0xb4   : > { %v2558_v35 = vor.u32 %v2557_v15, %v8019_v14  ;;  %v921_v15 = vrot.slane %v919_v56, 5  ;;  %3444 = vmatpush.bf16.msra.mxu1 %v7198_v25  ;;  %v699_v25 = vld [vmem:[%s7622_s12 + $0x6c] sm:$0xf] }
  0xb5   : > { %v1194_v17 = vpack.c.b16 %v1169_v61, %v1168_v59  ;;  %v7230_v59 = vld [vmem:[%s9706_s1 + $0x1d8] sm:$0xff]  ;;  %v1575_v8 = vsel %vm7770_vm5, %v1573_v46, %v1574_v49  ;;  %v6554_v46 = vld [vmem:[%s7622_s12 + $0x74] sm:$0x1] }
  0xb6   : > { %v2559_v54 = vrot.slane %v2558_v35, 4  ;;  %4569 = vmatpush.bf16.msra.mxu3 %v7230_v59  ;;  %v698_v35 = vld [vmem:[%s7622_s12 + $0x68] sm:$0x1] }
  0xb7   : > { %v7975_v4 = vpop.f32.mrf.mxu2  ;;  %v935_v56 = vshll.u32 %v698_v35, 16 }
  0xb8   : > { %v7979_v11 = vpop.f32.mrf.mxu3 }
  0xb9   : > { %v7983_v18 = vpop.f32.mrf.mxu1 }
  0xbb   : > { %v7986_v21 = vpop.f32.mrf.mxu0 }
  0xbc   : > { %1301 = vmatmul.bf16.gmra.mxu1 %v1193_v5  ;;  %1826 = vmatmul.bf16.gmra.mxu2 %v1718_v13  ;;  %v8015_v5 = vrot.slane %v901_v51, 5  ;;  %v2547_v13 = vrot.slane %v2545_v55, 5  ;;  %v697_v51 = vld [vmem:[%s7622_s12 + $0x64] sm:$0xf]  ;;  %v916_v55 = vshrl.u32 %v696_v38, 16 }
  0xbd   : > { %2205 = vmatmul.bf16.gmra.mxu3 %v7168_v19  ;;  %v898_v19 = vor.u32 %v897_v0, %v894_v63  ;;  %v925_v61 = vshll.u32 %v697_v51, 16  ;;  %v929_v62 = vshrl.u32 %v697_v51, 16  ;;  %v6552_v63 = vld [vmem:[%s7622_s12 + $0x6c] sm:$0xf]  ;;  %v6553_v0 = vld [vmem:[%s7622_s12 + $0x70] sm:$0xf] }
  0xbe   : > { %2951 = vmatmul.bf16.gmra.mxu0 %v2843_v20  ;;  %v911_v20 = vshll.u32 %v695_v3, 16  ;;  %v908_v24 = vor.u32 %v907_v7, %v8015_v5  ;;  %v2548_v34 = vor.u32 %v2547_v13, %v2544_v10  ;;  %v1572_v7 = vsel %vm7770_vm5, %v6327_v43, %v1571_v26  ;;  %v1446_v38 = vld [vmem:[%s7622_s12 + $0x64] sm:$0xf] }
  0xbf   : > { %v7997_v41 = vpop.f32.mrf.mxu2  ;;  %v899_v40 = vrot.slane %v898_v19, 4  ;;  %v2564_v13 = vsel %vm7766_vm4, %v2559_v54, %v2563_v50  ;;  %v2566_v19 = vshrl.u32 %v6552_v63, 16  ;;  %v8072_v26 = vrot.slane %v925_v61, 5 }
  0xc0   : > { %v8003_v47 = vpop.f32.mrf.mxu3  ;;  %v913_v42 = vrot.slane %v911_v20, 5  ;;  %v909_v44 = vrot.slane %v908_v24, 4  ;;  %v2549_v52 = vrot.slane %v2548_v34, 4  ;;  %v2569_v20 = vshll.u32 %v6552_v63, 16  ;;  %v1447_v63 = vld [vmem:[%s7622_s12 + $0x68] sm:$0x1] }
  0xc1   : > { %9714 = vst [vmem:[#allocation3_spill] sm:$0xff] %v8003_v47  ;;  %v8010_v53 = vpop.f32.mrf.mxu1  ;;  %v904_v2 = vsel %vm7766_vm4, %v899_v40, %v8015_v5  ;;  %v918_v5 = vrot.slane %v916_v55, 4  ;;  %v2579_v24 = vshrl.u32 %v6553_v0, 16  ;;  %v931_v27 = vrot.slane %v929_v62, 4 }
  0xc2   : > { %v914_v3 = vsel %vm7766_vm4, %v909_v44, %v913_v42  ;;  %v2554_v10 = vsel %vm7766_vm4, %v2549_v52, %v8019_v14  ;;  %v7238_v14 = vld [vmem:[%s9706_s1 + $0x218] sm:$0xff]  ;;  %v1695_v32 = vunpack.c.l.b16 %v1572_v7  ;;  %v1696_v34 = vunpack.c.l.b16 %v1575_v8  ;;  %v1445_v44 = vld [vmem:[%s7622_s12 + $0x60] sm:$0xe] }
  0xc3   : > { %v8012_v58 = vpop.f32.mrf.mxu0  ;;  %5091 = vmatpush.bf16.msra.mxu0 %v7238_v14  ;;  %v2820_v40 = vunpack.c.l.b16 %v2554_v10  ;;  %v2821_v42 = vunpack.c.l.b16 %v2564_v13  ;;  %v922_v43 = vor.u32 %v921_v15, %v918_v5  ;;  %v2568_v49 = vrot.slane %v2566_v19, 4  ;;  %v700_v14 = vld [vmem:[%s7622_s12 + $0x70] sm:$0xf] }
  0xc4   : > { %v2571_v50 = vrot.slane %v2569_v20, 5  ;;  %v2581_v52 = vrot.slane %v2579_v24, 4  ;;  %v932_v55 = vor.u32 %v931_v27, %v8072_v26  ;;  %v1578_v57 = vrot.slane %v1446_v38, 5 }
  0xc5   : > { %v1720_v62 = vpack.c.b16 %v1696_v34, %v1695_v32  ;;  %v923_v7 = vrot.slane %v922_v43, 4  ;;  %v6328_v8 = vrot.slane %v1445_v44, 9  ;;  %v2585_v10 = vshll.u32 %v6554_v46, 16  ;;  %v6555_v32 = vld [vmem:[%s7622_s12 + $0x78] sm:$0xf] }
  0xc6   : > { %v2572_v5 = vor.u32 %v2571_v50, %v2568_v49  ;;  %v933_v19 = vrot.slane %v932_v55, 4  ;;  %v937_v20 = vrot.slane %v935_v56, 5  ;;  %v1581_v24 = vrot.slane %v1447_v63, 5  ;;  %v6556_v34 = vld [vmem:[%s7622_s12 + $0x7c] sm:$0xf] }
  0xc7   : > { %v8021_v16 = vpop.f32.mrf.mxu2  ;;  %v928_v27 = vsel %vm7766_vm4, %v923_v7, %v8072_v26  ;;  %v949_v49 = vshll.u32 %v700_v14, 16  ;;  %v953_v26 = vshrl.u32 %v700_v14, 16  ;;  %v2593_v55 = vshll.u32 %v6555_v32, 16 }
  0xc8   : > { %v8023_v22 = vpop.f32.mrf.mxu3  ;;  %v2573_v35 = vrot.slane %v2572_v5, 4  ;;  %v938_v44 = vsel %vm7766_vm4, %v933_v19, %v937_v20  ;;  %v2599_v56 = vshll.u32 %v6556_v34, 16  ;;  %v701_v19 = vld [vmem:[%s7622_s12 + $0x74] sm:$0x1] }
  0xc9   : > { %9715 = vst [vmem:[#allocation4_spill] sm:$0xff] %v8023_v22  ;;  %v8027_v28 = vpop.f32.mrf.mxu1  ;;  %v1173_v5 = vunpack.c.l.b16 %v938_v44  ;;  %v8119_v20 = vrot.slane %v949_v49, 5  ;;  %v2595_v14 = vrot.slane %v2593_v55, 5  ;;  %v1453_v22 = vld [vmem:[%s7622_s12 + $0x80] sm:$0x1] }
  0xcb   : > { %v8032_v37 = vpop.f32.mrf.mxu0 }
  0xcc   : > { %1306 = vmatmul.bf16.gmra.mxu1 %v1194_v17  ;;  %1831 = vmatmul.bf16.gmra.mxu2 %v1719_v23  ;;  %v2575_v23 = vshll.u32 %v6553_v0, 16 }
  0xcd   : > { %2210 = vmatmul.bf16.gmra.mxu3 %v7169_v29  ;;  %v1170_v29 = vunpack.c.l.b16 %v904_v2  ;;  %v7170_v2 = vld [vmem:[%s7622_s12 + $0x60] sm:$0xff] }
  0xce   : > { %2956 = vmatmul.bf16.gmra.mxu0 %v2844_v30  ;;  %v1171_v30 = vunpack.c.l.b16 %v914_v3  ;;  %v8078_v51 = vrot.slane %v2575_v23, 5  ;;  %v2845_v3 = vpack.c.b16 %v2821_v42, %v2820_v40  ;;  %v1580_v23 = vrot.slane %v1578_v57, 4 }
  0xcf   : > { %v8042_v60 = vpop.f32.mrf.mxu2  ;;  %v940_v40 = vshrl.u32 %v699_v25, 16  ;;  %v943_v42 = vshll.u32 %v699_v25, 16 }
  0xd0   : > { %v8046_v1 = vpop.f32.mrf.mxu3  ;;  %v1195_v61 = vpack.c.b16 %v1171_v30, %v1170_v29  ;;  %v2582_v15 = vor.u32 %v2581_v52, %v8078_v51  ;;  %v1579_v29 = vsel %vm7770_vm5, %v6328_v8, %v1578_v57  ;;  %v2587_v30 = vrot.slane %v2585_v10, 5 }
  0xd1   : > { %9716 = vst [vmem:[#allocation5_spill] sm:$0xff] %v8046_v1  ;;  %v8057_v9 = vpop.f32.mrf.mxu1  ;;  %v1582_v46 = vsel %vm7770_vm5, %v1580_v23, %v1581_v24  ;;  %v2590_v52 = vshrl.u32 %v6555_v32, 16  ;;  %v2603_v57 = vshrl.u32 %v6556_v34, 16  ;;  %v1697_v63 = vunpack.c.l.b16 %v1579_v29  ;;  %v1449_v24 = vld [vmem:[%s7622_s12 + $0x70] sm:$0xf] }
  0xd2   : > { %v2583_v38 = vrot.slane %v2582_v15, 4  ;;  %v942_v8 = vrot.slane %v940_v40, 4  ;;  %v945_v10 = vrot.slane %v943_v42, 5  ;;  %v1698_v15 = vunpack.c.l.b16 %v1582_v46  ;;  %v6557_v34 = vld [vmem:[%s7622_s12 + $0x80] sm:$0x1] }
  0xd3   : > { %v8064_v17 = vpop.f32.mrf.mxu0  ;;  %v955_v23 = vrot.slane %v953_v26, 4  ;;  %v2592_v25 = vrot.slane %v2590_v52, 4  ;;  %v2605_v29 = vrot.slane %v2603_v57, 4  ;;  %v959_v42 = vshll.u32 %v701_v19, 16  ;;  %v1448_v26 = vld [vmem:[%s7622_s12 + $0x6c] sm:$0xe] }
  0xd4   : > { %v2588_v7 = vsel %vm7766_vm4, %v2583_v38, %v2587_v30  ;;  %v946_v30 = vor.u32 %v945_v10, %v942_v8  ;;  %v1585_v44 = vrot.slane %v1449_v24, 5  ;;  %v1721_v49 = vpack.c.b16 %v1698_v15, %v1697_v63  ;;  %v1450_v8 = vld [vmem:[%s7622_s12 + $0x74] sm:$0x1]  ;;  %v702_v15 = vld [vmem:[%s7622_s12 + $0x78] sm:$0xf] }
  0xd5   : > { %v2823_v32 = vunpack.c.l.b16 %v2588_v7  ;;  %v956_v40 = vor.u32 %v955_v23, %v8119_v20  ;;  %v2596_v52 = vor.u32 %v2595_v14, %v2592_v25  ;;  %v961_v23 = vrot.slane %v959_v42, 5  ;;  %v6558_v42 = vld [vmem:[%s7622_s12 + $0x84] sm:$0xf] }
  0xd6   : > { %v6329_v24 = vrot.slane %v1448_v26, 9  ;;  %v1587_v63 = vrot.slane %v1585_v44, 4  ;;  %v1588_v25 = vrot.slane %v1450_v8, 5 }
  0xd7   : > { %v8080_v54 = vpop.f32.mrf.mxu2  ;;  %v957_v19 = vrot.slane %v956_v40, 4  ;;  %v2597_v14 = vrot.slane %v2596_v52, 4  ;;  %v967_v40 = vshll.u32 %v702_v15, 16 }
  0xd8   : > { %v8083_v59 = vpop.f32.mrf.mxu3 }
  0xd9   : > { %9717 = vst [vmem:[#allocation6_spill] sm:$0xff] %v8083_v59  ;;  %v8086_v0 = vpop.f32.mrf.mxu1  ;;  %v962_v52 = vsel %vm7766_vm4, %v957_v19, %v961_v23  ;;  %v2614_v23 = vshrl.u32 %v6558_v42, 16 }
  0xdb   : > { %v8089_v13 = vpop.f32.mrf.mxu0 }
  0xdc   : > { %1311 = vmatmul.bf16.gmra.mxu1 %v1195_v61  ;;  %1836 = vmatmul.bf16.gmra.mxu2 %v1720_v62  ;;  %v1172_v62 = vunpack.c.l.b16 %v928_v27  ;;  %v8122_v27 = vrot.slane %v2599_v56, 5  ;;  %v2609_v56 = vshll.u32 %v6557_v34, 16  ;;  %v7229_v34 = vld [vmem:[%s9706_s1 + $0x1d0] sm:$0xff] }
  0xdd   : > { %2215 = vmatmul.bf16.gmra.mxu3 %v7170_v2 }
  0xde   : > { %2961 = vmatmul.bf16.gmra.mxu0 %v2845_v3  ;;  %v2578_v3 = vsel %vm7766_vm4, %v2573_v35, %v8078_v51  ;;  %v1196_v38 = vpack.c.b16 %v1173_v5, %v1172_v62  ;;  %v2606_v55 = vor.u32 %v2605_v29, %v8122_v27  ;;  %v947_v5 = vrot.slane %v946_v30, 4  ;;  %4570 = vmatpush.bf16.msra.mxu3 %v7229_v34 }
  0xdf   : > { %v8101_v43 = vpop.f32.mrf.mxu2  ;;  %v2822_v51 = vunpack.c.l.b16 %v2578_v3  ;;  %v7171_v3 = vld [vmem:[%s7622_s12 + $0x6c] sm:$0xff]  ;;  %v2602_v8 = vsel %vm7766_vm4, %v2597_v14, %v8122_v27 }
  0xe0   : > { %v8107_v50 = vpop.f32.mrf.mxu3  ;;  %v2607_v29 = vrot.slane %v2606_v55, 4  ;;  %v952_v30 = vsel %vm7766_vm4, %v947_v5, %v8119_v20  ;;  %v1586_v55 = vsel %vm7770_vm5, %v6329_v24, %v1585_v44  ;;  %v1589_v20 = vsel %vm7770_vm5, %v1587_v63, %v1588_v25  ;;  %v7197_v27 = vld [vmem:[%s9706_s1 + $0x150] sm:$0xff] }
  0xe1   : > { %9718 = vst [vmem:[#allocation7_spill] sm:$0xff] %v8107_v50  ;;  %v8109_v61 = vpop.f32.mrf.mxu1  ;;  %v2846_v7 = vpack.c.b16 %v2823_v32, %v2822_v51  ;;  %v2611_v51 = vrot.slane %v2609_v56, 5  ;;  %v703_v32 = vld [vmem:[%s7622_s12 + $0x7c] sm:$0xf]  ;;  %v969_v63 = vrot.slane %v967_v40, 5  ;;  %v7237_v25 = vld [vmem:[%s9706_s1 + $0x210] sm:$0xff]  ;;  %v1174_v14 = vunpack.c.l.b16 %v952_v30  ;;  %3445 = vmatpush.bf16.msra.mxu1 %v7197_v27 }
  0xe2   : > { %v973_v56 = vshll.u32 %v703_v32, 16  ;;  %5092 = vmatpush.bf16.msra.mxu0 %v7237_v25  ;;  %v6560_v40 = vld [vmem:[%s7622_s12 + $0x8c] sm:$0x1]  ;;  %v1451_v25 = vld [vmem:[%s7622_s12 + $0x78] sm:$0xe] }
  0xe3   : > { %v8111_v2 = vpop.f32.mrf.mxu0  ;;  %v2612_v5 = vsel %vm7766_vm4, %v2607_v29, %v2611_v51  ;;  %v1699_v29 = vunpack.c.l.b16 %v1586_v55  ;;  %v2633_v1 = vshll.u32 %v6560_v40, 16  ;;  %v6562_v40 = vld [vmem:[%s7622_s12 + $0x94] sm:$0xf] }
  0xe4   : > { %v8168_v51 = vrot.slane %v973_v56, 5 }
  0xe7   : > { %v8125_v35 = vpop.f32.mrf.mxu2 }
  0xe8   : > { %v8128_v46 = vpop.f32.mrf.mxu3 }
  0xe9   : > { %9719 = vst [vmem:[#allocation8_spill] sm:$0xff] %v8128_v46  ;;  %v1277_v57 = vpop.f32.mrf.mxu1 }
  0xea   : > { %v1357_v62 = vadd.f32 %v1277_v57, %v7927_v12  ;;  %v7221_v12 = vld [vmem:[%s9706_s1 + $0x190] sm:$0xff]  ;;  %v977_v57 = vshrl.u32 %v703_v32, 16 }
  0xeb   : > { %v8135_v10 = vpop.f32.mrf.mxu0  ;;  %3824 = vmatpush.bf16.msra.mxu2 %v7221_v12 }
  0xec   : > { %1316 = vmatmul.bf16.gmra.mxu1 %v1196_v38  ;;  %1841 = vmatmul.bf16.gmra.mxu2 %v1721_v49  ;;  %v964_v38 = vshrl.u32 %v702_v15, 16  ;;  %v6559_v49 = vld [vmem:[%s7622_s12 + $0x88] sm:$0xf]  ;;  %v2617_v15 = vshll.u32 %v6558_v42, 16  ;;  %v979_v42 = vrot.slane %v977_v57, 4 }
  0xed   : > { %2220 = vmatmul.bf16.gmra.mxu3 %v7171_v3  ;;  %v2623_v44 = vshll.u32 %v6559_v49, 16  ;;  %v2627_v24 = vshrl.u32 %v6559_v49, 16  ;;  %v1175_v49 = vunpack.c.l.b16 %v962_v52 }
  0xee   : > { %2966 = vmatmul.bf16.gmra.mxu0 %v2846_v7  ;;  %v966_v34 = vrot.slane %v964_v38, 4  ;;  %v704_v38 = vld [vmem:[%s7622_s12 + $0x80] sm:$0x1]  ;;  %v2619_v46 = vrot.slane %v2617_v15, 5  ;;  %v980_v52 = vor.u32 %v979_v42, %v8168_v51  ;;  %v7172_v15 = vld [vmem:[%s7622_s12 + $0x78] sm:$0xff] }
  0xef   : > { %v1802_v26 = vpop.f32.mrf.mxu2  ;;  %v8173_v50 = vrot.slane %v2623_v44, 5  ;;  %v2629_v30 = vrot.slane %v2627_v24, 4  ;;  %v983_v57 = vshll.u32 %v704_v38, 16  ;;  %v1197_v27 = vpack.c.b16 %v1175_v49, %v1174_v14  ;;  %v705_v14 = vld [vmem:[%s7622_s12 + $0x84] sm:$0xf] }
  0xf0   : > { %v1882_v3 = vadd.f32 %v1802_v26, %v1357_v62  ;;  %v2181_v7 = vpop.f32.mrf.mxu3  ;;  %v1700_v26 = vunpack.c.l.b16 %v1589_v20  ;;  %v970_v55 = vor.u32 %v969_v63, %v966_v34 }
  0xf1   : > { %v1279_v19 = vpop.f32.mrf.mxu1  ;;  %v2630_v24 = vor.u32 %v2629_v30, %v8173_v50  ;;  %v985_v49 = vrot.slane %v983_v57, 5 }
  0xf2   : > { %v2261_v32 = vadd.f32 %v2181_v7, %v1882_v3  ;;  %v1358_v62 = vadd.f32 %v1279_v19, %v7958_v48  ;;  %v2824_v48 = vunpack.c.l.b16 %v2602_v8  ;;  %v2825_v3 = vunpack.c.l.b16 %v2612_v5  ;;  %v1452_v7 = vld [vmem:[%s7622_s12 + $0x7c] sm:$0xf] }
  0xf3   : > { %v2929_v12 = vpop.f32.mrf.mxu0  ;;  %v2616_v19 = vrot.slane %v2614_v23, 4  ;;  %v1592_v20 = vrot.slane %v1452_v7, 5  ;;  %v1722_v59 = vpack.c.b16 %v1700_v26, %v1699_v29  ;;  %v971_v42 = vrot.slane %v970_v55, 4  ;;  %v706_v7 = vld [vmem:[%s7622_s12 + $0x88] sm:$0xf] }
  0xf4   : > { %v2847_v44 = vpack.c.b16 %v2825_v3, %v2824_v48  ;;  %v981_v29 = vrot.slane %v980_v52, 4  ;;  %v6330_v26 = vrot.slane %v1451_v25, 9  ;;  %v1595_v48 = vrot.slane %v1453_v22, 5  ;;  %v6561_v3 = vld [vmem:[%s7622_s12 + $0x90] sm:$0xf] }
  0xf5   : > { %v2620_v47 = vor.u32 %v2619_v46, %v2616_v19  ;;  %v1594_v38 = vrot.slane %v1592_v20, 4  ;;  %v2635_v46 = vrot.slane %v2633_v1, 5  ;;  %v8188_v19 = vadd.f32 %v8135_v10, %v2261_v32 }
  0xf6   : > { %v2631_v55 = vrot.slane %v2630_v24, 4  ;;  %v991_v52 = vshll.u32 %v705_v14, 16  ;;  %v976_v57 = vsel %vm7766_vm4, %v971_v42, %v8168_v51  ;;  %v1001_v22 = vshrl.u32 %v706_v7, 16 }
  0xf7   : > { %v1804_v56 = vpop.f32.mrf.mxu2  ;;  %9720 = vst [vmem:[#allocation9_spill] sm:$0xff] %v8188_v19  ;;  %v2647_v10 = vshll.u32 %v6562_v40, 16  ;;  %v2651_v32 = vshrl.u32 %v6562_v40, 16  ;;  %v1593_v25 = vsel %vm7770_vm5, %v6330_v26, %v1592_v20  ;;  %v707_v20 = vld [vmem:[%s7622_s12 + $0x8c] sm:$0x1] }
  0xf8   : > { %v1883_v8 = vadd.f32 %v1804_v56, %v1358_v62  ;;  %v2183_v5 = vpop.f32.mrf.mxu3  ;;  %v988_v56 = vshrl.u32 %v705_v14, 16 }
  0xf9   : > { %v1282_v23 = vpop.f32.mrf.mxu1 }
  0xfa   : > { %v2262_v34 = vadd.f32 %v2183_v5, %v1883_v8  ;;  %v1359_v63 = vadd.f32 %v1282_v23, %v7986_v21  ;;  %v2621_v21 = vrot.slane %v2620_v47, 4  ;;  %v2638_v8 = vshrl.u32 %v6561_v3, 16 }
  0xfb   : > { %v8181_v62 = vpop.f32.mrf.mxu0  ;;  %v2641_v5 = vshll.u32 %v6561_v3, 16  ;;  %v986_v47 = vsel %vm7766_vm4, %v981_v29, %v985_v49  ;;  %v1596_v23 = vsel %vm7770_vm5, %v1594_v38, %v1595_v48  ;;  %v990_v24 = vrot.slane %v988_v56, 4 }
  0xfc   : > { %1321 = vmatmul.bf16.gmra.mxu1 %v1197_v27  ;;  %1846 = vmatmul.bf16.gmra.mxu2 %v1722_v59  ;;  %v8190_v30 = vadd.f32 %v2929_v12, %v2262_v34  ;;  %v997_v59 = vshll.u32 %v706_v7, 16  ;;  %v993_v34 = vrot.slane %v991_v52, 5  ;;  %v1003_v49 = vrot.slane %v1001_v22, 4 }
  0xfd   : > { %2225 = vmatmul.bf16.gmra.mxu3 %v7172_v15  ;;  %v2626_v15 = vsel %vm7766_vm4, %v2621_v21, %v8173_v50  ;;  %v2640_v26 = vrot.slane %v2638_v8, 4  ;;  %v2643_v38 = vrot.slane %v2641_v5, 5  ;;  %v8210_v50 = vrot.slane %v2647_v10, 5  ;;  %v1455_v21 = vld [vmem:[%s7622_s12 + $0x88] sm:$0xf] }
  0xfe   : > { %9721 = vst [vmem:[#allocation10_spill] sm:$0xff] %v8190_v30  ;;  %2971 = vmatmul.bf16.gmra.mxu0 %v2847_v44  ;;  %v2636_v44 = vsel %vm7766_vm4, %v2631_v55, %v2635_v46  ;;  %v8208_v29 = vrot.slane %v997_v59, 5  ;;  %v2653_v7 = vrot.slane %v2651_v32, 4  ;;  %v1176_v48 = vunpack.c.l.b16 %v976_v57  ;;  %v6563_v55 = vld [vmem:[%s7622_s12 + $0x98] sm:$0x1] }
  0xff   : > { %v1807_v1 = vpop.f32.mrf.mxu2  ;;  %v1177_v46 = vunpack.c.l.b16 %v986_v47  ;;  %v1701_v3 = vunpack.c.l.b16 %v1593_v25  ;;  %v1702_v40 = vunpack.c.l.b16 %v1596_v23  ;;  %v2826_v56 = vunpack.c.l.b16 %v2626_v15  ;;  %v1456_v8 = vld [vmem:[%s7622_s12 + $0x8c] sm:$0x1]  ;;  %v7173_v15 = vld [vmem:[%s7622_s12 + $0x84] sm:$0xff] }
 0x100   : > { %v1884_v12 = vadd.f32 %v1807_v1, %v1359_v63  ;;  %v2186_v27 = vpop.f32.mrf.mxu3  ;;  %v1007_v52 = vshll.u32 %v707_v20, 16  ;;  %v994_v59 = vor.u32 %v993_v34, %v990_v24  ;;  %v1004_v22 = vor.u32 %v1003_v49, %v8208_v29  ;;  %v1454_v1 = vld [vmem:[%s7622_s12 + $0x84] sm:$0xe]  ;;  %v708_v49 = vld [vmem:[%s7622_s12 + $0x90] sm:$0xf] }
 0x101   : > { %v1284_v51 = vpop.f32.mrf.mxu1  ;;  %v1599_v10 = vrot.slane %v1455_v21, 5  ;;  %v2654_v57 = vor.u32 %v2653_v7, %v8210_v50  ;;  %v2657_v32 = vshll.u32 %v6563_v55, 16  ;;  %v1198_v25 = vpack.c.b16 %v1177_v46, %v1176_v48  ;;  %v709_v46 = vld [vmem:[%s7622_s12 + $0x94] sm:$0xf] }
 0x102   : > { %v2263_v63 = vadd.f32 %v2186_v27, %v1884_v12  ;;  %v1360_v42 = vadd.f32 %v1284_v51, %v8012_v58  ;;  %v2827_v58 = vunpack.c.l.b16 %v2636_v44  ;;  %v2644_v12 = vor.u32 %v2643_v38, %v2640_v26 }
 0x103   : > { %v2934_v14 = vpop.f32.mrf.mxu0  ;;  %v1723_v23 = vpack.c.b16 %v1702_v40, %v1701_v3  ;;  %v1009_v24 = vrot.slane %v1007_v52, 5  ;;  %v6331_v34 = vrot.slane %v1454_v1, 9  ;;  %v1602_v20 = vrot.slane %v1456_v8, 5  ;;  %v7228_v52 = vld [vmem:[%s9706_s1 + $0x1c8] sm:$0xff] }
 0x104   : > { %v2848_v44 = vpack.c.b16 %v2827_v58, %v2826_v56  ;;  %v995_v26 = vrot.slane %v994_v59, 4  ;;  %v1005_v38 = vrot.slane %v1004_v22, 4  ;;  %v1601_v7 = vrot.slane %v1599_v10, 4  ;;  %v6565_v22 = vld [vmem:[%s7622_s12 + $0xa0] sm:$0xf]  ;;  %4571 = vmatpush.bf16.msra.mxu3 %v7228_v52 }
 0x105   : > { %v2655_v55 = vrot.slane %v2654_v57, 4  ;;  %v2659_v48 = vrot.slane %v2657_v32, 5  ;;  %v1012_v3 = vshrl.u32 %v708_v49, 16  ;;  %v1015_v40 = vshll.u32 %v708_v49, 16  ;;  %v7196_v49 = vld [vmem:[%s9706_s1 + $0x148] sm:$0xff] }
 0x106   : > { %v8225_v56 = vadd.f32 %v8181_v62, %v2263_v63  ;;  %v1000_v59 = vsel %vm7766_vm4, %v995_v26, %v8208_v29  ;;  %v1600_v62 = vsel %vm7770_vm5, %v6331_v34, %v1599_v10  ;;  %v1021_v63 = vshll.u32 %v709_v46, 16  ;;  %v7236_v26 = vld [vmem:[%s9706_s1 + $0x208] sm:$0xff]  ;;  %3446 = vmatpush.bf16.msra.mxu1 %v7196_v49 }
 0x107   : > { %v1809_v5 = vpop.f32.mrf.mxu2  ;;  %v1010_v8 = vsel %vm7766_vm4, %v1005_v38, %v1009_v24  ;;  %v2660_v57 = vsel %vm7766_vm4, %v2655_v55, %v2659_v48  ;;  %v1014_v32 = vrot.slane %v1012_v3, 4  ;;  %v1178_v38 = vunpack.c.l.b16 %v1000_v59  ;;  %5093 = vmatpush.bf16.msra.mxu0 %v7236_v26  ;;  %v1458_v3 = vld [vmem:[%s7622_s12 + $0x94] sm:$0xf] }
 0x108   : > { %v1885_v27 = vadd.f32 %v1809_v5, %v1360_v42  ;;  %v2188_v47 = vpop.f32.mrf.mxu3  ;;  %v2645_v42 = vrot.slane %v2644_v12, 4  ;;  %v1603_v5 = vsel %vm7770_vm5, %v1601_v7, %v1602_v20  ;;  %v8253_v20 = vrot.slane %v1021_v63, 5 }
 0x109   : > { %v1287_v51 = vpop.f32.mrf.mxu1  ;;  %v1179_v7 = vunpack.c.l.b16 %v1010_v8  ;;  %v1704_v55 = vunpack.c.l.b16 %v1603_v5 }
 0x10a   : > { %v2264_v30 = vadd.f32 %v2188_v47, %v1885_v27  ;;  %v1361_v19 = vadd.f32 %v1287_v51, %v8032_v37  ;;  %v7220_v37 = vld [vmem:[%s9706_s1 + $0x188] sm:$0xff]  ;;  %v2650_v12 = vsel %vm7766_vm4, %v2645_v42, %v8210_v50  ;;  %v1017_v27 = vrot.slane %v1015_v40, 5 }
 0x10b   : > { %v8221_v21 = vpop.f32.mrf.mxu0  ;;  %3825 = vmatpush.bf16.msra.mxu2 %v7220_v37  ;;  %v1703_v42 = vunpack.c.l.b16 %v1600_v62  ;;  %v2828_v48 = vunpack.c.l.b16 %v2650_v12 }
 0x10c   : > { %1326 = vmatmul.bf16.gmra.mxu1 %v1198_v25  ;;  %1851 = vmatmul.bf16.gmra.mxu2 %v1723_v23  ;;  %v8227_v58 = vadd.f32 %v2934_v14, %v2264_v30  ;;  %v1025_v30 = vshrl.u32 %v709_v46, 16  ;;  %v6564_v14 = vld [vmem:[%s7622_s12 + $0x9c] sm:$0xf]  ;;  %v710_v25 = vld [vmem:[%s7622_s12 + $0x98] sm:$0x1] }
 0x10d   : > { %2230 = vmatmul.bf16.gmra.mxu3 %v7173_v15  ;;  %v2662_v23 = vshrl.u32 %v6564_v14, 16  ;;  %v2665_v51 = vshll.u32 %v6564_v14, 16  ;;  %v2671_v15 = vshll.u32 %v6565_v22, 16  ;;  %v1031_v46 = vshll.u32 %v710_v25, 16  ;;  %v1457_v14 = vld [vmem:[%s7622_s12 + $0x90] sm:$0xe] }
 0x10e   : > { %2976 = vmatmul.bf16.gmra.mxu0 %v2848_v44  ;;  %v2675_v44 = vshrl.u32 %v6565_v22, 16  ;;  %v6566_v22 = vld [vmem:[%s7622_s12 + $0xa4] sm:$0x1]  ;;  %v1724_v8 = vpack.c.b16 %v1704_v55, %v1703_v42  ;;  %v7174_v25 = vld [vmem:[%s7622_s12 + $0x90] sm:$0xff]  ;;  %v712_v55 = vld [vmem:[%s7622_s12 + $0xa0] sm:$0xf] }
 0x10f   : > { %v1812_v1 = vpop.f32.mrf.mxu2  ;;  %v2664_v40 = vrot.slane %v2662_v23, 4  ;;  %v2667_v37 = vrot.slane %v2665_v51, 5  ;;  %v8262_v52 = vrot.slane %v2671_v15, 5  ;;  %v1459_v23 = vld [vmem:[%s7622_s12 + $0x98] sm:$0x1]  ;;  %v6332_v51 = vrot.slane %v1457_v14, 9 }
 0x110   : > { %v1886_v29 = vadd.f32 %v1812_v1, %v1361_v19  ;;  %v2191_v10 = vpop.f32.mrf.mxu3  ;;  %v1027_v19 = vrot.slane %v1025_v30, 4  ;;  %v2677_v63 = vrot.slane %v2675_v44, 4  ;;  %v1018_v30 = vor.u32 %v1017_v27, %v1014_v32 }
 0x111   : > { %v1289_v47 = vpop.f32.mrf.mxu1  ;;  %v1199_v1 = vpack.c.b16 %v1179_v7, %v1178_v38  ;;  %v2668_v32 = vor.u32 %v2667_v37, %v2664_v40  ;;  %v2681_v15 = vshll.u32 %v6566_v22, 16  ;;  %v711_v38 = vld [vmem:[%s7622_s12 + $0x9c] sm:$0xf]  ;;  %v1609_v42 = vrot.slane %v1459_v23, 5 }
 0x112   : > { %v2265_v24 = vadd.f32 %v2191_v10, %v1886_v29  ;;  %v1362_v34 = vadd.f32 %v1289_v47, %v8064_v17  ;;  %v2829_v17 = vunpack.c.l.b16 %v2660_v57  ;;  %v1028_v59 = vor.u32 %v1027_v19, %v8253_v20 }
 0x113   : > { %v2939_v50 = vpop.f32.mrf.mxu0  ;;  %v1033_v10 = vrot.slane %v1031_v46, 5  ;;  %v1606_v57 = vrot.slane %v1458_v3, 5  ;;  %v2678_v27 = vor.u32 %v2677_v63, %v8262_v52  ;;  %v2669_v3 = vrot.slane %v2668_v32, 4  ;;  %v6568_v63 = vld [vmem:[%s7622_s12 + $0xac] sm:$0xf] }
 0x114   : > { %v2849_v29 = vpack.c.b16 %v2829_v17, %v2828_v48  ;;  %v1029_v26 = vrot.slane %v1028_v59, 4  ;;  %v6567_v48 = vld [vmem:[%s7622_s12 + $0xa8] sm:$0xf]  ;;  %v8277_v17 = vadd.f32 %v8221_v21, %v2265_v24  ;;  %v2683_v37 = vrot.slane %v2681_v15, 5  ;;  %v713_v15 = vld [vmem:[%s7622_s12 + $0xa4] sm:$0x1] }
 0x115   : > { %v1608_v7 = vrot.slane %v1606_v57, 4  ;;  %v2679_v40 = vrot.slane %v2678_v27, 4  ;;  %v1036_v21 = vshrl.u32 %v711_v38, 16  ;;  %v1039_v24 = vshll.u32 %v711_v38, 16 }
 0x116   : > { %v1034_v59 = vsel %vm7766_vm4, %v1029_v26, %v1033_v10  ;;  %v1045_v14 = vshll.u32 %v712_v55, 16  ;;  %v1049_v22 = vshrl.u32 %v712_v55, 16  ;;  %v2674_v10 = vsel %vm7766_vm4, %v2669_v3, %v8262_v52  ;;  %v1461_v52 = vld [vmem:[%s7622_s12 + $0xa0] sm:$0xf] }
 0x117   : > { %v1814_v62 = vpop.f32.mrf.mxu2  ;;  %v2684_v23 = vsel %vm7766_vm4, %v2679_v40, %v2683_v37  ;;  %v2830_v40 = vunpack.c.l.b16 %v2674_v10  ;;  %v1055_v37 = vshll.u32 %v713_v15, 16 }
 0x118   : > { %v1887_v5 = vadd.f32 %v1814_v62, %v1362_v34  ;;  %v2193_v12 = vpop.f32.mrf.mxu3  ;;  %v1019_v34 = vrot.slane %v1018_v30, 4  ;;  %v2686_v62 = vshrl.u32 %v6567_v48, 16  ;;  %v1051_v26 = vrot.slane %v1049_v22, 4 }
 0x119   : > { %v1292_v47 = vpop.f32.mrf.mxu1  ;;  %v1057_v10 = vrot.slane %v1055_v37, 5  ;;  %v7227_v37 = vld [vmem:[%s9706_s1 + $0x1c0] sm:$0xff] }
 0x11a   : > { %v2266_v44 = vadd.f32 %v2193_v12, %v1887_v5  ;;  %v1363_v19 = vadd.f32 %v1292_v47, %v8089_v13  ;;  %v1607_v13 = vsel %vm7770_vm5, %v6332_v51, %v1606_v57  ;;  %v1024_v30 = vsel %vm7766_vm4, %v1019_v34, %v8253_v20  ;;  %4572 = vmatpush.bf16.msra.mxu3 %v7227_v37 }
 0x11b   : > { %v8271_v49 = vpop.f32.mrf.mxu0  ;;  %v1610_v12 = vsel %vm7770_vm5, %v1608_v7, %v1609_v42  ;;  %v2699_v57 = vshrl.u32 %v6568_v63, 16  ;;  %v1180_v20 = vunpack.c.l.b16 %v1024_v30  ;;  %v8298_v34 = vrot.slane %v1045_v14, 5 }
 0x11c   : > { %1331 = vmatmul.bf16.gmra.mxu1 %v1199_v1  ;;  %1856 = vmatmul.bf16.gmra.mxu2 %v1724_v8  ;;  %v8279_v46 = vadd.f32 %v2939_v50, %v2266_v44  ;;  %v2689_v1 = vshll.u32 %v6567_v48, 16  ;;  %v1038_v44 = vrot.slane %v1036_v21, 4  ;;  %v2688_v38 = vrot.slane %v2686_v62, 4  ;;  %v6569_v48 = vld [vmem:[%s7622_s12 + $0xb0] sm:$0x1] }
 0x11d   : > { %2235 = vmatmul.bf16.gmra.mxu3 %v7174_v25  ;;  %v1705_v25 = vunpack.c.l.b16 %v1607_v13  ;;  %v1181_v42 = vunpack.c.l.b16 %v1034_v59  ;;  %v1706_v55 = vunpack.c.l.b16 %v1610_v12  ;;  %v2701_v3 = vrot.slane %v2699_v57, 4  ;;  %v7175_v57 = vld [vmem:[%s7622_s12 + $0x9c] sm:$0xff] }
 0x11e   : > { %2981 = vmatmul.bf16.gmra.mxu0 %v2849_v29  ;;  %v2695_v29 = vshll.u32 %v6568_v63, 16  ;;  %v2691_v7 = vrot.slane %v2689_v1, 5  ;;  %v1052_v21 = vor.u32 %v1051_v26, %v8298_v34  ;;  %v1613_v14 = vrot.slane %v1461_v52, 5 }
 0x11f   : > { %v1817_v50 = vpop.f32.mrf.mxu2  ;;  %v2705_v59 = vshll.u32 %v6569_v48, 16 }
 0x120   : > { %v1888_v8 = vadd.f32 %v1817_v50, %v1363_v19  ;;  %v2196_v5 = vpop.f32.mrf.mxu3  ;;  %v1041_v19 = vrot.slane %v1039_v24, 5  ;;  %v8302_v13 = vrot.slane %v2695_v29, 5  ;;  %v1460_v24 = vld [vmem:[%s7622_s12 + $0x9c] sm:$0xe]  ;;  %v1462_v50 = vld [vmem:[%s7622_s12 + $0xa4] sm:$0x1]  ;;  %v2692_v22 = vor.u32 %v2691_v7, %v2688_v38 }
 0x121   : > { %v1294_v47 = vpop.f32.mrf.mxu1  ;;  %v6333_v26 = vrot.slane %v1460_v24, 9  ;;  %v1616_v52 = vrot.slane %v1462_v50, 5  ;;  %v715_v38 = vld [vmem:[%s7622_s12 + $0xac] sm:$0xf]  ;;  %v1053_v7 = vrot.slane %v1052_v21, 4  ;;  %v1615_v48 = vrot.slane %v1613_v14, 4 }
 0x122   : > { %v2267_v51 = vadd.f32 %v2196_v5, %v1888_v8  ;;  %v1364_v32 = vadd.f32 %v1294_v47, %v8111_v2  ;;  %v2831_v2 = vunpack.c.l.b16 %v2684_v23  ;;  %v1042_v63 = vor.u32 %v1041_v19, %v1038_v44  ;;  %v714_v23 = vld [vmem:[%s7622_s12 + $0xa8] sm:$0xf] }
 0x123   : > { %v2944_v27 = vpop.f32.mrf.mxu0  ;;  %v1200_v8 = vpack.c.b16 %v1181_v42, %v1180_v20  ;;  %v1725_v5 = vpack.c.b16 %v1706_v55, %v1705_v25  ;;  %v2702_v12 = vor.u32 %v2701_v3, %v8302_v13  ;;  %v1060_v25 = vshrl.u32 %v714_v23, 16 }
 0x124   : > { %v2850_v47 = vpack.c.b16 %v2831_v2, %v2830_v40  ;;  %v1043_v19 = vrot.slane %v1042_v63, 4  ;;  %v8314_v42 = vadd.f32 %v8271_v49, %v2267_v51  ;;  %v1063_v3 = vshll.u32 %v714_v23, 16  ;;  %v7219_v2 = vld [vmem:[%s9706_s1 + $0x180] sm:$0xff] }
 0x125   : > { %v2703_v20 = vrot.slane %v2702_v12, 4  ;;  %v1069_v40 = vshll.u32 %v715_v38, 16  ;;  %v1614_v49 = vsel %vm7770_vm5, %v6333_v26, %v1613_v14  ;;  %v1073_v51 = vshrl.u32 %v715_v38, 16  ;;  %3826 = vmatpush.bf16.msra.mxu2 %v7219_v2 }
 0x126   : > { %v1048_v24 = vsel %vm7766_vm4, %v1043_v19, %v8298_v34  ;;  %v1058_v50 = vsel %vm7766_vm4, %v1053_v7, %v1057_v10  ;;  %v1065_v12 = vrot.slane %v1063_v3, 5 }
 0x127   : > { %v1819_v30 = vpop.f32.mrf.mxu2  ;;  %v1182_v38 = vunpack.c.l.b16 %v1048_v24  ;;  %v1183_v7 = vunpack.c.l.b16 %v1058_v50 }
 0x128   : > { %v1889_v62 = vadd.f32 %v1819_v30, %v1364_v32  ;;  %v2198_v1 = vpop.f32.mrf.mxu3  ;;  %v2693_v32 = vrot.slane %v2692_v22, 4  ;;  %v2707_v30 = vrot.slane %v2705_v59, 5  ;;  %v1617_v22 = vsel %vm7770_vm5, %v1615_v48, %v1616_v52  ;;  %v6571_v59 = vld [vmem:[%s7622_s12 + $0xb8] sm:$0xf]  ;;  %v7235_v52 = vld [vmem:[%s9706_s1 + $0x200] sm:$0xff] }
 0x129   : > { %v1297_v29 = vpop.f32.mrf.mxu1  ;;  %v2719_v19 = vshll.u32 %v6571_v59, 16  ;;  %v2723_v26 = vshrl.u32 %v6571_v59, 16  ;;  %v1707_v48 = vunpack.c.l.b16 %v1614_v49  ;;  %5094 = vmatpush.bf16.msra.mxu0 %v7235_v52  ;;  %v1201_v50 = vpack.c.b16 %v1183_v7, %v1182_v38 }
 0x12a   : > { %v2268_v15 = vadd.f32 %v2198_v1, %v1889_v62  ;;  %v1365_v63 = vadd.f32 %v1297_v29, %v7924_v6  ;;  %v2698_v14 = vsel %vm7766_vm4, %v2693_v32, %v8302_v13  ;;  %v2708_v1 = vsel %vm7766_vm4, %v2703_v20, %v2707_v30  ;;  %v7195_v13 = vld [vmem:[%s9706_s1 + $0x140] sm:$0xff] }
 0x12b   : > { %v8310_v44 = vpop.f32.mrf.mxu0  ;;  %v8342_v29 = vrot.slane %v1069_v40, 5  ;;  %v1708_v32 = vunpack.c.l.b16 %v1617_v22  ;;  %v2832_v30 = vunpack.c.l.b16 %v2698_v14  ;;  %v2833_v20 = vunpack.c.l.b16 %v2708_v1  ;;  %3447 = vmatpush.bf16.msra.mxu1 %v7195_v13  ;;  %v1464_v40 = vld [vmem:[%s7622_s12 + $0xac] sm:$0xf]  ;;  %v6572_v22 = vld [vmem:[%s7622_s12 + $0xbc] sm:$0x1] }
 0x12c   : > { %1336 = vmatmul.bf16.gmra.mxu1 %v1200_v8  ;;  %1861 = vmatmul.bf16.gmra.mxu2 %v1725_v5  ;;  %v8316_v55 = vadd.f32 %v2944_v27, %v2268_v15  ;;  %v6570_v27 = vld [vmem:[%s7622_s12 + $0xb4] sm:$0xf]  ;;  %v1062_v8 = vrot.slane %v1060_v25, 4  ;;  %v716_v5 = vld [vmem:[%s7622_s12 + $0xb0] sm:$0x1]  ;;  %v1075_v15 = vrot.slane %v1073_v51, 4 }
 0x12d   : > { %2240 = vmatmul.bf16.gmra.mxu3 %v7175_v57  ;;  %v2710_v57 = vshrl.u32 %v6570_v27, 16  ;;  %v1079_v3 = vshll.u32 %v716_v5, 16  ;;  %v2725_v49 = vrot.slane %v2723_v26, 4  ;;  %v2851_v14 = vpack.c.b16 %v2833_v20, %v2832_v30  ;;  %v7176_v5 = vld [vmem:[%s7622_s12 + $0xa8] sm:$0xff] }
 0x12e   : > { %2986 = vmatmul.bf16.gmra.mxu0 %v2850_v47  ;;  %v2713_v47 = vshll.u32 %v6570_v27, 16  ;;  %v1066_v25 = vor.u32 %v1065_v12, %v1062_v8  ;;  %v1076_v51 = vor.u32 %v1075_v15, %v8342_v29  ;;  %v1463_v27 = vld [vmem:[%s7622_s12 + $0xa8] sm:$0xe]  ;;  %v1620_v1 = vrot.slane %v1464_v40, 5  ;;  %v1465_v12 = vld [vmem:[%s7622_s12 + $0xb0] sm:$0x1] }
 0x12f   : > { %v1822_v21 = vpop.f32.mrf.mxu2  ;;  %v2712_v2 = vrot.slane %v2710_v57, 4  ;;  %v6334_v57 = vrot.slane %v1463_v27, 9  ;;  %v2729_v52 = vshll.u32 %v6572_v22, 16  ;;  %v1623_v7 = vrot.slane %v1465_v12, 5 }
 0x130   : > { %v1890_v6 = vadd.f32 %v1822_v21, %v1365_v63  ;;  %v2201_v62 = vpop.f32.mrf.mxu3  ;;  %v2715_v37 = vrot.slane %v2713_v47, 5  ;;  %v8354_v21 = vrot.slane %v2719_v19, 5  ;;  %v1077_v26 = vrot.slane %v1076_v51, 4 }
 0x131   : > { %v1299_v34 = vpop.f32.mrf.mxu1  ;;  %v1622_v38 = vrot.slane %v1620_v1, 4 }
 0x132   : > { %v2269_v10 = vadd.f32 %v2201_v62, %v1890_v6  ;;  %v1366_v63 = vadd.f32 %v1299_v34, %v7956_v45  ;;  %v1726_v62 = vpack.c.b16 %v1708_v32, %v1707_v48  ;;  %v1067_v45 = vrot.slane %v1066_v25, 4  ;;  %v717_v48 = vld [vmem:[%s7622_s12 + $0xb4] sm:$0xf]  ;;  %v718_v32 = vld [vmem:[%s7622_s12 + $0xb8] sm:$0xf] }
 0x133   : > { %v2949_v23 = vpop.f32.mrf.mxu0  ;;  %v1081_v34 = vrot.slane %v1079_v3, 5  ;;  %v2716_v47 = vor.u32 %v2715_v37, %v2712_v2  ;;  %v2726_v13 = vor.u32 %v2725_v49, %v8354_v21  ;;  %v1621_v3 = vsel %vm7770_vm5, %v6334_v57, %v1620_v1  ;;  %v6573_v2 = vld [vmem:[%s7622_s12 + $0xc0] sm:$0xf] }
 0x134   : > { %v8363_v30 = vadd.f32 %v8310_v44, %v2269_v10  ;;  %v1072_v25 = vsel %vm7766_vm4, %v1067_v45, %v8342_v29  ;;  %v2731_v10 = vrot.slane %v2729_v52, 5  ;;  %v1084_v27 = vshrl.u32 %v717_v48, 16 }
 0x135   : > { %v2717_v40 = vrot.slane %v2716_v47, 4  ;;  %v2727_v44 = vrot.slane %v2726_v13, 4  ;;  %v1087_v49 = vshll.u32 %v717_v48, 16  ;;  %v1184_v12 = vunpack.c.l.b16 %v1072_v25  ;;  %v719_v48 = vld [vmem:[%s7622_s12 + $0xbc] sm:$0x1] }
 0x137   : > { %v1824_v24 = vpop.f32.mrf.mxu2  ;;  %v2722_v1 = vsel %vm7766_vm4, %v2717_v40, %v8354_v21  ;;  %v2732_v47 = vsel %vm7766_vm4, %v2727_v44, %v2731_v10  ;;  %v1467_v40 = vld [vmem:[%s7622_s12 + $0xb8] sm:$0xf]  ;;  %v6575_v44 = vld [vmem:[%s7622_s12 + $0xc8] sm:$0x1] }
 0x138   : > { %v1891_v59 = vadd.f32 %v1824_v24, %v1366_v63  ;;  %v2203_v6 = vpop.f32.mrf.mxu3  ;;  %v1082_v63 = vsel %vm7766_vm4, %v1077_v26, %v1081_v34  ;;  %v1093_v24 = vshll.u32 %v718_v32, 16  ;;  %v1089_v26 = vrot.slane %v1087_v49, 5 }
 0x139   : > { %v1302_v8 = vpop.f32.mrf.mxu1  ;;  %v1185_v57 = vunpack.c.l.b16 %v1082_v63  ;;  %v1103_v49 = vshll.u32 %v719_v48, 16 }
 0x13a   : > { %v2270_v15 = vadd.f32 %v2203_v6, %v1891_v59  ;;  %v1367_v37 = vadd.f32 %v1302_v8, %v7983_v18  ;;  %v1624_v59 = vsel %vm7770_vm5, %v1622_v38, %v1623_v7  ;;  %v2734_v6 = vshrl.u32 %v6573_v2, 16 }
 0x13b   : > { %v2952_v19 = vpop.f32.mrf.mxu0  ;;  %v1709_v18 = vunpack.c.l.b16 %v1621_v3  ;;  %v8384_v13 = vrot.slane %v1093_v24, 5  ;;  %v1710_v38 = vunpack.c.l.b16 %v1624_v59  ;;  %v2834_v7 = vunpack.c.l.b16 %v2722_v1  ;;  %v7177_v1 = vld [vmem:[%s7622_s12 + $0xb4] sm:$0xff] }
 0x13c   : > { %1341 = vmatmul.bf16.gmra.mxu1 %v1201_v50  ;;  %1866 = vmatmul.bf16.gmra.mxu2 %v1726_v62  ;;  %v8365_v20 = vadd.f32 %v2949_v23, %v2270_v15  ;;  %v6574_v23 = vld [vmem:[%s7622_s12 + $0xc4] sm:$0xf]  ;;  %v1097_v50 = vshrl.u32 %v718_v32, 16  ;;  %v2737_v62 = vshll.u32 %v6573_v2, 16  ;;  %v1086_v15 = vrot.slane %v1084_v27, 4 }
 0x13d   : > { %2245 = vmatmul.bf16.gmra.mxu3 %v7176_v5  ;;  %v2743_v8 = vshll.u32 %v6574_v23, 16  ;;  %v2747_v5 = vshrl.u32 %v6574_v23, 16  ;;  %v2736_v21 = vrot.slane %v2734_v6, 4  ;;  %v2835_v3 = vunpack.c.l.b16 %v2732_v47 }
 0x13e   : > { %2991 = vmatmul.bf16.gmra.mxu0 %v2851_v14  ;;  %v1099_v52 = vrot.slane %v1097_v50, 4  ;;  %v2739_v32 = vrot.slane %v2737_v62, 5  ;;  %v1202_v23 = vpack.c.b16 %v1185_v57, %v1184_v12  ;;  %v1627_v59 = vrot.slane %v1467_v40, 5 }
 0x13f   : > { %v1827_v51 = vpop.f32.mrf.mxu2  ;;  %v2745_v2 = vrot.slane %v2743_v8, 5  ;;  %v2749_v25 = vrot.slane %v2747_v5, 4  ;;  %v1468_v8 = vld [vmem:[%s7622_s12 + $0xbc] sm:$0x1]  ;;  %v1105_v47 = vrot.slane %v1103_v49, 5 }
 0x140   : > { %v1892_v22 = vadd.f32 %v1827_v51, %v1367_v37  ;;  %v2206_v29 = vpop.f32.mrf.mxu3  ;;  %v1090_v51 = vor.u32 %v1089_v26, %v1086_v15  ;;  %v1100_v27 = vor.u32 %v1099_v52, %v8384_v13  ;;  %v2740_v6 = vor.u32 %v2739_v32, %v2736_v21  ;;  %v6880_v21 = vld [vmem:[%s7622_s12 + $0x18] sm:$0xf] }
 0x141   : > { %v1304_v14 = vpop.f32.mrf.mxu1  ;;  %v2750_v5 = vor.u32 %v2749_v25, %v2745_v2  ;;  %v1630_v26 = vrot.slane %v1468_v8, 5  ;;  %v4024_v49 = vshll.u32 %v6880_v21, 16 }
 0x142   : > { %v2271_v45 = vadd.f32 %v2206_v29, %v1892_v22  ;;  %v1368_v63 = vadd.f32 %v1304_v14, %v8010_v53  ;;  %v1727_v22 = vpack.c.b16 %v1710_v38, %v1709_v18  ;;  %v1466_v29 = vld [vmem:[%s7622_s12 + $0xb4] sm:$0xe]  ;;  %v2753_v53 = vshll.u32 %v6575_v44, 16 }
 0x143   : > { %v2954_v34 = vpop.f32.mrf.mxu0  ;;  %v1091_v12 = vrot.slane %v1090_v51, 4  ;;  %v1101_v57 = vrot.slane %v1100_v27, 4  ;;  %v6335_v15 = vrot.slane %v1466_v29, 9  ;;  %v1629_v18 = vrot.slane %v1627_v59, 4 }
 0x144   : > { %v8388_v37 = vadd.f32 %v2952_v19, %v2271_v45  ;;  %v2852_v19 = vpack.c.b16 %v2835_v3, %v2834_v7  ;;  %v2741_v52 = vrot.slane %v2740_v6, 4  ;;  %v2751_v7 = vrot.slane %v2750_v5, 4  ;;  %v6881_v3 = vld [vmem:[%s7622_s12 + $0x1c] sm:$0xf]  ;;  %v6625_v5 = vld [vmem:[%s7622_s12 + $0x10] sm:$0xf] }
 0x145   : > { %v2755_v48 = vrot.slane %v2753_v53, 5  ;;  %v1096_v25 = vsel %vm7766_vm4, %v1091_v12, %v8384_v13  ;;  %v4021_v51 = vshrl.u32 %v6880_v21, 16  ;;  %v3169_v21 = vrot.slane %v6625_v5, 5 }
 0x147   : > { %v1829_v10 = vpop.f32.mrf.mxu2  ;;  %v2756_v13 = vsel %vm7766_vm4, %v2751_v7, %v2755_v48  ;;  %v4023_v53 = vrot.slane %v4021_v51, 4  ;;  %v6976_v51 = vld [vmem:[%s7622_s12 + $0x18] sm:$0xe] }
 0x148   : > { %v1893_v24 = vadd.f32 %v1829_v10, %v1368_v63  ;;  %v2208_v50 = vpop.f32.mrf.mxu3  ;;  %v1106_v63 = vsel %vm7766_vm4, %v1101_v57, %v1105_v47  ;;  %v2837_v8 = vunpack.c.l.b16 %v2756_v13 }
 0x149   : > { %v1307_v62 = vpop.f32.mrf.mxu1  ;;  %v1187_v6 = vunpack.c.l.b16 %v1106_v63 }
 0x14a   : > { %v2272_v14 = vadd.f32 %v2208_v50, %v1893_v24  ;;  %v1369_v32 = vadd.f32 %v1307_v62, %v8027_v28  ;;  %v2746_v28 = vsel %vm7766_vm4, %v2741_v52, %v2745_v2  ;;  %v4030_v24 = vshll.u32 %v6881_v3, 16 }
 0x14b   : > { %v2957_v45 = vpop.f32.mrf.mxu0  ;;  %v4034_v50 = vshrl.u32 %v6881_v3, 16  ;;  %v7178_v3 = vld [vmem:[%s7622_s12 + $0xc0] sm:$0xff] }
 0x14c   : > { %1346 = vmatmul.bf16.gmra.mxu1 %v1202_v23  ;;  %1871 = vmatmul.bf16.gmra.mxu2 %v1727_v22  ;;  %v8396_v38 = vadd.f32 %v2954_v34, %v2272_v14  ;;  %v1628_v34 = vsel %vm7770_vm5, %v6335_v15, %v1627_v59  ;;  %v1631_v23 = vsel %vm7770_vm5, %v1629_v18, %v1630_v26  ;;  %v1186_v59 = vunpack.c.l.b16 %v1096_v25  ;;  %v6882_v15 = vld [vmem:[%s7622_s12 + $0x20] sm:$0x1]  ;;  %v6977_v26 = vld [vmem:[%s7622_s12 + $0x1c] sm:$0xf]  ;;  %v6624_v25 = vld [vmem:[%s7622_s12 + $0xc] sm:$0xe] }
 0x14d   : > { %2250 = vmatmul.bf16.gmra.mxu3 %v7177_v1  ;;  %v1711_v62 = vunpack.c.l.b16 %v1628_v34  ;;  %v1712_v1 = vunpack.c.l.b16 %v1631_v23  ;;  %v4026_v14 = vrot.slane %v4024_v49, 5  ;;  %v8417_v12 = vrot.slane %v4030_v24, 5  ;;  %v6626_v23 = vld [vmem:[%s7622_s12 + $0x14] sm:$0x1]  ;;  %v6883_v24 = vld [vmem:[%s7622_s12 + $0x24] sm:$0xf] }
 0x14e   : > { %2996 = vmatmul.bf16.gmra.mxu0 %v2852_v19  ;;  %v2836_v19 = vunpack.c.l.b16 %v2746_v28  ;;  %v4036_v57 = vrot.slane %v4034_v50, 4  ;;  %v4040_v34 = vshll.u32 %v6882_v15, 16  ;;  %v4816_v28 = vrot.slane %v6977_v26, 5  ;;  %v6884_v50 = vld [vmem:[%s7622_s12 + $0x28] sm:$0xf] }
 0x14f   : > { %v1832_v40 = vpop.f32.mrf.mxu2  ;;  %v1728_v48 = vpack.c.b16 %v1712_v1, %v1711_v62  ;;  %v4027_v63 = vor.u32 %v4026_v14, %v4023_v53  ;;  %v6672_v13 = vrot.slane %v6624_v25, 9  ;;  %v3171_v49 = vrot.slane %v3169_v21, 4 }
 0x150   : > { %v1894_v44 = vadd.f32 %v1832_v40, %v1369_v32  ;;  %v2211_v10 = vpop.f32.mrf.mxu3  ;;  %v2853_v40 = vpack.c.b16 %v2837_v8, %v2836_v19  ;;  %v4042_v1 = vrot.slane %v4040_v34, 5  ;;  %v7024_v8 = vrot.slane %v6976_v51, 9  ;;  %v6885_v51 = vld [vmem:[%s7622_s12 + $0x2c] sm:$0x1] }
 0x151   : > { %v1309_v27 = vpop.f32.mrf.mxu1  ;;  %v4818_v5 = vrot.slane %v4816_v28, 4  ;;  %v4054_v15 = vshll.u32 %v6884_v50, 16 }
 0x152   : > { %v2273_v22 = vadd.f32 %v2211_v10, %v1894_v44  ;;  %v1370_v47 = vadd.f32 %v1309_v27, %v8057_v9  ;;  %v4037_v9 = vor.u32 %v4036_v57, %v8417_v12  ;;  %v6978_v27 = vld [vmem:[%s7622_s12 + $0x20] sm:$0x1]  ;;  %v4045_v57 = vshrl.u32 %v6883_v24, 16 }
 0x153   : > { %v2959_v29 = vpop.f32.mrf.mxu0  ;;  %v4819_v53 = vrot.slane %v6978_v27, 5  ;;  %v8447_v34 = vrot.slane %v4054_v15, 5 }
 0x154   : > { %v8414_v2 = vadd.f32 %v2957_v45, %v2273_v22  ;;  %v1203_v45 = vpack.c.b16 %v1187_v6, %v1186_v59  ;;  %v3172_v59 = vrot.slane %v6626_v23, 5  ;;  %v4028_v6 = vrot.slane %v4027_v63, 4 }
 0x155   : > { %v4038_v62 = vrot.slane %v4037_v9, 4  ;;  %v4820_v25 = vsel %vm7770_vm5, %v4818_v5, %v4819_v53  ;;  %v4047_v63 = vrot.slane %v4045_v57, 4  ;;  %v4064_v5 = vshll.u32 %v6885_v51, 16  ;;  %v7203_v57 = vld [vmem:[%s7622_s12 + $0x18] sm:$0xff]  ;;  %v6886_v51 = vld [vmem:[%s7622_s12 + $0x30] sm:$0xf] }
 0x157   : > { %v1834_v18 = vpop.f32.mrf.mxu2 }
 0x158   : > { %v1895_v52 = vadd.f32 %v1834_v18, %v1370_v47  ;;  %v2213_v7 = vpop.f32.mrf.mxu3  ;;  %v4048_v47 = vshll.u32 %v6883_v24, 16  ;;  %v4058_v18 = vshrl.u32 %v6884_v50, 16  ;;  %v4976_v24 = vunpack.c.l.b16 %v4820_v25  ;;  %v6980_v50 = vld [vmem:[%s7622_s12 + $0x28] sm:$0xf] }
 0x159   : > { %v1312_v32 = vpop.f32.mrf.mxu1  ;;  %v4823_v15 = vrot.slane %v6980_v50, 5 }
 0x15a   : > { %v2274_v44 = vadd.f32 %v2213_v7, %v1895_v52  ;;  %v1371_v19 = vadd.f32 %v1312_v32, %v8086_v0  ;;  %v3170_v7 = vsel %vm7770_vm5, %v6672_v13, %v3169_v21  ;;  %v4033_v0 = vsel %vm7766_vm4, %v4028_v6, %v8417_v12  ;;  %v6628_v21 = vld [vmem:[%s7622_s12 + $0x1c] sm:$0xf] }
 0x15b   : > { %v2962_v10 = vpop.f32.mrf.mxu0  ;;  %v4050_v9 = vrot.slane %v4048_v47, 5  ;;  %v3328_v12 = vunpack.c.l.b16 %v3170_v7  ;;  %v4453_v13 = vunpack.c.l.b16 %v4033_v0  ;;  %v3176_v6 = vrot.slane %v6628_v21, 5  ;;  %v6629_v47 = vld [vmem:[%s7622_s12 + $0x20] sm:$0x1]  ;;  %v6979_v7 = vld [vmem:[%s7622_s12 + $0x24] sm:$0xe] }
 0x15c   : > { %1351 = vmatmul.bf16.gmra.mxu1 %v1203_v45  ;;  %1876 = vmatmul.bf16.gmra.mxu2 %v1728_v48  ;;  %v8430_v22 = vadd.f32 %v2959_v29, %v2274_v44  ;;  %v3173_v45 = vsel %vm7770_vm5, %v3171_v49, %v3172_v59  ;;  %v4060_v44 = vrot.slane %v4058_v18, 4  ;;  %v4066_v21 = vrot.slane %v4064_v5, 5 }
 0x15d   : > { %2255 = vmatmul.bf16.gmra.mxu3 %v7178_v3  ;;  %v4043_v3 = vsel %vm7766_vm4, %v4038_v62, %v4042_v1  ;;  %v3329_v23 = vunpack.c.l.b16 %v3173_v45  ;;  %v6627_v1 = vld [vmem:[%s7622_s12 + $0x18] sm:$0xe] }
 0x15e   : > { %3001 = vmatmul.bf16.gmra.mxu0 %v2853_v40  ;;  %v4817_v40 = vsel %vm7770_vm5, %v7024_v8, %v4816_v28  ;;  %v4454_v49 = vunpack.c.l.b16 %v4043_v3  ;;  %v4061_v8 = vor.u32 %v4060_v44, %v8447_v34  ;;  %v6673_v0 = vrot.slane %v6627_v1, 9 }
 0x15f   : > { %v1837_v14 = vpop.f32.mrf.mxu2  ;;  %v4975_v28 = vunpack.c.l.b16 %v4817_v40  ;;  %v3179_v3 = vrot.slane %v6629_v47, 5 }
 0x160   : > { %v1896_v26 = vadd.f32 %v1837_v14, %v1371_v19  ;;  %v2216_v29 = vpop.f32.mrf.mxu3  ;;  %v4051_v19 = vor.u32 %v4050_v9, %v4047_v63  ;;  %v3360_v14 = vpack.c.b16 %v3329_v23, %v3328_v12  ;;  %v4062_v25 = vrot.slane %v4061_v8, 4 }
 0x161   : > { %v1314_v52 = vpop.f32.mrf.mxu1  ;;  %v7025_v63 = vrot.slane %v6979_v7, 9  ;;  %v4825_v9 = vrot.slane %v4823_v15, 4  ;;  %v4072_v8 = vshll.u32 %v6886_v51, 16  ;;  %v6631_v7 = vld [vmem:[%s7622_s12 + $0x28] sm:$0xf] }
 0x162   : > { %v2275_v48 = vadd.f32 %v2216_v29, %v1896_v26  ;;  %v1372_v59 = vadd.f32 %v1314_v52, %v8109_v61  ;;  %v4485_v26 = vpack.c.b16 %v4454_v49, %v4453_v13  ;;  %v5007_v29 = vpack.c.b16 %v4976_v24, %v4975_v28  ;;  %v6981_v61 = vld [vmem:[%s7622_s12 + $0x2c] sm:$0x1]  ;;  %v6887_v13 = vld [vmem:[%s7622_s12 + $0x34] sm:$0xf] }
 0x163   : > { %v2964_v32 = vpop.f32.mrf.mxu0  ;;  %v4052_v40 = vrot.slane %v4051_v19, 4  ;;  %v4826_v44 = vrot.slane %v6981_v61, 5  ;;  %v3177_v28 = vsel %vm7770_vm5, %v6673_v0, %v3176_v6  ;;  %v4069_v19 = vshrl.u32 %v6886_v51, 16 }
 0x164   : > { %v8450_v27 = vadd.f32 %v2962_v10, %v2275_v48  ;;  %v3178_v48 = vrot.slane %v3176_v6, 4  ;;  %v4078_v5 = vshll.u32 %v6887_v13, 16  ;;  %v3183_v51 = vrot.slane %v6631_v7, 5 }
 0x165   : > { %v4057_v50 = vsel %vm7766_vm4, %v4052_v40, %v8447_v34  ;;  %v4827_v1 = vsel %vm7770_vm5, %v4825_v9, %v4826_v44  ;;  %v4071_v61 = vrot.slane %v4069_v19, 4  ;;  %v6888_v40 = vld [vmem:[%s7622_s12 + $0x38] sm:$0x1] }
 0x166   : > { %v3180_v24 = vsel %vm7770_vm5, %v3178_v48, %v3179_v3  ;;  %v4455_v47 = vunpack.c.l.b16 %v4057_v50  ;;  %v8481_v0 = vrot.slane %v4078_v5, 5  ;;  %v4088_v50 = vshll.u32 %v6888_v40, 16  ;;  %v6889_v5 = vld [vmem:[%s7622_s12 + $0x3c] sm:$0xf] }
 0x167   : > { %v1839_v62 = vpop.f32.mrf.mxu2 }
 0x168   : > { %v1897_v10 = vadd.f32 %v1839_v62, %v1372_v59  ;;  %v2218_v53 = vpop.f32.mrf.mxu3  ;;  %v4067_v62 = vsel %vm7766_vm4, %v4062_v25, %v4066_v21  ;;  %v6983_v21 = vld [vmem:[%s7622_s12 + $0x34] sm:$0xf] }
 0x169   : > { %v1317_v18 = vpop.f32.mrf.mxu1 }
 0x16a   : > { %v2276_v52 = vadd.f32 %v2218_v53, %v1897_v10  ;;  %v1373_v23 = vadd.f32 %v1317_v18, %v7945_v33  ;;  %v4824_v33 = vsel %vm7770_vm5, %v7025_v63, %v4823_v15  ;;  %v4082_v10 = vshrl.u32 %v6887_v13, 16 }
 0x16b   : > { %v2967_v45 = vpop.f32.mrf.mxu0  ;;  %v4456_v18 = vunpack.c.l.b16 %v4067_v62  ;;  %v4978_v15 = vunpack.c.l.b16 %v4827_v1  ;;  %v6632_v62 = vld [vmem:[%s7622_s12 + $0x2c] sm:$0x1]  ;;  %v6982_v1 = vld [vmem:[%s7622_s12 + $0x30] sm:$0xe] }
 0x16c   : > { %3448 = vmatmul.bf16.vlgmr.msra.gmra.mxu1 %v3360_v14  ;;  %3827 = vmatmul.bf16.vlgmr.msra.gmra.mxu2 %v7203_v57  ;;  %v8460_v12 = vadd.f32 %v2964_v32, %v2276_v52  ;;  %v3330_v14 = vunpack.c.l.b16 %v3177_v28  ;;  %v3331_v57 = vunpack.c.l.b16 %v3180_v24  ;;  %v4074_v52 = vrot.slane %v4072_v8, 5  ;;  %v6630_v28 = vld [vmem:[%s7622_s12 + $0x24] sm:$0xe] }
 0x16d   : > { %4573 = vmatmul.bf16.vlgmr.msra.gmra.mxu3 %v4485_v26  ;;  %v4977_v26 = vunpack.c.l.b16 %v4824_v33  ;;  %v4084_v48 = vrot.slane %v4082_v10, 4  ;;  %v4830_v33 = vrot.slane %v6983_v21, 5  ;;  %v6674_v19 = vrot.slane %v6630_v28, 9  ;;  %v6890_v10 = vld [vmem:[%s7622_s12 + $0x40] sm:$0xf] }
 0x16e   : > { %5095 = vmatmul.bf16.vlgmr.msra.gmra.mxu0 %v5007_v29  ;;  %v3361_v44 = vpack.c.b16 %v3331_v57, %v3330_v14  ;;  %v4075_v24 = vor.u32 %v4074_v52, %v4071_v61  ;;  %v3185_v8 = vrot.slane %v3183_v51, 4  ;;  %v3186_v14 = vrot.slane %v6632_v62, 5 }
 0x16f   : > { %v1842_v49 = vpop.f32.mrf.mxu2  ;;  %v4832_v7 = vrot.slane %v4830_v33, 4  ;;  %v4102_v40 = vshll.u32 %v6890_v10, 16 }
 0x170   : > { %v1898_v59 = vadd.f32 %v1842_v49, %v1373_v23  ;;  %v2221_v32 = vpop.f32.mrf.mxu3  ;;  %v4486_v23 = vpack.c.b16 %v4456_v18, %v4455_v47  ;;  %v5008_v49 = vpack.c.b16 %v4978_v15, %v4977_v26  ;;  %v4076_v57 = vrot.slane %v4075_v24, 4 }
 0x171   : > { %v1319_v6 = vpop.f32.mrf.mxu1  ;;  %v4090_v18 = vrot.slane %v4088_v50, 5  ;;  %v7026_v15 = vrot.slane %v6982_v1, 9  ;;  %v8511_v50 = vrot.slane %v4102_v40, 5  ;;  %v6891_v1 = vld [vmem:[%s7622_s12 + $0x44] sm:$0x1] }
 0x172   : > { %v2277_v53 = vadd.f32 %v2221_v32, %v1898_v59  ;;  %v1374_v3 = vadd.f32 %v1319_v6, %v7975_v4  ;;  %v4085_v4 = vor.u32 %v4084_v48, %v8481_v0  ;;  %v6984_v6 = vld [vmem:[%s7622_s12 + $0x38] sm:$0x1]  ;;  %v4093_v48 = vshrl.u32 %v6889_v5, 16 }
 0x173   : > { %v2969_v34 = vpop.f32.mrf.mxu0  ;;  %v4833_v61 = vrot.slane %v6984_v6, 5 }
 0x174   : > { %v8478_v29 = vadd.f32 %v2967_v45, %v2277_v53  ;;  %v7204_v45 = vld [vmem:[%s7622_s12 + $0x24] sm:$0xff]  ;;  %v4086_v47 = vrot.slane %v4085_v4, 4  ;;  %v4095_v24 = vrot.slane %v4093_v48, 4  ;;  %v7205_v48 = vld [vmem:[%s7622_s12 + $0x30] sm:$0xff] }
 0x175   : > { %v4834_v28 = vsel %vm7770_vm5, %v4832_v7, %v4833_v61  ;;  %v4112_v7 = vshll.u32 %v6891_v1, 16  ;;  %v6892_v1 = vld [vmem:[%s7622_s12 + $0x48] sm:$0xf] }
 0x177   : > { %v1844_v25 = vpop.f32.mrf.mxu2 }
 0x178   : > { %v1899_v63 = vadd.f32 %v1844_v25, %v1374_v3  ;;  %v2223_v9 = vpop.f32.mrf.mxu3  ;;  %v4096_v3 = vshll.u32 %v6889_v5, 16  ;;  %v4106_v25 = vshrl.u32 %v6890_v10, 16  ;;  %v4980_v5 = vunpack.c.l.b16 %v4834_v28  ;;  %v6986_v10 = vld [vmem:[%s7622_s12 + $0x40] sm:$0xf] }
 0x179   : > { %v1322_v13 = vpop.f32.mrf.mxu1  ;;  %v4837_v40 = vrot.slane %v6986_v10, 5 }
 0x17a   : > { %v2278_v59 = vadd.f32 %v2223_v9, %v1899_v63  ;;  %v1375_v26 = vadd.f32 %v1322_v13, %v7997_v41  ;;  %v3184_v9 = vsel %vm7770_vm5, %v6674_v19, %v3183_v51  ;;  %v4081_v41 = vsel %vm7766_vm4, %v4076_v57, %v8481_v0  ;;  %v6634_v51 = vld [vmem:[%s7622_s12 + $0x34] sm:$0xf] }
 0x17b   : > { %v2972_v32 = vpop.f32.mrf.mxu0  ;;  %v4091_v13 = vsel %vm7766_vm4, %v4086_v47, %v4090_v18  ;;  %v4098_v4 = vrot.slane %v4096_v3, 5  ;;  %v3332_v0 = vunpack.c.l.b16 %v3184_v9  ;;  %v4457_v19 = vunpack.c.l.b16 %v4081_v41  ;;  %v6633_v18 = vld [vmem:[%s7622_s12 + $0x30] sm:$0xe]  ;;  %v6635_v3 = vld [vmem:[%s7622_s12 + $0x38] sm:$0x1] }
 0x17c   : > { %3453 = vmatmul.bf16.gmra.mxu1 %v3361_v44  ;;  %3832 = vmatmul.bf16.gmra.mxu2 %v7204_v45  ;;  %v8494_v53 = vadd.f32 %v2969_v34, %v2278_v59  ;;  %v3187_v44 = vsel %vm7770_vm5, %v3185_v8, %v3186_v14  ;;  %v4108_v59 = vrot.slane %v4106_v25, 4  ;;  %v4458_v8 = vunpack.c.l.b16 %v4091_v13  ;;  %v6985_v9 = vld [vmem:[%s7622_s12 + $0x3c] sm:$0xe] }
 0x17d   : > { %4578 = vmatmul.bf16.gmra.mxu3 %v4486_v23  ;;  %v3333_v62 = vunpack.c.l.b16 %v3187_v44  ;;  %v3190_v57 = vrot.slane %v6634_v51, 5  ;;  %v6675_v41 = vrot.slane %v6633_v18, 9  ;;  %v3193_v13 = vrot.slane %v6635_v3, 5 }
 0x17e   : > { %5100 = vmatmul.bf16.gmra.mxu0 %v5008_v49  ;;  %v4831_v49 = vsel %vm7770_vm5, %v7026_v15, %v4830_v33  ;;  %v4109_v15 = vor.u32 %v4108_v59, %v8511_v50  ;;  %v4114_v51 = vrot.slane %v4112_v7, 5 }
 0x17f   : > { %v1847_v52 = vpop.f32.mrf.mxu2  ;;  %v4979_v33 = vunpack.c.l.b16 %v4831_v49 }
 0x180   : > { %v1900_v21 = vadd.f32 %v1847_v52, %v1375_v26  ;;  %v2226_v34 = vpop.f32.mrf.mxu3  ;;  %v4099_v26 = vor.u32 %v4098_v4, %v4095_v24  ;;  %v3362_v52 = vpack.c.b16 %v3333_v62, %v3332_v0  ;;  %v4110_v28 = vrot.slane %v4109_v15, 4 }
 0x181   : > { %v1324_v63 = vpop.f32.mrf.mxu1  ;;  %v7027_v24 = vrot.slane %v6985_v9, 9  ;;  %v4839_v4 = vrot.slane %v4837_v40, 4  ;;  %v4120_v15 = vshll.u32 %v6892_v1, 16  ;;  %v6637_v9 = vld [vmem:[%s7622_s12 + $0x40] sm:$0xf] }
 0x182   : > { %v2279_v45 = vadd.f32 %v2226_v34, %v1900_v21  ;;  %v1376_v14 = vadd.f32 %v1324_v63, %v8021_v16  ;;  %v4487_v21 = vpack.c.b16 %v4458_v8, %v4457_v19  ;;  %v5009_v34 = vpack.c.b16 %v4980_v5, %v4979_v33  ;;  %v6987_v16 = vld [vmem:[%s7622_s12 + $0x44] sm:$0x1]  ;;  %v6893_v19 = vld [vmem:[%s7622_s12 + $0x4c] sm:$0xf] }
 0x183   : > { %v2974_v23 = vpop.f32.mrf.mxu0  ;;  %v4100_v49 = vrot.slane %v4099_v26, 4  ;;  %v4840_v59 = vrot.slane %v6987_v16, 5  ;;  %v3191_v33 = vsel %vm7770_vm5, %v6675_v41, %v3190_v57  ;;  %v4117_v26 = vshrl.u32 %v6892_v1, 16 }
 0x184   : > { %v8514_v6 = vadd.f32 %v2972_v32, %v2279_v45  ;;  %v3192_v45 = vrot.slane %v3190_v57, 4  ;;  %v4126_v7 = vshll.u32 %v6893_v19, 16  ;;  %v3197_v1 = vrot.slane %v6637_v9, 5 }
 0x185   : > { %v4105_v10 = vsel %vm7766_vm4, %v4100_v49, %v8511_v50  ;;  %v4841_v18 = vsel %vm7770_vm5, %v4839_v4, %v4840_v59  ;;  %v4119_v16 = vrot.slane %v4117_v26, 4  ;;  %v6894_v49 = vld [vmem:[%s7622_s12 + $0x50] sm:$0x1] }
 0x186   : > { %v3194_v5 = vsel %vm7770_vm5, %v3192_v45, %v3193_v13  ;;  %v4459_v3 = vunpack.c.l.b16 %v4105_v10  ;;  %v8545_v41 = vrot.slane %v4126_v7, 5  ;;  %v4136_v10 = vshll.u32 %v6894_v49, 16  ;;  %v6895_v7 = vld [vmem:[%s7622_s12 + $0x54] sm:$0xf] }
 0x187   : > { %v1849_v47 = vpop.f32.mrf.mxu2 }
 0x188   : > { %v1901_v32 = vadd.f32 %v1849_v47, %v1376_v14  ;;  %v2228_v61 = vpop.f32.mrf.mxu3  ;;  %v4115_v47 = vsel %vm7766_vm4, %v4110_v28, %v4114_v51  ;;  %v6989_v51 = vld [vmem:[%s7622_s12 + $0x4c] sm:$0xf] }
 0x189   : > { %v1327_v25 = vpop.f32.mrf.mxu1 }
 0x18a   : > { %v2280_v63 = vadd.f32 %v2228_v61, %v1901_v32  ;;  %v1377_v62 = vadd.f32 %v1327_v25, %v8042_v60  ;;  %v4838_v60 = vsel %vm7770_vm5, %v7027_v24, %v4837_v40  ;;  %v4130_v32 = vshrl.u32 %v6893_v19, 16 }
 0x18b   : > { %v2977_v44 = vpop.f32.mrf.mxu0  ;;  %v4460_v25 = vunpack.c.l.b16 %v4115_v47  ;;  %v4982_v40 = vunpack.c.l.b16 %v4841_v18  ;;  %v6638_v47 = vld [vmem:[%s7622_s12 + $0x44] sm:$0x1]  ;;  %v6988_v18 = vld [vmem:[%s7622_s12 + $0x48] sm:$0xe] }
 0x18c   : > { %3458 = vmatmul.bf16.gmra.mxu1 %v3362_v52  ;;  %3837 = vmatmul.bf16.gmra.mxu2 %v7205_v48  ;;  %v8524_v0 = vadd.f32 %v2974_v23, %v2280_v63  ;;  %v3334_v52 = vunpack.c.l.b16 %v3191_v33  ;;  %v3335_v48 = vunpack.c.l.b16 %v3194_v5  ;;  %v4122_v63 = vrot.slane %v4120_v15, 5  ;;  %v6636_v33 = vld [vmem:[%s7622_s12 + $0x3c] sm:$0xe] }
 0x18d   : > { %4583 = vmatmul.bf16.gmra.mxu3 %v4487_v21  ;;  %v4981_v21 = vunpack.c.l.b16 %v4838_v60  ;;  %v4132_v45 = vrot.slane %v4130_v32, 4  ;;  %v4844_v60 = vrot.slane %v6989_v51, 5  ;;  %v6676_v26 = vrot.slane %v6636_v33, 9  ;;  %v6896_v32 = vld [vmem:[%s7622_s12 + $0x58] sm:$0xf] }
 0x18e   : > { %5105 = vmatmul.bf16.gmra.mxu0 %v5009_v34  ;;  %v3363_v59 = vpack.c.b16 %v3335_v48, %v3334_v52  ;;  %v4123_v5 = vor.u32 %v4122_v63, %v4119_v16  ;;  %v3199_v15 = vrot.slane %v3197_v1, 4  ;;  %v3200_v52 = vrot.slane %v6638_v47, 5 }
 0x18f   : > { %v1852_v8 = vpop.f32.mrf.mxu2  ;;  %v4846_v9 = vrot.slane %v4844_v60, 4  ;;  %v4150_v49 = vshll.u32 %v6896_v32, 16 }
 0x190   : > { %v1902_v14 = vadd.f32 %v1852_v8, %v1377_v62  ;;  %v2231_v23 = vpop.f32.mrf.mxu3  ;;  %v4488_v62 = vpack.c.b16 %v4460_v25, %v4459_v3  ;;  %v5010_v8 = vpack.c.b16 %v4982_v40, %v4981_v21  ;;  %v4124_v48 = vrot.slane %v4123_v5, 4 }
 0x191   : > { %v1329_v57 = vpop.f32.mrf.mxu1  ;;  %v4138_v25 = vrot.slane %v4136_v10, 5  ;;  %v7028_v40 = vrot.slane %v6988_v18, 9  ;;  %v8575_v10 = vrot.slane %v4150_v49, 5  ;;  %v6897_v18 = vld [vmem:[%s7622_s12 + $0x5c] sm:$0x1] }
 0x192   : > { %v2281_v61 = vadd.f32 %v2231_v23, %v1902_v14  ;;  %v1378_v13 = vadd.f32 %v1329_v57, %v8080_v54  ;;  %v4133_v54 = vor.u32 %v4132_v45, %v8545_v41  ;;  %v6990_v57 = vld [vmem:[%s7622_s12 + $0x50] sm:$0x1]  ;;  %v4141_v45 = vshrl.u32 %v6895_v7, 16 }
 0x193   : > { %v2979_v50 = vpop.f32.mrf.mxu0  ;;  %v4847_v16 = vrot.slane %v6990_v57, 5 }
 0x194   : > { %v8542_v34 = vadd.f32 %v2977_v44, %v2281_v61  ;;  %v7206_v44 = vld [vmem:[%s7622_s12 + $0x3c] sm:$0xff]  ;;  %v4134_v3 = vrot.slane %v4133_v54, 4  ;;  %v4143_v5 = vrot.slane %v4141_v45, 4  ;;  %v7207_v45 = vld [vmem:[%s7622_s12 + $0x48] sm:$0xff] }
 0x195   : > { %v4848_v33 = vsel %vm7770_vm5, %v4846_v9, %v4847_v16  ;;  %v4160_v9 = vshll.u32 %v6897_v18, 16  ;;  %v6898_v18 = vld [vmem:[%s7622_s12 + $0x60] sm:$0xf] }
 0x197   : > { %v1854_v28 = vpop.f32.mrf.mxu2 }
 0x198   : > { %v1903_v24 = vadd.f32 %v1854_v28, %v1378_v13  ;;  %v2233_v4 = vpop.f32.mrf.mxu3  ;;  %v4144_v13 = vshll.u32 %v6895_v7, 16  ;;  %v4154_v28 = vshrl.u32 %v6896_v32, 16  ;;  %v4984_v7 = vunpack.c.l.b16 %v4848_v33  ;;  %v6992_v32 = vld [vmem:[%s7622_s12 + $0x58] sm:$0xf] }
 0x199   : > { %v1332_v19 = vpop.f32.mrf.mxu1  ;;  %v4851_v49 = vrot.slane %v6992_v32, 5 }
 0x19a   : > { %v2282_v14 = vadd.f32 %v2233_v4, %v1903_v24  ;;  %v1379_v21 = vadd.f32 %v1332_v19, %v8101_v43  ;;  %v3198_v4 = vsel %vm7770_vm5, %v6676_v26, %v3197_v1  ;;  %v4129_v43 = vsel %vm7766_vm4, %v4124_v48, %v8545_v41  ;;  %v6640_v1 = vld [vmem:[%s7622_s12 + $0x4c] sm:$0xf] }
 0x19b   : > { %v2982_v23 = vpop.f32.mrf.mxu0  ;;  %v4139_v19 = vsel %vm7766_vm4, %v4134_v3, %v4138_v25  ;;  %v4146_v54 = vrot.slane %v4144_v13, 5  ;;  %v3336_v41 = vunpack.c.l.b16 %v3198_v4  ;;  %v4461_v26 = vunpack.c.l.b16 %v4129_v43  ;;  %v6639_v25 = vld [vmem:[%s7622_s12 + $0x48] sm:$0xe]  ;;  %v6641_v13 = vld [vmem:[%s7622_s12 + $0x50] sm:$0x1] }
 0x19c   : > { %3463 = vmatmul.bf16.gmra.mxu1 %v3363_v59  ;;  %3842 = vmatmul.bf16.gmra.mxu2 %v7206_v44  ;;  %v8558_v61 = vadd.f32 %v2979_v50, %v2282_v14  ;;  %v3201_v59 = vsel %vm7770_vm5, %v3199_v15, %v3200_v52  ;;  %v4156_v14 = vrot.slane %v4154_v28, 4  ;;  %v4462_v15 = vunpack.c.l.b16 %v4139_v19  ;;  %v6991_v4 = vld [vmem:[%s7622_s12 + $0x54] sm:$0xe] }
 0x19d   : > { %4588 = vmatmul.bf16.gmra.mxu3 %v4488_v62  ;;  %v3337_v47 = vunpack.c.l.b16 %v3201_v59  ;;  %v3204_v48 = vrot.slane %v6640_v1, 5  ;;  %v6677_v43 = vrot.slane %v6639_v25, 9  ;;  %v3207_v19 = vrot.slane %v6641_v13, 5 }
 0x19e   : > { %5110 = vmatmul.bf16.gmra.mxu0 %v5010_v8  ;;  %v4845_v8 = vsel %vm7770_vm5, %v7028_v40, %v4844_v60  ;;  %v4157_v40 = vor.u32 %v4156_v14, %v8575_v10  ;;  %v4162_v1 = vrot.slane %v4160_v9, 5 }
 0x19f   : > { %v1857_v63 = vpop.f32.mrf.mxu2  ;;  %v4983_v60 = vunpack.c.l.b16 %v4845_v8 }
 0x1a0   : > { %v1904_v51 = vadd.f32 %v1857_v63, %v1379_v21  ;;  %v2236_v50 = vpop.f32.mrf.mxu3  ;;  %v4147_v21 = vor.u32 %v4146_v54, %v4143_v5  ;;  %v3364_v63 = vpack.c.b16 %v3337_v47, %v3336_v41  ;;  %v4158_v33 = vrot.slane %v4157_v40, 4 }
 0x1a1   : > { %v1334_v24 = vpop.f32.mrf.mxu1  ;;  %v7029_v5 = vrot.slane %v6991_v4, 9  ;;  %v4853_v54 = vrot.slane %v4851_v49, 4  ;;  %v4168_v40 = vshll.u32 %v6898_v18, 16  ;;  %v6643_v4 = vld [vmem:[%s7622_s12 + $0x58] sm:$0xf] }
 0x1a2   : > { %v2283_v44 = vadd.f32 %v2236_v50, %v1904_v51  ;;  %v1380_v52 = vadd.f32 %v1334_v24, %v8125_v35  ;;  %v4489_v51 = vpack.c.b16 %v4462_v15, %v4461_v26  ;;  %v5011_v50 = vpack.c.b16 %v4984_v7, %v4983_v60  ;;  %v6993_v35 = vld [vmem:[%s7622_s12 + $0x5c] sm:$0x1]  ;;  %v6899_v26 = vld [vmem:[%s7622_s12 + $0x64] sm:$0xf] }
 0x1a3   : > { %v2984_v62 = vpop.f32.mrf.mxu0  ;;  %v4148_v8 = vrot.slane %v4147_v21, 4  ;;  %v4854_v14 = vrot.slane %v6993_v35, 5  ;;  %v3205_v60 = vsel %vm7770_vm5, %v6677_v43, %v3204_v48  ;;  %v4165_v21 = vshrl.u32 %v6898_v18, 16 }
 0x1a4   : > { %v8578_v57 = vadd.f32 %v2982_v23, %v2283_v44  ;;  %v3206_v44 = vrot.slane %v3204_v48, 4  ;;  %v4174_v9 = vshll.u32 %v6899_v26, 16  ;;  %v3211_v18 = vrot.slane %v6643_v4, 5 }
 0x1a5   : > { %v4153_v32 = vsel %vm7766_vm4, %v4148_v8, %v8575_v10  ;;  %v4855_v25 = vsel %vm7770_vm5, %v4853_v54, %v4854_v14  ;;  %v4167_v35 = vrot.slane %v4165_v21, 4  ;;  %v6900_v8 = vld [vmem:[%s7622_s12 + $0x68] sm:$0x1] }
 0x1a6   : > { %v3208_v7 = vsel %vm7770_vm5, %v3206_v44, %v3207_v19  ;;  %v4463_v13 = vunpack.c.l.b16 %v4153_v32  ;;  %v8609_v43 = vrot.slane %v4174_v9, 5  ;;  %v6901_v9 = vld [vmem:[%s7622_s12 + $0x6c] sm:$0xf] }
 0x1a7   : > { %v1859_v3 = vpop.f32.mrf.mxu2 }
 0x1a8   : > { %v1905_v23 = vadd.f32 %v1859_v3, %v1380_v52  ;;  %v2238_v16 = vpop.f32.mrf.mxu3  ;;  %v4163_v3 = vsel %vm7766_vm4, %v4158_v33, %v4162_v1  ;;  %v6995_v1 = vld [vmem:[%s7622_s12 + $0x64] sm:$0xf] }
 0x1a9   : > { %v1337_v28 = vpop.f32.mrf.mxu1 }
 0x1aa   : > { %v2284_v24 = vadd.f32 %v2238_v16, %v1905_v23  ;;  %v1381_v47 = vadd.f32 %v1337_v28, %v7951_v39  ;;  %v4852_v39 = vsel %vm7770_vm5, %v7029_v5, %v4851_v49  ;;  %v4178_v23 = vshrl.u32 %v6899_v26, 16 }
 0x1ab   : > { %v2987_v59 = vpop.f32.mrf.mxu0  ;;  %v4464_v28 = vunpack.c.l.b16 %v4163_v3  ;;  %v4986_v49 = vunpack.c.l.b16 %v4855_v25  ;;  %v6644_v3 = vld [vmem:[%s7622_s12 + $0x5c] sm:$0x1]  ;;  %v6994_v25 = vld [vmem:[%s7622_s12 + $0x60] sm:$0xe] }
 0x1ac   : > { %3468 = vmatmul.bf16.gmra.mxu1 %v3364_v63  ;;  %3847 = vmatmul.bf16.gmra.mxu2 %v7207_v45  ;;  %v8588_v41 = vadd.f32 %v2984_v62, %v2284_v24  ;;  %v3338_v63 = vunpack.c.l.b16 %v3205_v60  ;;  %v3339_v45 = vunpack.c.l.b16 %v3208_v7  ;;  %v4170_v24 = vrot.slane %v4168_v40, 5  ;;  %v6642_v60 = vld [vmem:[%s7622_s12 + $0x54] sm:$0xe] }
 0x1ad   : > { %4593 = vmatmul.bf16.gmra.mxu3 %v4489_v51  ;;  %v4985_v51 = vunpack.c.l.b16 %v4852_v39  ;;  %v4180_v44 = vrot.slane %v4178_v23, 4  ;;  %v4858_v39 = vrot.slane %v6995_v1, 5  ;;  %v6678_v21 = vrot.slane %v6642_v60, 9 }
 0x1ae   : > { %5115 = vmatmul.bf16.gmra.mxu0 %v5011_v50  ;;  %v3365_v14 = vpack.c.b16 %v3339_v45, %v3338_v63  ;;  %v4171_v7 = vor.u32 %v4170_v24, %v4167_v35  ;;  %v3213_v40 = vrot.slane %v3211_v18, 4  ;;  %v7030_v4 = vrot.slane %v6994_v25, 9  ;;  %v6646_v25 = vld [vmem:[%s7622_s12 + $0x64] sm:$0xf] }
 0x1af   : > { %v1862_v15 = vpop.f32.mrf.mxu2  ;;  %v4181_v32 = vor.u32 %v4180_v44, %v8609_v43  ;;  %v4860_v35 = vrot.slane %v4858_v39, 4 }
 0x1b0   : > { %v1906_v52 = vadd.f32 %v1862_v15, %v1381_v47  ;;  %v2241_v62 = vpop.f32.mrf.mxu3  ;;  %v4490_v47 = vpack.c.b16 %v4464_v28, %v4463_v13  ;;  %v5012_v15 = vpack.c.b16 %v4986_v49, %v4985_v51  ;;  %v4172_v63 = vrot.slane %v4171_v7, 4  ;;  %v6902_v28 = vld [vmem:[%s7622_s12 + $0x70] sm:$0xf]  ;;  %v9723_v51 = vld [vmem:[#allocation3_spill] sm:$0xff] }
 0x1b1   : > { %v1339_v48 = vpop.f32.mrf.mxu1  ;;  %v4182_v45 = vrot.slane %v4181_v32, 4  ;;  %v4859_v7 = vsel %vm7770_vm5, %v7030_v4, %v4858_v39 }
 0x1b2   : > { %v2285_v16 = vadd.f32 %v2241_v62, %v1906_v52  ;;  %v1382_v19 = vadd.f32 %v1339_v48, %v7979_v11  ;;  %v4184_v11 = vshll.u32 %v6900_v8, 16  ;;  %v6996_v48 = vld [vmem:[%s7622_s12 + $0x68] sm:$0x1]  ;;  %v4192_v8 = vshll.u32 %v6901_v9, 16 }
 0x1b3   : > { %v2989_v10 = vpop.f32.mrf.mxu0  ;;  %v4861_v24 = vrot.slane %v6996_v48, 5  ;;  %v4987_v39 = vunpack.c.l.b16 %v4859_v7  ;;  %v6904_v7 = vld [vmem:[%s7622_s12 + $0x78] sm:$0xf] }
 0x1b4   : > { %v8606_v50 = vadd.f32 %v2987_v59, %v2285_v16  ;;  %v7208_v59 = vld [vmem:[%s7622_s12 + $0x54] sm:$0xff]  ;;  %v3214_v16 = vrot.slane %v6644_v3, 5  ;;  %v4186_v13 = vrot.slane %v4184_v11, 5 }
 0x1b6   : > { %v4187_v60 = vsel %vm7766_vm4, %v4182_v45, %v4186_v13  ;;  %v9725_v45 = vld [vmem:[#allocation4_spill] sm:$0xff] }
 0x1b7   : > { %v1864_v33 = vpop.f32.mrf.mxu2 }
 0x1b8   : > { %v1907_v5 = vadd.f32 %v1864_v33, %v1382_v19  ;;  %v2243_v54 = vpop.f32.mrf.mxu3  ;;  %v4189_v19 = vshrl.u32 %v6901_v9, 16  ;;  %v4466_v9 = vunpack.c.l.b16 %v4187_v60  ;;  %v6999_v60 = vld [vmem:[%s7622_s12 + $0x74] sm:$0x1] }
 0x1b9   : > { %v1342_v26 = vpop.f32.mrf.mxu1 }
 0x1ba   : > { %v2286_v52 = vadd.f32 %v2243_v54, %v1907_v5  ;;  %v1383_v49 = vadd.f32 %v1342_v26, %v9723_v51  ;;  %v4198_v5 = vshll.u32 %v6902_v28, 16  ;;  %v4202_v54 = vshrl.u32 %v6902_v28, 16  ;;  %v6998_v28 = vld [vmem:[%s7622_s12 + $0x70] sm:$0xf] }
 0x1bb   : > { %v2992_v62 = vpop.f32.mrf.mxu0  ;;  %v4191_v11 = vrot.slane %v4189_v19, 4  ;;  %v6645_v19 = vld [vmem:[%s7622_s12 + $0x60] sm:$0xe] }
 0x1bc   : > { %3473 = vmatmul.bf16.gmra.mxu1 %v3365_v14  ;;  %3852 = vmatmul.bf16.gmra.mxu2 %v7208_v59  ;;  %v8621_v23 = vadd.f32 %v2989_v10, %v2286_v52  ;;  %v3212_v10 = vsel %vm7770_vm5, %v6678_v21, %v3211_v18  ;;  %v3215_v59 = vsel %vm7770_vm5, %v3213_v40, %v3214_v16  ;;  %v4194_v52 = vrot.slane %v4192_v8, 5  ;;  %v6647_v8 = vld [vmem:[%s7622_s12 + $0x68] sm:$0x1] }
 0x1bd   : > { %4598 = vmatmul.bf16.gmra.mxu3 %v4490_v47  ;;  %v4177_v47 = vsel %vm7766_vm4, %v4172_v63, %v8609_v43  ;;  %v4862_v18 = vsel %vm7770_vm5, %v4860_v35, %v4861_v24  ;;  %v3340_v32 = vunpack.c.l.b16 %v3212_v10  ;;  %v3341_v3 = vunpack.c.l.b16 %v3215_v59  ;;  %v6903_v63 = vld [vmem:[%s7622_s12 + $0x74] sm:$0x1] }
 0x1be   : > { %9722 = vst [vmem:[#allocation11_spill] sm:$0xff] %v8621_v23  ;;  %5120 = vmatmul.bf16.gmra.mxu0 %v5012_v15  ;;  %v8639_v48 = vrot.slane %v4198_v5, 5  ;;  %v4204_v43 = vrot.slane %v4202_v54, 4  ;;  %v4465_v40 = vunpack.c.l.b16 %v4177_v47  ;;  %v4988_v16 = vunpack.c.l.b16 %v4862_v18 }
 0x1bf   : > { %v1867_v44 = vpop.f32.mrf.mxu2  ;;  %v4195_v4 = vor.u32 %v4194_v52, %v4191_v11  ;;  %v4865_v59 = vrot.slane %v6998_v28, 5  ;;  %v6679_v18 = vrot.slane %v6645_v19, 9  ;;  %v3221_v52 = vrot.slane %v6647_v8, 5 }
 0x1c0   : > { %v1908_v33 = vadd.f32 %v1867_v44, %v1383_v49  ;;  %v2246_v1 = vpop.f32.mrf.mxu3  ;;  %v3218_v49 = vrot.slane %v6646_v25, 5  ;;  %v3366_v44 = vpack.c.b16 %v3341_v3, %v3340_v32  ;;  %v4491_v5 = vpack.c.b16 %v4466_v9, %v4465_v40  ;;  %v6905_v3 = vld [vmem:[%s7622_s12 + $0x7c] sm:$0xf] }
 0x1c1   : > { %v1344_v14 = vpop.f32.mrf.mxu1  ;;  %v5013_v54 = vpack.c.b16 %v4988_v16, %v4987_v39  ;;  %v4196_v32 = vrot.slane %v4195_v4, 4  ;;  %v4867_v40 = vrot.slane %v4865_v59, 4  ;;  %v4868_v9 = vrot.slane %v6999_v60, 5 }
 0x1c2   : > { %v2287_v26 = vadd.f32 %v2246_v1, %v1908_v33  ;;  %v1384_v13 = vadd.f32 %v1344_v14, %v9725_v45  ;;  %v4205_v33 = vor.u32 %v4204_v43, %v8639_v48  ;;  %v4208_v1 = vshll.u32 %v6903_v63, 16  ;;  %v6997_v14 = vld [vmem:[%s7622_s12 + $0x6c] sm:$0xe] }
 0x1c3   : > { %v2994_v15 = vpop.f32.mrf.mxu0  ;;  %v3220_v11 = vrot.slane %v3218_v49, 4  ;;  %v7031_v43 = vrot.slane %v6997_v14, 9  ;;  %v4213_v39 = vshrl.u32 %v6904_v7, 16  ;;  %v4216_v16 = vshll.u32 %v6904_v7, 16 }
 0x1c4   : > { %v8641_v21 = vadd.f32 %v2992_v62, %v2287_v26  ;;  %v7209_v62 = vld [vmem:[%s7622_s12 + $0x60] sm:$0xff]  ;;  %v4206_v25 = vrot.slane %v4205_v33, 4  ;;  %v4210_v45 = vrot.slane %v4208_v1, 5  ;;  %v4201_v19 = vsel %vm7766_vm4, %v4196_v32, %v8639_v48 }
 0x1c5   : > { %v4866_v1 = vsel %vm7770_vm5, %v7031_v43, %v4865_v59 }
 0x1c6   : > { %9724 = vst [vmem:[#allocation3_spill] sm:$0xff] %v8641_v21  ;;  %v4211_v8 = vsel %vm7766_vm4, %v4206_v25, %v4210_v45  ;;  %v4989_v32 = vunpack.c.l.b16 %v4866_v1  ;;  %v7001_v25 = vld [vmem:[%s7622_s12 + $0x7c] sm:$0xf]  ;;  %v7002_v1 = vld [vmem:[%s7622_s12 + $0x80] sm:$0x1] }
 0x1c7   : > { %v1869_v51 = vpop.f32.mrf.mxu2  ;;  %v4468_v59 = vunpack.c.l.b16 %v4211_v8 }
 0x1c8   : > { %v1909_v35 = vadd.f32 %v1869_v51, %v1384_v13  ;;  %v2248_v24 = vpop.f32.mrf.mxu3  ;;  %v9727_v13 = vld [vmem:[#allocation5_spill] sm:$0xff]  ;;  %v4222_v51 = vshll.u32 %v6905_v3, 16 }
 0x1c9   : > { %v1347_v10 = vpop.f32.mrf.mxu1 }
 0x1ca   : > { %v2288_v47 = vadd.f32 %v2248_v24, %v1909_v35  ;;  %v1385_v28 = vadd.f32 %v1347_v10, %v9727_v13  ;;  %v4226_v35 = vshrl.u32 %v6905_v3, 16  ;;  %v3219_v24 = vsel %vm7770_vm5, %v6679_v18, %v3218_v49  ;;  %v6650_v13 = vld [vmem:[%s7622_s12 + $0x74] sm:$0x1] }
 0x1cb   : > { %v2997_v26 = vpop.f32.mrf.mxu0  ;;  %v4869_v49 = vsel %vm7770_vm5, %v4867_v40, %v4868_v9  ;;  %v4215_v10 = vrot.slane %v4213_v39, 4  ;;  %v8671_v60 = vrot.slane %v4222_v51, 5  ;;  %v3342_v7 = vunpack.c.l.b16 %v3219_v24  ;;  %v9729_v9 = vld [vmem:[#allocation6_spill] sm:$0xff] }
 0x1cc   : > { %3478 = vmatmul.bf16.gmra.mxu1 %v3366_v44  ;;  %3857 = vmatmul.bf16.gmra.mxu2 %v7209_v62  ;;  %v8654_v63 = vadd.f32 %v2994_v15, %v2288_v47  ;;  %v3222_v15 = vsel %vm7770_vm5, %v3220_v11, %v3221_v52  ;;  %v6649_v47 = vld [vmem:[%s7622_s12 + $0x70] sm:$0xf]  ;;  %v4228_v48 = vrot.slane %v4226_v35, 4  ;;  %v4467_v11 = vunpack.c.l.b16 %v4201_v19  ;;  %v6906_v52 = vld [vmem:[%s7622_s12 + $0x80] sm:$0x1] }
 0x1cd   : > { %4603 = vmatmul.bf16.gmra.mxu3 %v4491_v5  ;;  %v4218_v5 = vrot.slane %v4216_v16, 5  ;;  %v3343_v18 = vunpack.c.l.b16 %v3222_v15  ;;  %v4990_v3 = vunpack.c.l.b16 %v4869_v49  ;;  %v3225_v43 = vrot.slane %v6649_v47, 5  ;;  %v6648_v16 = vld [vmem:[%s7622_s12 + $0x6c] sm:$0xe]  ;;  %v6907_v49 = vld [vmem:[%s7622_s12 + $0x84] sm:$0xf] }
 0x1ce   : > { %9726 = vst [vmem:[#allocation4_spill] sm:$0xff] %v8654_v63  ;;  %5125 = vmatmul.bf16.gmra.mxu0 %v5013_v54  ;;  %v4232_v51 = vshll.u32 %v6906_v52, 16  ;;  %v4872_v24 = vrot.slane %v7001_v25, 5  ;;  %v4492_v19 = vpack.c.b16 %v4468_v59, %v4467_v11 }
 0x1cf   : > { %v1872_v4 = vpop.f32.mrf.mxu2  ;;  %v4219_v40 = vor.u32 %v4218_v5, %v4215_v10  ;;  %v3367_v15 = vpack.c.b16 %v3343_v18, %v3342_v7  ;;  %v5014_v8 = vpack.c.b16 %v4990_v3, %v4989_v32  ;;  %v6680_v5 = vrot.slane %v6648_v16, 9  ;;  %v9731_v3 = vld [vmem:[#allocation7_spill] sm:$0xff] }
 0x1d0   : > { %v1910_v44 = vadd.f32 %v1872_v4, %v1385_v28  ;;  %v2251_v62 = vpop.f32.mrf.mxu3  ;;  %v4229_v28 = vor.u32 %v4228_v48, %v8671_v60  ;;  %v7000_v4 = vld [vmem:[%s7622_s12 + $0x78] sm:$0xe]  ;;  %v4234_v63 = vrot.slane %v4232_v51, 5  ;;  %v4874_v25 = vrot.slane %v4872_v24, 4 }
 0x1d1   : > { %v1349_v33 = vpop.f32.mrf.mxu1  ;;  %v4220_v47 = vrot.slane %v4219_v40, 4  ;;  %v7032_v21 = vrot.slane %v7000_v4, 9  ;;  %v4240_v7 = vshll.u32 %v6907_v49, 16  ;;  %v3226_v32 = vsel %vm7770_vm5, %v6680_v5, %v3225_v43 }
 0x1d2   : > { %v2289_v54 = vadd.f32 %v2251_v62, %v1910_v44  ;;  %v1386_v39 = vadd.f32 %v1349_v33, %v9729_v9  ;;  %v3227_v33 = vrot.slane %v3225_v43, 4  ;;  %v6908_v9 = vld [vmem:[%s7622_s12 + $0x88] sm:$0xf] }
 0x1d3   : > { %v2999_v14 = vpop.f32.mrf.mxu0  ;;  %v4246_v18 = vshll.u32 %v6908_v9, 16  ;;  %v4250_v11 = vshrl.u32 %v6908_v9, 16  ;;  %v4873_v51 = vsel %vm7770_vm5, %v7032_v21, %v4872_v24  ;;  %v6909_v21 = vld [vmem:[%s7622_s12 + $0x8c] sm:$0x1] }
 0x1d4   : > { %v8675_v45 = vadd.f32 %v2997_v26, %v2289_v54  ;;  %v7210_v26 = vld [vmem:[%s7622_s12 + $0x6c] sm:$0xff]  ;;  %v3228_v54 = vrot.slane %v6650_v13, 5  ;;  %v4225_v13 = vsel %vm7766_vm4, %v4220_v47, %v8671_v60  ;;  %v4991_v5 = vunpack.c.l.b16 %v4873_v51 }
 0x1d5   : > { %v4252_v60 = vrot.slane %v4250_v11, 4 }
 0x1d6   : > { %9728 = vst [vmem:[#allocation5_spill] sm:$0xff] %v8675_v45  ;;  %v4230_v45 = vrot.slane %v4229_v28, 4  ;;  %v3229_v16 = vsel %vm7770_vm5, %v3227_v33, %v3228_v54  ;;  %v7004_v54 = vld [vmem:[%s7622_s12 + $0x88] sm:$0xf] }
 0x1d7   : > { %v1874_v35 = vpop.f32.mrf.mxu2  ;;  %v4879_v11 = vrot.slane %v7004_v54, 5 }
 0x1d8   : > { %v1911_v44 = vadd.f32 %v1874_v35, %v1386_v39  ;;  %v2253_v62 = vpop.f32.mrf.mxu3  ;;  %v4875_v39 = vrot.slane %v7002_v1, 5  ;;  %v4237_v35 = vshrl.u32 %v6907_v49, 16  ;;  %v4235_v28 = vsel %vm7766_vm4, %v4230_v45, %v4234_v63 }
 0x1d9   : > { %v1352_v10 = vpop.f32.mrf.mxu1  ;;  %v3344_v63 = vunpack.c.l.b16 %v3226_v32  ;;  %v3345_v45 = vunpack.c.l.b16 %v3229_v16  ;;  %v4469_v1 = vunpack.c.l.b16 %v4225_v13  ;;  %v9733_v32 = vld [vmem:[#allocation8_spill] sm:$0xff] }
 0x1da   : > { %v2290_v48 = vadd.f32 %v2253_v62, %v1911_v44  ;;  %v1387_v40 = vadd.f32 %v1352_v10, %v9731_v3  ;;  %v4876_v43 = vsel %vm7770_vm5, %v4874_v25, %v4875_v39  ;;  %v4239_v4 = vrot.slane %v4237_v35, 4  ;;  %v6653_v25 = vld [vmem:[%s7622_s12 + $0x80] sm:$0x1] }
 0x1db   : > { %v3002_v52 = vpop.f32.mrf.mxu0  ;;  %v4242_v44 = vrot.slane %v4240_v7, 5  ;;  %v4470_v10 = vunpack.c.l.b16 %v4235_v28  ;;  %v4992_v33 = vunpack.c.l.b16 %v4876_v43  ;;  %v4256_v35 = vshll.u32 %v6909_v21, 16  ;;  %v7005_v28 = vld [vmem:[%s7622_s12 + $0x8c] sm:$0x1] }
 0x1dc   : > { %3483 = vmatmul.bf16.gmra.mxu1 %v3367_v15  ;;  %3862 = vmatmul.bf16.gmra.mxu2 %v7210_v26  ;;  %v8686_v59 = vadd.f32 %v2999_v14, %v2290_v48  ;;  %v6652_v26 = vld [vmem:[%s7622_s12 + $0x7c] sm:$0xf]  ;;  %v6651_v48 = vld [vmem:[%s7622_s12 + $0x78] sm:$0xe] }
 0x1dd   : > { %4608 = vmatmul.bf16.gmra.mxu3 %v4492_v19  ;;  %v8703_v19 = vrot.slane %v4246_v18, 5  ;;  %v3232_v47 = vrot.slane %v6652_v26, 5  ;;  %v4243_v9 = vor.u32 %v4242_v44, %v4239_v4  ;;  %v7003_v18 = vld [vmem:[%s7622_s12 + $0x84] sm:$0xe]  ;;  %v4493_v16 = vpack.c.b16 %v4470_v10, %v4469_v1 }
 0x1de   : > { %9730 = vst [vmem:[#allocation6_spill] sm:$0xff] %v8686_v59  ;;  %5130 = vmatmul.bf16.gmra.mxu0 %v5014_v8  ;;  %v5015_v13 = vpack.c.b16 %v4992_v33, %v4991_v5  ;;  %v6681_v43 = vrot.slane %v6651_v48, 9  ;;  %v3235_v44 = vrot.slane %v6653_v25, 5  ;;  %v4881_v59 = vrot.slane %v4879_v11, 4 }
 0x1df   : > { %v1877_v14 = vpop.f32.mrf.mxu2  ;;  %v4253_v39 = vor.u32 %v4252_v60, %v8703_v19  ;;  %v3234_v4 = vrot.slane %v3232_v47, 4 }
 0x1e0   : > { %v1912_v62 = vadd.f32 %v1877_v14, %v1387_v40  ;;  %v2256_v15 = vpop.f32.mrf.mxu3  ;;  %v3368_v40 = vpack.c.b16 %v3345_v45, %v3344_v63  ;;  %v6910_v14 = vld [vmem:[%s7622_s12 + $0x90] sm:$0xf] }
 0x1e1   : > { %v1354_v8 = vpop.f32.mrf.mxu1  ;;  %v4254_v21 = vrot.slane %v4253_v39, 4  ;;  %v4261_v63 = vshrl.u32 %v6910_v14, 16  ;;  %v4264_v45 = vshll.u32 %v6910_v14, 16  ;;  %v3236_v48 = vsel %vm7770_vm5, %v3234_v4, %v3235_v44  ;;  %v6655_v14 = vld [vmem:[%s7622_s12 + $0x88] sm:$0xf] }
 0x1e2   : > { %v2291_v24 = vadd.f32 %v2256_v15, %v1912_v62  ;;  %v1388_v3 = vadd.f32 %v1354_v8, %v9733_v32  ;;  %v4244_v62 = vrot.slane %v4243_v9, 4  ;;  %v6911_v15 = vld [vmem:[%s7622_s12 + $0x94] sm:$0xf]  ;;  %v4882_v8 = vrot.slane %v7005_v28, 5  ;;  %v6912_v4 = vld [vmem:[%s7622_s12 + $0x98] sm:$0x1] }
 0x1e3   : > { %v3004_v49 = vpop.f32.mrf.mxu0  ;;  %v4270_v5 = vshll.u32 %v6911_v15, 16  ;;  %v4274_v33 = vshrl.u32 %v6911_v15, 16  ;;  %v3233_v9 = vsel %vm7770_vm5, %v6681_v43, %v3232_v47  ;;  %v4263_v32 = vrot.slane %v4261_v63, 4  ;;  %v8745_v15 = vld [vmem:[%s9707_s2] ss:$0 sm:$0xff] }
 0x1e4   : > { %v8710_v7 = vadd.f32 %v3002_v52, %v2291_v24  ;;  %v7211_v52 = vld [vmem:[%s7622_s12 + $0x78] sm:$0xff]  ;;  %v4258_v24 = vrot.slane %v4256_v35, 5  ;;  %v4249_v25 = vsel %vm7766_vm4, %v4244_v62, %v8703_v19 }
 0x1e5   : > { %v8735_v19 = vrot.slane %v4270_v5, 5  ;;  %v8753_v5 = vld [vmem:[%s9708_s3] ss:$0 sm:$0xff] }
 0x1e6   : > { %9732 = vst [vmem:[#allocation7_spill] sm:$0xff] %v8710_v7  ;;  %v7033_v7 = vrot.slane %v7003_v18, 9  ;;  %v4259_v39 = vsel %vm7766_vm4, %v4254_v21, %v4258_v24  ;;  %v4883_v18 = vsel %vm7770_vm5, %v4881_v59, %v4882_v8  ;;  %v6656_v8 = vld [vmem:[%s7622_s12 + $0x8c] sm:$0x1] }
 0x1e7   : > { %v1879_v51 = vpop.f32.mrf.mxu2  ;;  %v8740_v44 = vunpack.c.l.b16 %v4259_v39  ;;  %v4994_v62 = vunpack.c.l.b16 %v4883_v18  ;;  %v3242_v18 = vrot.slane %v6656_v8, 5  ;;  %v7008_v8 = vld [vmem:[%s7622_s12 + $0x98] sm:$0x1] }
 0x1e8   : > { %v1913_v26 = vadd.f32 %v1879_v51, %v1388_v3  ;;  %v2258_v60 = vpop.f32.mrf.mxu3  ;;  %v4880_v47 = vsel %vm7770_vm5, %v7033_v7, %v4879_v11  ;;  %v4266_v3 = vrot.slane %v4264_v45, 5  ;;  %v4276_v51 = vrot.slane %v4274_v33, 4 }
 0x1e9   : > { %v3449_v54 = vpop.f32.mrf.mxu1  ;;  %v4993_v59 = vunpack.c.l.b16 %v4880_v47  ;;  %v4280_v45 = vshll.u32 %v6912_v4, 16 }
 0x1ea   : > { %v2292_v1 = vadd.f32 %v2258_v60, %v1913_v26  ;;  %v3239_v60 = vrot.slane %v6655_v14, 5  ;;  %v4277_v63 = vor.u32 %v4276_v51, %v8735_v19 }
 0x1eb   : > { %v5096_v10 = vpop.f32.mrf.mxu0  ;;  %v4282_v51 = vrot.slane %v4280_v45, 5 }
 0x1ec   : > { %3488 = vmatmul.bf16.gmra.mxu1 %v3368_v40  ;;  %3867 = vmatmul.bf16.gmra.mxu2 %v7211_v52  ;;  %v8727_v35 = vadd.f32 %v3004_v49, %v2292_v1  ;;  %v9735_v40 = vld [vmem:[#allocation9_spill] sm:$0xff]  ;;  %v3346_v49 = vunpack.c.l.b16 %v3233_v9  ;;  %v4267_v52 = vor.u32 %v4266_v3, %v4263_v32  ;;  %v3241_v47 = vrot.slane %v3239_v60, 4 }
 0x1ed   : > { %4613 = vmatmul.bf16.gmra.mxu3 %v4493_v16  ;;  %v3529_v28 = vadd.f32 %v3449_v54, %v9735_v40  ;;  %v3347_v16 = vunpack.c.l.b16 %v3236_v48  ;;  %v6654_v54 = vld [vmem:[%s7622_s12 + $0x84] sm:$0xe]  ;;  %v5016_v48 = vpack.c.b16 %v4994_v62, %v4993_v59  ;;  %v7006_v3 = vld [vmem:[%s7622_s12 + $0x90] sm:$0xe]  ;;  %v9736_v40 = vld [vmem:[#allocation10_spill] sm:$0xff]  ;;  %v4278_v14 = vrot.slane %v4277_v63, 4 }
 0x1ee   : > { %9734 = vst [vmem:[#allocation8_spill] sm:$0xff] %v8727_v35  ;;  %5135 = vmatmul.bf16.gmra.mxu0 %v5015_v13  ;;  %v8737_v13 = vunpack.c.l.b16 %v4249_v25  ;;  %v7007_v25 = vld [vmem:[%s7622_s12 + $0x94] sm:$0xf]  ;;  %v6682_v39 = vrot.slane %v6654_v54, 9  ;;  %v4268_v32 = vrot.slane %v4267_v52, 4  ;;  %v7212_v52 = vld [vmem:[%s7622_s12 + $0x84] sm:$0xff] }
 0x1ef   : > { %v3828_v43 = vpop.f32.mrf.mxu2  ;;  %v3369_v33 = vpack.c.b16 %v3347_v16, %v3346_v49  ;;  %v6914_v49 = vld [vmem:[%s7622_s12 + $0xa0] sm:$0xf] }
 0x1f0   : > { %v3908_v7 = vadd.f32 %v3828_v43, %v3529_v28  ;;  %v4574_v11 = vpop.f32.mrf.mxu3  ;;  %v4494_v9 = vpack.c.b16 %v8740_v44, %v8737_v13  ;;  %v6913_v43 = vld [vmem:[%s7622_s12 + $0x9c] sm:$0xf] }
 0x1f1   : > { %v3451_v26 = vpop.f32.mrf.mxu1  ;;  %v4285_v4 = vshrl.u32 %v6913_v43, 16  ;;  %v4288_v13 = vshll.u32 %v6913_v43, 16 }
 0x1f2   : > { %v4654_v21 = vadd.f32 %v4574_v11, %v3908_v7  ;;  %v3530_v28 = vadd.f32 %v3451_v26, %v9736_v40  ;;  %v4294_v7 = vshll.u32 %v6914_v49, 16  ;;  %v4298_v11 = vshrl.u32 %v6914_v49, 16 }
 0x1f3   : > { %v5098_v24 = vpop.f32.mrf.mxu0  ;;  %v4886_v26 = vrot.slane %v7007_v25, 5  ;;  %v4287_v63 = vrot.slane %v4285_v4, 4  ;;  %v4290_v45 = vrot.slane %v4288_v13, 5  ;;  %v8777_v25 = vsel %vm7770_vm5, %v3241_v47, %v3242_v18  ;;  %v6657_v47 = vld [vmem:[%s7622_s12 + $0x90] sm:$0xe] }
 0x1f4   : > { %v5176_v1 = vadd.f32 %v5096_v10, %v4654_v21  ;;  %v7034_v21 = vrot.slane %v7006_v3, 9  ;;  %v4300_v40 = vrot.slane %v4298_v11, 4  ;;  %v6658_v3 = vld [vmem:[%s7622_s12 + $0x94] sm:$0xf]  ;;  %v4273_v4 = vsel %vm7766_vm4, %v4268_v32, %v8735_v19  ;;  %v6659_v18 = vld [vmem:[%s7622_s12 + $0x98] sm:$0x1] }
 0x1f5   : > { %v4283_v13 = vsel %vm7766_vm4, %v4278_v14, %v4282_v51  ;;  %v4291_v11 = vor.u32 %v4290_v45, %v4287_v63  ;;  %v7010_v63 = vld [vmem:[%s7622_s12 + $0xa0] sm:$0xf] }
 0x1f6   : > { %v5276_v10 = vmul.f32 %v8745_v15, %v5176_v1  ;;  %v8768_v1 = vrot.slane %v4294_v7, 5  ;;  %v3246_v7 = vrot.slane %v6658_v3, 5  ;;  %v4887_v19 = vsel %vm7770_vm5, %v7034_v21, %v4886_v26 }
 0x1f7   : > { %v3830_v16 = vpop.f32.mrf.mxu2 }
 0x1f8   : > { %v8764_v44 = vadd.f32 %v8753_v5, %v5276_v10  ;;  %v3909_v59 = vadd.f32 %v3830_v16, %v3530_v28  ;;  %v4576_v62 = vpop.f32.mrf.mxu3  ;;  %v8773_v28 = vsel %vm7770_vm5, %v6682_v39, %v3239_v60  ;;  %v6915_v16 = vld [vmem:[%s7622_s12 + $0xa4] sm:$0x1]  ;;  %v4888_v60 = vrot.slane %v4886_v26, 4 }
 0x1f9   : > { %v3454_v54 = vpop.f32.mrf.mxu1  ;;  %v4889_v39 = vrot.slane %v7008_v8, 5  ;;  %v4301_v32 = vor.u32 %v4300_v40, %v8768_v1  ;;  %v4304_v14 = vshll.u32 %v6915_v16, 16  ;;  %v3248_v51 = vrot.slane %v3246_v7, 4 }
 0x1fa   : > { %v7088_v43 = vmul.f32 -1.442695, %v8764_v44  ;;  %v4655_v49 = vadd.f32 %v4576_v62, %v3909_v59  ;;  %v3531_v62 = vadd.f32 %v3454_v54, %v8225_v56  ;;  %v3348_v45 = vunpack.c.l.b16 %v8773_v28 }
 0x1fb   : > { %v5101_v10 = vpop.f32.mrf.mxu0  ;;  %v3349_v56 = vunpack.c.l.b16 %v8777_v25  ;;  %v8801_v40 = vunpack.c.l.b16 %v4283_v13  ;;  %v4995_v16 = vunpack.c.l.b16 %v4887_v19  ;;  %v4306_v28 = vrot.slane %v4304_v14, 5 }
 0x1fc   : > { %7389 = vpow2.f32 %v7088_v43  ;;  %v5177_v59 = vadd.f32 %v5098_v24, %v4655_v49  ;;  %3493 = vmatmul.bf16.gmra.mxu1 %v3369_v33  ;;  %3872 = vmatmul.bf16.gmra.mxu2 %v7212_v52  ;;  %v6683_v33 = vrot.slane %v6657_v47, 9  ;;  %v3249_v52 = vrot.slane %v6659_v18, 5  ;;  %v7009_v49 = vld [vmem:[%s7622_s12 + $0x9c] sm:$0xe]  ;;  %v7011_v47 = vld [vmem:[%s7622_s12 + $0xa4] sm:$0x1] }
 0x1fd   : > { %4618 = vmatmul.bf16.gmra.mxu3 %v4494_v9  ;;  %v8796_v9 = vunpack.c.l.b16 %v4273_v4  ;;  %v4890_v43 = vsel %vm7770_vm5, %v4888_v60, %v4889_v39  ;;  %v4893_v25 = vrot.slane %v7010_v63, 5 }
 0x1fe   : > { %5140 = vmatmul.bf16.gmra.mxu0 %v5016_v48  ;;  %v5277_v24 = vmul.f32 %v8745_v15, %v5177_v59  ;;  %v4292_v48 = vrot.slane %v4291_v11, 4  ;;  %v4302_v59 = vrot.slane %v4301_v32, 4  ;;  %v3250_v13 = vsel %vm7770_vm5, %v3248_v51, %v3249_v52 }
 0x1ff   : > { %v3833_v8 = vpop.f32.mrf.mxu2  ;;  %v4996_v39 = vunpack.c.l.b16 %v4890_v43  ;;  %v7035_v32 = vrot.slane %v7009_v49, 9  ;;  %v4895_v63 = vrot.slane %v4893_v25, 4 }
 0x200   : > { %v8799_v21 = vadd.f32 %v8753_v5, %v5277_v24  ;;  %v3910_v26 = vadd.f32 %v3833_v8, %v3531_v62  ;;  %v4579_v54 = vpop.f32.mrf.mxu3  ;;  %v3247_v62 = vsel %vm7770_vm5, %v6683_v33, %v3246_v7  ;;  %v4297_v19 = vsel %vm7766_vm4, %v4292_v48, %v8768_v1 }
 0x201   : > { %v3456_v3 = vpop.f32.mrf.mxu1  ;;  %v4896_v8 = vrot.slane %v7011_v47, 5  ;;  %v3350_v7 = vunpack.c.l.b16 %v3247_v62  ;;  %v3351_v33 = vunpack.c.l.b16 %v3250_v13  ;;  %v4307_v51 = vsel %vm7766_vm4, %v4302_v59, %v4306_v28  ;;  %v7213_v28 = vld [vmem:[%s7622_s12 + $0x90] sm:$0xff] }
 0x202   : > { %v7390_v4 = vpop.eup %7389  ;;  %v7089_v11 = vmul.f32 -1.442695, %v8799_v21  ;;  %v4656_v18 = vadd.f32 %v4579_v54, %v3910_v26  ;;  %v3532_v26 = vadd.f32 %v3456_v3, %v8227_v58  ;;  %v6916_v54 = vld [vmem:[%s7622_s12 + $0xa8] sm:$0xf]  ;;  %v3370_v1 = vpack.c.b16 %v3349_v56, %v3348_v45 }
 0x203   : > { %v5103_v24 = vpop.f32.mrf.mxu0  ;;  %v8812_v60 = vadd.f32 1.0, %v7390_v4  ;;  %v8825_v48 = vunpack.c.l.b16 %v4297_v19  ;;  %v4894_v49 = vsel %vm7770_vm5, %v7035_v32, %v4893_v25  ;;  %v4897_v58 = vsel %vm7770_vm5, %v4895_v63, %v4896_v8 }
 0x204   : > { %7391 = vpow2.f32 %v7089_v11  ;;  %v5178_v14 = vadd.f32 %v5101_v10, %v4656_v18  ;;  %v4495_v10 = vpack.c.b16 %v8801_v40, %v8796_v9  ;;  %v8833_v11 = vunpack.c.l.b16 %v4307_v51 }
 0x205   : > { %7393 = vrcp.f32 %v8812_v60  ;;  %v5017_v56 = vpack.c.b16 %v4996_v39, %v4995_v16  ;;  %v8837_v9 = vpack.c.b16 %v3351_v33, %v3350_v7  ;;  %v4309_v40 = vshrl.u32 %v6916_v54, 16 }
 0x206   : > { %v5278_v52 = vmul.f32 %v8745_v15, %v5178_v14  ;;  %v4312_v3 = vshll.u32 %v6916_v54, 16  ;;  %v5481_v25 = vand.u32 2147483647, %v8812_v60  ;;  %v4997_v32 = vunpack.c.l.b16 %v4894_v49  ;;  %v6661_v14 = vld [vmem:[%s7622_s12 + $0xa0] sm:$0xf] }
 0x207   : > { %v3835_v43 = vpop.f32.mrf.mxu2  ;;  %vm5477_vm6 = vweird.f32 %v8812_v60  ;;  %v5483_v16 = vand.u32 2147483648, %v8812_v60  ;;  %v4998_v63 = vunpack.c.l.b16 %v4897_v58  ;;  %v4311_v54 = vrot.slane %v4309_v40, 4 }
 0x208   : > { %v8830_v47 = vadd.f32 %v8753_v5, %v5278_v52  ;;  %v3911_v4 = vadd.f32 %v3835_v43, %v3532_v26  ;;  %v4581_v59 = vpop.f32.mrf.mxu3  ;;  %v6917_v52 = vld [vmem:[%s7622_s12 + $0xac] sm:$0xf]  ;;  %v3253_v26 = vrot.slane %v6661_v14, 5  ;;  %v4314_v43 = vrot.slane %v4312_v3, 5 }
 0x209   : > { %v3459_v45 = vpop.f32.mrf.mxu1  ;;  %vm8856_vm7 = vcmp.eq.f32.partialorder %v5481_v25, 8.507059e+37 }
 0x20a   : > { %v7392_v18 = vpop.eup %7391  ;;  %v7090_v62 = vmul.f32 -1.442695, %v8830_v47  ;;  %v4657_v13 = vadd.f32 %v4581_v59, %v3911_v4  ;;  %v6660_v59 = vld [vmem:[%s7622_s12 + $0x9c] sm:$0xe] }
 0x20b   : > { %v8841_v19 = vpop.f32.mrf.mxu0  ;;  %v8844_v51 = vpop.eup %7393  ;;  %v8848_v39 = vadd.f32 1.0, %v7392_v18  ;;  %v8863_v18 = vpack.c.b16 %v4998_v63, %v4997_v32 }
 0x20c   : > { %v5473_v8 = vmul.f32 %v8844_v51, %v8812_v60  ;;  %7395 = vpow2.f32 %v7090_v62  ;;  %v5179_v7 = vadd.f32 %v5103_v24, %v4657_v13  ;;  %3498 = vmatmul.bf16.gmra.mxu1 %v3370_v1  ;;  %3877 = vmatmul.bf16.gmra.mxu2 %v7213_v28  ;;  %v3533_v1 = vadd.f32 %v3459_v45, %v8277_v17  ;;  %v6662_v62 = vld [vmem:[%s7622_s12 + $0xa4] sm:$0x1]  ;;  %v6918_v60 = vld [vmem:[%s7622_s12 + $0xb0] sm:$0x1] }
 0x20d   : > { %7397 = vrcp.f32 %v8848_v39  ;;  %4623 = vmatmul.bf16.gmra.mxu3 %v4495_v10  ;;  %v5484_v28 = vor.u32 1.1754944e-38, %v5483_v16  ;;  %v4318_v10 = vshll.u32 %v6917_v52, 16  ;;  %vm5478_vm8 = vweird.f32 %v8844_v51 }
 0x20e   : > { %5145 = vmatmul.bf16.gmra.mxu0 %v5017_v56  ;;  %v5474_v49 = vsub.f32 1.0, %v5473_v8  ;;  %v5279_v24 = vmul.f32 %v8745_v15, %v5179_v7  ;;  %v4322_v56 = vshrl.u32 %v6917_v52, 16  ;;  %v5496_v14 = vand.u32 2147483647, %v8848_v39  ;;  %vm8880_vm9 = vmor %vm5477_vm6, %vm5478_vm8 }
 0x20f   : > { %v3838_v58 = vpop.f32.mrf.mxu2  ;;  %v6684_v45 = vrot.slane %v6660_v59, 9  ;;  %v3255_v16 = vrot.slane %v3253_v26, 4  ;;  %v4315_v8 = vor.u32 %v4314_v43, %v4311_v54  ;;  %v3256_v33 = vrot.slane %v6662_v62, 5 }
 0x210   : > { %v5475_v40 = vmul.f32 %v8844_v51, %v5474_v49  ;;  %v8869_v3 = vadd.f32 %v8753_v5, %v5279_v24  ;;  %v3912_v25 = vadd.f32 %v3838_v58, %v3533_v1  ;;  %v4584_v13 = vpop.f32.mrf.mxu3  ;;  %v5498_v54 = vand.u32 2147483648, %v8848_v39 }
 0x211   : > { %v3461_v17 = vpop.f32.mrf.mxu1  ;;  %v8887_v59 = vrot.slane %v4318_v10, 5  ;;  %v4324_v58 = vrot.slane %v4322_v56, 4  ;;  %vm5492_vm10 = vweird.f32 %v8848_v39  ;;  %vm8895_vm11 = vcmp.eq.f32.partialorder %v5496_v14, 8.507059e+37 }
 0x212   : > { %v7396_v32 = vpop.eup %7395  ;;  %v5476_v63 = vadd.f32 %v8844_v51, %v5475_v40  ;;  %v7091_v7 = vmul.f32 -1.442695, %v8869_v3  ;;  %v4658_v52 = vadd.f32 %v4584_v13, %v3912_v25  ;;  %v3254_v10 = vsel %vm7770_vm5, %v6684_v45, %v3253_v26  ;;  %v7013_v26 = vld [vmem:[%s7622_s12 + $0xac] sm:$0xf] }
 0x213   : > { %v8874_v49 = vpop.f32.mrf.mxu0  ;;  %v7398_v24 = vpop.eup %7397  ;;  %v8885_v43 = vadd.f32 1.0, %v7396_v32  ;;  %v8902_v56 = vrot.slane %v4315_v8, 4  ;;  %v3534_v32 = vadd.f32 %v3461_v17, %v8279_v46  ;;  %v4325_v35 = vor.u32 %v4324_v58, %v8887_v59  ;;  %v7214_v46 = vld [vmem:[%s7622_s12 + $0x9c] sm:$0xff] }
 0x214   : > { %v5480_v62 = vsel %vm8880_vm9, %v8844_v51, %v5476_v63  ;;  %v5488_v40 = vmul.f32 %v7398_v24, %v8848_v39  ;;  %7399 = vpow2.f32 %v7091_v7  ;;  %v5180_v13 = vadd.f32 %v8841_v19, %v4658_v52 }
 0x215   : > { %7401 = vrcp.f32 %v8885_v43  ;;  %v3257_v63 = vsel %vm7770_vm5, %v3255_v16, %v3256_v33  ;;  %v5485_v14 = vsel %vm8856_vm7, %v5484_v28, %v5480_v62  ;;  %v5499_v7 = vor.u32 1.1754944e-38, %v5498_v54 }
 0x216   : > { %v5489_v51 = vsub.f32 1.0, %v5488_v40  ;;  %v4328_v23 = vshll.u32 %v6918_v60, 16  ;;  %vm5493_vm12 = vweird.f32 %v7398_v24  ;;  %v5280_v8 = vmul.f32 %v8745_v15, %v5180_v13 }
 0x217   : > { %v3840_v1 = vpop.f32.mrf.mxu2  ;;  %v5511_v17 = vand.u32 2147483647, %v8885_v43  ;;  %v3352_v16 = vunpack.c.l.b16 %v3254_v10  ;;  %v3353_v4 = vunpack.c.l.b16 %v3257_v63  ;;  %v4321_v28 = vsel %vm7766_vm4, %v8902_v56, %v8887_v59  ;;  %vm5494_vm14 = vmor %vm5492_vm10, %vm5493_vm12 }
 0x218   : > { %v5490_v45 = vmul.f32 %v7398_v24, %v5489_v51  ;;  %v3913_v19 = vadd.f32 %v3840_v1, %v3534_v32  ;;  %v4586_v52 = vpop.f32.mrf.mxu3  ;;  %v5952_v58 = vmul.f32 %v5485_v14, %v8764_v44  ;;  %vm5507_vm13 = vweird.f32 %v8885_v43  ;;  %v7012_v51 = vld [vmem:[%s7622_s12 + $0xa8] sm:$0xe] }
 0x219   : > { %v3464_v33 = vpop.f32.mrf.mxu1  ;;  %v8922_v40 = vadd.f32 %v8753_v5, %v5280_v8  ;;  %v4900_v10 = vrot.slane %v7013_v26, 5  ;;  %v4326_v44 = vrot.slane %v4325_v35, 4  ;;  %v4330_v32 = vrot.slane %v4328_v23, 5 }
 0x21a   : > { %v7400_v54 = vpop.eup %7399  ;;  %v5491_v62 = vadd.f32 %v7398_v24, %v5490_v45  ;;  %v4659_v56 = vadd.f32 %v4586_v52, %v3913_v19  ;;  %v5513_v1 = vand.u32 2147483648, %v8885_v43  ;;  %v7014_v45 = vld [vmem:[%s7622_s12 + $0xb0] sm:$0x1]  ;;  %v3535_v23 = vadd.f32 %v3464_v33, %v8314_v42 }
 0x21b   : > { %v5111_v60 = vpop.f32.mrf.mxu0  ;;  %v8925_v13 = vpop.eup %7401  ;;  %v8930_v59 = vadd.f32 1.0, %v7400_v54  ;;  %v7092_v26 = vmul.f32 -1.442695, %v8922_v40  ;;  %v9743_v35 = vpack.c.b16 %v8833_v11, %v8825_v48  ;;  %vm8948_vm15 = vcmp.eq.f32.partialorder %v5511_v17, 8.507059e+37 }
 0x21c   : > { %v5495_v63 = vsel %vm5494_vm14, %v7398_v24, %v5491_v62  ;;  %v5503_v14 = vmul.f32 %v8925_v13, %v8885_v43  ;;  %3503 = vmatmul.bf16.gmra.mxu1 %v8837_v9  ;;  %3882 = vmatmul.bf16.gmra.mxu2 %v7214_v46  ;;  %v7036_v24 = vrot.slane %v7012_v51, 9  ;;  %v4902_v25 = vrot.slane %v4900_v10, 4 }
 0x21d   : > { %v5500_v39 = vsel %vm8895_vm11, %v5499_v7, %v5495_v63  ;;  %7403 = vrcp.f32 %v8930_v59  ;;  %4628 = vmatmul.bf16.gmra.mxu3 %v9743_v35  ;;  %v5181_v42 = vadd.f32 %v8874_v49, %v4659_v56  ;;  %v8958_v11 = vpack.c.b16 %v3353_v4, %v3352_v16  ;;  %v6663_v35 = vld [vmem:[%s7622_s12 + $0xa8] sm:$0xe] }
 0x21e   : > { %5150 = vmatmul.bf16.gmra.mxu0 %v8863_v18  ;;  %v5953_v8 = vmul.f32 %v5500_v39, %v8799_v21  ;;  %v5504_v19 = vsub.f32 1.0, %v5503_v14  ;;  %7405 = vpow2.f32 %v7092_v26  ;;  %v4331_v21 = vsel %vm7766_vm4, %v4326_v44, %v4330_v32  ;;  %v6664_v32 = vld [vmem:[%s7622_s12 + $0xac] sm:$0xf] }
 0x21f   : > { %v3843_v48 = vpop.f32.mrf.mxu2  ;;  %v4903_v18 = vrot.slane %v7014_v45, 5  ;;  %vm5508_vm0 = vweird.f32 %v8925_v13  ;;  %v5514_v33 = vor.u32 1.1754944e-38, %v5513_v1  ;;  %v5281_v54 = vmul.f32 %v8745_v15, %v5181_v42 }
 0x220   : > { %v7246_v7 = vpack.c.bf16 %v5953_v8, %v5952_v58  ;;  %v5505_v52 = vmul.f32 %v8925_v13, %v5504_v19  ;;  %v3914_v46 = vadd.f32 %v3843_v48, %v3535_v23  ;;  %v4589_v17 = vpop.f32.mrf.mxu3  ;;  %v8965_v49 = vunpack.c.l.b16 %v4321_v28  ;;  %vm8979_vm1 = vmor %vm5507_vm13, %vm5508_vm0 }
 0x221   : > { %v3466_v62 = vpop.f32.mrf.mxu1  ;;  %v4901_v16 = vsel %vm7770_vm5, %v7036_v24, %v4900_v10  ;;  %v5526_v58 = vand.u32 2147483647, %v8930_v59  ;;  %v4904_v44 = vsel %vm7770_vm5, %v4902_v25, %v4903_v18  ;;  %vm5522_vm2 = vweird.f32 %v8930_v59 }
 0x222   : > { %7247 = vst [vmem:[%s8955_s25] sm:$0xff] %v7246_v7   ;;  %v5506_v4 = vadd.f32 %v8925_v13, %v5505_v52  ;;  %v4660_v51 = vadd.f32 %v4589_v17, %v3914_v46  ;;  %v5528_v10 = vand.u32 2147483648, %v8930_v59  ;;  %v8986_v14 = vadd.f32 %v8753_v5, %v5281_v54 }
 0x223   : > { %v5113_v56 = vpop.f32.mrf.mxu0  ;;  %v7404_v63 = vpop.eup %7403  ;;  %v4478_v1 = vunpack.c.l.b16 %v4331_v21  ;;  %v4999_v23 = vunpack.c.l.b16 %v4901_v16  ;;  %v5000_v19 = vunpack.c.l.b16 %v4904_v44  ;;  %v3260_v25 = vrot.slane %v6664_v32, 5 }
 0x224   : > { %v7406_v26 = vpop.eup %7405  ;;  %v5510_v45 = vsel %vm8979_vm1, %v8925_v13, %v5506_v4  ;;  %v5518_v43 = vmul.f32 %v7404_v63, %v8930_v59  ;;  %v5182_v39 = vadd.f32 %v5111_v60, %v4660_v51  ;;  %v7093_v8 = vmul.f32 -1.442695, %v8986_v14  ;;  %v6665_v60 = vld [vmem:[%s7622_s12 + $0xb0] sm:$0x1]  ;;  %v7215_v4 = vld [vmem:[%s7622_s12 + $0xa8] sm:$0xff] }
 0x225   : > { %v8993_v24 = vadd.f32 1.0, %v7406_v26  ;;  %vm8996_vm3 = vcmp.eq.f32.partialorder %v5526_v58, 8.507059e+37  ;;  %v3536_v21 = vadd.f32 %v3466_v62, %v8316_v55  ;;  %v5515_v18 = vsel %vm8948_vm15, %v5514_v33, %v5510_v45  ;;  %v6919_v58 = vld [vmem:[%s7622_s12 + $0xb4] sm:$0xf] }
 0x226   : > { %v5519_v42 = vsub.f32 1.0, %v5518_v43  ;;  %v5282_v13 = vmul.f32 %v8745_v15, %v5182_v39  ;;  %vm5523_vm6 = vweird.f32 %v7404_v63  ;;  %v6685_v52 = vrot.slane %v6663_v35, 9  ;;  %v6920_v35 = vld [vmem:[%s7622_s12 + $0xb8] sm:$0xf] }
 0x227   : > { %7407 = vrcp.f32 %v8993_v24  ;;  %v3845_v7 = vpop.f32.mrf.mxu2  ;;  %v4497_v62 = vpack.c.b16 %v4478_v1, %v8965_v49  ;;  %v5019_v9 = vpack.c.b16 %v5000_v19, %v4999_v23  ;;  %v3262_v33 = vrot.slane %v3260_v25, 4  ;;  %vm5524_vm7 = vmor %vm5522_vm2, %vm5523_vm6 }
 0x228   : > { %v5520_v46 = vmul.f32 %v7404_v63, %v5519_v42  ;;  %7409 = vpow2.f32 %v7093_v8  ;;  %v9007_v17 = vadd.f32 %v8753_v5, %v5282_v13  ;;  %v3915_v54 = vadd.f32 %v3845_v7, %v3536_v21  ;;  %v4591_v16 = vpop.f32.mrf.mxu3 }
 0x229   : > { %v3469_v55 = vpop.f32.mrf.mxu1  ;;  %v3263_v51 = vrot.slane %v6665_v60, 5  ;;  %v5529_v32 = vor.u32 1.1754944e-38, %v5528_v10  ;;  %v5954_v43 = vmul.f32 %v5515_v18, %v8830_v47  ;;  %v3261_v39 = vsel %vm7770_vm5, %v6685_v52, %v3260_v25 }
 0x22a   : > { %v5521_v44 = vadd.f32 %v7404_v63, %v5520_v46  ;;  %v7094_v28 = vmul.f32 -1.442695, %v9007_v17  ;;  %v4661_v26 = vadd.f32 %v4591_v16, %v3915_v54  ;;  %v4333_v49 = vshrl.u32 %v6919_v58, 16 }
 0x22b   : > { %v5116_v45 = vpop.f32.mrf.mxu0  ;;  %v4336_v1 = vshll.u32 %v6919_v58, 16  ;;  %v3537_v10 = vadd.f32 %v3469_v55, %v8363_v30  ;;  %v3264_v59 = vsel %vm7770_vm5, %v3262_v33, %v3263_v51  ;;  %v4342_v13 = vshll.u32 %v6920_v35, 16 }
 0x22c   : > { %v5525_v23 = vsel %vm5524_vm7, %v7404_v63, %v5521_v44  ;;  %7411 = vpow2.f32 %v7094_v28  ;;  %v5183_v8 = vadd.f32 %v5113_v56, %v4661_v26  ;;  %3508 = vmatmul.bf16.gmra.mxu1 %v8958_v11  ;;  %3887 = vmatmul.bf16.gmra.mxu2 %v7215_v4  ;;  %v4335_v25 = vrot.slane %v4333_v49, 4 }
 0x22d   : > { %v9022_v19 = vpop.eup %7407  ;;  %v5530_v47 = vsel %vm8996_vm3, %v5529_v32, %v5525_v23  ;;  %4633 = vmatmul.bf16.gmra.mxu3 %v4497_v62  ;;  %v4338_v42 = vrot.slane %v4336_v1, 5  ;;  %v5541_v21 = vand.u32 2147483647, %v8993_v24  ;;  %v5543_v48 = vand.u32 2147483648, %v8993_v24  ;;  %v6921_v1 = vld [vmem:[%s7622_s12 + $0xbc] sm:$0x1] }
 0x22e   : > { %5155 = vmatmul.bf16.gmra.mxu0 %v5019_v9  ;;  %v7410_v63 = vpop.eup %7409  ;;  %v5955_v56 = vmul.f32 %v5530_v47, %v8869_v3  ;;  %v5533_v30 = vmul.f32 %v9022_v19, %v8993_v24  ;;  %v5283_v11 = vmul.f32 %v8745_v15, %v5183_v8  ;;  %v4346_v7 = vshrl.u32 %v6920_v35, 16 }
 0x22f   : > { %v9034_v60 = vadd.f32 1.0, %v7410_v63  ;;  %v3848_v18 = vpop.f32.mrf.mxu2  ;;  %v3354_v58 = vunpack.c.l.b16 %v3261_v39  ;;  %v3355_v55 = vunpack.c.l.b16 %v3264_v59  ;;  %v4339_v62 = vor.u32 %v4338_v42, %v4335_v25 }
 0x230   : > { %v7251_v52 = vpack.c.bf16 %v5955_v56, %v5954_v43  ;;  %v5534_v46 = vsub.f32 1.0, %v5533_v30  ;;  %v9037_v54 = vadd.f32 %v8753_v5, %v5283_v11  ;;  %v3916_v3 = vadd.f32 %v3848_v18, %v3537_v10  ;;  %v4594_v16 = vpop.f32.mrf.mxu3 }
 0x231   : > { %7413 = vrcp.f32 %v9034_v60  ;;  %v3471_v4 = vpop.f32.mrf.mxu1  ;;  %v4344_v28 = vrot.slane %v4342_v13, 5  ;;  %vm5538_vm8 = vweird.f32 %v9022_v19  ;;  %v5556_v26 = vand.u32 2147483647, %v9034_v60 }
 0x232   : > { %v7412_v9 = vpop.eup %7411  ;;  %7323 = vst [vmem:[%s8955_s25 + $0x8] sm:$0xff] %v7251_v52   ;;  %v5535_v33 = vmul.f32 %v9022_v19, %v5534_v46  ;;  %v7095_v51 = vmul.f32 -1.442695, %v9037_v54  ;;  %v4662_v44 = vadd.f32 %v4594_v16, %v3916_v3  ;;  %v5558_v43 = vand.u32 2147483648, %v9034_v60  ;;  %v7216_v52 = vld [vmem:[%s7622_s12 + $0xb4] sm:$0xff] }
 0x233   : > { %v9043_v32 = vpop.f32.mrf.mxu0  ;;  %v9048_v39 = vadd.f32 1.0, %v7412_v9  ;;  %v4348_v23 = vrot.slane %v4346_v7, 4  ;;  %vm5537_vm9 = vweird.f32 %v8993_v24  ;;  %vm9053_vm10 = vcmp.eq.f32.partialorder %v5541_v21, 8.507059e+37  ;;  %v7016_v46 = vld [vmem:[%s7622_s12 + $0xb8] sm:$0xf] }
 0x234   : > { %v5536_v35 = vadd.f32 %v9022_v19, %v5535_v33  ;;  %7415 = vpow2.f32 %v7095_v51  ;;  %v5184_v49 = vadd.f32 %v5116_v45, %v4662_v44  ;;  %v4340_v10 = vrot.slane %v4339_v62, 4  ;;  %vm9058_vm11 = vmor %vm5537_vm9, %vm5538_vm8  ;;  %v7015_v44 = vld [vmem:[%s7622_s12 + $0xb4] sm:$0xe] }
 0x235   : > { %7417 = vrcp.f32 %v9048_v39  ;;  %v5544_v59 = vor.u32 1.1754944e-38, %v5543_v48  ;;  %v3373_v45 = vpack.c.b16 %v3355_v55, %v3354_v58  ;;  %v4349_v42 = vor.u32 %v4348_v23, %v4344_v28 }
 0x236   : > { %v5284_v25 = vmul.f32 %v8745_v15, %v5184_v49  ;;  %v5540_v24 = vsel %vm9058_vm11, %v9022_v19, %v5536_v35  ;;  %vm5552_vm12 = vweird.f32 %v9034_v60  ;;  %v3538_v56 = vadd.f32 %v3471_v4, %v8365_v20 }
 0x237   : > { %v7414_v63 = vpop.eup %7413  ;;  %v3850_v30 = vpop.f32.mrf.mxu2  ;;  %v4352_v11 = vshll.u32 %v6921_v1, 16  ;;  %vm9069_vm13 = vcmp.eq.f32.partialorder %v5556_v26, 8.507059e+37  ;;  %v5559_v48 = vor.u32 1.1754944e-38, %v5558_v43  ;;  %v5571_v18 = vand.u32 2147483647, %v9048_v39 }
 0x238   : > { %v5548_v13 = vmul.f32 %v7414_v63, %v9034_v60  ;;  %v9075_v7 = vadd.f32 %v8753_v5, %v5284_v25  ;;  %v4596_v19 = vpop.f32.mrf.mxu3  ;;  %v3917_v3 = vadd.f32 %v3850_v30, %v3538_v56  ;;  %v4345_v16 = vsel %vm7766_vm4, %v4340_v10, %v4344_v28 }
 0x239   : > { %v3474_v20 = vpop.f32.mrf.mxu1  ;;  %v4350_v4 = vrot.slane %v4349_v42, 4  ;;  %v4354_v58 = vrot.slane %v4352_v11, 5  ;;  %v5545_v62 = vsel %vm9053_vm10, %v5544_v59, %v5540_v24  ;;  %vm5553_vm14 = vweird.f32 %v7414_v63  ;;  %v7017_v11 = vld [vmem:[%s7622_s12 + $0xbc] sm:$0x1] }
 0x23a   : > { %v7416_v55 = vpop.eup %7415  ;;  %v5549_v9 = vsub.f32 1.0, %v5548_v13  ;;  %vm5567_vm15 = vweird.f32 %v9048_v39  ;;  %v7096_v33 = vmul.f32 -1.442695, %v9075_v7  ;;  %v4663_v28 = vadd.f32 %v4596_v19, %v3917_v3  ;;  %vm5554_vm1 = vmor %vm5552_vm12, %vm5553_vm14 }
 0x23b   : > { %v9085_v51 = vpop.f32.mrf.mxu0  ;;  %v9088_v26 = vpop.eup %7417  ;;  %v9090_v43 = vadd.f32 1.0, %v7416_v55  ;;  %v4355_v35 = vsel %vm7766_vm4, %v4350_v4, %v4354_v58  ;;  %v4907_v49 = vrot.slane %v7016_v46, 5  ;;  %v4479_v8 = vunpack.c.l.b16 %v4345_v16 }
 0x23c   : > { %v5550_v1 = vmul.f32 %v7414_v63, %v5549_v9  ;;  %v5563_v23 = vmul.f32 %v9088_v26, %v9048_v39  ;;  %7419 = vpow2.f32 %v7096_v33  ;;  %3513 = vmatmul.bf16.gmra.mxu1 %v3373_v45  ;;  %3892 = vmatmul.bf16.gmra.mxu2 %v7216_v52  ;;  %v5956_v10 = vmul.f32 %v5545_v62, %v8922_v40 }
 0x23d   : > { %v5573_v47 = vand.u32 2147483648, %v9048_v39  ;;  %7421 = vrcp.f32 %v9090_v43  ;;  %v7037_v59 = vrot.slane %v7015_v44, 9  ;;  %vm9099_vm0 = vcmp.eq.f32.partialorder %v5571_v18, 8.507059e+37 }
 0x23e   : > { %v5551_v25 = vadd.f32 %v7414_v63, %v5550_v1  ;;  %v5564_v42 = vsub.f32 1.0, %v5563_v23  ;;  %v5185_v56 = vadd.f32 %v9043_v32, %v4663_v28  ;;  %v4480_v30 = vunpack.c.l.b16 %v4355_v35 }
 0x23f   : > { %vm5568_vm2 = vweird.f32 %v9088_v26  ;;  %v5586_v40 = vand.u32 2147483647, %v9090_v43  ;;  %v3539_v45 = vadd.f32 %v3474_v20, %v8388_v37  ;;  %v4909_v13 = vrot.slane %v4907_v49, 4  ;;  %v3853_v19 = vpop.f32.mrf.mxu2 }
 0x240   : > { %v5555_v18 = vsel %vm5554_vm1, %v7414_v63, %v5551_v25  ;;  %v5565_v52 = vmul.f32 %v9088_v26, %v5564_v42  ;;  %v5285_v32 = vmul.f32 %v8745_v15, %v5185_v56  ;;  %v4498_v46 = vpack.c.b16 %v4480_v30, %v4479_v8  ;;  %v4599_v3 = vpop.f32.mrf.mxu3  ;;  %vm9128_vm3 = vmor %vm5567_vm15, %vm5568_vm2 }
 0x241   : > { %v5560_v60 = vsel %vm9069_vm13, %v5559_v48, %v5555_v18  ;;  %v5588_v16 = vand.u32 2147483648, %v9090_v43  ;;  %v4910_v4 = vrot.slane %v7017_v11, 5  ;;  %v3918_v58 = vadd.f32 %v3853_v19, %v3539_v45  ;;  %v3476_v55 = vpop.f32.mrf.mxu1  ;;  %v6666_v48 = vld [vmem:[%s7622_s12 + $0xb4] sm:$0xe] }
 0x242   : > { %v7420_v62 = vpop.eup %7419  ;;  %v5957_v37 = vmul.f32 %v5560_v60, %v8986_v14  ;;  %v5566_v63 = vadd.f32 %v9088_v26, %v5565_v52  ;;  %v9119_v20 = vadd.f32 %v8753_v5, %v5285_v32  ;;  %4638 = vmatmul.bf16.gmra.mxu3 %v4498_v46  ;;  %v4908_v9 = vsel %vm7770_vm5, %v7037_v59, %v4907_v49  ;;  %v6922_v60 = vld [vmem:[%s7622_s12 + $0xc0] sm:$0xf] }
 0x243   : > { %v5123_v21 = vpop.f32.mrf.mxu0  ;;  %v7422_v33 = vpop.eup %7421  ;;  %v5574_v44 = vor.u32 1.1754944e-38, %v5573_v47  ;;  %vm5582_vm6 = vweird.f32 %v9090_v43  ;;  %v9133_v28 = vadd.f32 1.0, %v7420_v62  ;;  %v4664_v35 = vadd.f32 %v4599_v3, %v3918_v58  ;;  %v6667_v47 = vld [vmem:[%s7622_s12 + $0xb8] sm:$0xf]  ;;  %v7217_v3 = vld [vmem:[%s7622_s12 + $0xc0] sm:$0xff] }
 0x244   : > { %v7256_v1 = vpack.c.bf16 %v5957_v37, %v5956_v10  ;;  %v5570_v49 = vsel %vm9128_vm3, %v9088_v26, %v5566_v63  ;;  %v5578_v23 = vmul.f32 %v7422_v33, %v9090_v43  ;;  %vm9139_vm7 = vcmp.eq.f32.partialorder %v5586_v40, 8.507059e+37 }
 0x245   : > { %v4911_v8 = vsel %vm7770_vm5, %v4909_v13, %v4910_v4  ;;  %v5589_v59 = vor.u32 1.1754944e-38, %v5588_v16  ;;  %7423 = vrcp.f32 %v9133_v28  ;;  %v5001_v25 = vunpack.c.l.b16 %v4908_v9  ;;  %v6668_v13 = vld [vmem:[%s7622_s12 + $0xbc] sm:$0x1] }
 0x246   : > { %v6686_v10 = vrot.slane %v6666_v48, 9  ;;  %7324 = vst [vmem:[%s8955_s25 + $0x10] sm:$0xff] %v7256_v1   ;;  %v5579_v42 = vsub.f32 1.0, %v5578_v23  ;;  %vm5583_vm8 = vweird.f32 %v7422_v33  ;;  %v7097_v26 = vmul.f32 -1.442695, %v9119_v20 }
 0x247   : > { %v3540_v56 = vadd.f32 %v3476_v55, %v8396_v38  ;;  %v5575_v30 = vsel %vm9099_vm0, %v5574_v44, %v5570_v49  ;;  %v5002_v11 = vunpack.c.l.b16 %v4911_v8  ;;  %v5186_v40 = vadd.f32 %v9085_v51, %v4664_v35  ;;  %v3855_v45 = vpop.f32.mrf.mxu2  ;;  %vm5584_vm9 = vmor %vm5582_vm6, %vm5583_vm8  ;;  %v6923_v23 = vld [vmem:[%s7622_s12 + $0xc4] sm:$0xf] }
 0x248   : > { %v3267_v19 = vrot.slane %v6667_v47, 5  ;;  %v5580_v18 = vmul.f32 %v7422_v33, %v5579_v42  ;;  %v5601_v52 = vand.u32 2147483647, %v9133_v28  ;;  %7425 = vpow2.f32 %v7097_v26  ;;  %v4601_v46 = vpop.f32.mrf.mxu3 }
 0x249   : > { %v3919_v32 = vadd.f32 %v3855_v45, %v3540_v56  ;;  %v5020_v16 = vpack.c.b16 %v5002_v11, %v5001_v25  ;;  %v5286_v38 = vmul.f32 %v8745_v15, %v5186_v40  ;;  %v9158_v4 = vpop.f32.mrf.mxu1  ;;  %v5958_v58 = vmul.f32 %v5575_v30, %v9007_v17  ;;  %v9197_v40 = vld [vmem:[%s9708_s3] ss:$0 sm:$0xff] }
 0x24a   : > { %v3268_v24 = vsel %vm7770_vm5, %v6686_v10, %v3267_v19  ;;  %v3269_v51 = vrot.slane %v3267_v19, 4  ;;  %v5581_v55 = vadd.f32 %v7422_v33, %v5580_v18  ;;  %v3270_v63 = vrot.slane %v6668_v13, 5  ;;  %v6924_v19 = vld [vmem:[%s7622_s12 + $0xc8] sm:$0x1] }
 0x24b   : > { %v4665_v62 = vadd.f32 %v4601_v46, %v3919_v32  ;;  %v9163_v37 = vpop.f32.mrf.mxu0  ;;  %v9165_v9 = vpop.eup %7423  ;;  %v5603_v15 = vand.u32 2147483648, %v9133_v28  ;;  %5160 = vmatmul.bf16.gmra.mxu0 %v5020_v16  ;;  %v9172_v48 = vadd.f32 %v8753_v5, %v5286_v38  ;;  %v4357_v14 = vshrl.u32 %v6922_v60, 16  ;;  %v7018_v46 = vld [vmem:[%s7622_s12 + $0xc0] sm:$0xe] }
 0x24c   : > { %v4360_v17 = vshll.u32 %v6922_v60, 16  ;;  %v5585_v44 = vsel %vm5584_vm9, %v7422_v33, %v5581_v55  ;;  %v5593_v35 = vmul.f32 %v9165_v9, %v9133_v28  ;;  %v3356_v49 = vunpack.c.l.b16 %v3268_v24  ;;  %3897 = vmatmul.bf16.gmra.mxu2 %v7217_v3  ;;  %v7019_v3 = vld [vmem:[%s7622_s12 + $0xc4] sm:$0xf] }
 0x24d   : > { %v5187_v1 = vadd.f32 %v5123_v21, %v4665_v62  ;;  %v5590_v43 = vsel %vm9139_vm7, %v5589_v59, %v5585_v44  ;;  %v7098_v8 = vmul.f32 -1.442695, %v9172_v48  ;;  %v3271_v47 = vsel %vm7770_vm5, %v3269_v51, %v3270_v63  ;;  %v9186_v21 = vld [vmem:[%s9707_s2] ss:$0 sm:$0xff] }
 0x24e   : > { %v4359_v5 = vrot.slane %v4357_v14, 4  ;;  %v7426_v25 = vpop.eup %7425  ;;  %v5959_v33 = vmul.f32 %v5590_v43, %v9037_v54  ;;  %v5594_v10 = vsub.f32 1.0, %v5593_v35  ;;  %v3357_v39 = vunpack.c.l.b16 %v3271_v47 }
 0x24f   : > { %v5287_v42 = vmul.f32 %v9186_v21, %v5187_v1  ;;  %v9189_v59 = vadd.f32 1.0, %v7426_v25  ;;  %7427 = vpow2.f32 %v7098_v8  ;;  %v4362_v26 = vrot.slane %v4360_v17, 5  ;;  %v9191_v30 = vpop.f32.mrf.mxu2 }
 0x250   : > { %v4366_v56 = vshll.u32 %v6923_v23, 16  ;;  %v7261_v54 = vpack.c.bf16 %v5959_v33, %v5958_v58  ;;  %v5595_v11 = vmul.f32 %v9165_v9, %v5594_v10  ;;  %v3374_v13 = vpack.c.b16 %v3357_v39, %v3356_v49  ;;  %v9203_v18 = vpop.f32.mrf.mxu3  ;;  %v7020_v58 = vld [vmem:[%s7622_s12 + $0xc8] sm:$0x1] }
 0x251   : > { %v9200_v45 = vadd.f32 %v9197_v40, %v5287_v42  ;;  %vm5597_vm10 = vweird.f32 %v9133_v28  ;;  %vm5598_vm11 = vweird.f32 %v9165_v9  ;;  %vm9207_vm12 = vcmp.eq.f32.partialorder %v5601_v52, 8.507059e+37  ;;  %v9214_v60 = vpop.f32.mrf.mxu1 }
 0x252   : > { %7429 = vrcp.f32 %v9189_v59  ;;  %7325 = vst [vmem:[%s8955_s25 + $0x18] sm:$0xff] %v7261_v54   ;;  %v5596_v16 = vadd.f32 %v9165_v9, %v5595_v11  ;;  %v5604_v38 = vor.u32 1.1754944e-38, %v5603_v15  ;;  %3518 = vmatmul.bf16.gmra.mxu1 %v3374_v13  ;;  %v4363_v51 = vor.u32 %v4362_v26, %v4359_v5  ;;  %vm9227_vm13 = vmor %vm5597_vm10, %vm5598_vm11  ;;  %v7218_v11 = vld [vmem:[%s7622_s12 + $0xcc] sm:$0xff] }
 0x253   : > { %v7099_v24 = vmul.f32 -1.442695, %v9200_v45  ;;  %v9220_v55 = vpop.f32.mrf.mxu0  ;;  %v5616_v52 = vand.u32 2147483647, %v9189_v59  ;;  %v4368_v62 = vrot.slane %v4366_v56, 5  ;;  %v4370_v63 = vshrl.u32 %v6923_v23, 16 }
 0x254   : > { %v4376_v14 = vshll.u32 %v6924_v19, 16  ;;  %v5618_v15 = vand.u32 2147483648, %v9189_v59  ;;  %v4364_v44 = vrot.slane %v4363_v51, 4  ;;  %v7038_v35 = vrot.slane %v7018_v46, 9 }
 0x255   : > { %7431 = vpow2.f32 %v7099_v24  ;;  %v7428_v1 = vpop.eup %7427  ;;  %v5600_v49 = vsel %vm9227_vm13, %v9165_v9, %v5596_v16  ;;  %v3541_v23 = vadd.f32 %v9158_v4, %v8414_v2  ;;  %v4372_v43 = vrot.slane %v4370_v63, 4 }
 0x256   : > { %v4914_v8 = vrot.slane %v7019_v3, 5  ;;  %vm5612_vm14 = vweird.f32 %v9189_v59  ;;  %v9238_v28 = vadd.f32 1.0, %v7428_v1  ;;  %v4369_v47 = vsel %vm7766_vm4, %v4364_v44, %v4368_v62 }
 0x257   : > { %v4917_v5 = vrot.slane %v7020_v58, 5  ;;  %v4373_v33 = vor.u32 %v4372_v43, %v4368_v62  ;;  %v4378_v10 = vrot.slane %v4376_v14, 5  ;;  %v3860_v39 = vpop.f32.mrf.mxu2  ;;  %v5605_v2 = vsel %vm9207_vm12, %v5604_v38, %v5600_v49 }
 0x258   : > { %v7430_v25 = vpop.eup %7429  ;;  %v4915_v9 = vsel %vm7770_vm5, %v7038_v35, %v4914_v8  ;;  %v4916_v42 = vrot.slane %v4914_v8, 4  ;;  %vm9247_vm15 = vcmp.eq.f32.partialorder %v5616_v52, 8.507059e+37  ;;  %v5619_v56 = vor.u32 1.1754944e-38, %v5618_v15  ;;  %v4606_v54 = vpop.f32.mrf.mxu3 }
 0x259   : > { %v5608_v4 = vmul.f32 %v7430_v25, %v9189_v59  ;;  %7433 = vrcp.f32 %v9238_v28  ;;  %vm5613_vm0 = vweird.f32 %v7430_v25  ;;  %v4374_v13 = vrot.slane %v4373_v33, 4  ;;  %v9255_v3 = vpop.f32.mrf.mxu1 }
 0x25a   : > { %v4481_v19 = vunpack.c.l.b16 %v4369_v47  ;;  %v4918_v46 = vsel %vm7770_vm5, %v4916_v42, %v4917_v5  ;;  %v5003_v38 = vunpack.c.l.b16 %v4915_v9  ;;  %v3920_v51 = vadd.f32 %v9191_v30, %v3541_v23  ;;  %v6669_v47 = vld [vmem:[%s7622_s12 + $0xc0] sm:$0xe]  ;;  %vm9281_vm2 = vmor %vm5612_vm14, %vm5613_vm0  ;;  %v6927_v5 = vld [vmem:[%s7622_s12 + $0xd4] sm:$0x1] }
 0x25b   : > { %v7432_v32 = vpop.eup %7431  ;;  %v5609_v16 = vsub.f32 1.0, %v5608_v4  ;;  %v5004_v24 = vunpack.c.l.b16 %v4918_v46  ;;  %v9258_v58 = vpop.f32.mrf.mxu0  ;;  %v5631_v52 = vand.u32 2147483647, %v9238_v28  ;;  %v5633_v62 = vand.u32 2147483648, %v9238_v28 }
 0x25c   : > { %v9262_v63 = vadd.f32 1.0, %v7432_v32  ;;  %v4379_v14 = vsel %vm7766_vm4, %v4374_v13, %v4378_v10  ;;  %v4666_v35 = vadd.f32 %v9203_v18, %v3920_v51  ;;  %3902 = vmatmul.bf16.gmra.mxu2 %v7218_v11  ;;  %v5960_v30 = vmul.f32 %v5605_v2, %v9075_v7  ;;  %v6670_v7 = vld [vmem:[%s7622_s12 + $0xc4] sm:$0xf]  ;;  %v6671_v10 = vld [vmem:[%s7622_s12 + $0xc8] sm:$0x1] }
 0x25d   : > { %v5610_v17 = vmul.f32 %v7430_v25, %v5609_v16  ;;  %v4482_v15 = vunpack.c.l.b16 %v4379_v14  ;;  %v5021_v44 = vpack.c.b16 %v5004_v24, %v5003_v38  ;;  %vm5627_vm1 = vweird.f32 %v9238_v28  ;;  %v6925_v11 = vld [vmem:[%s7622_s12 + $0xcc] sm:$0xf] }
 0x25e   : > { %7435 = vrcp.f32 %v9262_v63  ;;  %v5648_v1 = vand.u32 2147483648, %v9262_v63  ;;  %v5188_v8 = vadd.f32 %v9163_v37, %v4666_v35  ;;  %v3542_v18 = vadd.f32 %v9214_v60, %v8430_v22  ;;  %v6926_v35 = vld [vmem:[%s7622_s12 + $0xd0] sm:$0xf] }
 0x25f   : > { %v9271_v49 = vpop.eup %7433  ;;  %v5611_v23 = vadd.f32 %v7430_v25, %v5610_v17  ;;  %v4499_v43 = vpack.c.b16 %v4482_v15, %v4481_v19  ;;  %5165 = vmatmul.bf16.gmra.mxu0 %v5021_v44  ;;  %vm9288_vm6 = vcmp.eq.f32.partialorder %v5631_v52, 8.507059e+37  ;;  %v5634_v22 = vor.u32 1.1754944e-38, %v5633_v62  ;;  %v9294_v9 = vpop.f32.mrf.mxu2 }
 0x260   : > { %v5623_v33 = vmul.f32 %v9271_v49, %v9238_v28  ;;  %vm5628_vm3 = vweird.f32 %v9271_v49  ;;  %v5646_v60 = vand.u32 2147483647, %v9262_v63  ;;  %v9298_v42 = vor.u32 1.1754944e-38, %v5648_v1  ;;  %v9302_v13 = vpop.f32.mrf.mxu3 }
 0x261   : > { %v5615_v59 = vsel %vm9281_vm2, %v7430_v25, %v5611_v23  ;;  %4643 = vmatmul.bf16.gmra.mxu3 %v4499_v43  ;;  %v5288_v2 = vmul.f32 %v9186_v21, %v5188_v8  ;;  %v3921_v4 = vadd.f32 %v3860_v39, %v3542_v18  ;;  %v6687_v32 = vrot.slane %v6669_v47, 9  ;;  %v9306_v38 = vpop.f32.mrf.mxu1  ;;  %vm5629_vm10 = vmor %vm5627_vm1, %vm5628_vm3 }
 0x262   : > { %v5620_v19 = vsel %vm9247_vm15, %v5619_v56, %v5615_v59  ;;  %v5624_v46 = vsub.f32 1.0, %v5623_v33  ;;  %v3274_v16 = vrot.slane %v6670_v7, 5  ;;  %vm5642_vm7 = vweird.f32 %v9262_v63 }
 0x263   : > { %v5961_v24 = vmul.f32 %v5620_v19, %v9119_v20  ;;  %v9311_v25 = vadd.f32 %v9197_v40, %v5288_v2  ;;  %v4667_v39 = vadd.f32 %v4606_v54, %v3921_v4  ;;  %v3277_v51 = vrot.slane %v6671_v10, 5  ;;  %v9313_v52 = vpop.f32.mrf.mxu0  ;;  %v7021_v19 = vld [vmem:[%s7622_s12 + $0xcc] sm:$0xe] }
 0x264   : > { %v7436_v26 = vpop.eup %7435  ;;  %v5625_v56 = vmul.f32 %v9271_v49, %v5624_v46  ;;  %v3275_v62 = vsel %vm7770_vm5, %v6687_v32, %v3274_v16  ;;  %v3276_v14 = vrot.slane %v3274_v16, 4  ;;  %v4381_v17 = vshrl.u32 %v6925_v11, 16  ;;  %v7022_v46 = vld [vmem:[%s7622_s12 + $0xd0] sm:$0xf] }
 0x265   : > { %v7266_v20 = vpack.c.bf16 %v5961_v24, %v5960_v30  ;;  %v5638_v15 = vmul.f32 %v7436_v26, %v9262_v63  ;;  %vm5643_vm8 = vweird.f32 %v7436_v26  ;;  %vm9319_vm9 = vcmp.eq.f32.partialorder %v5646_v60, 8.507059e+37 }
 0x266   : > { %v7100_v54 = vmul.f32 -1.442695, %v9311_v25  ;;  %v5626_v1 = vadd.f32 %v9271_v49, %v5625_v56  ;;  %v5189_v23 = vadd.f32 %v9220_v55, %v4667_v39  ;;  %v3278_v43 = vsel %vm7770_vm5, %v3276_v14, %v3277_v51  ;;  %v7023_v39 = vld [vmem:[%s7622_s12 + $0xd4] sm:$0x1]  ;;  %vm5644_vm11 = vmor %vm5642_vm7, %vm5643_vm8 }
 0x267   : > { %v3358_v8 = vunpack.c.l.b16 %v3275_v62  ;;  %7326 = vst [vmem:[%s8955_s25 + $0x20] sm:$0xff] %v7266_v20   ;;  %v5639_v30 = vsub.f32 1.0, %v5638_v15  ;;  %v3359_v18 = vunpack.c.l.b16 %v3278_v43  ;;  %v4383_v47 = vrot.slane %v4381_v17, 4  ;;  %v3865_v10 = vpop.f32.mrf.mxu2 }
 0x268   : > { %7437 = vpow2.f32 %v7100_v54  ;;  %v5630_v7 = vsel %vm5629_vm10, %v9271_v49, %v5626_v1  ;;  %v5289_v55 = vmul.f32 %v9186_v21, %v5189_v23  ;;  %v4384_v33 = vshll.u32 %v6925_v11, 16  ;;  %v9341_v32 = vpop.f32.mrf.mxu3 }
 0x269   : > { %v4390_v60 = vshll.u32 %v6926_v35, 16  ;;  %v5635_v59 = vsel %vm9288_vm6, %v5634_v22, %v5630_v7  ;;  %v5640_v28 = vmul.f32 %v7436_v26, %v5639_v30  ;;  %v3375_v2 = vpack.c.b16 %v3359_v18, %v3358_v8  ;;  %v3489_v51 = vpop.f32.mrf.mxu1 }
 0x26a   : > { %v4394_v4 = vshrl.u32 %v6926_v35, 16  ;;  %v9344_v16 = vadd.f32 %v9197_v40, %v5289_v55  ;;  %v3543_v49 = vadd.f32 %v9255_v3, %v8450_v27  ;;  %v4386_v24 = vrot.slane %v4384_v33, 5 }
 0x26b   : > { %v4392_v11 = vrot.slane %v4390_v60, 5  ;;  %v5962_v37 = vmul.f32 %v5635_v59, %v9172_v48  ;;  %v5641_v22 = vadd.f32 %v7436_v26, %v5640_v28  ;;  %3523 = vmatmul.bf16.gmra.mxu1 %v3375_v2  ;;  %v4400_v62 = vshll.u32 %v6927_v5, 16  ;;  %v5136_v14 = vpop.f32.mrf.mxu0 }
 0x26c   : > { %v4396_v56 = vrot.slane %v4394_v4, 4  ;;  %v7101_v17 = vmul.f32 -1.442695, %v9344_v16  ;;  %v4387_v20 = vor.u32 %v4386_v24, %v4383_v47  ;;  %v7039_v15 = vrot.slane %v7021_v19, 9 }
 0x26d   : > { %v4921_v27 = vrot.slane %v7022_v46, 5  ;;  %v5645_v54 = vsel %vm5644_vm11, %v7436_v26, %v5641_v22  ;;  %v4402_v1 = vrot.slane %v4400_v62, 5  ;;  %v4924_v23 = vrot.slane %v7023_v39, 5 }
 0x26e   : > { %v7438_v3 = vpop.eup %7437  ;;  %v4397_v35 = vor.u32 %v4396_v56, %v4392_v11  ;;  %v5650_v48 = vsel %vm9319_vm9, %v9298_v42, %v5645_v54  ;;  %7439 = vpow2.f32 %v7101_v17  ;;  %v4388_v8 = vrot.slane %v4387_v20, 4 }
 0x26f   : > { %v9357_v43 = vadd.f32 1.0, %v7438_v3  ;;  %v5963_v63 = vmul.f32 %v5650_v48, %v9200_v45  ;;  %v4923_v18 = vrot.slane %v4921_v27, 4  ;;  %v3922_v47 = vadd.f32 %v9294_v9, %v3543_v49  ;;  %v3868_v7 = vpop.f32.mrf.mxu2 }
 0x270   : > { %v4398_v30 = vrot.slane %v4397_v35, 4  ;;  %v4922_v26 = vsel %vm7770_vm5, %v7039_v15, %v4921_v27  ;;  %v4393_v42 = vsel %vm7766_vm4, %v4388_v8, %v4392_v11  ;;  %v4614_v5 = vpop.f32.mrf.mxu3  ;;  %v3544_v4 = vadd.f32 %v9306_v38, %v8460_v12 }
 0x271   : > { %7441 = vrcp.f32 %v9357_v43  ;;  %v7271_v55 = vpack.c.bf16 %v5963_v63, %v5962_v37  ;;  %v4925_v45 = vsel %vm7770_vm5, %v4923_v18, %v4924_v23  ;;  %v4483_v33 = vunpack.c.l.b16 %v4393_v42  ;;  %v3491_v9 = vpop.f32.mrf.mxu1 }
 0x272   : > { %v4403_v44 = vsel %vm7766_vm4, %v4398_v30, %v4402_v1  ;;  %v5005_v59 = vunpack.c.l.b16 %v4922_v26  ;;  %v5006_v28 = vunpack.c.l.b16 %v4925_v45  ;;  %v4668_v2 = vadd.f32 %v9302_v13, %v3922_v47 }
 0x273   : > { %v4484_v60 = vunpack.c.l.b16 %v4403_v44  ;;  %7327 = vst [vmem:[%s8955_s25 + $0x28] sm:$0xff] %v7271_v55   ;;  %v5138_v19 = vpop.f32.mrf.mxu0  ;;  %v3545_v31 = vadd.f32 %v3489_v51, %v8478_v29  ;;  %v3923_v39 = vadd.f32 %v3865_v10, %v3544_v4  ;;  %v3546_v12 = vadd.f32 %v3491_v9, %v8494_v53 }
 0x274   : > { %v7440_v46 = vpop.eup %7439  ;;  %v5022_v36 = vpack.c.b16 %v5006_v28, %v5005_v59  ;;  %v5190_v11 = vadd.f32 %v9258_v58, %v4668_v2  ;;  %vm5657_vm4 = vweird.f32 %v9357_v43  ;;  %v5663_v63 = vand.u32 2147483648, %v9357_v43 }
 0x275   : > { %v4500_v49 = vpack.c.b16 %v4484_v60, %v4483_v33  ;;  %v9375_v24 = vadd.f32 1.0, %v7440_v46  ;;  %v3924_v22 = vadd.f32 %v3868_v7, %v3545_v31  ;;  %v4669_v38 = vadd.f32 %v9341_v32, %v3923_v39 }
 0x276   : > { %5170 = vmatmul.bf16.gmra.mxu0 %v5022_v36  ;;  %v5290_v29 = vmul.f32 %v9186_v21, %v5190_v11  ;;  %v5661_v26 = vand.u32 2147483647, %v9357_v43  ;;  %v5664_v2 = vor.u32 1.1754944e-38, %v5663_v63 }
 0x277   : > { %v9378_v37 = vpop.eup %7441  ;;  %4648 = vmatmul.bf16.gmra.mxu3 %v4500_v49  ;;  %7443 = vrcp.f32 %v9375_v24  ;;  %v3870_v51 = vpop.f32.mrf.mxu2  ;;  %v4670_v58 = vadd.f32 %v4614_v5, %v3924_v22  ;;  %v5191_v20 = vadd.f32 %v9313_v52, %v4669_v38  ;;  %v5678_v55 = vand.u32 2147483648, %v9375_v24 }
 0x278   : > { %v5653_v13 = vmul.f32 %v9378_v37, %v9357_v43  ;;  %v3925_v10 = vadd.f32 %v3870_v51, %v3546_v12  ;;  %v4616_v62 = vpop.f32.mrf.mxu3  ;;  %v9387_v17 = vadd.f32 %v9197_v40, %v5290_v29  ;;  %vm5658_vm5 = vweird.f32 %v9378_v37 }
 0x279   : > { %v3494_v15 = vpop.f32.mrf.mxu1  ;;  %v5192_v3 = vadd.f32 %v5136_v14, %v4670_v58  ;;  %v5291_v32 = vmul.f32 %v9186_v21, %v5191_v20  ;;  %vm9414_vm12 = vmor %vm5657_vm4, %vm5658_vm5  ;;  %v5676_v5 = vand.u32 2147483647, %v9375_v24  ;;  %vm5662_vm14 = vcmp.eq.f32.partialorder %v5661_v26, 8.507059e+37 }
 0x27a   : > { %v5654_v56 = vsub.f32 1.0, %v5653_v13  ;;  %v4671_v54 = vadd.f32 %v4616_v62, %v3925_v10  ;;  %v7102_v35 = vmul.f32 -1.442695, %v9387_v17  ;;  %v3547_v47 = vadd.f32 %v3494_v15, %v8514_v6 }
 0x27b   : > { %v5141_v53 = vpop.f32.mrf.mxu0  ;;  %v5292_v23 = vmul.f32 %v9186_v21, %v5192_v3  ;;  %v9399_v14 = vadd.f32 %v9197_v40, %v5291_v32  ;;  %vm5672_vm15 = vweird.f32 %v9375_v24  ;;  %v5679_v36 = vor.u32 1.1754944e-38, %v5678_v55 }
 0x27c   : > { %v5655_v27 = vmul.f32 %v9378_v37, %v5654_v56  ;;  %v5193_v48 = vadd.f32 %v5138_v19, %v4671_v54  ;;  %7445 = vpow2.f32 %v7102_v35  ;;  %vm5677_vm1 = vcmp.eq.f32.partialorder %v5676_v5, 8.507059e+37 }
 0x27d   : > { %v7444_v1 = vpop.eup %7443  ;;  %v9403_v30 = vadd.f32 %v9197_v40, %v5292_v23  ;;  %v7103_v42 = vmul.f32 -1.442695, %v9399_v14 }
 0x27e   : > { %v5656_v52 = vadd.f32 %v9378_v37, %v5655_v27  ;;  %v5668_v8 = vmul.f32 %v7444_v1, %v9375_v24  ;;  %v5293_v18 = vmul.f32 %v9186_v21, %v5193_v48  ;;  %vm5673_vm13 = vweird.f32 %v7444_v1 }
 0x27f   : > { %v3873_v44 = vpop.f32.mrf.mxu2  ;;  %v7104_v6 = vmul.f32 -1.442695, %v9403_v30  ;;  %7447 = vpow2.f32 %v7103_v42  ;;  %vm5674_vm0 = vmor %vm5672_vm15, %vm5673_vm13 }
 0x280   : > { %v5669_v7 = vsub.f32 1.0, %v5668_v8  ;;  %v9421_v33 = vadd.f32 %v9197_v40, %v5293_v18  ;;  %v3926_v60 = vadd.f32 %v3873_v44, %v3547_v47  ;;  %v4619_v9 = vpop.f32.mrf.mxu3  ;;  %v5660_v59 = vsel %vm9414_vm12, %v9378_v37, %v5656_v52 }
 0x281   : > { %v3496_v43 = vpop.f32.mrf.mxu1  ;;  %7449 = vpow2.f32 %v7104_v6  ;;  %v5665_v11 = vsel %vm5662_vm14, %v5664_v2, %v5660_v59 }
 0x282   : > { %v5670_v28 = vmul.f32 %v7444_v1, %v5669_v7  ;;  %v7105_v4 = vmul.f32 -1.442695, %v9421_v33  ;;  %v4672_v19 = vadd.f32 %v4619_v9, %v3926_v60  ;;  %v7446_v49 = vpop.eup %7445  ;;  %v5964_v29 = vmul.f32 %v5665_v11, %v9311_v25 }
 0x283   : > { %v5143_v46 = vpop.f32.mrf.mxu0  ;;  %v9428_v39 = vadd.f32 1.0, %v7446_v49  ;;  %v3548_v27 = vadd.f32 %v3496_v43, %v8524_v0 }
 0x284   : > { %v5671_v31 = vadd.f32 %v7444_v1, %v5670_v28  ;;  %7451 = vpow2.f32 %v7105_v4  ;;  %v5194_v37 = vadd.f32 %v5141_v53, %v4672_v19 }
 0x285   : > { %7453 = vrcp.f32 %v9428_v39  ;;  %v7448_v12 = vpop.eup %7447  ;;  %v5693_v25 = vand.u32 2147483648, %v9428_v39  ;;  %vm5687_vm2 = vweird.f32 %v9428_v39 }
 0x286   : > { %v5675_v22 = vsel %vm5674_vm0, %v7444_v1, %v5671_v31  ;;  %v5294_v24 = vmul.f32 %v9186_v21, %v5194_v37  ;;  %v9434_v58 = vadd.f32 1.0, %v7448_v12 }
 0x287   : > { %v5680_v13 = vsel %vm5677_vm1, %v5679_v36, %v5675_v22  ;;  %v3875_v51 = vpop.f32.mrf.mxu2  ;;  %v7450_v56 = vpop.eup %7449  ;;  %v5694_v48 = vor.u32 1.1754944e-38, %v5693_v25 }
 0x288   : > { %v5965_v38 = vmul.f32 %v5680_v13, %v9344_v16  ;;  %v4621_v10 = vpop.f32.mrf.mxu3  ;;  %v9436_v20 = vadd.f32 1.0, %v7450_v56  ;;  %v9439_v15 = vadd.f32 %v9197_v40, %v5294_v24  ;;  %7455 = vrcp.f32 %v9434_v58 }
 0x289   : > { %v3499_v3 = vpop.f32.mrf.mxu1  ;;  %v5691_v16 = vand.u32 2147483647, %v9428_v39  ;;  %v3927_v53 = vadd.f32 %v3875_v51, %v3548_v27  ;;  %v5706_v52 = vand.u32 2147483647, %v9434_v58  ;;  %v5708_v8 = vand.u32 2147483648, %v9434_v58 }
 0x28a   : > { %v7276_v62 = vpack.c.bf16 %v5965_v38, %v5964_v29  ;;  %v7452_v54 = vpop.eup %7451  ;;  %7457 = vrcp.f32 %v9436_v20  ;;  %v7106_v23 = vmul.f32 -1.442695, %v9439_v15  ;;  %v5721_v47 = vand.u32 2147483647, %v9436_v20 }
 0x28b   : > { %v5146_v35 = vpop.f32.mrf.mxu0  ;;  %v7454_v32 = vpop.eup %7453  ;;  %v9447_v1 = vadd.f32 1.0, %v7452_v54  ;;  %vm9455_vm3 = vcmp.eq.f32.partialorder %v5691_v16, 8.507059e+37  ;;  %v4673_v26 = vadd.f32 %v4621_v10, %v3927_v53  ;;  %vm5702_vm6 = vweird.f32 %v9434_v58 }
 0x28c   : > { %7328 = vst [vmem:[%s8955_s25 + $0x30] sm:$0xff] %v7276_v62   ;;  %v5683_v0 = vmul.f32 %v7454_v32, %v9428_v39  ;;  %vm5717_vm7 = vweird.f32 %v9436_v20  ;;  %v5723_v42 = vand.u32 2147483648, %v9436_v20  ;;  %v3549_v44 = vadd.f32 %v3499_v3, %v8542_v34 }
 0x28d   : > { %7459 = vrcp.f32 %v9447_v1  ;;  %vm5688_vm8 = vweird.f32 %v7454_v32  ;;  %v5195_v9 = vadd.f32 %v5143_v46, %v4673_v26  ;;  %vm9465_vm9 = vcmp.eq.f32.partialorder %v5706_v52, 8.507059e+37 }
 0x28e   : > { %v5684_v63 = vsub.f32 1.0, %v5683_v0  ;;  %7461 = vpow2.f32 %v7106_v23  ;;  %v7456_v55 = vpop.eup %7455  ;;  %v5709_v43 = vor.u32 1.1754944e-38, %v5708_v8  ;;  %vm9470_vm10 = vcmp.eq.f32.partialorder %v5721_v47, 8.507059e+37  ;;  %vm9477_vm11 = vmor %vm5687_vm2, %vm5688_vm8 }
 0x28f   : > { %v3878_v7 = vpop.f32.mrf.mxu2  ;;  %v5698_v60 = vmul.f32 %v7456_v55, %v9434_v58  ;;  %v5295_v31 = vmul.f32 %v9186_v21, %v5195_v9  ;;  %v5724_v37 = vor.u32 1.1754944e-38, %v5723_v42  ;;  %vm5732_vm4 = vweird.f32 %v9447_v1 }
 0x290   : > { %v4624_v45 = vpop.f32.mrf.mxu3  ;;  %v7458_v5 = vpop.eup %7457  ;;  %v5685_v6 = vmul.f32 %v7454_v32, %v5684_v63  ;;  %v3928_v4 = vadd.f32 %v3878_v7, %v3549_v44  ;;  %vm5703_vm5 = vweird.f32 %v7456_v55  ;;  %v5738_v27 = vand.u32 2147483648, %v9447_v1 }
 0x291   : > { %v3501_v59 = vpop.f32.mrf.mxu1  ;;  %v5713_v2 = vmul.f32 %v7458_v5, %v9436_v20  ;;  %v5699_v49 = vsub.f32 1.0, %v5698_v60  ;;  %vm5718_vm12 = vweird.f32 %v7458_v5  ;;  %v9488_v56 = vadd.f32 %v9197_v40, %v5295_v31  ;;  %vm5704_vm13 = vmor %vm5702_vm6, %vm5703_vm5 }
 0x292   : > { %v5686_v19 = vadd.f32 %v7454_v32, %v5685_v6  ;;  %v4674_v22 = vadd.f32 %v4624_v45, %v3928_v4  ;;  %v5736_v53 = vand.u32 2147483647, %v9447_v1  ;;  %vm5719_vm14 = vmor %vm5717_vm7, %vm5718_vm12  ;;  %v3550_v63 = vadd.f32 %v3501_v59, %v8558_v61 }
 0x293   : > { %v7460_v36 = vpop.eup %7459  ;;  %v5714_v11 = vsub.f32 1.0, %v5713_v2  ;;  %v5700_v29 = vmul.f32 %v7456_v55, %v5699_v49  ;;  %v5148_v24 = vpop.f32.mrf.mxu0  ;;  %v5739_v26 = vor.u32 1.1754944e-38, %v5738_v27 }
 0x294   : > { %v7462_v13 = vpop.eup %7461  ;;  %v5690_v12 = vsel %vm9477_vm11, %v7454_v32, %v5686_v19  ;;  %v5728_v38 = vmul.f32 %v7460_v36, %v9447_v1  ;;  %v5196_v3 = vadd.f32 %v5146_v35, %v4674_v22  ;;  %vm5733_vm15 = vweird.f32 %v7460_v36 }
 0x295   : > { %v5715_v51 = vmul.f32 %v7458_v5, %v5714_v11  ;;  %v9485_v39 = vadd.f32 1.0, %v7462_v13  ;;  %v5701_v10 = vadd.f32 %v7456_v55, %v5700_v29  ;;  %v5695_v25 = vsel %vm9455_vm3, %v5694_v48, %v5690_v12  ;;  %vm5734_vm0 = vmor %vm5732_vm4, %vm5733_vm15 }
 0x296   : > { %v5729_v62 = vsub.f32 1.0, %v5728_v38  ;;  %v7107_v35 = vmul.f32 -1.442695, %v9488_v56  ;;  %v5296_v8 = vmul.f32 %v9186_v21, %v5196_v3  ;;  %v5966_v18 = vmul.f32 %v5695_v25, %v9387_v17 }
 0x297   : > { %v3880_v54 = vpop.f32.mrf.mxu2  ;;  %v5716_v16 = vadd.f32 %v7458_v5, %v5715_v51  ;;  %7463 = vrcp.f32 %v9485_v39  ;;  %v5705_v23 = vsel %vm5704_vm13, %v7456_v55, %v5701_v10  ;;  %vm5737_vm1 = vcmp.eq.f32.partialorder %v5736_v53, 8.507059e+37 }
 0x298   : > { %v4626_v32 = vpop.f32.mrf.mxu3  ;;  %v5730_v0 = vmul.f32 %v7460_v36, %v5729_v62  ;;  %v5710_v58 = vsel %vm9465_vm9, %v5709_v43, %v5705_v23  ;;  %7465 = vpow2.f32 %v7107_v35  ;;  %v9512_v55 = vadd.f32 %v9197_v40, %v5296_v8 }
 0x299   : > { %v3504_v52 = vpop.f32.mrf.mxu1  ;;  %v5720_v48 = vsel %vm5719_vm14, %v7458_v5, %v5716_v16  ;;  %v5967_v47 = vmul.f32 %v5710_v58, %v9399_v14  ;;  %v3929_v42 = vadd.f32 %v3880_v54, %v3550_v63  ;;  %vm5747_vm3 = vweird.f32 %v9485_v39 }
 0x29a   : > { %v5731_v20 = vadd.f32 %v7460_v36, %v5730_v0  ;;  %v5725_v7 = vsel %vm9470_vm10, %v5724_v37, %v5720_v48  ;;  %v7108_v45 = vmul.f32 -1.442695, %v9512_v55  ;;  %v3551_v6 = vadd.f32 %v3504_v52, %v8578_v57 }
 0x29b   : > { %v7281_v44 = vpack.c.bf16 %v5967_v47, %v5966_v18  ;;  %v4675_v5 = vadd.f32 %v4626_v32, %v3929_v42  ;;  %v5968_v1 = vmul.f32 %v5725_v7, %v9403_v30  ;;  %v5151_v59 = vpop.f32.mrf.mxu0  ;;  %v5751_v53 = vand.u32 2147483647, %v9485_v39 }
 0x29c   : > { %v5735_v61 = vsel %vm5734_vm0, %v7460_v36, %v5731_v20  ;;  %7467 = vpow2.f32 %v7108_v45 }
 0x29d   : > { %v9514_v17 = vpop.eup %7463  ;;  %v5740_v14 = vsel %vm5737_vm1, %v5739_v26, %v5735_v61  ;;  %7329 = vst [vmem:[%s8955_s25 + $0x38] sm:$0xff] %v7281_v44   ;;  %v5197_v43 = vadd.f32 %v5148_v24, %v4675_v5  ;;  %vm5752_vm8 = vcmp.eq.f32.partialorder %v5751_v53, 8.507059e+37 }
 0x29e   : > { %v5969_v60 = vmul.f32 %v5740_v14, %v9421_v33  ;;  %v5743_v9 = vmul.f32 %v9514_v17, %v9485_v39  ;;  %v7466_v34 = vpop.eup %7465  ;;  %vm5748_vm2 = vweird.f32 %v9514_v17 }
 0x29f   : > { %v3883_v28 = vpop.f32.mrf.mxu2  ;;  %v5297_v57 = vmul.f32 %v9186_v21, %v5197_v43  ;;  %v5459_v30 = vadd.f32 1.0, %v7466_v34  ;;  %vm9544_vm6 = vmor %vm5747_vm3, %vm5748_vm2 }
 0x2a0   : > { %v3930_v2 = vadd.f32 %v3883_v28, %v3551_v6  ;;  %v4629_v4 = vpop.f32.mrf.mxu3  ;;  %v7286_v19 = vpack.c.bf16 %v5969_v60, %v5968_v1  ;;  %v5744_v36 = vsub.f32 1.0, %v5743_v9 }
 0x2a1   : > { %v3506_v49 = vpop.f32.mrf.mxu1  ;;  %v9526_v33 = vadd.f32 %v9197_v40, %v5297_v57  ;;  %7469 = vrcp.f32 %v5459_v30  ;;  %v5766_v52 = vand.u32 2147483647, %v5459_v30  ;;  %v5768_v63 = vand.u32 2147483648, %v5459_v30 }
 0x2a2   : > { %v4676_v31 = vadd.f32 %v4629_v4, %v3930_v2  ;;  %7330 = vst [vmem:[%s8955_s25 + $0x40] sm:$0xff] %v7286_v19   ;;  %v7468_v11 = vpop.eup %7467  ;;  %v5745_v13 = vmul.f32 %v9514_v17, %v5744_v36  ;;  %v3552_v24 = vadd.f32 %v3506_v49, %v8588_v41  ;;  %v5753_v41 = vand.u32 2147483648, %v9485_v39 }
 0x2a3   : > { %v7109_v37 = vmul.f32 -1.442695, %v9526_v33  ;;  %v9531_v12 = vadd.f32 1.0, %v7468_v11  ;;  %v5153_v10 = vpop.f32.mrf.mxu0  ;;  %vm5762_vm9 = vweird.f32 %v5459_v30  ;;  %vm5767_vm11 = vcmp.eq.f32.partialorder %v5766_v52, 8.507059e+37 }
 0x2a4   : > { %v5198_v46 = vadd.f32 %v5151_v59, %v4676_v31  ;;  %v5746_v25 = vadd.f32 %v9514_v17, %v5745_v13  ;;  %v5754_v42 = vor.u32 1.1754944e-38, %v5753_v41  ;;  %v5769_v1 = vor.u32 1.1754944e-38, %v5768_v63 }
 0x2a5   : > { %7471 = vpow2.f32 %v7109_v37  ;;  %v9786_v37 = vld [vmem:[#allocation11_spill] sm:$0xff]  ;;  %vm5777_vm5 = vweird.f32 %v9531_v12 }
 0x2a6   : > { %v5298_v22 = vmul.f32 %v9186_v21, %v5198_v46  ;;  %7473 = vrcp.f32 %v9531_v12  ;;  %v5750_v8 = vsel %vm9544_vm6, %v9514_v17, %v5746_v25 }
 0x2a7   : > { %v3885_v29 = vpop.f32.mrf.mxu2  ;;  %v7470_v54 = vpop.eup %7469  ;;  %v5755_v6 = vsel %vm5752_vm8, %v5754_v42, %v5750_v8 }
 0x2a8   : > { %v9534_v38 = vadd.f32 %v9197_v40, %v5298_v22  ;;  %v4631_v51 = vpop.f32.mrf.mxu3  ;;  %v3931_v3 = vadd.f32 %v3885_v29, %v3552_v24  ;;  %v5758_v16 = vmul.f32 %v7470_v54, %v5459_v30  ;;  %vm5763_vm7 = vweird.f32 %v7470_v54 }
 0x2a9   : > { %v3509_v62 = vpop.f32.mrf.mxu1  ;;  %vm5764_vm10 = vmor %vm5762_vm9, %vm5763_vm7  ;;  %v5970_v19 = vmul.f32 %v5755_v6, %v9439_v15  ;;  %v5783_v15 = vand.u32 2147483648, %v9531_v12 }
 0x2aa   : > { %v7110_v27 = vmul.f32 -1.442695, %v9534_v38  ;;  %v4677_v32 = vadd.f32 %v4631_v51, %v3931_v3  ;;  %v5759_v35 = vsub.f32 1.0, %v5758_v16  ;;  %v3553_v58 = vadd.f32 %v3509_v62, %v8606_v50 }
 0x2ab   : > { %v7472_v23 = vpop.eup %7471  ;;  %v5156_v9 = vpop.f32.mrf.mxu0  ;;  %v5784_v53 = vor.u32 1.1754944e-38, %v5783_v15 }
 0x2ac   : > { %7475 = vpow2.f32 %v7110_v27  ;;  %v9549_v48 = vpop.eup %7473  ;;  %v9554_v18 = vadd.f32 1.0, %v7472_v23  ;;  %v5199_v39 = vadd.f32 %v5153_v10, %v4677_v32  ;;  %v5760_v20 = vmul.f32 %v7470_v54, %v5759_v35 }
 0x2ad   : > { %v5773_v26 = vmul.f32 %v9549_v48, %v9531_v12  ;;  %vm5778_vm4 = vweird.f32 %v9549_v48 }
 0x2ae   : > { %7477 = vrcp.f32 %v9554_v18  ;;  %v5761_v17 = vadd.f32 %v7470_v54, %v5760_v20  ;;  %v5299_v45 = vmul.f32 %v9186_v21, %v5199_v39  ;;  %vm9582_vm12 = vmor %vm5777_vm5, %vm5778_vm4  ;;  %v5796_v62 = vand.u32 2147483647, %v9554_v18  ;;  %v9601_v39 = vld [vmem:[%s9707_s2] ss:$0 sm:$0xff] }
 0x2af   : > { %v3888_v47 = vpop.f32.mrf.mxu2  ;;  %v5774_v14 = vsub.f32 1.0, %v5773_v26  ;;  %vm5792_vm15 = vweird.f32 %v9554_v18 }
 0x2b0   : > { %v3932_v7 = vadd.f32 %v3888_v47, %v3553_v58  ;;  %v4634_v50 = vpop.f32.mrf.mxu3  ;;  %v5765_v59 = vsel %vm5764_vm10, %v7470_v54, %v5761_v17  ;;  %v9565_v43 = vadd.f32 %v9197_v40, %v5299_v45  ;;  %vm5797_vm1 = vcmp.eq.f32.partialorder %v5796_v62, 8.507059e+37 }
 0x2b1   : > { %v3511_v44 = vpop.f32.mrf.mxu1  ;;  %v5775_v28 = vmul.f32 %v9549_v48, %v5774_v14  ;;  %v5770_v4 = vsel %vm5767_vm11, %v5769_v1, %v5765_v59 }
 0x2b2   : > { %v7476_v61 = vpop.eup %7475  ;;  %v4678_v5 = vadd.f32 %v4634_v50, %v3932_v7  ;;  %v5971_v49 = vmul.f32 %v5770_v4, %v9488_v56  ;;  %v7111_v34 = vmul.f32 -1.442695, %v9565_v43  ;;  %v3554_v22 = vadd.f32 %v3511_v44, %v9786_v37  ;;  %v9610_v44 = vld [vmem:[%s9708_s3] ss:$0 sm:$0xff]  ;;  %v9790_v4 = vld [vmem:[#allocation4_spill] sm:$0xff] }
 0x2b3   : > { %v9561_v60 = vadd.f32 1.0, %v7476_v61  ;;  %v5776_v31 = vadd.f32 %v9549_v48, %v5775_v28  ;;  %v5158_v41 = vpop.f32.mrf.mxu0 }
 0x2b4   : > { %v5200_v2 = vadd.f32 %v5156_v9, %v4678_v5  ;;  %v7478_v57 = vpop.eup %7477  ;;  %v7291_v46 = vpack.c.bf16 %v5971_v49, %v5970_v19 }
 0x2b5   : > { %7479 = vrcp.f32 %v9561_v60  ;;  %v5788_v11 = vmul.f32 %v7478_v57, %v9554_v18  ;;  %v5780_v10 = vsel %vm9582_vm12, %v9549_v48, %v5776_v31  ;;  %vm5793_vm13 = vweird.f32 %v7478_v57 }
 0x2b6   : > { %v5300_v36 = vmul.f32 %v9186_v21, %v5200_v2  ;;  %7481 = vpow2.f32 %v7111_v34  ;;  %7331 = vst [vmem:[%s8955_s25 + $0x48] sm:$0xff] %v7291_v46   ;;  %v5781_v21 = vand.u32 2147483647, %v9531_v12  ;;  %vm5794_vm0 = vmor %vm5792_vm15, %vm5793_vm13  ;;  %vm5807_vm3 = vweird.f32 %v9561_v60 }
 0x2b7   : > { %v3890_v30 = vpop.f32.mrf.mxu2  ;;  %v5789_v29 = vsub.f32 1.0, %v5788_v11  ;;  %v5813_v31 = vand.u32 2147483648, %v9561_v60 }
 0x2b8   : > { %v9579_v56 = vadd.f32 %v9197_v40, %v5300_v36  ;;  %v3933_v24 = vadd.f32 %v3890_v30, %v3554_v22  ;;  %v5798_v40 = vand.u32 2147483648, %v9554_v18  ;;  %v4636_v3 = vpop.f32.mrf.mxu3  ;;  %vm5782_vm14 = vcmp.eq.f32.partialorder %v5781_v21, 8.507059e+37  ;;  %v9789_v18 = vld [vmem:[#allocation3_spill] sm:$0xff] }
 0x2b9   : > { %v3514_v54 = vpop.f32.mrf.mxu1  ;;  %v5790_v25 = vmul.f32 %v7478_v57, %v5789_v29  ;;  %v5785_v35 = vsel %vm5782_vm14, %v5784_v53, %v5780_v10  ;;  %v5814_v62 = vor.u32 1.1754944e-38, %v5813_v31 }
 0x2ba   : > { %v7112_v27 = vmul.f32 -1.442695, %v9579_v56  ;;  %v4679_v16 = vadd.f32 %v4636_v3, %v3933_v24  ;;  %v5799_v52 = vor.u32 1.1754944e-38, %v5798_v40  ;;  %v3555_v26 = vadd.f32 %v3514_v54, %v9789_v18 }
 0x2bb   : > { %v9587_v51 = vpop.eup %7479  ;;  %v5791_v32 = vadd.f32 %v7478_v57, %v5790_v25  ;;  %v5972_v7 = vmul.f32 %v5785_v35, %v9512_v55 }
 0x2bc   : > { %v5803_v12 = vmul.f32 %v9587_v51, %v9561_v60  ;;  %7483 = vpow2.f32 %v7112_v27  ;;  %v5201_v23 = vadd.f32 %v5158_v41, %v4679_v16  ;;  %v7482_v0 = vpop.eup %7481  ;;  %vm5808_vm2 = vweird.f32 %v9587_v51 }
 0x2bd   : > { %v5795_v48 = vsel %vm5794_vm0, %v7478_v57, %v5791_v32  ;;  %v5463_v63 = vadd.f32 1.0, %v7482_v0  ;;  %v5811_v57 = vand.u32 2147483647, %v9561_v60  ;;  %vm9627_vm6 = vmor %vm5807_vm3, %vm5808_vm2 }
 0x2be   : > { %v5804_v8 = vsub.f32 1.0, %v5803_v12  ;;  %v5301_v47 = vmul.f32 %v9601_v39, %v5201_v23  ;;  %v5800_v20 = vsel %vm5797_vm1, %v5799_v52, %v5795_v48 }
 0x2bf   : > { %v3893_v58 = vpop.f32.mrf.mxu2  ;;  %v5973_v42 = vmul.f32 %v5800_v20, %v9526_v33  ;;  %7485 = vrcp.f32 %v5463_v63  ;;  %v5826_v15 = vand.u32 2147483647, %v5463_v63  ;;  %v5828_v13 = vand.u32 2147483648, %v5463_v63 }
 0x2c0   : > { %v9613_v61 = vadd.f32 %v9610_v44, %v5301_v47  ;;  %v3934_v17 = vadd.f32 %v3893_v58, %v3555_v26  ;;  %v5805_v45 = vmul.f32 %v9587_v51, %v5804_v8  ;;  %vm5812_vm8 = vcmp.eq.f32.partialorder %v5811_v57, 8.507059e+37 }
 0x2c1   : > { %v7296_v14 = vpack.c.bf16 %v5973_v42, %v5972_v7  ;;  %v3516_v33 = vpop.f32.mrf.mxu1  ;;  %vm5822_vm9 = vweird.f32 %v5463_v63  ;;  %v5829_v12 = vor.u32 1.1754944e-38, %v5828_v13  ;;  %vm5827_vm11 = vcmp.eq.f32.partialorder %v5826_v15, 8.507059e+37 }
 0x2c2   : > { %v7484_v50 = vpop.eup %7483  ;;  %v7113_v55 = vmul.f32 -1.442695, %v9613_v61  ;;  %v5806_v28 = vadd.f32 %v9587_v51, %v5805_v45  ;;  %v3556_v19 = vadd.f32 %v3516_v33, %v9790_v4 }
 0x2c3   : > { %v9616_v5 = vadd.f32 1.0, %v7484_v50  ;;  %7332 = vst [vmem:[%s8955_s25 + $0x50] sm:$0xff] %v7296_v14  }
 0x2c4   : > { %v5810_v22 = vsel %vm9627_vm6, %v9587_v51, %v5806_v28 }
 0x2c5   : > { %v4639_v6 = vpop.f32.mrf.mxu3  ;;  %7487 = vrcp.f32 %v9616_v5  ;;  %v7486_v59 = vpop.eup %7485  ;;  %v5815_v25 = vsel %vm5812_vm8, %v5814_v62, %v5810_v22  ;;  %v5843_v26 = vand.u32 2147483648, %v9616_v5  ;;  %vm5837_vm5 = vweird.f32 %v9616_v5 }
 0x2c6   : > { %7489 = vpow2.f32 %v7113_v55  ;;  %v4680_v1 = vadd.f32 %v4639_v6, %v3934_v17  ;;  %v5818_v49 = vmul.f32 %v7486_v59, %v5463_v63  ;;  %vm5823_vm7 = vweird.f32 %v7486_v59 }
 0x2c7   : > { %v3895_v9 = vpop.f32.mrf.mxu2  ;;  %vm5824_vm10 = vmor %vm5822_vm9, %vm5823_vm7  ;;  %v5974_v23 = vmul.f32 %v5815_v25, %v9534_v38  ;;  %v5841_v7 = vand.u32 2147483647, %v9616_v5  ;;  %v5844_v6 = vor.u32 1.1754944e-38, %v5843_v26 }
 0x2c8   : > { %v5161_v2 = vpop.f32.mrf.mxu0  ;;  %v3935_v36 = vadd.f32 %v3895_v9, %v3556_v19  ;;  %v5819_v46 = vsub.f32 1.0, %v5818_v49 }
 0x2c9   : > { %v5202_v34 = vadd.f32 %v5161_v2, %v4680_v1  ;;  %vm5842_vm14 = vcmp.eq.f32.partialorder %v5841_v7, 8.507059e+37 }
 0x2ca   : > { %v5820_v29 = vmul.f32 %v7486_v59, %v5819_v46 }
 0x2cb   : > { %v5302_v11 = vmul.f32 %v9601_v39, %v5202_v34  ;;  %v7488_v37 = vpop.eup %7487 }
 0x2cc   : > { %v7490_v21 = vpop.eup %7489  ;;  %v5833_v60 = vmul.f32 %v7488_v37, %v9616_v5  ;;  %v5821_v3 = vadd.f32 %v7486_v59, %v5820_v29  ;;  %vm5838_vm4 = vweird.f32 %v7488_v37 }
 0x2cd   : > { %v9637_v24 = vadd.f32 %v9610_v44, %v5302_v11  ;;  %v4641_v10 = vpop.f32.mrf.mxu3  ;;  %v5465_v40 = vadd.f32 1.0, %v7490_v21  ;;  %vm5839_vm12 = vmor %vm5837_vm5, %vm5838_vm4 }
 0x2ce   : > { %v4681_v27 = vadd.f32 %v4641_v10, %v3935_v36  ;;  %v5834_v54 = vsub.f32 1.0, %v5833_v60  ;;  %v5825_v53 = vsel %vm5824_vm10, %v7486_v59, %v5821_v3  ;;  %v9793_v59 = vld [vmem:[#allocation5_spill] sm:$0xff]  ;;  %v9794_v60 = vld [vmem:[#allocation6_spill] sm:$0xff] }
 0x2cf   : > { %v7114_v51 = vmul.f32 -1.442695, %v9637_v24  ;;  %7491 = vrcp.f32 %v5465_v40  ;;  %v5830_v32 = vsel %vm5827_vm11, %v5829_v12, %v5825_v53  ;;  %v5858_v50 = vand.u32 2147483648, %v5465_v40  ;;  %v3898_v55 = vpop.f32.mrf.mxu2 }
 0x2d0   : > { %v5163_v16 = vpop.f32.mrf.mxu0  ;;  %v5975_v0 = vmul.f32 %v5830_v32, %v9565_v43  ;;  %v5835_v35 = vmul.f32 %v7488_v37, %v5834_v54  ;;  %v3519_v43 = vpop.f32.mrf.mxu1  ;;  %v5856_v45 = vand.u32 2147483647, %v5465_v40  ;;  %vm5852_vm15 = vweird.f32 %v5465_v40 }
 0x2d1   : > { %7493 = vpow2.f32 %v7114_v51  ;;  %v5203_v41 = vadd.f32 %v5163_v16, %v4681_v27  ;;  %v5859_v9 = vor.u32 1.1754944e-38, %v5858_v50  ;;  %v3557_v5 = vadd.f32 %v3519_v43, %v9793_v59 }
 0x2d2   : > { %v7301_v58 = vpack.c.bf16 %v5975_v0, %v5974_v23  ;;  %v5836_v47 = vadd.f32 %v7488_v37, %v5835_v35  ;;  %vm5857_vm1 = vcmp.eq.f32.partialorder %v5856_v45, 8.507059e+37 }
 0x2d3   : > { %v5303_v52 = vmul.f32 %v9601_v39, %v5203_v41  ;;  %v3936_v34 = vadd.f32 %v3898_v55, %v3557_v5 }
 0x2d4   : > { %7333 = vst [vmem:[%s8955_s25 + $0x58] sm:$0xff] %v7301_v58   ;;  %v5840_v17 = vsel %vm5839_vm12, %v7488_v37, %v5836_v47 }
 0x2d5   : > { %v9644_v48 = vadd.f32 %v9610_v44, %v5303_v52  ;;  %v7492_v8 = vpop.eup %7491  ;;  %v5845_v1 = vsel %vm5842_vm14, %v5844_v6, %v5840_v17 }
 0x2d6   : > { %v5848_v20 = vmul.f32 %v7492_v8, %v5465_v40  ;;  %vm5853_vm13 = vweird.f32 %v7492_v8  ;;  %v5976_v57 = vmul.f32 %v5845_v1, %v9579_v56 }
 0x2d7   : > { %v7494_v63 = vpop.eup %7493  ;;  %v7115_v18 = vmul.f32 -1.442695, %v9644_v48  ;;  %vm5854_vm0 = vmor %vm5852_vm15, %vm5853_vm13  ;;  %v3900_v21 = vpop.f32.mrf.mxu2 }
 0x2d8   : > { %v9649_v38 = vadd.f32 1.0, %v7494_v63  ;;  %v5849_v42 = vsub.f32 1.0, %v5848_v20  ;;  %v3521_v30 = vpop.f32.mrf.mxu1 }
 0x2d9   : > { %7495 = vpow2.f32 %v7115_v18  ;;  %v3558_v10 = vadd.f32 %v3521_v30, %v9794_v60 }
 0x2da   : > { %7497 = vrcp.f32 %v9649_v38  ;;  %v5850_v14 = vmul.f32 %v7492_v8, %v5849_v42  ;;  %v5873_v3 = vand.u32 2147483648, %v9649_v38  ;;  %vm5867_vm3 = vweird.f32 %v9649_v38 }
 0x2db   : > { %v3937_v40 = vadd.f32 %v3900_v21, %v3558_v10  ;;  %v5871_v51 = vand.u32 2147483647, %v9649_v38 }
 0x2dc   : > { %v5851_v33 = vadd.f32 %v7492_v8, %v5850_v14  ;;  %v5166_v37 = vpop.f32.mrf.mxu0  ;;  %v9797_v14 = vld [vmem:[#allocation7_spill] sm:$0xff] }
 0x2dd   : > { %vm5872_vm8 = vcmp.eq.f32.partialorder %v5871_v51, 8.507059e+37 }
 0x2de   : > { %v5855_v2 = vsel %vm5854_vm0, %v7492_v8, %v5851_v33  ;;  %v5874_v8 = vor.u32 1.1754944e-38, %v5873_v3 }
 0x2df   : > { %v7496_v28 = vpop.eup %7495  ;;  %v5860_v19 = vsel %vm5857_vm1, %v5859_v9, %v5855_v2 }
 0x2e0   : > { %v7498_v4 = vpop.eup %7497  ;;  %v5467_v49 = vadd.f32 1.0, %v7496_v28  ;;  %v5977_v31 = vmul.f32 %v5860_v19, %v9613_v61 }
 0x2e1   : > { %v5863_v36 = vmul.f32 %v7498_v4, %v9649_v38  ;;  %vm5868_vm2 = vweird.f32 %v7498_v4  ;;  %v3903_v38 = vpop.f32.mrf.mxu2 }
 0x2e2   : > { %7499 = vrcp.f32 %v5467_v49  ;;  %v7306_v46 = vpack.c.bf16 %v5977_v31, %v5976_v57  ;;  %vm9667_vm6 = vmor %vm5867_vm3, %vm5868_vm2  ;;  %v5888_v53 = vand.u32 2147483648, %v5467_v49  ;;  %v5886_v35 = vand.u32 2147483647, %v5467_v49 }
 0x2e3   : > { %v5864_v11 = vsub.f32 1.0, %v5863_v36  ;;  %vm5882_vm9 = vweird.f32 %v5467_v49 }
 0x2e4   : > { %v4644_v22 = vpop.f32.mrf.mxu3  ;;  %7334 = vst [vmem:[%s8955_s25 + $0x60] sm:$0xff] %v7306_v46   ;;  %v5168_v52 = vpop.f32.mrf.mxu0  ;;  %v5889_v18 = vor.u32 1.1754944e-38, %v5888_v53  ;;  %vm5887_vm11 = vcmp.eq.f32.partialorder %v5886_v35, 8.507059e+37 }
 0x2e5   : > { %v4682_v15 = vadd.f32 %v4644_v22, %v3936_v34  ;;  %v5865_v13 = vmul.f32 %v7498_v4, %v5864_v11 }
 0x2e7   : > { %v5204_v29 = vadd.f32 %v5166_v37, %v4682_v15  ;;  %v5866_v61 = vadd.f32 %v7498_v4, %v5865_v13 }
 0x2e8   : > { %v7500_v62 = vpop.eup %7499  ;;  %v3524_v58 = vpop.f32.mrf.mxu1 }
 0x2e9   : > { %v5304_v56 = vmul.f32 %v9601_v39, %v5204_v29  ;;  %v5878_v27 = vmul.f32 %v7500_v62, %v5467_v49  ;;  %v5870_v23 = vsel %vm9667_vm6, %v7498_v4, %v5866_v61  ;;  %vm5883_vm7 = vweird.f32 %v7500_v62  ;;  %v3905_v4 = vpop.f32.mrf.mxu2 }
 0x2ea   : > { %v5875_v20 = vsel %vm5872_vm8, %v5874_v8, %v5870_v23  ;;  %vm5884_vm10 = vmor %vm5882_vm9, %vm5883_vm7  ;;  %v3559_v45 = vadd.f32 %v3524_v58, %v9797_v14 }
 0x2eb   : > { %v9663_v54 = vadd.f32 %v9610_v44, %v5304_v56  ;;  %v5879_v25 = vsub.f32 1.0, %v5878_v27  ;;  %v5978_v50 = vmul.f32 %v5875_v20, %v9637_v24  ;;  %v9798_v24 = vld [vmem:[#allocation8_spill] sm:$0xff] }
 0x2ec   : > { %v4646_v12 = vpop.f32.mrf.mxu3  ;;  %v3938_v9 = vadd.f32 %v3903_v38, %v3559_v45 }
 0x2ed   : > { %v7116_v41 = vmul.f32 -1.442695, %v9663_v54  ;;  %v4683_v32 = vadd.f32 %v4646_v12, %v3937_v40  ;;  %v5880_v0 = vmul.f32 %v7500_v62, %v5879_v25 }
 0x2ef   : > { %7501 = vpow2.f32 %v7116_v41  ;;  %v5205_v63 = vadd.f32 %v5168_v52, %v4683_v32  ;;  %v5881_v47 = vadd.f32 %v7500_v62, %v5880_v0 }
 0x2f0   : > { %v3526_v59 = vpop.f32.mrf.mxu1 }
 0x2f1   : > { %v5305_v26 = vmul.f32 %v9601_v39, %v5205_v63  ;;  %v5885_v43 = vsel %vm5884_vm10, %v7500_v62, %v5881_v47  ;;  %v3560_v49 = vadd.f32 %v3526_v59, %v9798_v24 }
 0x2f2   : > { %v5890_v7 = vsel %vm5887_vm11, %v5889_v18, %v5885_v43 }
 0x2f3   : > { %v9676_v42 = vadd.f32 %v9610_v44, %v5305_v26  ;;  %v5979_v17 = vmul.f32 %v5890_v7, %v9644_v48  ;;  %v5171_v5 = vpop.f32.mrf.mxu0  ;;  %v3939_v36 = vadd.f32 %v3905_v4, %v3560_v49 }
 0x2f5   : > { %v7502_v55 = vpop.eup %7501  ;;  %v7117_v6 = vmul.f32 -1.442695, %v9676_v42  ;;  %v7311_v33 = vpack.c.bf16 %v5979_v17, %v5978_v50 }
 0x2f6   : > { %v5468_v1 = vadd.f32 1.0, %v7502_v55 }
 0x2f7   : > { %7503 = vpow2.f32 %v7117_v6  ;;  %7335 = vst [vmem:[%s8955_s25 + $0x68] sm:$0xff] %v7311_v33  }
 0x2f8   : > { %7505 = vrcp.f32 %v5468_v1  ;;  %v5903_v40 = vand.u32 2147483648, %v5468_v1  ;;  %vm5897_vm5 = vweird.f32 %v5468_v1  ;;  %v5901_v27 = vand.u32 2147483647, %v5468_v1 }
 0x2fa   : > { %v4649_v28 = vpop.f32.mrf.mxu3  ;;  %v5904_v32 = vor.u32 1.1754944e-38, %v5903_v40  ;;  %vm5902_vm14 = vcmp.eq.f32.partialorder %v5901_v27, 8.507059e+37 }
 0x2fb   : > { %v4684_v2 = vadd.f32 %v4649_v28, %v3938_v9  ;;  %v5173_v21 = vpop.f32.mrf.mxu0 }
 0x2fd   : > { %v5206_v19 = vadd.f32 %v5171_v5, %v4684_v2  ;;  %v7504_v48 = vpop.eup %7503 }
 0x2fe   : > { %v7506_v34 = vpop.eup %7505  ;;  %v5469_v57 = vadd.f32 1.0, %v7504_v48 }
 0x2ff   : > { %v5306_v31 = vmul.f32 %v9601_v39, %v5206_v19  ;;  %v5893_v30 = vmul.f32 %v7506_v34, %v5468_v1  ;;  %vm5898_vm4 = vweird.f32 %v7506_v34 }
 0x300   : > { %7507 = vrcp.f32 %v5469_v57  ;;  %vm5899_vm12 = vmor %vm5897_vm5, %vm5898_vm4  ;;  %v5918_v51 = vand.u32 2147483648, %v5469_v57  ;;  %v5916_v41 = vand.u32 2147483647, %v5469_v57  ;;  %vm5912_vm15 = vweird.f32 %v5469_v57 }
 0x301   : > { %v5894_v46 = vsub.f32 1.0, %v5893_v30  ;;  %v9686_v11 = vadd.f32 %v9610_v44, %v5306_v31 }
 0x302   : > { %v4651_v37 = vpop.f32.mrf.mxu3  ;;  %vm5917_vm1 = vcmp.eq.f32.partialorder %v5916_v41, 8.507059e+37 }
 0x303   : > { %v4685_v22 = vadd.f32 %v4651_v37, %v3939_v36  ;;  %v5895_v15 = vmul.f32 %v7506_v34, %v5894_v46  ;;  %v7118_v13 = vmul.f32 -1.442695, %v9686_v11 }
 0x305   : > { %v5207_v29 = vadd.f32 %v5173_v21, %v4685_v22  ;;  %7509 = vpow2.f32 %v7118_v13  ;;  %v5896_v62 = vadd.f32 %v7506_v34, %v5895_v15 }
 0x306   : > { %v7508_v60 = vpop.eup %7507 }
 0x307   : > { %v5307_v10 = vmul.f32 %v9601_v39, %v5207_v29  ;;  %v5908_v56 = vmul.f32 %v7508_v60, %v5469_v57  ;;  %v5900_v16 = vsel %vm5899_vm12, %v7506_v34, %v5896_v62  ;;  %vm5913_vm13 = vweird.f32 %v7508_v60 }
 0x308   : > { %v5905_v0 = vsel %vm5902_vm14, %v5904_v32, %v5900_v16  ;;  %vm5914_vm0 = vmor %vm5912_vm15, %vm5913_vm13 }
 0x309   : > { %v5343_v61 = vadd.f32 %v9610_v44, %v5307_v10  ;;  %v5909_v3 = vsub.f32 1.0, %v5908_v56  ;;  %v5919_v44 = vor.u32 1.1754944e-38, %v5918_v51  ;;  %v5980_v58 = vmul.f32 %v5905_v0, %v9663_v54 }
 0x30b   : > { %v7119_v25 = vmul.f32 -1.442695, %v5343_v61  ;;  %v7510_v12 = vpop.eup %7509  ;;  %v5910_v53 = vmul.f32 %v7508_v60, %v5909_v3 }
 0x30c   : > { %v5470_v23 = vadd.f32 1.0, %v7510_v12 }
 0x30d   : > { %7511 = vpow2.f32 %v7119_v25  ;;  %v5911_v39 = vadd.f32 %v7508_v60, %v5910_v53 }
 0x30e   : > { %7513 = vrcp.f32 %v5470_v23  ;;  %v5933_v14 = vand.u32 2147483648, %v5470_v23  ;;  %vm5927_vm3 = vweird.f32 %v5470_v23  ;;  %v5931_v45 = vand.u32 2147483647, %v5470_v23 }
 0x30f   : > { %v5915_v35 = vsel %vm5914_vm0, %v7508_v60, %v5911_v39 }
 0x310   : > { %v5920_v52 = vsel %vm5917_vm1, %v5919_v44, %v5915_v35  ;;  %v5934_v1 = vor.u32 1.1754944e-38, %v5933_v14  ;;  %vm5932_vm8 = vcmp.eq.f32.partialorder %v5931_v45, 8.507059e+37 }
 0x311   : > { %v5981_v8 = vmul.f32 %v5920_v52, %v9676_v42 }
 0x313   : > { %v7512_v63 = vpop.eup %7511  ;;  %v7316_v47 = vpack.c.bf16 %v5981_v8, %v5980_v58 }
 0x314   : > { %v5471_v20 = vadd.f32 1.0, %v7512_v63  ;;  %v7514_v18 = vpop.eup %7513 }
 0x315   : > { %7336 = vst [vmem:[%s8955_s25 + $0x70] sm:$0xff] %v7316_v47   ;;  %v5923_v26 = vmul.f32 %v7514_v18, %v5470_v23  ;;  %vm5928_vm2 = vweird.f32 %v7514_v18 }
 0x316   : > { %7515 = vrcp.f32 %v5471_v20  ;;  %vm5929_vm6 = vmor %vm5927_vm3, %vm5928_vm2  ;;  %v5948_v54 = vand.u32 2147483648, %v5471_v20  ;;  %v5946_v33 = vand.u32 2147483647, %v5471_v20  ;;  %vm5942_vm9 = vweird.f32 %v5471_v20 }
 0x317   : > { %v5924_v38 = vsub.f32 1.0, %v5923_v26 }
 0x318   : > { %v5949_v5 = vor.u32 1.1754944e-38, %v5948_v54  ;;  %vm5947_vm11 = vcmp.eq.f32.partialorder %v5946_v33, 8.507059e+37 }
 0x319   : > { %v5925_v43 = vmul.f32 %v7514_v18, %v5924_v38 }
 0x31b   : > { %v5926_v50 = vadd.f32 %v7514_v18, %v5925_v43 }
 0x31c   : > { %v7516_v7 = vpop.eup %7515 }
 0x31d   : > { %v5938_v17 = vmul.f32 %v7516_v7, %v5471_v20  ;;  %v5930_v42 = vsel %vm5929_vm6, %v7514_v18, %v5926_v50  ;;  %vm5943_vm7 = vweird.f32 %v7516_v7 }
 0x31e   : > { %v5935_v59 = vsel %vm5932_vm8, %v5934_v1, %v5930_v42  ;;  %vm5944_vm10 = vmor %vm5942_vm9, %vm5943_vm7 }
 0x31f   : > { %v5939_v55 = vsub.f32 1.0, %v5938_v17  ;;  %v5982_v4 = vmul.f32 %v5935_v59, %v9686_v11 }
 0x321   : > { %v5940_v6 = vmul.f32 %v7516_v7, %v5939_v55 }
 0x323   : > { %v5941_v9 = vadd.f32 %v7516_v7, %v5940_v6 }
 0x325   : > { %v5945_v28 = vsel %vm5944_vm10, %v7516_v7, %v5941_v9 }
 0x326   : > { %v5950_v2 = vsel %vm5947_vm11, %v5949_v5, %v5945_v28 }
 0x327   : > { %v5983_v19 = vmul.f32 %v5950_v2, %v5343_v61 }
 0x329   : > { %v7321_v24 = vpack.c.bf16 %v5983_v19, %v5982_v4 }
 0x32b   : > { %7337 = vst [vmem:[%s8955_s25 + $0x78] sm:$0xff] %v7321_v24  }
 0x32c PF: > { %s14_s17 = sadd.s32 1, %s7543_s17   ;;  %s9799_s15 = smov %s7539_s16 }
 0x32d   : > { %p11_p5 = scmp.ge.s32.totalorder %s14_s17, 4   ;;  %s9800_s16 = smov %s9802_s18 }
 0x32f   :  { %13 = sbr.rel (!%p11_p5) target bundleno = 2 (0x2), region = 85 }

</bundles_post_ra>
